<compile_context>
chip_gen: v5e
topology: v5e:2x2
jax: 0.10.0
libtpu: 0.0.40
codegen_flags: <defaults>
</compile_context>

<pallas_src>
import functools

import jax
import jax.numpy as jnp
from jax.experimental import pallas as pl
from jax.experimental.pallas import tpu as pltpu

_VMEM_LIMIT = 32 * 1024 * 1024


# ----------------------------------------------------------------- conv block --

def _conv_relu_pool_kernel(x_ref, w_ref, b_ref, o_ref, *, cout):
    """Fused Conv3x3(s=1,p=1) + bias + ReLU + MaxPool2x2 for one image.

    x_ref : (1, macc, 16*Cin) bf16  shift-concat space-to-depth rows (aligned read)
    w_ref : (16*Cin, 4*Cout)  bf16  shifts along K, pool corners along N
    b_ref : (1, Cout)         f32
    o_ref : (1, macc, Cout)   bf16  pooled output (col s_w-1 of each row group is
                                    over-compute, handled by the caller)
    """
    # One MXU push: K = 16*Cin, N = 4*Cout, f32 accumulation.
    acc = jnp.dot(x_ref[0], w_ref[...], preferred_element_type=jnp.float32)
    # Max over the 4 pool-corner lane groups (Cout-wide).
    c01 = jnp.maximum(acc[:, 0 * cout:1 * cout], acc[:, 1 * cout:2 * cout])
    c23 = jnp.maximum(acc[:, 2 * cout:3 * cout], acc[:, 3 * cout:4 * cout])
    pooled = jnp.maximum(c01, c23)
    # max_c relu(conv_c + b) == relu(max_c(conv_c) + b)  (ReLU monotone, shared bias)
    o_ref[0] = jnp.maximum(pooled + b_ref[...], 0.0).astype(o_ref.dtype)


def _stem_layout(x_nhwc):
    """zero-pad(1) + 2x2 space-to-depth + zero row-group + 4-shift concat along K.

    (N,H,W,C) -> (N, macc, 16*C) bf16 with macc = (H//2)*s_w, s_w = W//2 + 1.
    Row m = i*s_w + j, channel block s*(4C)+(2qy+qx)*C+c holds the padded-image
    2x2 block anchored at (2(i+ry), 2(j+rx)) for shift s = 2ry+rx.  Pure layout
    plumbing (4x duplication of a tens-of-KB array), done by XLA outside the kernel.
    """
    N, H, W, C = x_nhwc.shape
    assert H % 2 == 0 and W % 2 == 0
    s_h, s_w = H // 2 + 1, W // 2 + 1
    hp = H // 2
    xp = jnp.pad(x_nhwc, ((0, 0), (1, 1), (1, 1), (0, 0)))
    xs = xp.reshape(N, s_h, 2, s_w, 2, C).transpose(0, 1, 3, 2, 4, 5)
    xs = xs.reshape(N, s_h, s_w, 4 * C)
    xs = jnp.pad(xs, ((0, 0), (0, 1), (0, 0), (0, 0)))       # extra zero row-group
    xs = xs.reshape(N, (s_h + 1) * s_w, 4 * C)
    macc = hp * s_w
    shifts = [xs[:, ry * s_w + rx: ry * s_w + rx + macc, :]
              for ry in range(2) for rx in range(2)]
    return jnp.concatenate(shifts, axis=-1).astype(jnp.bfloat16), hp, s_w


def _pool_conv_weight(w_hwio):
    """(3,3,Cin,Cout) conv weight -> (16*Cin, 4*Cout) bf16.

    Row block s*(4*Cin) + (2qy+qx)*Cin + ci (shift s = 2ry+rx), column block
    (2py+px)*Cout + o, so that the conv value at pool corner (py,px) of pooled
    position m equals (xcat[m, :] @ Wq)[corner*Cout + o].
    """
    cin, cout = w_hwio.shape[2], w_hwio.shape[3]
    zero = jnp.zeros((cin, cout), w_hwio.dtype)
    shift_blocks = []
    for ry in range(2):
        for rx in range(2):
            corner_mats = []
            for py in range(2):
                for px in range(2):
                    taps = []
                    for qy in range(2):
                        for qx in range(2):
                            dy, dx = 2 * ry + qy - py, 2 * rx + qx - px
                            taps.append(w_hwio[dy, dx]
                                        if 0 <= dy <= 2 and 0 <= dx <= 2 else zero)
                    corner_mats.append(jnp.concatenate(taps, axis=0))   # (4*Cin, Cout)
            shift_blocks.append(jnp.concatenate(corner_mats, axis=1))   # (4*Cin, 4*Cout)
    return jnp.concatenate(shift_blocks, axis=0).astype(jnp.bfloat16)   # (16*Cin, 4*Cout)


def conv_relu_pool(x_nhwc, wq, b2d, cout):
    """Conv2d(k=3,s=1,p=1) + ReLU + MaxPool2d(2,2), NHWC, one fused kernel.

    Returns (N, hp, s_w, Cout) bf16; column s_w-1 of each row is over-compute
    (trimmed by the caller or neutralised by zero fc1 weight rows).
    """
    N, H, W, Cin = x_nhwc.shape
    xcat, hp, s_w = _stem_layout(x_nhwc)                 # (N, macc, 16*Cin) bf16
    macc = hp * s_w
    kernel = functools.partial(_conv_relu_pool_kernel, cout=cout)
    out = pl.pallas_call(
        kernel,
        out_shape=jax.ShapeDtypeStruct((N, macc, cout), jnp.bfloat16),
        grid_spec=pltpu.PrefetchScalarGridSpec(
            num_scalar_prefetch=0,
            grid=(N,),                                   # one image per program
            in_specs=[
                pl.BlockSpec((1, macc, 16 * Cin), lambda n: (n, 0, 0)),
                pl.BlockSpec((16 * Cin, 4 * cout), lambda n: (0, 0)),
                pl.BlockSpec((1, cout), lambda n: (0, 0)),
            ],
            out_specs=pl.BlockSpec((1, macc, cout), lambda n: (n, 0, 0)),
        ),
        compiler_params=pltpu.CompilerParams(
            dimension_semantics=("parallel",),           # feeds both v7x TCs
            vmem_limit_bytes=_VMEM_LIMIT),
    )(xcat, wq, b2d)
    return out.reshape(N, hp, s_w, cout)


# ------------------------------------------------------------------- FC head --

def _fc_head_kernel(x_ref, w1_ref, b1_ref, w2t_ref, b2_ref, o_ref):
    """fc1 + ReLU + [dropout=identity] + fc2 + sigmoid for one batch row."""
    h = jnp.dot(x_ref[0], w1_ref[...], preferred_element_type=jnp.float32)  # (1, 512)
    h = jnp.maximum(h + b1_ref[...], 0.0)
    # TODO(synk): nn.Dropout(0.5) is identity in eval mode; training-mode RNG dropout not emitted.
    # fc2 (512 -> 1) as a VPU/XLU lane reduction instead of a 1-lane-wide matmul.
    logit = jnp.sum(h * w2t_ref[...], axis=1, keepdims=True) + b2_ref[...]  # (1, 1)
    # Numerically stable sigmoid with an EXACT reciprocal so the result stays in [0, 1].
    e = jnp.exp(-jnp.abs(logit))
    o_ref[0] = jnp.where(logit >= 0.0, 1.0 / (1.0 + e), e / (1.0 + e)).astype(o_ref.dtype)


def fc_head(x, w1k, b1, w2t, b2):
    """sigmoid(relu(x @ w1 + b1) @ w2 + b2), x:(B,K) bf16 -> (B,1) f32.

    Single grid step per batch row ("parallel" axis); w1 (bf16) fits VMEM whole at
    this scale, so no K-tiling / accumulator scratch.  At real scale (K=524288)
    reinstate a K grid axis with tk ~ 4096-8192 and pl.Buffered(3) on w1.
    """
    B, K = x.shape
    H = w1k.shape[1]
    x3 = x.reshape(B, 1, K)
    out = pl.pallas_call(
        _fc_head_kernel,
        out_shape=jax.ShapeDtypeStruct((B, 1, 1), jnp.float32),
        grid_spec=pltpu.PrefetchScalarGridSpec(
            num_scalar_prefetch=0,
            grid=(B,),
            in_specs=[
                pl.BlockSpec((1, 1, K), lambda b: (b, 0, 0)),
                pl.BlockSpec((K, H), lambda b: (0, 0)),
                pl.BlockSpec((1, H), lambda b: (0, 0)),
                pl.BlockSpec((1, H), lambda b: (0, 0)),
                pl.BlockSpec((1, 1), lambda b: (0, 0)),
            ],
            out_specs=pl.BlockSpec((1, 1, 1), lambda b: (b, 0, 0)),
        ),
        compiler_params=pltpu.CompilerParams(
            dimension_semantics=("parallel",),
            vmem_limit_bytes=_VMEM_LIMIT),
    )(x3, w1k, b1, w2t, b2)
    return out.reshape(B, 1)


# --------------------------------------------------------------------- model --

def init_params(key, in_hw=32):
    """PyTorch-equivalent parameters (conv weights HWIO, fc1 rows in (c,h,w) order)."""
    ks = jax.random.split(key, 10)
    hw3 = in_hw // 8                                # spatial size after 3 pools
    fc1_in = 128 * hw3 * hw3
    def w(k, shape, fan_in):
        return jax.random.normal(k, shape, jnp.float32) * (1.0 / jnp.sqrt(fan_in))
    return {
        "w1": w(ks[0], (3, 3, 3, 32), 3 * 9),    "b1": w(ks[1], (32,), 3 * 9),
        "w2": w(ks[2], (3, 3, 32, 64), 32 * 9),  "b2": w(ks[3], (64,), 32 * 9),
        "w3": w(ks[4], (3, 3, 64, 128), 64 * 9), "b3": w(ks[5], (128,), 64 * 9),
        "wf1": w(ks[6], (fc1_in, 512), fc1_in),  "bf1": w(ks[7], (512,), fc1_in),
        "wf2": w(ks[8], (512, 1), 512),          "bf2": w(ks[9], (1,), 512),
    }


def prepare_params(params, in_hw=32):
    """One-time kernel-layout conversion of the PyTorch-style parameters.

    * conv weights -> merged shift/corner matmul matrices (bf16)
    * fc1 rows permuted from PyTorch (c,h,w) flatten order to our (h,w,c) order and
      zero-padded for the conv-3 garbage column, so conv3 -> fc is a pure reshape.
    """
    hw3 = in_hw // 8
    s_w3 = hw3 + 1
    c3 = 128
    wf1 = params["wf1"].reshape(c3, hw3, hw3, 512).transpose(1, 2, 0, 3)  # (h,w,c,512)
    wf1 = jnp.pad(wf1, ((0, 0), (0, s_w3 - hw3), (0, 0), (0, 0)))         # zero rows: garbage col
    wf1k = wf1.reshape(hw3 * s_w3 * c3, 512).astype(jnp.bfloat16)
    return {
        "wq1": _pool_conv_weight(params["w1"]),
        "wq2": _pool_conv_weight(params["w2"]),
        "wq3": _pool_conv_weight(params["w3"]),
        "b1": params["b1"].reshape(1, -1).astype(jnp.float32),
        "b2": params["b2"].reshape(1, -1).astype(jnp.float32),
        "b3": params["b3"].reshape(1, -1).astype(jnp.float32),
        "wf1k": wf1k,
        "bf1": params["bf1"].reshape(1, -1).astype(jnp.float32),
        "w2t": params["wf2"].reshape(1, -1).astype(jnp.float32),
        "bf2": params["bf2"].reshape(1, 1).astype(jnp.float32),
    }


def ai_image_detector_forward(p, x_nchw):
    x = jnp.transpose(x_nchw, (0, 2, 3, 1)).astype(jnp.bfloat16)     # NCHW -> NHWC bf16
    x = conv_relu_pool(x, p["wq1"], p["b1"], 32)[:, :, :-1, :]       # trim garbage col
    x = conv_relu_pool(x, p["wq2"], p["b2"], 64)[:, :, :-1, :]
    x = conv_relu_pool(x, p["wq3"], p["b3"], 128)                    # keep col: wf1k rows are zero
    N = x.shape[0]
    feats = x.reshape(N, -1)                                         # pure reshape, no transpose
    return fc_head(feats, p["wf1k"], p["bf1"], p["w2t"], p["bf2"])   # (N,1) sigmoid probs


# ---------------------------------------------------------------------- main --

if __name__ == "__main__":
    key = jax.random.PRNGKey(0)
    k_params, k_x = jax.random.split(key)
    N, H, W = 2, 32, 32
    raw_params = init_params(k_params, in_hw=H)
    params = prepare_params(raw_params, in_hw=H)                     # one-time, outside jit
    x = jax.random.normal(k_x, (N, 3, H, W), jnp.float32)            # NCHW, like PyTorch

    fwd = jax.jit(ai_image_detector_forward)
    out = jax.block_until_ready(fwd(params, x))
    assert out.shape == (N, 1)
    assert bool(jnp.all(jnp.isfinite(out)))
    assert bool(jnp.all((out >= 0.0) & (out <= 1.0)))
    print("KERNEL_OK")
</pallas_src>

<mosaic_0001>
module attributes {stable_mosaic.version = 11 : i64} {
  func.func @_conv_relu_pool_kernel(%arg0: i32, %arg1: memref<1x272x48xbf16, #tpu.memory_space<vmem>>, %arg2: memref<48x128xbf16, #tpu.memory_space<vmem>>, %arg3: memref<1x32xf32, #tpu.memory_space<vmem>>, %arg4: memref<1x272x32xbf16, #tpu.memory_space<vmem>>) attributes {dimension_semantics = [#tpu.dimension_semantics<parallel>], iteration_bounds = array<i64: 2>, scalar_prefetch = 0 : i64, scratch_operands = 0 : i64, tpu.core_type = #tpu.core_type<tc>, window_params = [{transform_indices = @transform_0, window_bounds = array<i64: 1, 272, 48>}, {pipeline_mode = #tpu.pipeline_mode<synchronous>, transform_indices = @transform_1, window_bounds = array<i64: 48, 128>}, {pipeline_mode = #tpu.pipeline_mode<synchronous>, transform_indices = @transform_2, window_bounds = array<i64: 1, 32>}, {transform_indices = @transform_3, window_bounds = array<i64: 1, 272, 32>}]} {
    %c0 = arith.constant 0 : index
    %c0_0 = arith.constant 0 : index
    %c0_1 = arith.constant 0 : index
    %0 = vector.load %arg1[%c0, %c0_0, %c0_1] : memref<1x272x48xbf16, #tpu.memory_space<vmem>>, vector<1x272x48xbf16>
    %1 = vector.shape_cast %0 : vector<1x272x48xbf16> to vector<272x48xbf16>
    %c0_2 = arith.constant 0 : index
    %c0_3 = arith.constant 0 : index
    %2 = vector.load %arg2[%c0_2, %c0_3] : memref<48x128xbf16, #tpu.memory_space<vmem>>, vector<48x128xbf16>
    %cst = arith.constant dense<0.000000e+00> : vector<272x128xf32>
    %3 = tpu.matmul %1, %2, %cst {dimension_numbers = #tpu.dot_dimension_numbers<[1], [0], [0], [1], [0, 0, 1, 1], [], []>} : vector<272x48xbf16>, vector<48x128xbf16>, vector<272x128xf32> -> vector<272x128xf32>
    %4 = vector.extract_strided_slice %3 {offsets = [0, 0], sizes = [272, 32], strides = [1, 1]} : vector<272x128xf32> to vector<272x32xf32>
    %5 = vector.extract_strided_slice %3 {offsets = [0, 32], sizes = [272, 32], strides = [1, 1]} : vector<272x128xf32> to vector<272x32xf32>
    %6 = arith.maximumf %4, %5 : vector<272x32xf32>
    %7 = vector.extract_strided_slice %3 {offsets = [0, 64], sizes = [272, 32], strides = [1, 1]} : vector<272x128xf32> to vector<272x32xf32>
    %8 = vector.extract_strided_slice %3 {offsets = [0, 96], sizes = [272, 32], strides = [1, 1]} : vector<272x128xf32> to vector<272x32xf32>
    %9 = arith.maximumf %7, %8 : vector<272x32xf32>
    %10 = arith.maximumf %6, %9 : vector<272x32xf32>
    %c0_4 = arith.constant 0 : index
    %c0_5 = arith.constant 0 : index
    %11 = vector.load %arg3[%c0_4, %c0_5] : memref<1x32xf32, #tpu.memory_space<vmem>>, vector<1x32xf32>
    %12 = vector.broadcast %11 : vector<1x32xf32> to vector<272x32xf32>
    %13 = arith.addf %10, %12 : vector<272x32xf32>
    %cst_6 = arith.constant 0.000000e+00 : f32
    %14 = vector.broadcast %cst_6 : f32 to vector<272x32xf32>
    %15 = arith.maximumf %13, %14 : vector<272x32xf32>
    %16 = arith.truncf %15 : vector<272x32xf32> to vector<272x32xbf16>
    %c0_7 = arith.constant 0 : index
    %c0_8 = arith.constant 0 : index
    %c0_9 = arith.constant 0 : index
    %17 = vector.load %arg4[%c0_7, %c0_8, %c0_9] : memref<1x272x32xbf16, #tpu.memory_space<vmem>>, vector<1x272x32xbf16>
    %18 = vector.shape_cast %17 : vector<1x272x32xbf16> to vector<272x32xbf16>
    %19 = vector.shape_cast %16 : vector<272x32xbf16> to vector<1x272x32xbf16>
    tpu.vector_store %arg4[%c0_7, %c0_8, %c0_9], %19 {strides = array<i32>} : memref<1x272x32xbf16, #tpu.memory_space<vmem>>, vector<1x272x32xbf16>,
    return
  }
  func.func @transform_0(%arg0: i32) -> (i32, i32, i32) {
    %c0_i32 = arith.constant 0 : i32
    %c0_i32_0 = arith.constant 0 : i32
    %c0_i32_1 = arith.constant 0 : i32
    return %arg0, %c0_i32, %c0_i32_0 : i32, i32, i32
  }
  func.func @transform_1(%arg0: i32) -> (i32, i32) {
    %c0_i32 = arith.constant 0 : i32
    %c0_i32_0 = arith.constant 0 : i32
    %c0_i32_1 = arith.constant 0 : i32
    return %c0_i32, %c0_i32_0 : i32, i32
  }
  func.func @transform_2(%arg0: i32) -> (i32, i32) {
    %c0_i32 = arith.constant 0 : i32
    %c0_i32_0 = arith.constant 0 : i32
    %c0_i32_1 = arith.constant 0 : i32
    return %c0_i32, %c0_i32_0 : i32, i32
  }
  func.func @transform_3(%arg0: i32) -> (i32, i32, i32) {
    %c0_i32 = arith.constant 0 : i32
    %c0_i32_0 = arith.constant 0 : i32
    %c0_i32_1 = arith.constant 0 : i32
    return %arg0, %c0_i32, %c0_i32_0 : i32, i32, i32
  }
}

module attributes {stable_mosaic.version = 11 : i64} {
  func.func @_conv_relu_pool_kernel(%arg0: i32, %arg1: memref<1x72x512xbf16, #tpu.memory_space<vmem>>, %arg2: memref<512x256xbf16, #tpu.memory_space<vmem>>, %arg3: memref<1x64xf32, #tpu.memory_space<vmem>>, %arg4: memref<1x72x64xbf16, #tpu.memory_space<vmem>>) attributes {dimension_semantics = [#tpu.dimension_semantics<parallel>], iteration_bounds = array<i64: 2>, scalar_prefetch = 0 : i64, scratch_operands = 0 : i64, tpu.core_type = #tpu.core_type<tc>, window_params = [{transform_indices = @transform_0, window_bounds = array<i64: 1, 72, 512>}, {pipeline_mode = #tpu.pipeline_mode<synchronous>, transform_indices = @transform_1, window_bounds = array<i64: 512, 256>}, {pipeline_mode = #tpu.pipeline_mode<synchronous>, transform_indices = @transform_2, window_bounds = array<i64: 1, 64>}, {transform_indices = @transform_3, window_bounds = array<i64: 1, 72, 64>}]} {
    %c0 = arith.constant 0 : index
    %c0_0 = arith.constant 0 : index
    %c0_1 = arith.constant 0 : index
    %0 = vector.load %arg1[%c0, %c0_0, %c0_1] : memref<1x72x512xbf16, #tpu.memory_space<vmem>>, vector<1x72x512xbf16>
    %1 = vector.shape_cast %0 : vector<1x72x512xbf16> to vector<72x512xbf16>
    %c0_2 = arith.constant 0 : index
    %c0_3 = arith.constant 0 : index
    %2 = vector.load %arg2[%c0_2, %c0_3] : memref<512x256xbf16, #tpu.memory_space<vmem>>, vector<512x256xbf16>
    %cst = arith.constant dense<0.000000e+00> : vector<72x256xf32>
    %3 = tpu.matmul %1, %2, %cst {dimension_numbers = #tpu.dot_dimension_numbers<[1], [0], [0], [1], [0, 0, 1, 1], [], []>} : vector<72x512xbf16>, vector<512x256xbf16>, vector<72x256xf32> -> vector<72x256xf32>
    %4 = vector.extract_strided_slice %3 {offsets = [0, 0], sizes = [72, 64], strides = [1, 1]} : vector<72x256xf32> to vector<72x64xf32>
    %5 = vector.extract_strided_slice %3 {offsets = [0, 64], sizes = [72, 64], strides = [1, 1]} : vector<72x256xf32> to vector<72x64xf32>
    %6 = arith.maximumf %4, %5 : vector<72x64xf32>
    %7 = vector.extract_strided_slice %3 {offsets = [0, 128], sizes = [72, 64], strides = [1, 1]} : vector<72x256xf32> to vector<72x64xf32>
    %8 = vector.extract_strided_slice %3 {offsets = [0, 192], sizes = [72, 64], strides = [1, 1]} : vector<72x256xf32> to vector<72x64xf32>
    %9 = arith.maximumf %7, %8 : vector<72x64xf32>
    %10 = arith.maximumf %6, %9 : vector<72x64xf32>
    %c0_4 = arith.constant 0 : index
    %c0_5 = arith.constant 0 : index
    %11 = vector.load %arg3[%c0_4, %c0_5] : memref<1x64xf32, #tpu.memory_space<vmem>>, vector<1x64xf32>
    %12 = vector.broadcast %11 : vector<1x64xf32> to vector<72x64xf32>
    %13 = arith.addf %10, %12 : vector<72x64xf32>
    %cst_6 = arith.constant 0.000000e+00 : f32
    %14 = vector.broadcast %cst_6 : f32 to vector<72x64xf32>
    %15 = arith.maximumf %13, %14 : vector<72x64xf32>
    %16 = arith.truncf %15 : vector<72x64xf32> to vector<72x64xbf16>
    %c0_7 = arith.constant 0 : index
    %c0_8 = arith.constant 0 : index
    %c0_9 = arith.constant 0 : index
    %17 = vector.load %arg4[%c0_7, %c0_8, %c0_9] : memref<1x72x64xbf16, #tpu.memory_space<vmem>>, vector<1x72x64xbf16>
    %18 = vector.shape_cast %17 : vector<1x72x64xbf16> to vector<72x64xbf16>
    %19 = vector.shape_cast %16 : vector<72x64xbf16> to vector<1x72x64xbf16>
    tpu.vector_store %arg4[%c0_7, %c0_8, %c0_9], %19 {strides = array<i32>} : memref<1x72x64xbf16, #tpu.memory_space<vmem>>, vector<1x72x64xbf16>,
    return
  }
  func.func @transform_0(%arg0: i32) -> (i32, i32, i32) {
    %c0_i32 = arith.constant 0 : i32
    %c0_i32_0 = arith.constant 0 : i32
    %c0_i32_1 = arith.constant 0 : i32
    return %arg0, %c0_i32, %c0_i32_0 : i32, i32, i32
  }
  func.func @transform_1(%arg0: i32) -> (i32, i32) {
    %c0_i32 = arith.constant 0 : i32
    %c0_i32_0 = arith.constant 0 : i32
    %c0_i32_1 = arith.constant 0 : i32
    return %c0_i32, %c0_i32_0 : i32, i32
  }
  func.func @transform_2(%arg0: i32) -> (i32, i32) {
    %c0_i32 = arith.constant 0 : i32
    %c0_i32_0 = arith.constant 0 : i32
    %c0_i32_1 = arith.constant 0 : i32
    return %c0_i32, %c0_i32_0 : i32, i32
  }
  func.func @transform_3(%arg0: i32) -> (i32, i32, i32) {
    %c0_i32 = arith.constant 0 : i32
    %c0_i32_0 = arith.constant 0 : i32
    %c0_i32_1 = arith.constant 0 : i32
    return %arg0, %c0_i32, %c0_i32_0 : i32, i32, i32
  }
}

module attributes {stable_mosaic.version = 11 : i64} {
  func.func @_fc_head_kernel(%arg0: i32, %arg1: memref<1x1x2560xbf16, #tpu.memory_space<vmem>>, %arg2: memref<2560x512xbf16, #tpu.memory_space<vmem>>, %arg3: memref<1x512xf32, #tpu.memory_space<vmem>>, %arg4: memref<1x512xf32, #tpu.memory_space<vmem>>, %arg5: memref<1x1xf32, #tpu.memory_space<vmem>>, %arg6: memref<1x1x1xf32, #tpu.memory_space<vmem>>) attributes {dimension_semantics = [#tpu.dimension_semantics<parallel>], iteration_bounds = array<i64: 2>, scalar_prefetch = 0 : i64, scratch_operands = 0 : i64, tpu.core_type = #tpu.core_type<tc>, window_params = [{transform_indices = @transform_0, window_bounds = array<i64: 1, 1, 2560>}, {pipeline_mode = #tpu.pipeline_mode<synchronous>, transform_indices = @transform_1, window_bounds = array<i64: 2560, 512>}, {pipeline_mode = #tpu.pipeline_mode<synchronous>, transform_indices = @transform_2, window_bounds = array<i64: 1, 512>}, {pipeline_mode = #tpu.pipeline_mode<synchronous>, transform_indices = @transform_3, window_bounds = array<i64: 1, 512>}, {pipeline_mode = #tpu.pipeline_mode<synchronous>, transform_indices = @transform_4, window_bounds = array<i64: 1, 1>}, {transform_indices = @transform_5, window_bounds = array<i64: 1, 1, 1>}]} {
    %c0 = arith.constant 0 : index
    %c0_0 = arith.constant 0 : index
    %c0_1 = arith.constant 0 : index
    %0 = vector.load %arg1[%c0, %c0_0, %c0_1] : memref<1x1x2560xbf16, #tpu.memory_space<vmem>>, vector<1x1x2560xbf16>
    %1 = vector.shape_cast %0 : vector<1x1x2560xbf16> to vector<1x2560xbf16>
    %c0_2 = arith.constant 0 : index
    %c0_3 = arith.constant 0 : index
    %2 = vector.load %arg2[%c0_2, %c0_3] : memref<2560x512xbf16, #tpu.memory_space<vmem>>, vector<2560x512xbf16>
    %cst = arith.constant dense<0.000000e+00> : vector<1x512xf32>
    %3 = tpu.matmul %1, %2, %cst {dimension_numbers = #tpu.dot_dimension_numbers<[1], [0], [0], [1], [0, 0, 1, 1], [], []>} : vector<1x2560xbf16>, vector<2560x512xbf16>, vector<1x512xf32> -> vector<1x512xf32>
    %c0_4 = arith.constant 0 : index
    %c0_5 = arith.constant 0 : index
    %4 = vector.load %arg3[%c0_4, %c0_5] : memref<1x512xf32, #tpu.memory_space<vmem>>, vector<1x512xf32>
    %5 = arith.addf %3, %4 : vector<1x512xf32>
    %cst_6 = arith.constant 0.000000e+00 : f32
    %6 = vector.broadcast %cst_6 : f32 to vector<1x512xf32>
    %7 = arith.maximumf %5, %6 : vector<1x512xf32>
    %c0_7 = arith.constant 0 : index
    %c0_8 = arith.constant 0 : index
    %8 = vector.load %arg4[%c0_7, %c0_8] : memref<1x512xf32, #tpu.memory_space<vmem>>, vector<1x512xf32>
    %9 = arith.mulf %7, %8 : vector<1x512xf32>
    %cst_9 = arith.constant dense<0.000000e+00> : vector<1xf32>
    %10 = vector.multi_reduction <add>, %9, %cst_9 [1] : vector<1x512xf32> to vector<1xf32>
    %11 = vector.shape_cast %10 : vector<1xf32> to vector<1x1xf32>
    %c0_10 = arith.constant 0 : index
    %c0_11 = arith.constant 0 : index
    %12 = vector.load %arg5[%c0_10, %c0_11] : memref<1x1xf32, #tpu.memory_space<vmem>>, vector<1x1xf32>
    %13 = arith.addf %11, %12 : vector<1x1xf32>
    %14 = math.absf %13 : vector<1x1xf32>
    %cst_12 = arith.constant 0.000000e+00 : f32
    %15 = vector.broadcast %cst_12 : f32 to vector<1x1xf32>
    %16 = arith.subf %15, %14 : vector<1x1xf32>
    %17 = math.exp %16 : vector<1x1xf32>
    %cst_13 = arith.constant 0.000000e+00 : f32
    %18 = vector.broadcast %cst_13 : f32 to vector<1x1xf32>
    %19 = arith.cmpf oge, %13, %18 : vector<1x1xf32>
    %cst_14 = arith.constant 1.000000e+00 : f32
    %20 = vector.broadcast %cst_14 : f32 to vector<1x1xf32>
    %21 = arith.addf %20, %17 : vector<1x1xf32>
    %cst_15 = arith.constant 1.000000e+00 : f32
    %22 = vector.broadcast %cst_15 : f32 to vector<1x1xf32>
    %23 = arith.divf %22, %21 : vector<1x1xf32>
    %cst_16 = arith.constant 1.000000e+00 : f32
    %24 = vector.broadcast %cst_16 : f32 to vector<1x1xf32>
    %25 = arith.addf %24, %17 : vector<1x1xf32>
    %26 = arith.divf %17, %25 : vector<1x1xf32>
    %27 = arith.select %19, %23, %26 : vector<1x1xi1>, vector<1x1xf32>
    %c0_17 = arith.constant 0 : index
    %c0_18 = arith.constant 0 : index
    %c0_19 = arith.constant 0 : index
    %28 = vector.load %arg6[%c0_17, %c0_18, %c0_19] : memref<1x1x1xf32, #tpu.memory_space<vmem>>, vector<1x1x1xf32>
    %29 = vector.shape_cast %28 : vector<1x1x1xf32> to vector<1x1xf32>
    %30 = vector.shape_cast %27 : vector<1x1xf32> to vector<1x1x1xf32>
    tpu.vector_store %arg6[%c0_17, %c0_18, %c0_19], %30 {strides = array<i32>} : memref<1x1x1xf32, #tpu.memory_space<vmem>>, vector<1x1x1xf32>,
    return
  }
  func.func @transform_0(%arg0: i32) -> (i32, i32, i32) {
    %c0_i32 = arith.constant 0 : i32
    %c0_i32_0 = arith.constant 0 : i32
    %c0_i32_1 = arith.constant 0 : i32
    return %arg0, %c0_i32, %c0_i32_0 : i32, i32, i32
  }
  func.func @transform_1(%arg0: i32) -> (i32, i32) {
    %c0_i32 = arith.constant 0 : i32
    %c0_i32_0 = arith.constant 0 : i32
    %c0_i32_1 = arith.constant 0 : i32
    return %c0_i32, %c0_i32_0 : i32, i32
  }
  func.func @transform_2(%arg0: i32) -> (i32, i32) {
    %c0_i32 = arith.constant 0 : i32
    %c0_i32_0 = arith.constant 0 : i32
    %c0_i32_1 = arith.constant 0 : i32
    return %c0_i32, %c0_i32_0 : i32, i32
  }
  func.func @transform_3(%arg0: i32) -> (i32, i32) {
    %c0_i32 = arith.constant 0 : i32
    %c0_i32_0 = arith.constant 0 : i32
    %c0_i32_1 = arith.constant 0 : i32
    return %c0_i32, %c0_i32_0 : i32, i32
  }
  func.func @transform_4(%arg0: i32) -> (i32, i32) {
    %c0_i32 = arith.constant 0 : i32
    %c0_i32_0 = arith.constant 0 : i32
    %c0_i32_1 = arith.constant 0 : i32
    return %c0_i32, %c0_i32_0 : i32, i32
  }
  func.func @transform_5(%arg0: i32) -> (i32, i32, i32) {
    %c0_i32 = arith.constant 0 : i32
    %c0_i32_0 = arith.constant 0 : i32
    %c0_i32_1 = arith.constant 0 : i32
    return %arg0, %c0_i32, %c0_i32_0 : i32, i32, i32
  }
}

module attributes {stable_mosaic.version = 11 : i64} {
  func.func @_conv_relu_pool_kernel(%arg0: i32, %arg1: memref<1x20x1024xbf16, #tpu.memory_space<vmem>>, %arg2: memref<1024x512xbf16, #tpu.memory_space<vmem>>, %arg3: memref<1x128xf32, #tpu.memory_space<vmem>>, %arg4: memref<1x20x128xbf16, #tpu.memory_space<vmem>>) attributes {dimension_semantics = [#tpu.dimension_semantics<parallel>], iteration_bounds = array<i64: 2>, scalar_prefetch = 0 : i64, scratch_operands = 0 : i64, tpu.core_type = #tpu.core_type<tc>, window_params = [{transform_indices = @transform_0, window_bounds = array<i64: 1, 20, 1024>}, {pipeline_mode = #tpu.pipeline_mode<synchronous>, transform_indices = @transform_1, window_bounds = array<i64: 1024, 512>}, {pipeline_mode = #tpu.pipeline_mode<synchronous>, transform_indices = @transform_2, window_bounds = array<i64: 1, 128>}, {transform_indices = @transform_3, window_bounds = array<i64: 1, 20, 128>}]} {
    %c0 = arith.constant 0 : index
    %c0_0 = arith.constant 0 : index
    %c0_1 = arith.constant 0 : index
    %0 = vector.load %arg1[%c0, %c0_0, %c0_1] : memref<1x20x1024xbf16, #tpu.memory_space<vmem>>, vector<1x20x1024xbf16>
    %1 = vector.shape_cast %0 : vector<1x20x1024xbf16> to vector<20x1024xbf16>
    %c0_2 = arith.constant 0 : index
    %c0_3 = arith.constant 0 : index
    %2 = vector.load %arg2[%c0_2, %c0_3] : memref<1024x512xbf16, #tpu.memory_space<vmem>>, vector<1024x512xbf16>
    %cst = arith.constant dense<0.000000e+00> : vector<20x512xf32>
    %3 = tpu.matmul %1, %2, %cst {dimension_numbers = #tpu.dot_dimension_numbers<[1], [0], [0], [1], [0, 0, 1, 1], [], []>} : vector<20x1024xbf16>, vector<1024x512xbf16>, vector<20x512xf32> -> vector<20x512xf32>
    %4 = vector.extract_strided_slice %3 {offsets = [0, 0], sizes = [20, 128], strides = [1, 1]} : vector<20x512xf32> to vector<20x128xf32>
    %5 = vector.extract_strided_slice %3 {offsets = [0, 128], sizes = [20, 128], strides = [1, 1]} : vector<20x512xf32> to vector<20x128xf32>
    %6 = arith.maximumf %4, %5 : vector<20x128xf32>
    %7 = vector.extract_strided_slice %3 {offsets = [0, 256], sizes = [20, 128], strides = [1, 1]} : vector<20x512xf32> to vector<20x128xf32>
    %8 = vector.extract_strided_slice %3 {offsets = [0, 384], sizes = [20, 128], strides = [1, 1]} : vector<20x512xf32> to vector<20x128xf32>
    %9 = arith.maximumf %7, %8 : vector<20x128xf32>
    %10 = arith.maximumf %6, %9 : vector<20x128xf32>
    %c0_4 = arith.constant 0 : index
    %c0_5 = arith.constant 0 : index
    %11 = vector.load %arg3[%c0_4, %c0_5] : memref<1x128xf32, #tpu.memory_space<vmem>>, vector<1x128xf32>
    %12 = vector.broadcast %11 : vector<1x128xf32> to vector<20x128xf32>
    %13 = arith.addf %10, %12 : vector<20x128xf32>
    %cst_6 = arith.constant 0.000000e+00 : f32
    %14 = vector.broadcast %cst_6 : f32 to vector<20x128xf32>
    %15 = arith.maximumf %13, %14 : vector<20x128xf32>
    %16 = arith.truncf %15 : vector<20x128xf32> to vector<20x128xbf16>
    %c0_7 = arith.constant 0 : index
    %c0_8 = arith.constant 0 : index
    %c0_9 = arith.constant 0 : index
    %17 = vector.load %arg4[%c0_7, %c0_8, %c0_9] : memref<1x20x128xbf16, #tpu.memory_space<vmem>>, vector<1x20x128xbf16>
    %18 = vector.shape_cast %17 : vector<1x20x128xbf16> to vector<20x128xbf16>
    %19 = vector.shape_cast %16 : vector<20x128xbf16> to vector<1x20x128xbf16>
    tpu.vector_store %arg4[%c0_7, %c0_8, %c0_9], %19 {strides = array<i32>} : memref<1x20x128xbf16, #tpu.memory_space<vmem>>, vector<1x20x128xbf16>,
    return
  }
  func.func @transform_0(%arg0: i32) -> (i32, i32, i32) {
    %c0_i32 = arith.constant 0 : i32
    %c0_i32_0 = arith.constant 0 : i32
    %c0_i32_1 = arith.constant 0 : i32
    return %arg0, %c0_i32, %c0_i32_0 : i32, i32, i32
  }
  func.func @transform_1(%arg0: i32) -> (i32, i32) {
    %c0_i32 = arith.constant 0 : i32
    %c0_i32_0 = arith.constant 0 : i32
    %c0_i32_1 = arith.constant 0 : i32
    return %c0_i32, %c0_i32_0 : i32, i32
  }
  func.func @transform_2(%arg0: i32) -> (i32, i32) {
    %c0_i32 = arith.constant 0 : i32
    %c0_i32_0 = arith.constant 0 : i32
    %c0_i32_1 = arith.constant 0 : i32
    return %c0_i32, %c0_i32_0 : i32, i32
  }
  func.func @transform_3(%arg0: i32) -> (i32, i32, i32) {
    %c0_i32 = arith.constant 0 : i32
    %c0_i32_0 = arith.constant 0 : i32
    %c0_i32_1 = arith.constant 0 : i32
    return %arg0, %c0_i32, %c0_i32_0 : i32, i32, i32
  }
}

</mosaic_0001>

<bundles_post_ra>
// kernel: ai_image_detector_forward.4
= control target key start
LH: loop header
LB: loop body
LE: loop exit
PB: predicated region body
PF: predicated region fallthrough
CT: control target
= control target key end

     0   :  { %s1174_s12 = smov 0   ;;  %s1691_s0 = inlined_call_operand.vmem [shape: bf16[2,272,48], index: 0, kind: input, shape index: {}]   ;;  %s1692_s1 = inlined_call_operand.vmem [shape: bf16[48,128], index: 1, kind: input, shape index: {}]   ;;  %s1693_s2 = inlined_call_operand.vmem [shape: f32[1,32], index: 2, kind: input, shape index: {}]   ;;  %s1694_s3 = inlined_call_operand.vmem [shape: bf16[2,272,32], index: 3, kind: output, shape index: {}]  }
   0x1 LB: > { %s997_s13 = sadd.s32 4294967295, %s1150_s12   ;;  %p1001_p0 = scmp.ge.s32.totalorder %s1150_s12, 1  ;;  %s1150_s12 = sphi %s1174_s12, %s13_s12  }
   0x2   : > { %p137_p1 = scmp.lt.s32.totalorder %s1150_s12, 3 }
   0x4   : > { %p138_p2 = pnand %p1001_p0, %p137_p1 }
   0x5   : > { %p161_p3 = scmp.lt.s32.totalorder (!%p138_p2), %s997_s13, 1  ;;  %s1152_s24 = smov (!%p138_p2), 96  }
   0x6   : > { %141 = sbr.rel (%p138_p2) target bundleno = 486 (0x1e6), region = 32  ;;  %s1153_s25 = smov (!%p138_p2), 64  }
   0xb   : > { %v1122_v0 = vld [vmem:[%s1692_s1 + $0x10] sm:$0xff]  ;;  %v1121_v1 = vld [vmem:[%s1692_s1 + $0x8] sm:$0xff]  ;;  %s1696_s13 = smov (!%p161_p3, %s997_s13), 1  ;;  %v1120_v2 = vld [vmem:[%s1692_s1] sm:$0xff]  ;;  %vm315_vm0 = vcmask 392192   ;;  %vm907_vm1 = vcmask 257024  }
   0xc   : > { %372 = vmatpush.bf16.msra.mxu0 %v1122_v0  ;;  %1123 = vmatpush.bf16.msra.mxu1 %v1122_v0  ;;  %s1132_s18 = smul.u32 136, %s1696_s13 }
   0xd   : > { %1124 = vmatpush.bf16.msra.mxu2 %v1122_v0  ;;  %1125 = vmatpush.bf16.msra.mxu3 %v1122_v0 }
   0xe   : > { %s1199_s23 = scalar_lea.vmem %s1691_s0, %s1132_s18  ;;  %s1553_s30 = scalar_lea.vmem %s1694_s3, %s1132_s18 }
   0xf   : > { %v1103_v3 = vld [vmem:[%s1199_s23] sm:$0xff]  ;;  %v1112_v5 = vld [vmem:[%s1199_s23 + $0x48] sm:$0xff]  ;;  %v1117_v6 = vld [vmem:[%s1199_s23 + $0x70] sm:$0xff] }
  0x10   : > { %373 = vmatpush.bf16.msra.mxu0 %v1121_v1  ;;  %1126 = vmatpush.bf16.msra.mxu1 %v1121_v1  ;;  %v1107_v4 = vld [vmem:[%s1199_s23 + $0x20] sm:$0xff]  ;;  %v1104_v7 = vld [vmem:[%s1199_s23 + $0x8] sm:$0xff]  ;;  %v1113_v9 = vld [vmem:[%s1199_s23 + $0x50] sm:$0xff] }
  0x11   : > { %1127 = vmatpush.bf16.msra.mxu2 %v1121_v1  ;;  %1128 = vmatpush.bf16.msra.mxu3 %v1121_v1  ;;  %v1108_v8 = vld [vmem:[%s1199_s23 + $0x28] sm:$0xff]  ;;  %v1118_v10 = vld [vmem:[%s1199_s23 + $0x78] sm:$0xff]  ;;  %v1105_v11 = vld [vmem:[%s1199_s23 + $0x10] sm:$0xff] }
  0x12   : > { %v1109_v12 = vld [vmem:[%s1199_s23 + $0x30] sm:$0xff]  ;;  %v1114_v13 = vld [vmem:[%s1199_s23 + $0x58] sm:$0xff]  ;;  %v1119_v14 = vld [vmem:[%s1199_s23 + $0x80] sm:$0xff] }
  0x13   : > { %v1106_v15 = vld [vmem:[%s1199_s23 + $0x18] sm:$0xff]  ;;  %v1115_v17 = vld [vmem:[%s1199_s23 + $0x60] sm:$0xff]  ;;  %v1116_v19 = vld [vmem:[%s1199_s23 + $0x68] sm:$0xff] }
  0x14   : > { %374 = vmatpush.bf16.msra.mxu0 %v1120_v2  ;;  %1129 = vmatpush.bf16.msra.mxu1 %v1120_v2  ;;  %v1110_v16 = vld [vmem:[%s1199_s23 + $0x38] sm:$0xff]  ;;  %v1111_v18 = vld [vmem:[%s1199_s23 + $0x40] sm:$0xff] }
  0x15   : > { %1130 = vmatpush.bf16.msra.mxu2 %v1120_v2  ;;  %1131 = vmatpush.bf16.msra.mxu3 %v1120_v2 }
  0x17   : > { %1084 = vmatmul.msk.bf16.vlgmr.msra.gmra.mxu0 %vm315_vm0, %v1103_v3  ;;  %1088 = vmatmul.msk.bf16.vlgmr.msra.gmra.mxu1 %vm315_vm0, %v1107_v4 }
  0x18   : > { %1093 = vmatmul.msk.bf16.vlgmr.msra.gmra.mxu2 %vm315_vm0, %v1112_v5  ;;  %1098 = vmatmul.msk.bf16.vlgmr.msra.gmra.mxu3 %vm315_vm0, %v1117_v6 }
  0x27   : > { %1085 = vmatmul.msk.bf16.gmra.mxu0 %vm315_vm0, %v1104_v7  ;;  %1089 = vmatmul.msk.bf16.gmra.mxu1 %vm315_vm0, %v1108_v8 }
  0x28   : > { %1094 = vmatmul.msk.bf16.gmra.mxu2 %vm315_vm0, %v1113_v9  ;;  %1099 = vmatmul.msk.bf16.gmra.mxu3 %vm315_vm0, %v1118_v10 }
  0x37   : > { %1086 = vmatmul.msk.bf16.gmra.mxu0 %vm315_vm0, %v1105_v11  ;;  %1090 = vmatmul.msk.bf16.gmra.mxu1 %vm315_vm0, %v1109_v12 }
  0x38   : > { %1095 = vmatmul.msk.bf16.gmra.mxu2 %vm315_vm0, %v1114_v13  ;;  %1100 = vmatmul.msk.bf16.gmra.mxu3 %vm315_vm0, %v1119_v14 }
  0x47   : > { %1087 = vmatmul.msk.bf16.gmra.mxu0 %vm315_vm0, %v1106_v15  ;;  %1091 = vmatmul.msk.bf16.gmra.mxu1 %vm315_vm0, %v1110_v16 }
  0x48   : > { %1096 = vmatmul.msk.bf16.gmra.mxu2 %vm315_vm0, %v1115_v17 }
  0x57   : > { %1092 = vmatmul.msk.bf16.gmra.mxu1 %vm315_vm0, %v1111_v18 }
  0x58   : > { %1097 = vmatmul.msk.bf16.gmra.mxu2 %vm315_vm0, %v1116_v19 }
  0x94   : > { %v1235_v20 = vpop.f32.mrf.mxu0  ;;  %v1237_v21 = vpop.f32.mrf.mxu1 }
  0x95   : > { %511 = vrot.lane.b32.xlu2 %v1237_v21, %s1152_s24  ;;  %495 = vrot.lane.b32.xlu0 %v1235_v20, %s1152_s24 }
  0x9b   : > { %v1243_v22 = vpop.f32.mrf.mxu2  ;;  %v1245_v23 = vpop.f32.mrf.mxu3 }
  0x9c   : > { %551 = vrot.lane.b32.xlu1 %v1245_v23, %s1152_s24  ;;  %v1249_v24 = vpop.f32.mrf.mxu0  ;;  %v1253_v25 = vpop.f32.mrf.mxu1 }
  0x9d   : > { %531 = vrot.lane.b32.xlu0 %v1243_v22, %s1152_s24 }
  0xa3   : > { %v1255_v26 = vpop.f32.mrf.mxu2  ;;  %v448_v27 = vpop.f32.mrf.mxu3 }
  0xa4   : > { %533 = vrot.lane.b32.xlu1 %v1255_v26, %s1152_s24  ;;  %553 = vrot.lane.b32.xlu2 %v448_v27, %s1152_s24  ;;  %v1262_v28 = vpop.f32.mrf.mxu0  ;;  %v1264_v29 = vpop.f32.mrf.mxu1 }
  0xa5   : > { %497 = vrot.lane.b32.xlu0 %v1249_v24, %s1152_s24 }
  0xab   : > { %v1266_v30 = vpop.f32.mrf.mxu2  ;;  %v1274_v31 = vpop.f32.mrf.mxu3 }
  0xac   : > { %535 = vrot.lane.b32.xlu2 %v1266_v30, %s1152_s24  ;;  %499 = vrot.lane.b32.xlu1 %v1262_v28, %s1152_s24  ;;  %v1276_v32 = vpop.f32.mrf.mxu0  ;;  %v1278_v33 = vpop.f32.mrf.mxu1 }
  0xad   : > { %513 = vrot.lane.b32.xlu0 %v1253_v25, %s1152_s24 }
  0xb3   : > { %v1280_v34 = vpop.f32.mrf.mxu2  ;;  %v1288_v35 = vpop.f32.mrf.mxu3 }
  0xb4   : > { %517 = vrot.lane.b32.xlu2 %v1278_v33, %s1152_s24  ;;  %515 = vrot.lane.b32.xlu1 %v1264_v29, %s1152_s24  ;;  %v1290_v36 = vpop.f32.mrf.mxu0  ;;  %v1292_v37 = vpop.f32.mrf.mxu1 }
  0xb5   : > { %555 = vrot.lane.b32.xlu0 %v1274_v31, %s1152_s24 }
  0xbb   : > { %v1294_v38 = vpop.f32.mrf.mxu2  ;;  %v1302_v39 = vpop.f32.mrf.mxu3 }
  0xbc   : > { %501 = vrot.lane.b32.xlu1 %v1276_v32, %s1152_s24  ;;  %503 = vrot.lane.b32.xlu2 %v1290_v36, %s1152_s24  ;;  %v1304_v40 = vpop.f32.mrf.mxu1  ;;  %v1314_v42 = vpop.f32.mrf.mxu0 }
  0xbd   : > { %537 = vrot.lane.b32.xlu0 %v1280_v34, %s1152_s24 }
  0xc3   : > { %v1310_v41 = vpop.f32.mrf.mxu2  ;;  %v1318_v44 = vpop.f32.mrf.mxu3 }
  0xc4   : > { %557 = vrot.lane.b32.xlu1 %v1288_v35, %s1152_s24  ;;  %559 = vrot.lane.b32.xlu2 %v1302_v39, %s1152_s24  ;;  %v1316_v43 = vpop.f32.mrf.mxu1  ;;  %v1328_v46 = vpop.f32.mrf.mxu0 }
  0xc5   : > { %519 = vrot.lane.b32.xlu0 %v1292_v37, %s1152_s24 }
  0xcb   : > { %v1326_v45 = vpop.f32.mrf.mxu2 }
  0xcc   : > { %539 = vrot.lane.b32.xlu1 %v1294_v38, %s1152_s24  ;;  %505 = vrot.lane.b32.xlu2 %v1314_v42, %s1152_s24  ;;  %v1336_v47 = vpop.f32.mrf.mxu1  ;;  %v1340_v49 = vpop.f32.mrf.mxu0 }
  0xcd   : > { %561 = vrot.lane.b32.xlu0 %v1318_v44, %s1152_s24 }
  0xd3   : > { %v1338_v48 = vpop.f32.mrf.mxu2 }
  0xd4   : > { %521 = vrot.lane.b32.xlu1 %v1304_v40, %s1152_s24  ;;  %541 = vrot.lane.b32.xlu2 %v1310_v41, %s1152_s24  ;;  %v1348_v50 = vpop.f32.mrf.mxu1 }
  0xd5   : > { %507 = vrot.lane.b32.xlu0 %v1328_v46, %s1152_s24 }
  0xdb   : > { %v1350_v51 = vpop.f32.mrf.mxu2 }
  0xdc   : > { %523 = vrot.lane.b32.xlu2 %v1316_v43, %s1152_s24  ;;  %509 = vrot.lane.b32.xlu1 %v1340_v49, %s1152_s24  ;;  %v1358_v52 = vpop.f32.mrf.mxu1 }
  0xdd   : > { %543 = vrot.lane.b32.xlu0 %v1326_v45, %s1152_s24 }
  0xe3   : > { %v1360_v53 = vpop.f32.mrf.mxu2 }
  0xe4   : > { %547 = vrot.lane.b32.xlu2 %v1350_v51, %s1152_s24  ;;  %545 = vrot.lane.b32.xlu1 %v1338_v48, %s1152_s24 }
  0xe5   : > { %525 = vrot.lane.b32.xlu0 %v1336_v47, %s1152_s24 }
  0xec   : > { %529 = vrot.lane.b32.xlu2 %v1358_v52, %s1152_s24  ;;  %527 = vrot.lane.b32.xlu1 %v1348_v50, %s1152_s24 }
  0xed   : > { %549 = vrot.lane.b32.xlu0 %v1360_v53, %s1152_s24 }
  0xef   : > { %v512_v54 = vpop.permute.xlu2 %511 }
  0xf0   : > { %v1369_v55 = vmax.f32 %v1237_v21, %v512_v54 }
  0xf5   : > { %681 = vrot.lane.b32.xlu0 %v1369_v55, %s1153_s25 }
  0xfe   : > { %v554_v56 = vpop.permute.xlu2 %553 }
  0xff   : > { %v1373_v57 = vmax.f32 %v448_v27, %v554_v56 }
 0x101   : > { %723 = vrot.lane.b32.xlu0 %v1373_v57, %s1153_s25 }
 0x106   : > { %v536_v58 = vpop.permute.xlu2 %535 }
 0x107   : > { %v496_v59 = vpop.permute.xlu0 %495  ;;  %v1415_v13 = vmax.f32 %v1266_v30, %v536_v58 }
 0x108   : > { %v1378_v60 = vmax.f32 %v1235_v20, %v496_v59 }
 0x10a   : > { %665 = vrot.lane.b32.xlu1 %v1378_v60, %s1153_s25 }
 0x10e   : > { %v552_v61 = vpop.permute.xlu1 %551  ;;  %v518_v62 = vpop.permute.xlu2 %517 }
 0x10f   : > { %v1383_v63 = vmax.f32 %v1245_v23, %v552_v61  ;;  %v532_v0 = vpop.permute.xlu0 %531  ;;  %v1430_v19 = vmax.f32 %v1278_v33, %v518_v62 }
 0x110   : > { %v1386_v1 = vmax.f32 %v1243_v22, %v532_v0 }
 0x111   : > { %721 = vrot.lane.b32.xlu2 %v1383_v63, %s1153_s25 }
 0x112   : > { %701 = vrot.lane.b32.xlu1 %v1386_v1, %s1153_s25 }
 0x116   : > { %v534_v2 = vpop.permute.xlu1 %533  ;;  %v504_v4 = vpop.permute.xlu2 %503 }
 0x117   : > { %v498_v3 = vpop.permute.xlu0 %497  ;;  %v1401_v9 = vmax.f32 %v1255_v26, %v534_v2  ;;  %v1433_v21 = vmax.f32 %v1290_v36, %v504_v4 }
 0x118   : > { %v1393_v5 = vmax.f32 %v1249_v24, %v498_v3 }
 0x11a   : > { %667 = vrot.lane.b32.xlu2 %v1393_v5, %s1153_s25 }
 0x11e   : > { %v500_v6 = vpop.permute.xlu1 %499  ;;  %v1408_v11 = vpop.permute.xlu2 %559 }
 0x11f   : > { %v1398_v7 = vmax.f32 %v1262_v28, %v500_v6  ;;  %v514_v8 = vpop.permute.xlu0 %513 }
 0x120   : > { %v1404_v10 = vmax.f32 %v1253_v25, %v514_v8 }
 0x121   : > { %669 = vrot.lane.b32.xlu0 %v1398_v7, %s1153_s25 }
 0x122   : > { %703 = vrot.lane.b32.xlu2 %v1401_v9, %s1153_s25  ;;  %683 = vrot.lane.b32.xlu1 %v1404_v10, %s1153_s25 }
 0x126   : > { %v516_v12 = vpop.permute.xlu1 %515  ;;  %v506_v17 = vpop.permute.xlu2 %505 }
 0x127   : > { %v556_v14 = vpop.permute.xlu0 %555  ;;  %v1418_v15 = vmax.f32 %v1264_v29, %v516_v12  ;;  %v1445_v25 = vmax.f32 %v1314_v42, %v506_v17 }
 0x128   : > { %v1421_v16 = vmax.f32 %v1274_v31, %v556_v14 }
 0x129   : > { %705 = vrot.lane.b32.xlu0 %v1415_v13, %s1153_s25 }
 0x12a   : > { %685 = vrot.lane.b32.xlu2 %v1418_v15, %s1153_s25  ;;  %725 = vrot.lane.b32.xlu1 %v1421_v16, %s1153_s25 }
 0x12e   : > { %v502_v18 = vpop.permute.xlu1 %501  ;;  %v542_v23 = vpop.permute.xlu2 %541 }
 0x12f   : > { %v538_v20 = vpop.permute.xlu0 %537  ;;  %v1436_v22 = vmax.f32 %v1276_v32, %v502_v18  ;;  %v1455_v29 = vmax.f32 %v1310_v41, %v542_v23 }
 0x130   : > { %v1448_v27 = vmax.f32 %v1280_v34, %v538_v20 }
 0x131   : > { %687 = vrot.lane.b32.xlu0 %v1430_v19, %s1153_s25 }
 0x132   : > { %673 = vrot.lane.b32.xlu2 %v1433_v21, %s1153_s25  ;;  %671 = vrot.lane.b32.xlu1 %v1436_v22, %s1153_s25 }
 0x136   : > { %v558_v24 = vpop.permute.xlu1 %557  ;;  %v524_v32 = vpop.permute.xlu2 %523 }
 0x137   : > { %v520_v26 = vpop.permute.xlu0 %519  ;;  %v1470_v36 = vmax.f32 %v1316_v43, %v524_v32 }
 0x138   : > { %v1461_v33 = vmax.f32 %v1292_v37, %v520_v26 }
 0x139   : > { %675 = vrot.lane.b32.xlu0 %v1445_v25, %s1153_s25 }
 0x13a   : > { %707 = vrot.lane.b32.xlu1 %v1448_v27, %s1153_s25 }
 0x13e   : > { %v540_v28 = vpop.permute.xlu1 %539  ;;  %v548_v42 = vpop.permute.xlu2 %547 }
 0x13f   : > { %v1458_v30 = vmax.f32 %v1294_v38, %v540_v28  ;;  %v562_v31 = vpop.permute.xlu0 %561  ;;  %v1485_v43 = vmax.f32 %v1350_v51, %v548_v42 }
 0x141   : > { %709 = vrot.lane.b32.xlu2 %v1458_v30, %s1153_s25  ;;  %711 = vrot.lane.b32.xlu0 %v1455_v29, %s1153_s25 }
 0x142   : > { %689 = vrot.lane.b32.xlu1 %v1461_v33, %s1153_s25 }
 0x146   : > { %v522_v34 = vpop.permute.xlu1 %521  ;;  %v530_v58 = vpop.permute.xlu2 %529 }
 0x147   : > { %v1473_v38 = vmax.f32 %v1304_v40, %v522_v34  ;;  %v508_v41 = vpop.permute.xlu0 %507  ;;  %v1500_v51 = vmax.f32 %v1358_v52, %v530_v58  ;;  %v1516_v52 = vmax.f32 %v1302_v39, %v1408_v11  ;;  %v1533_v39 = vld [vmem:[%s1693_s2] ss:$0 sm:$0xff] }
 0x148   : > { %v1476_v37 = vmax.f32 %v1328_v46, %v508_v41 }
 0x149   : > { %691 = vrot.lane.b32.xlu2 %v1473_v38, %s1153_s25  ;;  %693 = vrot.lane.b32.xlu0 %v1470_v36, %s1153_s25 }
 0x14a   : > { %677 = vrot.lane.b32.xlu1 %v1476_v37, %s1153_s25 }
 0x14e   : > { %v510_v54 = vpop.permute.xlu1 %509 }
 0x14f   : > { %v1488_v40 = vmax.f32 %v1340_v49, %v510_v54  ;;  %v544_v56 = vpop.permute.xlu0 %543 }
 0x150   : > { %v1491_v46 = vmax.f32 %v1326_v45, %v544_v56 }
 0x151   : > { %717 = vrot.lane.b32.xlu0 %v1485_v43, %s1153_s25  ;;  %679 = vrot.lane.b32.xlu2 %v1488_v40, %s1153_s25 }
 0x152   : > { %713 = vrot.lane.b32.xlu1 %v1491_v46, %s1153_s25 }
 0x156   : > { %v546_v59 = vpop.permute.xlu1 %545 }
 0x157   : > { %v1503_v49 = vmax.f32 %v1338_v48, %v546_v59  ;;  %v526_v61 = vpop.permute.xlu0 %525 }
 0x158   : > { %v1506_v45 = vmax.f32 %v1336_v47, %v526_v61 }
 0x159   : > { %699 = vrot.lane.b32.xlu0 %v1500_v51, %s1153_s25  ;;  %715 = vrot.lane.b32.xlu2 %v1503_v49, %s1153_s25 }
 0x15a   : > { %695 = vrot.lane.b32.xlu1 %v1506_v45, %s1153_s25 }
 0x15e   : > { %v528_v62 = vpop.permute.xlu1 %527 }
 0x15f   : > { %v1519_v48 = vmax.f32 %v1348_v50, %v528_v62  ;;  %v550_v0 = vpop.permute.xlu0 %549  ;;  %v1536_v50 = vmax.f32 %v1288_v35, %v558_v24 }
 0x160   : > { %v1522_v47 = vmax.f32 %v1360_v53, %v550_v0  ;;  %v1539_v53 = vmax.f32 %v1318_v44, %v562_v31 }
 0x161   : > { %729 = vrot.lane.b32.xlu0 %v1516_v52, %s1153_s25  ;;  %697 = vrot.lane.b32.xlu2 %v1519_v48, %s1153_s25 }
 0x162   : > { %719 = vrot.lane.b32.xlu1 %v1522_v47, %s1153_s25 }
 0x167   : > { %v682_v2 = vpop.permute.xlu0 %681 }
 0x168   : > { %v775_v3 = vmax.f32 %v1369_v55, %v682_v2 }
 0x169   : > { %727 = vrot.lane.b32.xlu2 %v1536_v50, %s1153_s25 }
 0x16a   : > { %v813_v4 = vadd.f32 %v1533_v39, %v775_v3  ;;  %731 = vrot.lane.b32.xlu1 %v1539_v53, %s1153_s25 }
 0x16b   : > { %v722_v6 = vpop.permute.xlu2 %721 }
 0x16c   : > { %v847_v8 = vmax.f32 %v813_v4, 0.0  ;;  %v795_v11 = vmax.f32 %v1383_v63, %v722_v6 }
 0x16e   : > { %v881_v35 = vpack.c.bf16 %v847_v8, %v847_v8  ;;  %v833_v44 = vadd.f32 %v1533_v39, %v795_v11 }
 0x170   : > { %916 = vst.msk [vmem:[%s1553_s30 + $0x20] sm:$0xf] %vm907_vm1, %v881_v35  ;;  %v867_v55 = vmax.f32 %v833_v44, 0.0 }
 0x172   : > { %v901_v12 = vpack.c.bf16 %v867_v55, %v867_v55 }
 0x173   : > { %v724_v14 = vpop.permute.xlu0 %723 }
 0x174   : > { %936 = vst.msk [vmem:[%s1553_s30 + $0x70] sm:$0xf] %vm907_vm1, %v901_v12  ;;  %v796_v63 = vmax.f32 %v1373_v57, %v724_v14  ;;  %v668_v17 = vpop.permute.xlu2 %667 }
 0x175   : > { %v768_v18 = vmax.f32 %v1393_v5, %v668_v17 }
 0x176   : > { %v834_v20 = vadd.f32 %v1533_v39, %v796_v63 }
 0x177   : > { %v806_v23 = vadd.f32 %v1533_v39, %v768_v18 }
 0x178   : > { %v868_v24 = vmax.f32 %v834_v20, 0.0 }
 0x179   : > { %v840_v26 = vmax.f32 %v806_v23, 0.0 }
 0x17a   : > { %v902_v28 = vpack.c.bf16 %v868_v24, %v868_v24 }
 0x17b   : > { %v874_v31 = vpack.c.bf16 %v840_v26, %v840_v26 }
 0x17c   : > { %937 = vst.msk [vmem:[%s1553_s30 + $0x74] sm:$0xf] %vm907_vm1, %v902_v28  ;;  %v704_v32 = vpop.permute.xlu2 %703  ;;  %v666_v34 = vpop.permute.xlu1 %665 }
 0x17d   : > { %909 = vst.msk [vmem:[%s1553_s30 + $0x4] sm:$0xf] %vm907_vm1, %v874_v31  ;;  %v786_v57 = vmax.f32 %v1401_v9, %v704_v32  ;;  %v767_v5 = vmax.f32 %v1378_v60, %v666_v34 }
 0x17f   : > { %v824_v41 = vadd.f32 %v1533_v39, %v786_v57  ;;  %v805_v42 = vadd.f32 %v1533_v39, %v767_v5 }
 0x181   : > { %v858_v54 = vmax.f32 %v824_v41, 0.0  ;;  %v839_v56 = vmax.f32 %v805_v42, 0.0 }
 0x183   : > { %v892_v58 = vpack.c.bf16 %v858_v54, %v858_v54  ;;  %v873_v59 = vpack.c.bf16 %v839_v56, %v839_v56 }
 0x184   : > { %v686_v61 = vpop.permute.xlu2 %685  ;;  %v702_v62 = vpop.permute.xlu1 %701 }
 0x185   : > { %927 = vst.msk [vmem:[%s1553_s30 + $0x4c] sm:$0xf] %vm907_vm1, %v892_v58  ;;  %v777_v0 = vmax.f32 %v1418_v15, %v686_v61  ;;  %v785_v9 = vmax.f32 %v1386_v1, %v702_v62 }
 0x186   : > { %908 = vst.msk [vmem:[%s1553_s30] sm:$0xf] %vm907_vm1, %v873_v59 }
 0x187   : > { %v815_v60 = vadd.f32 %v1533_v39, %v777_v0  ;;  %v823_v2 = vadd.f32 %v1533_v39, %v785_v9 }
 0x189   : > { %v849_v3 = vmax.f32 %v815_v60, 0.0  ;;  %v857_v4 = vmax.f32 %v823_v2, 0.0 }
 0x18b   : > { %v883_v6 = vpack.c.bf16 %v849_v3, %v849_v3  ;;  %v891_v8 = vpack.c.bf16 %v857_v4, %v857_v4 }
 0x18c   : > { %v674_v11 = vpop.permute.xlu2 %673 }
 0x18d   : > { %918 = vst.msk [vmem:[%s1553_s30 + $0x28] sm:$0xf] %vm907_vm1, %v883_v6  ;;  %v771_v35 = vmax.f32 %v1433_v21, %v674_v11 }
 0x18e   : > { %926 = vst.msk [vmem:[%s1553_s30 + $0x48] sm:$0xf] %vm907_vm1, %v891_v8 }
 0x18f   : > { %v809_v1 = vadd.f32 %v1533_v39, %v771_v35 }
 0x191   : > { %v843_v15 = vmax.f32 %v809_v1, 0.0 }
 0x193   : > { %v877_v44 = vpack.c.bf16 %v843_v15, %v843_v15  ;;  %v670_v55 = vpop.permute.xlu0 %669 }
 0x194   : > { %v769_v12 = vmax.f32 %v1398_v7, %v670_v55  ;;  %v684_v14 = vpop.permute.xlu1 %683 }
 0x195   : > { %912 = vst.msk [vmem:[%s1553_s30 + $0x10] sm:$0xf] %vm907_vm1, %v877_v44  ;;  %v776_v63 = vmax.f32 %v1404_v10, %v684_v14 }
 0x196   : > { %v807_v17 = vadd.f32 %v1533_v39, %v769_v12 }
 0x197   : > { %v814_v21 = vadd.f32 %v1533_v39, %v776_v63 }
 0x198   : > { %v841_v18 = vmax.f32 %v807_v17, 0.0 }
 0x199   : > { %v848_v20 = vmax.f32 %v814_v21, 0.0 }
 0x19a   : > { %v875_v23 = vpack.c.bf16 %v841_v18, %v841_v18 }
 0x19b   : > { %v882_v24 = vpack.c.bf16 %v848_v20, %v848_v20  ;;  %v710_v26 = vpop.permute.xlu2 %709  ;;  %v706_v28 = vpop.permute.xlu0 %705 }
 0x19c   : > { %910 = vst.msk [vmem:[%s1553_s30 + $0x8] sm:$0xf] %vm907_vm1, %v875_v23  ;;  %v789_v7 = vmax.f32 %v1458_v30, %v710_v26  ;;  %v787_v31 = vmax.f32 %v1415_v13, %v706_v28  ;;  %v726_v32 = vpop.permute.xlu1 %725 }
 0x19d   : > { %917 = vst.msk [vmem:[%s1553_s30 + $0x24] sm:$0xf] %vm907_vm1, %v882_v24  ;;  %v797_v10 = vmax.f32 %v1421_v16, %v726_v32 }
 0x19e   : > { %v827_v34 = vadd.f32 %v1533_v39, %v789_v7  ;;  %v825_v57 = vadd.f32 %v1533_v39, %v787_v31 }
 0x19f   : > { %v835_v5 = vadd.f32 %v1533_v39, %v797_v10 }
 0x1a0   : > { %v861_v41 = vmax.f32 %v827_v34, 0.0  ;;  %v859_v42 = vmax.f32 %v825_v57, 0.0 }
 0x1a1   : > { %v869_v54 = vmax.f32 %v835_v5, 0.0 }
 0x1a2   : > { %v895_v30 = vpack.c.bf16 %v861_v41, %v861_v41  ;;  %v893_v56 = vpack.c.bf16 %v859_v42, %v859_v42 }
 0x1a3   : > { %v903_v58 = vpack.c.bf16 %v869_v54, %v869_v54  ;;  %v692_v13 = vpop.permute.xlu2 %691  ;;  %v688_v59 = vpop.permute.xlu0 %687 }
 0x1a4   : > { %930 = vst.msk [vmem:[%s1553_s30 + $0x58] sm:$0xf] %vm907_vm1, %v895_v30  ;;  %v780_v16 = vmax.f32 %v1473_v38, %v692_v13  ;;  %v778_v61 = vmax.f32 %v1430_v19, %v688_v59  ;;  %v672_v62 = vpop.permute.xlu1 %671 }
 0x1a5   : > { %928 = vst.msk [vmem:[%s1553_s30 + $0x50] sm:$0xf] %vm907_vm1, %v893_v56  ;;  %v770_v0 = vmax.f32 %v1436_v22, %v672_v62 }
 0x1a6   : > { %938 = vst.msk [vmem:[%s1553_s30 + $0x78] sm:$0xf] %vm907_vm1, %v903_v58  ;;  %v818_v9 = vadd.f32 %v1533_v39, %v780_v16  ;;  %v816_v60 = vadd.f32 %v1533_v39, %v778_v61 }
 0x1a7   : > { %v808_v2 = vadd.f32 %v1533_v39, %v770_v0 }
 0x1a8   : > { %v852_v3 = vmax.f32 %v818_v9, 0.0  ;;  %v850_v38 = vmax.f32 %v816_v60, 0.0 }
 0x1a9   : > { %v842_v4 = vmax.f32 %v808_v2, 0.0 }
 0x1aa   : > { %v886_v19 = vpack.c.bf16 %v852_v3, %v852_v3  ;;  %v884_v6 = vpack.c.bf16 %v850_v38, %v850_v38 }
 0x1ab   : > { %v876_v8 = vpack.c.bf16 %v842_v4, %v842_v4  ;;  %v676_v11 = vpop.permute.xlu0 %675  ;;  %v680_v35 = vpop.permute.xlu2 %679 }
 0x1ac   : > { %921 = vst.msk [vmem:[%s1553_s30 + $0x34] sm:$0xf] %vm907_vm1, %v886_v19  ;;  %v772_v22 = vmax.f32 %v1445_v25, %v676_v11  ;;  %v774_v1 = vmax.f32 %v1488_v40, %v680_v35  ;;  %v708_v15 = vpop.permute.xlu1 %707 }
 0x1ad   : > { %919 = vst.msk [vmem:[%s1553_s30 + $0x2c] sm:$0xf] %vm907_vm1, %v884_v6  ;;  %v788_v44 = vmax.f32 %v1448_v27, %v708_v15 }
 0x1ae   : > { %911 = vst.msk [vmem:[%s1553_s30 + $0xc] sm:$0xf] %vm907_vm1, %v876_v8  ;;  %v810_v55 = vadd.f32 %v1533_v39, %v772_v22  ;;  %v812_v12 = vadd.f32 %v1533_v39, %v774_v1 }
 0x1af   : > { %v826_v14 = vadd.f32 %v1533_v39, %v788_v44 }
 0x1b0   : > { %v844_v63 = vmax.f32 %v810_v55, 0.0  ;;  %v846_v25 = vmax.f32 %v812_v12, 0.0 }
 0x1b1   : > { %v860_v17 = vmax.f32 %v826_v14, 0.0 }
 0x1b2   : > { %v878_v40 = vpack.c.bf16 %v844_v63, %v844_v63  ;;  %v880_v21 = vpack.c.bf16 %v846_v25, %v846_v25 }
 0x1b3   : > { %v894_v18 = vpack.c.bf16 %v860_v17, %v860_v17  ;;  %v712_v20 = vpop.permute.xlu0 %711  ;;  %v716_v23 = vpop.permute.xlu2 %715 }
 0x1b4   : > { %913 = vst.msk [vmem:[%s1553_s30 + $0x14] sm:$0xf] %vm907_vm1, %v878_v40  ;;  %v790_v27 = vmax.f32 %v1455_v29, %v712_v20  ;;  %v792_v24 = vmax.f32 %v1503_v49, %v716_v23  ;;  %v690_v26 = vpop.permute.xlu1 %689 }
 0x1b5   : > { %915 = vst.msk [vmem:[%s1553_s30 + $0x1c] sm:$0xf] %vm907_vm1, %v880_v21  ;;  %v779_v28 = vmax.f32 %v1461_v33, %v690_v26 }
 0x1b6   : > { %929 = vst.msk [vmem:[%s1553_s30 + $0x54] sm:$0xf] %vm907_vm1, %v894_v18  ;;  %v828_v7 = vadd.f32 %v1533_v39, %v790_v27  ;;  %v830_v31 = vadd.f32 %v1533_v39, %v792_v24 }
 0x1b7   : > { %v817_v32 = vadd.f32 %v1533_v39, %v779_v28 }
 0x1b8   : > { %v862_v10 = vmax.f32 %v828_v7, 0.0  ;;  %v864_v29 = vmax.f32 %v830_v31, 0.0 }
 0x1b9   : > { %v851_v34 = vmax.f32 %v817_v32, 0.0 }
 0x1ba   : > { %v896_v49 = vpack.c.bf16 %v862_v10, %v862_v10  ;;  %v898_v57 = vpack.c.bf16 %v864_v29, %v864_v29 }
 0x1bb   : > { %v885_v5 = vpack.c.bf16 %v851_v34, %v851_v34  ;;  %v694_v41 = vpop.permute.xlu0 %693  ;;  %v698_v42 = vpop.permute.xlu2 %697 }
 0x1bc   : > { %931 = vst.msk [vmem:[%s1553_s30 + $0x5c] sm:$0xf] %vm907_vm1, %v896_v49  ;;  %v781_v33 = vmax.f32 %v1470_v36, %v694_v41  ;;  %v783_v54 = vmax.f32 %v1519_v48, %v698_v42  ;;  %v678_v30 = vpop.permute.xlu1 %677 }
 0x1bd   : > { %933 = vst.msk [vmem:[%s1553_s30 + $0x64] sm:$0xf] %vm907_vm1, %v898_v57  ;;  %v773_v56 = vmax.f32 %v1476_v37, %v678_v30 }
 0x1be   : > { %920 = vst.msk [vmem:[%s1553_s30 + $0x30] sm:$0xf] %vm907_vm1, %v885_v5  ;;  %v819_v58 = vadd.f32 %v1533_v39, %v781_v33  ;;  %v821_v13 = vadd.f32 %v1533_v39, %v783_v54 }
 0x1bf   : > { %v811_v59 = vadd.f32 %v1533_v39, %v773_v56 }
 0x1c0   : > { %v853_v16 = vmax.f32 %v819_v58, 0.0  ;;  %v855_v36 = vmax.f32 %v821_v13, 0.0 }
 0x1c1   : > { %v845_v61 = vmax.f32 %v811_v59, 0.0 }
 0x1c2   : > { %v887_v48 = vpack.c.bf16 %v853_v16, %v853_v16  ;;  %v889_v62 = vpack.c.bf16 %v855_v36, %v855_v36 }
 0x1c3   : > { %v879_v0 = vpack.c.bf16 %v845_v61, %v845_v61  ;;  %v718_v9 = vpop.permute.xlu0 %717  ;;  %v728_v60 = vpop.permute.xlu2 %727 }
 0x1c4   : > { %922 = vst.msk [vmem:[%s1553_s30 + $0x38] sm:$0xf] %vm907_vm1, %v887_v48  ;;  %v793_v37 = vmax.f32 %v1485_v43, %v718_v9  ;;  %v798_v2 = vmax.f32 %v1536_v50, %v728_v60  ;;  %v714_v3 = vpop.permute.xlu1 %713 }
 0x1c5   : > { %924 = vst.msk [vmem:[%s1553_s30 + $0x40] sm:$0xf] %vm907_vm1, %v889_v62  ;;  %v791_v38 = vmax.f32 %v1491_v46, %v714_v3 }
 0x1c6   : > { %914 = vst.msk [vmem:[%s1553_s30 + $0x18] sm:$0xf] %vm907_vm1, %v879_v0  ;;  %v831_v4 = vadd.f32 %v1533_v39, %v793_v37  ;;  %v836_v19 = vadd.f32 %v1533_v39, %v798_v2 }
 0x1c7   : > { %v829_v6 = vadd.f32 %v1533_v39, %v791_v38 }
 0x1c8   : > { %v865_v8 = vmax.f32 %v831_v4, 0.0  ;;  %v870_v43 = vmax.f32 %v836_v19, 0.0 }
 0x1c9   : > { %v863_v11 = vmax.f32 %v829_v6, 0.0 }
 0x1ca   : > { %v899_v35 = vpack.c.bf16 %v865_v8, %v865_v8  ;;  %v904_v50 = vpack.c.bf16 %v870_v43, %v870_v43 }
 0x1cb   : > { %v897_v22 = vpack.c.bf16 %v863_v11, %v863_v11  ;;  %v700_v1 = vpop.permute.xlu0 %699 }
 0x1cc   : > { %934 = vst.msk [vmem:[%s1553_s30 + $0x68] sm:$0xf] %vm907_vm1, %v899_v35  ;;  %v784_v46 = vmax.f32 %v1500_v51, %v700_v1  ;;  %v696_v15 = vpop.permute.xlu1 %695 }
 0x1cd   : > { %939 = vst.msk [vmem:[%s1553_s30 + $0x7c] sm:$0xf] %vm907_vm1, %v904_v50  ;;  %v782_v44 = vmax.f32 %v1506_v45, %v696_v15 }
 0x1ce   : > { %932 = vst.msk [vmem:[%s1553_s30 + $0x60] sm:$0xf] %vm907_vm1, %v897_v22  ;;  %v822_v55 = vadd.f32 %v1533_v39, %v784_v46 }
 0x1cf   : > { %v820_v12 = vadd.f32 %v1533_v39, %v782_v44 }
 0x1d0   : > { %v856_v14 = vmax.f32 %v822_v55, 0.0 }
 0x1d1   : > { %v854_v63 = vmax.f32 %v820_v12, 0.0 }
 0x1d2   : > { %v890_v25 = vpack.c.bf16 %v856_v14, %v856_v14 }
 0x1d3   : > { %v888_v17 = vpack.c.bf16 %v854_v63, %v854_v63  ;;  %v730_v40 = vpop.permute.xlu0 %729 }
 0x1d4   : > { %925 = vst.msk [vmem:[%s1553_s30 + $0x44] sm:$0xf] %vm907_vm1, %v890_v25  ;;  %v799_v51 = vmax.f32 %v1516_v52, %v730_v40  ;;  %v720_v21 = vpop.permute.xlu1 %719 }
 0x1d5   : > { %923 = vst.msk [vmem:[%s1553_s30 + $0x3c] sm:$0xf] %vm907_vm1, %v888_v17  ;;  %v794_v45 = vmax.f32 %v1522_v47, %v720_v21 }
 0x1d6   : > { %v837_v18 = vadd.f32 %v1533_v39, %v799_v51 }
 0x1d7   : > { %v832_v20 = vadd.f32 %v1533_v39, %v794_v45 }
 0x1d8   : > { %v871_v23 = vmax.f32 %v837_v18, 0.0 }
 0x1d9   : > { %v866_v27 = vmax.f32 %v832_v20, 0.0 }
 0x1da   : > { %v905_v24 = vpack.c.bf16 %v871_v23, %v871_v23 }
 0x1db   : > { %v900_v26 = vpack.c.bf16 %v866_v27, %v866_v27 }
 0x1dc   : > { %940 = vst.msk [vmem:[%s1553_s30 + $0x80] sm:$0xf] %vm907_vm1, %v905_v24  ;;  %v732_v28 = vpop.permute.xlu1 %731 }
 0x1dd   : > { %935 = vst.msk [vmem:[%s1553_s30 + $0x6c] sm:$0xf] %vm907_vm1, %v900_v26  ;;  %v800_v52 = vmax.f32 %v1539_v53, %v732_v28 }
 0x1df   : > { %v838_v7 = vadd.f32 %v1533_v39, %v800_v52 }
 0x1e1   : > { %v872_v31 = vmax.f32 %v838_v7, 0.0 }
 0x1e3   : > { %v906_v32 = vpack.c.bf16 %v872_v31, %v872_v31 }
 0x1e5   : > { %941 = vst.msk [vmem:[%s1553_s30 + $0x84] sm:$0xf] %vm907_vm1, %v906_v32 }
 0x1e6 PF: > { %s13_s12 = sadd.s32 1, %s1150_s12  }
 0x1e7   : > { %p10_p4 = scmp.ge.s32.totalorder %s13_s12, 4  }
 0x1e9   :  { %12 = sbr.rel (!%p10_p4) target bundleno = 1 (0x1), region = 62 }

// kernel: ai_image_detector_forward.5
= control target key start
LH: loop header
LB: loop body
LE: loop exit
PB: predicated region body
PF: predicated region fallthrough
CT: control target
= control target key end

     0   :  { %s1576_s12 = smov 0   ;;  %s2199_s0 = inlined_call_operand.vmem [shape: bf16[2,72,512], index: 0, kind: input, shape index: {}]   ;;  %s2200_s1 = inlined_call_operand.vmem [shape: bf16[512,256], index: 1, kind: input, shape index: {}]   ;;  %s2201_s2 = inlined_call_operand.vmem [shape: f32[1,64], index: 2, kind: input, shape index: {}]   ;;  %s2202_s3 = inlined_call_operand.vmem [shape: bf16[2,72,64], index: 3, kind: output, shape index: {}]  }
   0x1 LB: > { %s1126_s13 = sadd.s32 4294967295, %s1553_s12   ;;  %p1130_p0 = scmp.ge.s32.totalorder %s1553_s12, 1  ;;  %s1553_s12 = sphi %s1576_s12, %s13_s12  }
   0x2   : > { %p137_p1 = scmp.lt.s32.totalorder %s1553_s12, 3 }
   0x4   : > { %p138_p2 = pnand %p1130_p0, %p137_p1 }
   0x5   : > { %p161_p3 = scmp.lt.s32.totalorder (!%p138_p2), %s1126_s13, 1 }
   0x6   : > { %141 = sbr.rel (%p138_p2) target bundleno = 445 (0x1bd), region = 32 }
   0xb   : > { %v1255_v0 = vld [vmem:[%s2200_s1 + $0x70] sm:$0xf]  ;;  %v1486_v1 = vld [vmem:[%s2200_s1 + $0x74] sm:$0xf0]  ;;  %v1247_v11 = vld [vmem:[%s2200_s1 + $0x60] sm:$0xf] }
   0xc   : > { %v1319_v2 = vld [vmem:[%s2200_s1 + $0xf0] sm:$0xf]  ;;  %v1256_v3 = vor.u32 %v1486_v1, %v1255_v0  ;;  %v1502_v4 = vld [vmem:[%s2200_s1 + $0xf4] sm:$0xf0]  ;;  %v1484_v13 = vld [vmem:[%s2200_s1 + $0x64] sm:$0xf0] }
   0xd   : > { %v1383_v5 = vld [vmem:[%s2200_s1 + $0x170] sm:$0xf]  ;;  %v1518_v6 = vld [vmem:[%s2200_s1 + $0x174] sm:$0xf0]  ;;  %v1320_v7 = vor.u32 %v1502_v4, %v1319_v2  ;;  %v1311_v14 = vld [vmem:[%s2200_s1 + $0xe0] sm:$0xf]  ;;  %v1248_v16 = vor.u32 %v1484_v13, %v1247_v11 }
   0xe   : > { %v1384_v8 = vor.u32 %v1518_v6, %v1383_v5  ;;  %v1447_v9 = vld [vmem:[%s2200_s1 + $0x1f0] sm:$0xf]  ;;  %v1534_v10 = vld [vmem:[%s2200_s1 + $0x1f4] sm:$0xf0]  ;;  %667 = vmatpush.bf16.msra.mxu0 %v1256_v3  ;;  %v1500_v15 = vld [vmem:[%s2200_s1 + $0xe4] sm:$0xf0] }
   0xf   : > { %v1448_v12 = vor.u32 %v1534_v10, %v1447_v9  ;;  %700 = vmatpush.bf16.msra.mxu1 %v1320_v7  ;;  %v1312_v17 = vor.u32 %v1500_v15, %v1311_v14  ;;  %v1375_v18 = vld [vmem:[%s2200_s1 + $0x160] sm:$0xf]  ;;  %v1516_v19 = vld [vmem:[%s2200_s1 + $0x164] sm:$0xf0]  ;;  %v1239_v23 = vld [vmem:[%s2200_s1 + $0x50] sm:$0xf] }
  0x10   : > { %733 = vmatpush.bf16.msra.mxu2 %v1384_v8  ;;  %v1439_v20 = vld [vmem:[%s2200_s1 + $0x1e0] sm:$0xf]  ;;  %v1376_v21 = vor.u32 %v1516_v19, %v1375_v18  ;;  %v1532_v22 = vld [vmem:[%s2200_s1 + $0x1e4] sm:$0xf0]  ;;  %v1482_v24 = vld [vmem:[%s2200_s1 + $0x54] sm:$0xf0] }
  0x11   : > { %766 = vmatpush.bf16.msra.mxu3 %v1448_v12  ;;  %v1440_v25 = vor.u32 %v1532_v22, %v1439_v20  ;;  %v1303_v26 = vld [vmem:[%s2200_s1 + $0xd0] sm:$0xf]  ;;  %v1498_v27 = vld [vmem:[%s2200_s1 + $0xd4] sm:$0xf0]  ;;  %v1240_v29 = vor.u32 %v1482_v24, %v1239_v23  ;;  %v1231_v35 = vld [vmem:[%s2200_s1 + $0x40] sm:$0xf] }
  0x12   : > { %v1367_v28 = vld [vmem:[%s2200_s1 + $0x150] sm:$0xf]  ;;  %668 = vmatpush.bf16.msra.mxu0 %v1248_v16  ;;  %v1514_v30 = vld [vmem:[%s2200_s1 + $0x154] sm:$0xf0]  ;;  %v1304_v33 = vor.u32 %v1498_v27, %v1303_v26  ;;  %v1480_v36 = vld [vmem:[%s2200_s1 + $0x44] sm:$0xf0] }
  0x13   : > { %v1431_v31 = vld [vmem:[%s2200_s1 + $0x1d0] sm:$0xf]  ;;  %v1530_v32 = vld [vmem:[%s2200_s1 + $0x1d4] sm:$0xf0]  ;;  %701 = vmatpush.bf16.msra.mxu1 %v1312_v17  ;;  %v1368_v34 = vor.u32 %v1514_v30, %v1367_v28  ;;  %v1295_v37 = vld [vmem:[%s2200_s1 + $0xc0] sm:$0xf]  ;;  %v1232_v44 = vor.u32 %v1480_v36, %v1231_v35 }
  0x14   : > { %734 = vmatpush.bf16.msra.mxu2 %v1376_v21  ;;  %v1432_v38 = vor.u32 %v1530_v32, %v1431_v31  ;;  %v1496_v39 = vld [vmem:[%s2200_s1 + $0xc4] sm:$0xf0]  ;;  %v1359_v40 = vld [vmem:[%s2200_s1 + $0x140] sm:$0xf]  ;;  %v1223_v47 = vld [vmem:[%s2200_s1 + $0x30] sm:$0xf] }
  0x15   : > { %767 = vmatpush.bf16.msra.mxu3 %v1440_v25  ;;  %v1512_v41 = vld [vmem:[%s2200_s1 + $0x144] sm:$0xf0]  ;;  %v1423_v42 = vld [vmem:[%s2200_s1 + $0x1c0] sm:$0xf]  ;;  %v1296_v45 = vor.u32 %v1496_v39, %v1295_v37  ;;  %v1478_v48 = vld [vmem:[%s2200_s1 + $0x34] sm:$0xf0] }
  0x16   : > { %v1528_v43 = vld [vmem:[%s2200_s1 + $0x1c4] sm:$0xf0]  ;;  %669 = vmatpush.bf16.msra.mxu0 %v1240_v29  ;;  %v1360_v46 = vor.u32 %v1512_v41, %v1359_v40  ;;  %v1287_v49 = vld [vmem:[%s2200_s1 + $0xb0] sm:$0xf]  ;;  %v1494_v51 = vld [vmem:[%s2200_s1 + $0xb4] sm:$0xf0]  ;;  %v1224_v56 = vor.u32 %v1478_v48, %v1223_v47 }
  0x17   : > { %702 = vmatpush.bf16.msra.mxu1 %v1304_v33  ;;  %v1424_v50 = vor.u32 %v1528_v43, %v1423_v42  ;;  %v1351_v52 = vld [vmem:[%s2200_s1 + $0x130] sm:$0xf]  ;;  %v1510_v53 = vld [vmem:[%s2200_s1 + $0x134] sm:$0xf0]  ;;  %v1288_v57 = vor.u32 %v1494_v51, %v1287_v49  ;;  %v1215_v59 = vld [vmem:[%s2200_s1 + $0x20] sm:$0xf] }
  0x18   : > { %735 = vmatpush.bf16.msra.mxu2 %v1368_v34  ;;  %v1415_v54 = vld [vmem:[%s2200_s1 + $0x1b0] sm:$0xf]  ;;  %v1526_v55 = vld [vmem:[%s2200_s1 + $0x1b4] sm:$0xf0]  ;;  %v1352_v58 = vor.u32 %v1510_v53, %v1351_v52  ;;  %v1476_v60 = vld [vmem:[%s2200_s1 + $0x24] sm:$0xf0] }
  0x19   : > { %768 = vmatpush.bf16.msra.mxu3 %v1432_v38  ;;  %v1279_v61 = vld [vmem:[%s2200_s1 + $0xa0] sm:$0xf]  ;;  %v1416_v62 = vor.u32 %v1526_v55, %v1415_v54  ;;  %v1492_v63 = vld [vmem:[%s2200_s1 + $0xa4] sm:$0xf0]  ;;  %v1216_v4 = vor.u32 %v1476_v60, %v1215_v59  ;;  %v1207_v5 = vld [vmem:[%s2200_s1 + $0x10] sm:$0xf] }
  0x1a   : > { %670 = vmatpush.bf16.msra.mxu0 %v1232_v44  ;;  %v1343_v0 = vld [vmem:[%s2200_s1 + $0x120] sm:$0xf]  ;;  %v1508_v1 = vld [vmem:[%s2200_s1 + $0x124] sm:$0xf0]  ;;  %v1280_v6 = vor.u32 %v1492_v63, %v1279_v61  ;;  %v1474_v8 = vld [vmem:[%s2200_s1 + $0x14] sm:$0xf0] }
  0x1b   : > { %703 = vmatpush.bf16.msra.mxu1 %v1296_v45  ;;  %v1407_v2 = vld [vmem:[%s2200_s1 + $0x1a0] sm:$0xf]  ;;  %v1524_v3 = vld [vmem:[%s2200_s1 + $0x1a4] sm:$0xf0]  ;;  %v1344_v7 = vor.u32 %v1508_v1, %v1343_v0  ;;  %v1271_v9 = vld [vmem:[%s2200_s1 + $0x90] sm:$0xf]  ;;  %v1208_v17 = vor.u32 %v1474_v8, %v1207_v5 }
  0x1c   : > { %736 = vmatpush.bf16.msra.mxu2 %v1360_v46  ;;  %v1490_v10 = vld [vmem:[%s2200_s1 + $0x94] sm:$0xf0]  ;;  %v1408_v11 = vor.u32 %v1524_v3, %v1407_v2  ;;  %v1335_v12 = vld [vmem:[%s2200_s1 + $0x110] sm:$0xf]  ;;  %v1199_v16 = vld [vmem:[%s2200_s1] sm:$0xf] }
  0x1d   : > { %769 = vmatpush.bf16.msra.mxu3 %v1424_v50  ;;  %v1506_v13 = vld [vmem:[%s2200_s1 + $0x114] sm:$0xf0]  ;;  %v1399_v14 = vld [vmem:[%s2200_s1 + $0x190] sm:$0xf]  ;;  %v1472_v18 = vld [vmem:[%s2200_s1 + $0x4] sm:$0xf0]  ;;  %v1272_v20 = vor.u32 %v1490_v10, %v1271_v9 }
  0x1e   : > { %671 = vmatpush.bf16.msra.mxu0 %v1224_v56  ;;  %v1522_v15 = vld [vmem:[%s2200_s1 + $0x194] sm:$0xf0]  ;;  %v1263_v19 = vld [vmem:[%s2200_s1 + $0x80] sm:$0xf]  ;;  %s2204_s13 = smov (!%p161_p3, %s1126_s13), 1  ;;  %v1336_v21 = vor.u32 %v1506_v13, %v1335_v12  ;;  %v1200_v31 = vor.u32 %v1472_v18, %v1199_v16  ;;  %vm1061_vm0 = vcmask 519168  }
  0x1f   : > { %704 = vmatpush.bf16.msra.mxu1 %v1288_v57  ;;  %v1488_v22 = vld [vmem:[%s2200_s1 + $0x84] sm:$0xf0]  ;;  %v1327_v23 = vld [vmem:[%s2200_s1 + $0x100] sm:$0xf]  ;;  %v1400_v25 = vor.u32 %v1522_v15, %v1399_v14  ;;  %s1535_s17 = smul.u32 144, %s2204_s13 }
  0x20   : > { %737 = vmatpush.bf16.msra.mxu2 %v1352_v58  ;;  %v1504_v24 = vld [vmem:[%s2200_s1 + $0x104] sm:$0xf0]  ;;  %v1391_v26 = vld [vmem:[%s2200_s1 + $0x180] sm:$0xf]  ;;  %v1517_v28 = vld [vmem:[%s2200_s1 + $0x174] sm:$0xf]  ;;  %v1264_v35 = vor.u32 %v1488_v22, %v1263_v19 }
  0x21   : > { %770 = vmatpush.bf16.msra.mxu3 %v1416_v62  ;;  %v1520_v27 = vld [vmem:[%s2200_s1 + $0x184] sm:$0xf0]  ;;  %v1385_v29 = vld [vmem:[%s2200_s1 + $0x178] sm:$0xf0]  ;;  %v1533_v30 = vld [vmem:[%s2200_s1 + $0x1f4] sm:$0xf]  ;;  %s1795_s26 = scalar_lea.vmem %s2199_s0, %s1535_s17  ;;  %v1328_v36 = vor.u32 %v1504_v24, %v1327_v23 }
  0x22   : > { %672 = vmatpush.bf16.msra.mxu0 %v1216_v4  ;;  %v1449_v32 = vld [vmem:[%s2200_s1 + $0x1f8] sm:$0xf0]  ;;  %v1485_v33 = vld [vmem:[%s2200_s1 + $0x74] sm:$0xf]  ;;  %v1135_v37 = vld [vmem:[%s1795_s26] sm:$0xf]  ;;  %v1392_v43 = vor.u32 %v1520_v27, %v1391_v26  ;;  %v1388_v47 = vor.u32 %v1517_v28, %v1385_v29 }
  0x23   : > { %705 = vmatpush.bf16.msra.mxu1 %v1280_v6  ;;  %v1257_v34 = vld [vmem:[%s2200_s1 + $0x78] sm:$0xf0]  ;;  %v1457_v38 = vld [vmem:[%s1795_s26 + $0xc] sm:$0xf0]  ;;  %v1455_v39 = vld [vmem:[%s1795_s26 + $0x4] sm:$0xf]  ;;  %v1452_v51 = vor.u32 %v1533_v30, %v1449_v32 }
  0x24   : > { %738 = vmatpush.bf16.msra.mxu2 %v1344_v7  ;;  %v1501_v40 = vld [vmem:[%s2200_s1 + $0xf4] sm:$0xf]  ;;  %v1321_v41 = vld [vmem:[%s2200_s1 + $0xf8] sm:$0xf0]  ;;  %v1515_v42 = vld [vmem:[%s2200_s1 + $0x164] sm:$0xf]  ;;  %v1821_v48 = vor.u32 %v1457_v38, %v1135_v37  ;;  %v1260_v58 = vor.u32 %v1485_v33, %v1257_v34 }
  0x25   : > { %771 = vmatpush.bf16.msra.mxu3 %v1408_v11  ;;  %v1137_v44 = vld [vmem:[%s1795_s26 + $0x10] sm:$0xf0]  ;;  %v1143_v45 = vld [vmem:[%s1795_s26 + $0x8] sm:$0xf]  ;;  %v1458_v46 = vld [vmem:[%s1795_s26 + $0x14] sm:$0xf0]  ;;  %v1324_v59 = vor.u32 %v1501_v40, %v1321_v41 }
  0x26   : > { %673 = vmatpush.bf16.msra.mxu0 %v1208_v17  ;;  %v1456_v49 = vld [vmem:[%s1795_s26 + $0xc] sm:$0xf]  ;;  %v1145_v50 = vld [vmem:[%s1795_s26 + $0x18] sm:$0xf0]  ;;  %v1828_v53 = vor.u32 %v1455_v39, %v1137_v44  ;;  %v1830_v54 = vor.u32 %v1458_v46, %v1143_v45  ;;  %v1531_v55 = vld [vmem:[%s2200_s1 + $0x1e4] sm:$0xf] }
  0x27   : > { %706 = vmatpush.bf16.msra.mxu1 %v1272_v20  ;;  %v1377_v52 = vld [vmem:[%s2200_s1 + $0x168] sm:$0xf0]  ;;  %v1838_v57 = vor.u32 %v1456_v49, %v1145_v50  ;;  %v1483_v61 = vld [vmem:[%s2200_s1 + $0x64] sm:$0xf]  ;;  %v1513_v2 = vld [vmem:[%s2200_s1 + $0x154] sm:$0xf] }
  0x28   : > { %739 = vmatpush.bf16.msra.mxu2 %v1336_v21  ;;  %v1441_v56 = vld [vmem:[%s2200_s1 + $0x1e8] sm:$0xf0]  ;;  %v1380_v60 = vor.u32 %v1515_v42, %v1377_v52  ;;  %v1499_v63 = vld [vmem:[%s2200_s1 + $0xe4] sm:$0xf]  ;;  %v1369_v3 = vld [vmem:[%s2200_s1 + $0x158] sm:$0xf0] }
  0x29   : > { %772 = vmatpush.bf16.msra.mxu3 %v1400_v25  ;;  %v1249_v62 = vld [vmem:[%s2200_s1 + $0x68] sm:$0xf0]  ;;  %v1444_v0 = vor.u32 %v1531_v55, %v1441_v56  ;;  %v1529_v4 = vld [vmem:[%s2200_s1 + $0x1d4] sm:$0xf]  ;;  %v1433_v5 = vld [vmem:[%s2200_s1 + $0x1d8] sm:$0xf0]  ;;  %v1372_v8 = vor.u32 %v1513_v2, %v1369_v3 }
  0x2a   : > { %674 = vmatpush.bf16.msra.mxu0 %v1200_v31  ;;  %v1313_v1 = vld [vmem:[%s2200_s1 + $0xe8] sm:$0xf0]  ;;  %v1252_v6 = vor.u32 %v1483_v61, %v1249_v62  ;;  %v1481_v9 = vld [vmem:[%s2200_s1 + $0x54] sm:$0xf]  ;;  %v1241_v10 = vld [vmem:[%s2200_s1 + $0x58] sm:$0xf0]  ;;  %v1436_v12 = vor.u32 %v1529_v4, %v1433_v5 }
  0x2b   : > { %707 = vmatpush.bf16.msra.mxu1 %v1264_v35  ;;  %v1316_v7 = vor.u32 %v1499_v63, %v1313_v1  ;;  %v1497_v11 = vld [vmem:[%s2200_s1 + $0xd4] sm:$0xf]  ;;  %v1305_v13 = vld [vmem:[%s2200_s1 + $0xd8] sm:$0xf0]  ;;  %v1511_v14 = vld [vmem:[%s2200_s1 + $0x144] sm:$0xf]  ;;  %v1244_v18 = vor.u32 %v1481_v9, %v1241_v10 }
  0x2c   : > { %740 = vmatpush.bf16.msra.mxu2 %v1328_v36  ;;  %v1361_v15 = vld [vmem:[%s2200_s1 + $0x148] sm:$0xf0]  ;;  %v1527_v16 = vld [vmem:[%s2200_s1 + $0x1c4] sm:$0xf]  ;;  %v1151_v19 = vld [vmem:[%s1795_s26 + $0x20] sm:$0xf]  ;;  %v1308_v21 = vor.u32 %v1497_v11, %v1305_v13 }
  0x2d   : > { %773 = vmatpush.bf16.msra.mxu3 %v1392_v43  ;;  %675 = vmatmul.bf16.vlgmr.msra.gmra.mxu0 %v1821_v48  ;;  %v1425_v17 = vld [vmem:[%s2200_s1 + $0x1c8] sm:$0xf0]  ;;  %v1461_v20 = vld [vmem:[%s1795_s26 + $0x2c] sm:$0xf0]  ;;  %v1364_v22 = vor.u32 %v1511_v14, %v1361_v15  ;;  %v1479_v23 = vld [vmem:[%s2200_s1 + $0x44] sm:$0xf] }
  0x2e   : > { %708 = vmatmul.bf16.vlgmr.msra.gmra.mxu1 %v1828_v53  ;;  %799 = vmatpush.bf16.msrb.mxu0 %v1260_v58  ;;  %v1233_v24 = vld [vmem:[%s2200_s1 + $0x48] sm:$0xf0]  ;;  %v1495_v25 = vld [vmem:[%s2200_s1 + $0xc4] sm:$0xf]  ;;  %v1153_v27 = vld [vmem:[%s1795_s26 + $0x30] sm:$0xf0]  ;;  %v1428_v28 = vor.u32 %v1527_v16, %v1425_v17  ;;  %v1930_v43 = vor.u32 %v1461_v20, %v1151_v19 }
  0x2f   : > { %741 = vmatmul.bf16.vlgmr.msra.gmra.mxu2 %v1830_v54  ;;  %832 = vmatpush.bf16.msrb.mxu1 %v1324_v59  ;;  %v1459_v26 = vld [vmem:[%s1795_s26 + $0x24] sm:$0xf]  ;;  %v1297_v29 = vld [vmem:[%s2200_s1 + $0xc8] sm:$0xf0]  ;;  %v1509_v30 = vld [vmem:[%s2200_s1 + $0x134] sm:$0xf]  ;;  %v1236_v37 = vor.u32 %v1479_v23, %v1233_v24 }
  0x30   : > { %865 = vmatpush.bf16.msrb.mxu2 %v1388_v47  ;;  %774 = vmatmul.bf16.vlgmr.msra.gmra.mxu3 %v1838_v57  ;;  %v1353_v31 = vld [vmem:[%s2200_s1 + $0x138] sm:$0xf0]  ;;  %v1159_v32 = vld [vmem:[%s1795_s26 + $0x28] sm:$0xf]  ;;  %v1525_v33 = vld [vmem:[%s2200_s1 + $0x1b4] sm:$0xf]  ;;  %v1300_v39 = vor.u32 %v1495_v25, %v1297_v29  ;;  %v1938_v47 = vor.u32 %v1459_v26, %v1153_v27 }
  0x31   : > { %898 = vmatpush.bf16.msrb.mxu3 %v1452_v51  ;;  %v1417_v34 = vld [vmem:[%s2200_s1 + $0x1b8] sm:$0xf0]  ;;  %v1462_v35 = vld [vmem:[%s1795_s26 + $0x34] sm:$0xf0]  ;;  %v1460_v36 = vld [vmem:[%s1795_s26 + $0x2c] sm:$0xf]  ;;  %v1356_v40 = vor.u32 %v1509_v30, %v1353_v31 }
  0x32   : > { %800 = vmatpush.bf16.msrb.mxu0 %v1252_v6  ;;  %v1161_v38 = vld [vmem:[%s1795_s26 + $0x38] sm:$0xf0]  ;;  %v1477_v41 = vld [vmem:[%s2200_s1 + $0x34] sm:$0xf]  ;;  %v1420_v44 = vor.u32 %v1525_v33, %v1417_v34  ;;  %v1940_v49 = vor.u32 %v1462_v35, %v1159_v32  ;;  %v1507_v55 = vld [vmem:[%s2200_s1 + $0x124] sm:$0xf] }
  0x33   : > { %833 = vmatpush.bf16.msrb.mxu1 %v1316_v7  ;;  %v1225_v42 = vld [vmem:[%s2200_s1 + $0x38] sm:$0xf0]  ;;  %v1493_v45 = vld [vmem:[%s2200_s1 + $0xb4] sm:$0xf]  ;;  %v1942_v50 = vor.u32 %v1460_v36, %v1161_v38  ;;  %v1345_v56 = vld [vmem:[%s2200_s1 + $0x128] sm:$0xf0] }
  0x34   : > { %866 = vmatpush.bf16.msrb.mxu2 %v1380_v60  ;;  %v1289_v46 = vld [vmem:[%s2200_s1 + $0xb8] sm:$0xf0]  ;;  %v1228_v51 = vor.u32 %v1477_v41, %v1225_v42  ;;  %v1523_v58 = vld [vmem:[%s2200_s1 + $0x1a4] sm:$0xf]  ;;  %v1348_v59 = vor.u32 %v1507_v55, %v1345_v56  ;;  %v1409_v60 = vld [vmem:[%s2200_s1 + $0x1a8] sm:$0xf0] }
  0x35   : > { %899 = vmatpush.bf16.msrb.mxu3 %v1444_v0  ;;  %v1292_v52 = vor.u32 %v1493_v45, %v1289_v46  ;;  %v1475_v61 = vld [vmem:[%s2200_s1 + $0x24] sm:$0xf]  ;;  %v1217_v62 = vld [vmem:[%s2200_s1 + $0x28] sm:$0xf0]  ;;  %v1412_v63 = vor.u32 %v1523_v58, %v1409_v60  ;;  %v1505_v3 = vld [vmem:[%s2200_s1 + $0x114] sm:$0xf] }
  0x36   : > { %801 = vmatpush.bf16.msrb.mxu0 %v1244_v18  ;;  %v1220_v0 = vor.u32 %v1475_v61, %v1217_v62  ;;  %v1491_v1 = vld [vmem:[%s2200_s1 + $0xa4] sm:$0xf]  ;;  %v1281_v2 = vld [vmem:[%s2200_s1 + $0xa8] sm:$0xf0]  ;;  %v1337_v5 = vld [vmem:[%s2200_s1 + $0x118] sm:$0xf0] }
  0x37   : > { %834 = vmatpush.bf16.msrb.mxu1 %v1308_v21  ;;  %v1284_v4 = vor.u32 %v1491_v1, %v1281_v2  ;;  %v1521_v6 = vld [vmem:[%s2200_s1 + $0x194] sm:$0xf]  ;;  %v1401_v7 = vld [vmem:[%s2200_s1 + $0x198] sm:$0xf0]  ;;  %v1167_v10 = vld [vmem:[%s1795_s26 + $0x40] sm:$0xf] }
  0x38   : > { %867 = vmatpush.bf16.msrb.mxu2 %v1372_v8  ;;  %v1340_v8 = vor.u32 %v1505_v3, %v1337_v5  ;;  %v1404_v9 = vor.u32 %v1521_v6, %v1401_v7  ;;  %v1465_v11 = vld [vmem:[%s1795_s26 + $0x4c] sm:$0xf0]  ;;  %v1169_v13 = vld [vmem:[%s1795_s26 + $0x50] sm:$0xf0]  ;;  %v1175_v14 = vld [vmem:[%s1795_s26 + $0x48] sm:$0xf] }
  0x39   : > { %900 = vmatpush.bf16.msrb.mxu3 %v1436_v12  ;;  %v1463_v12 = vld [vmem:[%s1795_s26 + $0x44] sm:$0xf]  ;;  %v1466_v15 = vld [vmem:[%s1795_s26 + $0x54] sm:$0xf0]  ;;  %v1464_v16 = vld [vmem:[%s1795_s26 + $0x4c] sm:$0xf]  ;;  %v1992_v18 = vor.u32 %v1465_v11, %v1167_v10 }
  0x3a   : > { %802 = vmatpush.bf16.msrb.mxu0 %v1236_v37  ;;  %v1177_v17 = vld [vmem:[%s1795_s26 + $0x58] sm:$0xf0]  ;;  %v1994_v19 = vor.u32 %v1463_v12, %v1169_v13  ;;  %v1996_v20 = vor.u32 %v1466_v15, %v1175_v14  ;;  %v1489_v24 = vld [vmem:[%s2200_s1 + $0x94] sm:$0xf]  ;;  %v1503_v27 = vld [vmem:[%s2200_s1 + $0x104] sm:$0xf] }
  0x3b   : > { %835 = vmatpush.bf16.msrb.mxu1 %v1300_v39  ;;  %v1998_v21 = vor.u32 %v1464_v16, %v1177_v17  ;;  %v1209_v23 = vld [vmem:[%s2200_s1 + $0x18] sm:$0xf0]  ;;  %v1519_v31 = vld [vmem:[%s2200_s1 + $0x184] sm:$0xf]  ;;  %v1393_v32 = vld [vmem:[%s2200_s1 + $0x188] sm:$0xf0] }
  0x3c   : > { %868 = vmatpush.bf16.msrb.mxu2 %v1364_v22  ;;  %v1473_v22 = vld [vmem:[%s2200_s1 + $0x14] sm:$0xf]  ;;  %v1273_v26 = vld [vmem:[%s2200_s1 + $0x98] sm:$0xf0]  ;;  %v1471_v33 = vld [vmem:[%s2200_s1 + $0x4] sm:$0xf]  ;;  %v1396_v34 = vor.u32 %v1519_v31, %v1393_v32 }
  0x3d   : > { %901 = vmatpush.bf16.msrb.mxu3 %v1428_v28  ;;  %680 = vmatmul.bf16.gmra.mxu0 %v1930_v43  ;;  %v1212_v25 = vor.u32 %v1473_v22, %v1209_v23  ;;  %v1329_v28 = vld [vmem:[%s2200_s1 + $0x108] sm:$0xf0]  ;;  %v1276_v29 = vor.u32 %v1489_v24, %v1273_v26  ;;  %v1487_v36 = vld [vmem:[%s2200_s1 + $0x84] sm:$0xf]  ;;  %v1469_v41 = vld [vmem:[%s1795_s26 + $0x6c] sm:$0xf0] }
  0x3e   : > { %713 = vmatmul.bf16.gmra.mxu1 %v1938_v47  ;;  %803 = vmatpush.bf16.msrb.mxu0 %v1228_v51  ;;  %v1332_v30 = vor.u32 %v1503_v27, %v1329_v28  ;;  %v1201_v35 = vld [vmem:[%s2200_s1 + $0x8] sm:$0xf0]  ;;  %v1467_v42 = vld [vmem:[%s1795_s26 + $0x64] sm:$0xf]  ;;  %v1191_v45 = vld [vmem:[%s1795_s26 + $0x68] sm:$0xf] }
  0x3f   : > { %746 = vmatmul.bf16.gmra.mxu2 %v1940_v49  ;;  %836 = vmatpush.bf16.msrb.mxu1 %v1292_v52  ;;  %v1265_v37 = vld [vmem:[%s2200_s1 + $0x88] sm:$0xf0]  ;;  %v1204_v38 = vor.u32 %v1471_v33, %v1201_v35  ;;  %v1470_v46 = vld [vmem:[%s1795_s26 + $0x74] sm:$0xf0]  ;;  %v1193_v52 = vld [vmem:[%s1795_s26 + $0x78] sm:$0xf0] }
  0x40   : > { %869 = vmatpush.bf16.msrb.mxu2 %v1356_v40  ;;  %779 = vmatmul.bf16.gmra.mxu3 %v1942_v50  ;;  %v1268_v39 = vor.u32 %v1487_v36, %v1265_v37  ;;  %v1183_v40 = vld [vmem:[%s1795_s26 + $0x60] sm:$0xf]  ;;  %v1468_v51 = vld [vmem:[%s1795_s26 + $0x6c] sm:$0xf]  ;;  %v1192_v58 = vor.u32 %v1470_v46, %v1191_v45  ;;  %s1536_s4 = smul.u32 36, %s2204_s13 }
  0x41   : > { %902 = vmatpush.bf16.msrb.mxu3 %v1420_v44  ;;  %v1185_v44 = vld [vmem:[%s1795_s26 + $0x70] sm:$0xf0]  ;;  %v1184_v55 = vor.u32 %v1469_v41, %v1183_v40  ;;  %v187_v60 = vld [vmem:[%s1795_s26 + $0x80] sm:$0xff]  ;;  %v188_v61 = vld [vmem:[%s1795_s26 + $0x88] sm:$0xff]  ;;  %s1555_s26 = smov 64  }
  0x42   : > { %804 = vmatpush.bf16.msrb.mxu0 %v1220_v0  ;;  %v1188_v56 = vor.u32 %v1467_v42, %v1185_v44  ;;  %v303_v62 = vunpack.c.l.b16 %v187_v60  ;;  %v305_v0 = vunpack.c.l.b16 %v188_v61  ;;  %v306_v1 = vunpack.c.h.b16 %v188_v61  ;;  %s2150_s7 = scalar_lea.vmem %s2202_s3, %s1536_s4 }
  0x43   : > { %837 = vmatpush.bf16.msrb.mxu1 %v1284_v4 }
  0x44   : > { %870 = vmatpush.bf16.msrb.mxu2 %v1348_v59  ;;  %v1196_v59 = vor.u32 %v1468_v51, %v1193_v52  ;;  %v323_v2 = vpack.c.b16 %v303_v62, %v303_v62  ;;  %v325_v4 = vpack.c.b16 %v305_v0, %v305_v0  ;;  %v326_v5 = vpack.c.b16 %v306_v1, %v306_v1 }
  0x45   : > { %903 = vmatpush.bf16.msrb.mxu3 %v1412_v63  ;;  %v304_v63 = vunpack.c.h.b16 %v187_v60 }
  0x46   : > { %805 = vmatpush.bf16.msrb.mxu0 %v1212_v25 }
  0x47   : > { %838 = vmatpush.bf16.msrb.mxu1 %v1276_v29  ;;  %v324_v3 = vpack.c.b16 %v304_v63, %v304_v63 }
  0x48   : > { %871 = vmatpush.bf16.msrb.mxu2 %v1340_v8 }
  0x49   : > { %904 = vmatpush.bf16.msrb.mxu3 %v1404_v9 }
  0x4a   : > { %806 = vmatpush.bf16.msrb.mxu0 %v1204_v38 }
  0x4b   : > { %839 = vmatpush.bf16.msrb.mxu1 %v1268_v39 }
  0x4c   : > { %872 = vmatpush.bf16.msrb.mxu2 %v1332_v30 }
  0x4d   : > { %685 = vmatmul.bf16.gmra.mxu0 %v1992_v18  ;;  %905 = vmatpush.bf16.msrb.mxu3 %v1396_v34 }
  0x4e   : > { %718 = vmatmul.bf16.gmra.mxu1 %v1994_v19 }
  0x4f   : > { %751 = vmatmul.bf16.gmra.mxu2 %v1996_v20 }
  0x50   : > { %784 = vmatmul.bf16.gmra.mxu3 %v1998_v21 }
  0x5d   : > { %690 = vmatmul.bf16.gmra.mxu0 %v1184_v55 }
  0x5e   : > { %723 = vmatmul.bf16.gmra.mxu1 %v1188_v56 }
  0x5f   : > { %756 = vmatmul.bf16.gmra.mxu2 %v1192_v58 }
  0x60   : > { %789 = vmatmul.bf16.gmra.mxu3 %v1196_v59 }
  0x6d   : > { %695 = vmatmul.bf16.gmra.mxu0 %v323_v2 }
  0x6e   : > { %728 = vmatmul.bf16.gmra.mxu1 %v324_v3 }
  0x6f   : > { %761 = vmatmul.bf16.gmra.mxu2 %v325_v4 }
  0x70   : > { %794 = vmatmul.bf16.gmra.mxu3 %v326_v5 }
  0x7d   : > { %807 = vmatmul.bf16.vlgmr.msrb.gmra.mxu0 %v1821_v48 }
  0x7e   : > { %840 = vmatmul.bf16.vlgmr.msrb.gmra.mxu1 %v1828_v53 }
  0x7f   : > { %873 = vmatmul.bf16.vlgmr.msrb.gmra.mxu2 %v1830_v54 }
  0x80   : > { %906 = vmatmul.bf16.vlgmr.msrb.gmra.mxu3 %v1838_v57 }
  0x8d   : > { %812 = vmatmul.bf16.gmra.mxu0 %v1930_v43 }
  0x8e   : > { %845 = vmatmul.bf16.gmra.mxu1 %v1938_v47 }
  0x8f   : > { %878 = vmatmul.bf16.gmra.mxu2 %v1940_v49 }
  0x90   : > { %911 = vmatmul.bf16.gmra.mxu3 %v1942_v50 }
  0x9d   : > { %817 = vmatmul.bf16.gmra.mxu0 %v1992_v18 }
  0x9e   : > { %850 = vmatmul.bf16.gmra.mxu1 %v1994_v19 }
  0x9f   : > { %883 = vmatmul.bf16.gmra.mxu2 %v1996_v20 }
  0xa0   : > { %916 = vmatmul.bf16.gmra.mxu3 %v1998_v21 }
  0xaa   : > { %v676_v48 = vpop.f32.mrf.mxu0 }
  0xab   : > { %v709_v53 = vpop.f32.mrf.mxu1 }
  0xac   : > { %v710_v54 = vadd.f32 %v709_v53, %v676_v48 }
  0xad   : > { %822 = vmatmul.bf16.gmra.mxu0 %v1184_v55 }
  0xae   : > { %855 = vmatmul.bf16.gmra.mxu1 %v1188_v56 }
  0xaf   : > { %888 = vmatmul.bf16.gmra.mxu2 %v1192_v58 }
  0xb0   : > { %921 = vmatmul.bf16.gmra.mxu3 %v1196_v59 }
  0xb2   : > { %v742_v57 = vpop.f32.mrf.mxu2  ;;  %v678_v49 = vpop.f32.mrf.mxu0 }
  0xb3   : > { %v743_v43 = vadd.f32 %v742_v57, %v710_v54  ;;  %v775_v47 = vpop.f32.mrf.mxu3  ;;  %v711_v50 = vpop.f32.mrf.mxu1 }
  0xb4   : > { %v712_v7 = vadd.f32 %v711_v50, %v678_v49 }
  0xb5   : > { %v2062_v6 = vadd.f32 %v775_v47, %v743_v43 }
  0xb7   : > { %940 = vrot.lane.b32.xlu0 %v2062_v6, %s1555_s26 }
  0xba   : > { %v744_v8 = vpop.f32.mrf.mxu2  ;;  %v681_v11 = vpop.f32.mrf.mxu0 }
  0xbb   : > { %v745_v9 = vadd.f32 %v744_v8, %v712_v7  ;;  %v777_v10 = vpop.f32.mrf.mxu3  ;;  %v714_v12 = vpop.f32.mrf.mxu1 }
  0xbc   : > { %v715_v14 = vadd.f32 %v714_v12, %v681_v11 }
  0xbd   : > { %v2066_v13 = vadd.f32 %v777_v10, %v745_v9  ;;  %827 = vmatmul.bf16.gmra.mxu0 %v323_v2 }
  0xbe   : > { %860 = vmatmul.bf16.gmra.mxu1 %v324_v3 }
  0xbf   : > { %893 = vmatmul.bf16.gmra.mxu2 %v325_v4  ;;  %942 = vrot.lane.b32.xlu0 %v2066_v13, %s1555_s26 }
  0xc0   : > { %926 = vmatmul.bf16.gmra.mxu3 %v326_v5 }
  0xc2   : > { %v747_v15 = vpop.f32.mrf.mxu2  ;;  %v683_v18 = vpop.f32.mrf.mxu0 }
  0xc3   : > { %v748_v16 = vadd.f32 %v747_v15, %v715_v14  ;;  %v780_v17 = vpop.f32.mrf.mxu3  ;;  %v716_v19 = vpop.f32.mrf.mxu1 }
  0xc4   : > { %v717_v21 = vadd.f32 %v716_v19, %v683_v18 }
  0xc5   : > { %v2070_v20 = vadd.f32 %v780_v17, %v748_v16 }
  0xc7   : > { %944 = vrot.lane.b32.xlu1 %v2070_v20, %s1555_s26 }
  0xca   : > { %v749_v22 = vpop.f32.mrf.mxu2  ;;  %v686_v25 = vpop.f32.mrf.mxu0 }
  0xcb   : > { %v750_v23 = vadd.f32 %v749_v22, %v717_v21  ;;  %v782_v24 = vpop.f32.mrf.mxu3  ;;  %v719_v26 = vpop.f32.mrf.mxu1 }
  0xcc   : > { %v720_v28 = vadd.f32 %v719_v26, %v686_v25 }
  0xcd   : > { %v2074_v27 = vadd.f32 %v782_v24, %v750_v23 }
  0xcf   : > { %946 = vrot.lane.b32.xlu1 %v2074_v27, %s1555_s26 }
  0xd2   : > { %v752_v29 = vpop.f32.mrf.mxu2  ;;  %v688_v32 = vpop.f32.mrf.mxu0 }
  0xd3   : > { %v753_v30 = vadd.f32 %v752_v29, %v720_v28  ;;  %v785_v31 = vpop.f32.mrf.mxu3  ;;  %v721_v33 = vpop.f32.mrf.mxu1 }
  0xd4   : > { %v722_v35 = vadd.f32 %v721_v33, %v688_v32 }
  0xd5   : > { %v2078_v34 = vadd.f32 %v785_v31, %v753_v30 }
  0xd7   : > { %948 = vrot.lane.b32.xlu2 %v2078_v34, %s1555_s26 }
  0xda   : > { %v754_v36 = vpop.f32.mrf.mxu2  ;;  %v691_v39 = vpop.f32.mrf.mxu0 }
  0xdb   : > { %v755_v37 = vadd.f32 %v754_v36, %v722_v35  ;;  %v787_v38 = vpop.f32.mrf.mxu3  ;;  %v724_v40 = vpop.f32.mrf.mxu1 }
  0xdc   : > { %v725_v42 = vadd.f32 %v724_v40, %v691_v39 }
  0xdd   : > { %v2082_v41 = vadd.f32 %v787_v38, %v755_v37 }
  0xdf   : > { %950 = vrot.lane.b32.xlu2 %v2082_v41, %s1555_s26 }
  0xe2   : > { %v757_v44 = vpop.f32.mrf.mxu2  ;;  %v693_v51 = vpop.f32.mrf.mxu0 }
  0xe3   : > { %v758_v45 = vadd.f32 %v757_v44, %v725_v42  ;;  %v790_v46 = vpop.f32.mrf.mxu3  ;;  %v726_v52 = vpop.f32.mrf.mxu1 }
  0xe4   : > { %v727_v56 = vadd.f32 %v726_v52, %v693_v51 }
  0xe5   : > { %v2086_v55 = vadd.f32 %v790_v46, %v758_v45 }
  0xe7   : > { %952 = vrot.lane.b32.xlu0 %v2086_v55, %s1555_s26 }
  0xea   : > { %v759_v58 = vpop.f32.mrf.mxu2  ;;  %v696_v61 = vpop.f32.mrf.mxu0 }
  0xeb   : > { %v760_v59 = vadd.f32 %v759_v58, %v727_v56  ;;  %v792_v60 = vpop.f32.mrf.mxu3  ;;  %v729_v62 = vpop.f32.mrf.mxu1 }
  0xec   : > { %v730_v0 = vadd.f32 %v729_v62, %v696_v61 }
  0xed   : > { %v2090_v63 = vadd.f32 %v792_v60, %v760_v59 }
  0xef   : > { %954 = vrot.lane.b32.xlu1 %v2090_v63, %s1555_s26 }
  0xf2   : > { %v762_v1 = vpop.f32.mrf.mxu2  ;;  %v698_v4 = vpop.f32.mrf.mxu0 }
  0xf3   : > { %v763_v2 = vadd.f32 %v762_v1, %v730_v0  ;;  %v795_v3 = vpop.f32.mrf.mxu3  ;;  %v731_v5 = vpop.f32.mrf.mxu1 }
  0xf5   : > { %v2094_v48 = vadd.f32 %v795_v3, %v763_v2 }
  0xf7   : > { %956 = vrot.lane.b32.xlu2 %v2094_v48, %s1555_s26 }
  0xfa   : > { %v764_v53 = vpop.f32.mrf.mxu2  ;;  %v808_v57 = vpop.f32.mrf.mxu0 }
  0xfb   : > { %v797_v54 = vpop.f32.mrf.mxu3  ;;  %v841_v43 = vpop.f32.mrf.mxu1 }
  0xfc   : > { %v842_v47 = vadd.f32 %v841_v43, %v808_v57 }
 0x102   : > { %v874_v49 = vpop.f32.mrf.mxu2  ;;  %v810_v8 = vpop.f32.mrf.mxu0 }
 0x103   : > { %v875_v50 = vadd.f32 %v874_v49, %v842_v47  ;;  %v907_v7 = vpop.f32.mrf.mxu3  ;;  %v843_v9 = vpop.f32.mrf.mxu1 }
 0x104   : > { %v844_v11 = vadd.f32 %v843_v9, %v810_v8 }
 0x105   : > { %v2098_v10 = vadd.f32 %v907_v7, %v875_v50 }
 0x107   : > { %985 = vrot.lane.b32.xlu0 %v2098_v10, %s1555_s26 }
 0x10a   : > { %v876_v12 = vpop.f32.mrf.mxu2  ;;  %v813_v16 = vpop.f32.mrf.mxu0 }
 0x10b   : > { %v877_v14 = vadd.f32 %v876_v12, %v844_v11  ;;  %v909_v15 = vpop.f32.mrf.mxu3  ;;  %v846_v17 = vpop.f32.mrf.mxu1 }
 0x10c   : > { %v847_v19 = vadd.f32 %v846_v17, %v813_v16 }
 0x10d   : > { %v2102_v18 = vadd.f32 %v909_v15, %v877_v14 }
 0x10f   : > { %987 = vrot.lane.b32.xlu1 %v2102_v18, %s1555_s26 }
 0x112   : > { %v879_v21 = vpop.f32.mrf.mxu2  ;;  %v815_v24 = vpop.f32.mrf.mxu0 }
 0x113   : > { %v880_v22 = vadd.f32 %v879_v21, %v847_v19  ;;  %v912_v23 = vpop.f32.mrf.mxu3  ;;  %v848_v25 = vpop.f32.mrf.mxu1 }
 0x114   : > { %v849_v28 = vadd.f32 %v848_v25, %v815_v24 }
 0x115   : > { %v2106_v26 = vadd.f32 %v912_v23, %v880_v22 }
 0x117   : > { %989 = vrot.lane.b32.xlu2 %v2106_v26, %s1555_s26 }
 0x11a   : > { %v881_v29 = vpop.f32.mrf.mxu2  ;;  %v818_v32 = vpop.f32.mrf.mxu0 }
 0x11b   : > { %v882_v30 = vadd.f32 %v881_v29, %v849_v28  ;;  %v914_v31 = vpop.f32.mrf.mxu3  ;;  %v851_v33 = vpop.f32.mrf.mxu1 }
 0x11c   : > { %v852_v36 = vadd.f32 %v851_v33, %v818_v32 }
 0x11d   : > { %v2110_v35 = vadd.f32 %v914_v31, %v882_v30  ;;  %v2140_v30 = vld [vmem:[%s2201_s2] ss:$0 sm:$0xff] }
 0x11f   : > { %991 = vrot.lane.b32.xlu0 %v2110_v35, %s1555_s26 }
 0x122   : > { %v884_v37 = vpop.f32.mrf.mxu2  ;;  %v820_v40 = vpop.f32.mrf.mxu0 }
 0x123   : > { %v885_v38 = vadd.f32 %v884_v37, %v852_v36  ;;  %v917_v39 = vpop.f32.mrf.mxu3  ;;  %v853_v42 = vpop.f32.mrf.mxu1 }
 0x124   : > { %v854_v45 = vadd.f32 %v853_v42, %v820_v40 }
 0x125   : > { %v2114_v44 = vadd.f32 %v917_v39, %v885_v38 }
 0x127   : > { %993 = vrot.lane.b32.xlu1 %v2114_v44, %s1555_s26 }
 0x129   : > { %v941_v17 = vpop.permute.xlu0 %940 }
 0x12a   : > { %v886_v46 = vpop.f32.mrf.mxu2  ;;  %v823_v56 = vpop.f32.mrf.mxu0  ;;  %v967_v38 = vmax.f32 %v2062_v6, %v941_v17 }
 0x12b   : > { %v887_v51 = vadd.f32 %v886_v46, %v854_v45  ;;  %v919_v52 = vpop.f32.mrf.mxu3  ;;  %v856_v58 = vpop.f32.mrf.mxu1 }
 0x12c   : > { %v857_v60 = vadd.f32 %v856_v58, %v823_v56 }
 0x12d   : > { %v2118_v59 = vadd.f32 %v919_v52, %v887_v51 }
 0x12f   : > { %995 = vrot.lane.b32.xlu2 %v2118_v59, %s1555_s26 }
 0x131   : > { %v949_v16 = vpop.permute.xlu2 %948  ;;  %v943_v22 = vpop.permute.xlu0 %942 }
 0x132   : > { %v889_v61 = vpop.f32.mrf.mxu2  ;;  %v825_v1 = vpop.f32.mrf.mxu0  ;;  %v968_v51 = vmax.f32 %v2066_v13, %v943_v22 }
 0x133   : > { %v890_v62 = vadd.f32 %v889_v61, %v857_v60  ;;  %v922_v0 = vpop.f32.mrf.mxu3  ;;  %v858_v3 = vpop.f32.mrf.mxu1 }
 0x134   : > { %v859_v4 = vadd.f32 %v858_v3, %v825_v1 }
 0x135   : > { %v2122_v2 = vadd.f32 %v922_v0, %v890_v62 }
 0x137   : > { %997 = vrot.lane.b32.xlu0 %v2122_v2, %s1555_s26 }
 0x139   : > { %v951_v19 = vpop.permute.xlu2 %950  ;;  %v945_v21 = vpop.permute.xlu1 %944 }
 0x13a   : > { %v891_v5 = vpop.f32.mrf.mxu2  ;;  %v828_v57 = vpop.f32.mrf.mxu0  ;;  %v969_v29 = vmax.f32 %v2070_v20, %v945_v21  ;;  %v972_v61 = vmax.f32 %v2082_v41, %v951_v19 }
 0x13b   : > { %v892_v53 = vadd.f32 %v891_v5, %v859_v4  ;;  %v924_v54 = vpop.f32.mrf.mxu3  ;;  %v861_v47 = vpop.f32.mrf.mxu1 }
 0x13c   : > { %v862_v49 = vadd.f32 %v861_v47, %v828_v57  ;;  %v971_v47 = vmax.f32 %v2078_v34, %v949_v16 }
 0x13d   : > { %v2126_v43 = vadd.f32 %v924_v54, %v892_v53 }
 0x13f   : > { %999 = vrot.lane.b32.xlu1 %v2126_v43, %s1555_s26 }
 0x141   : > { %v947_v24 = vpop.permute.xlu1 %946 }
 0x142   : > { %v894_v50 = vpop.f32.mrf.mxu2  ;;  %v830_v9 = vpop.f32.mrf.mxu0  ;;  %v970_v4 = vmax.f32 %v2074_v27, %v947_v24 }
 0x143   : > { %v895_v7 = vadd.f32 %v894_v50, %v862_v49  ;;  %v927_v8 = vpop.f32.mrf.mxu3  ;;  %v863_v12 = vpop.f32.mrf.mxu1 }
 0x145   : > { %v2130_v11 = vadd.f32 %v927_v8, %v895_v7 }
 0x147   : > { %1001 = vrot.lane.b32.xlu2 %v2130_v11, %s1555_s26 }
 0x14a   : > { %v896_v14 = vpop.f32.mrf.mxu2 }
 0x14b   : > { %v929_v15 = vpop.f32.mrf.mxu3 }
 0x151   : > { %v957_v23 = vpop.permute.xlu2 %956 }
 0x152   : > { %v975_v9 = vmax.f32 %v2094_v48, %v957_v23 }
 0x159   : > { %v2134_v25 = vpop.permute.xlu0 %952 }
 0x15a   : > { %v973_v17 = vmax.f32 %v2086_v55, %v2134_v25 }
 0x161   : > { %v2145_v37 = vpop.permute.xlu1 %954 }
 0x162   : > { %v974_v24 = vmax.f32 %v2090_v63, %v2145_v37 }
 0x171   : > { %v990_v28 = vpop.permute.xlu2 %989 }
 0x172   : > { %v1014_v31 = vmax.f32 %v2106_v26, %v990_v28 }
 0x174   : > { %v1023_v32 = vmax.f32 %v969_v29, %v1014_v31 }
 0x176   : > { %v1036_v33 = vadd.f32 %v2140_v30, %v1023_v32 }
 0x178   : > { %v1045_v36 = vmax.f32 %v1036_v33, 0.0 }
 0x179   : > { %v986_v20 = vpop.permute.xlu0 %985 }
 0x17a   : > { %v1054_v39 = vpack.c.bf16 %v1045_v36, %v1045_v36  ;;  %v1012_v26 = vmax.f32 %v2098_v10, %v986_v20 }
 0x17c   : > { %1064 = vst.msk [vmem:[%s2150_s7 + $0x8] sm:$0xf] %vm1061_vm0, %v1054_v39  ;;  %v1021_v40 = vmax.f32 %v967_v38, %v1012_v26 }
 0x17e   : > { %v1034_v42 = vadd.f32 %v2140_v30, %v1021_v40 }
 0x180   : > { %v1043_v45 = vmax.f32 %v1034_v42, 0.0 }
 0x181   : > { %v988_v46 = vpop.permute.xlu1 %987 }
 0x182   : > { %v1052_v52 = vpack.c.bf16 %v1043_v45, %v1043_v45  ;;  %v1013_v56 = vmax.f32 %v2102_v18, %v988_v46 }
 0x184   : > { %1062 = vst.msk [vmem:[%s2150_s7] sm:$0xf] %vm1061_vm0, %v1052_v52  ;;  %v1022_v6 = vmax.f32 %v968_v51, %v1013_v56 }
 0x186   : > { %v1035_v58 = vadd.f32 %v2140_v30, %v1022_v6 }
 0x188   : > { %v1044_v10 = vmax.f32 %v1035_v58, 0.0 }
 0x189   : > { %v996_v60 = vpop.permute.xlu2 %995 }
 0x18a   : > { %v1053_v62 = vpack.c.bf16 %v1044_v10, %v1044_v10  ;;  %v1017_v0 = vmax.f32 %v2118_v59, %v996_v60 }
 0x18c   : > { %1063 = vst.msk [vmem:[%s2150_s7 + $0x4] sm:$0xf] %vm1061_vm0, %v1053_v62  ;;  %v1026_v13 = vmax.f32 %v972_v61, %v1017_v0 }
 0x18e   : > { %v1039_v1 = vadd.f32 %v2140_v30, %v1026_v13 }
 0x190   : > { %v1048_v18 = vmax.f32 %v1039_v1, 0.0 }
 0x191   : > { %v992_v3 = vpop.permute.xlu0 %991 }
 0x192   : > { %v1057_v5 = vpack.c.bf16 %v1048_v18, %v1048_v18  ;;  %v1015_v53 = vmax.f32 %v2110_v35, %v992_v3 }
 0x194   : > { %1067 = vst.msk [vmem:[%s2150_s7 + $0x14] sm:$0xf] %vm1061_vm0, %v1057_v5  ;;  %v1024_v41 = vmax.f32 %v970_v4, %v1015_v53 }
 0x196   : > { %v1037_v54 = vadd.f32 %v2140_v30, %v1024_v41 }
 0x198   : > { %v1046_v59 = vmax.f32 %v1037_v54, 0.0 }
 0x199   : > { %v994_v57 = vpop.permute.xlu1 %993 }
 0x19a   : > { %v1055_v49 = vpack.c.bf16 %v1046_v59, %v1046_v59  ;;  %v1016_v50 = vmax.f32 %v2114_v44, %v994_v57 }
 0x19c   : > { %1065 = vst.msk [vmem:[%s2150_s7 + $0xc] sm:$0xf] %vm1061_vm0, %v1055_v49  ;;  %v1025_v27 = vmax.f32 %v971_v47, %v1016_v50 }
 0x19e   : > { %v1038_v7 = vadd.f32 %v2140_v30, %v1025_v27 }
 0x1a0   : > { %v1047_v35 = vmax.f32 %v1038_v7, 0.0 }
 0x1a1   : > { %v1002_v8 = vpop.permute.xlu2 %1001 }
 0x1a2   : > { %v1056_v12 = vpack.c.bf16 %v1047_v35, %v1047_v35  ;;  %v1020_v14 = vmax.f32 %v2130_v11, %v1002_v8 }
 0x1a4   : > { %1066 = vst.msk [vmem:[%s2150_s7 + $0x10] sm:$0xf] %vm1061_vm0, %v1056_v12  ;;  %v1029_v34 = vmax.f32 %v975_v9, %v1020_v14 }
 0x1a6   : > { %v1042_v15 = vadd.f32 %v2140_v30, %v1029_v34 }
 0x1a8   : > { %v1051_v44 = vmax.f32 %v1042_v15, 0.0 }
 0x1a9   : > { %v998_v16 = vpop.permute.xlu0 %997 }
 0x1aa   : > { %v1060_v19 = vpack.c.bf16 %v1051_v44, %v1051_v44  ;;  %v1018_v21 = vmax.f32 %v2122_v2, %v998_v16 }
 0x1ac   : > { %1070 = vst.msk [vmem:[%s2150_s7 + $0x20] sm:$0xf] %vm1061_vm0, %v1060_v19  ;;  %v1027_v48 = vmax.f32 %v973_v17, %v1018_v21 }
 0x1ae   : > { %v1040_v11 = vadd.f32 %v2140_v30, %v1027_v48 }
 0x1b0   : > { %v1049_v22 = vmax.f32 %v1040_v11, 0.0 }
 0x1b1   : > { %v1000_v23 = vpop.permute.xlu1 %999 }
 0x1b2   : > { %v1058_v28 = vpack.c.bf16 %v1049_v22, %v1049_v22  ;;  %v1019_v29 = vmax.f32 %v2126_v43, %v1000_v23 }
 0x1b4   : > { %1068 = vst.msk [vmem:[%s2150_s7 + $0x18] sm:$0xf] %vm1061_vm0, %v1058_v28  ;;  %v1028_v55 = vmax.f32 %v974_v24, %v1019_v29 }
 0x1b6   : > { %v1041_v25 = vadd.f32 %v2140_v30, %v1028_v55 }
 0x1b8   : > { %v1050_v31 = vmax.f32 %v1041_v25, 0.0 }
 0x1ba   : > { %v1059_v2 = vpack.c.bf16 %v1050_v31, %v1050_v31 }
 0x1bc   : > { %1069 = vst.msk [vmem:[%s2150_s7 + $0x1c] sm:$0xf] %vm1061_vm0, %v1059_v2 }
 0x1bd PF: > { %s13_s12 = sadd.s32 1, %s1553_s12  }
 0x1be   : > { %p10_p4 = scmp.ge.s32.totalorder %s13_s12, 4  }
 0x1c0   :  { %12 = sbr.rel (!%p10_p4) target bundleno = 1 (0x1), region = 62 }

// kernel: ai_image_detector_forward.6
= control target key start
LH: loop header
LB: loop body
LE: loop exit
PB: predicated region body
PF: predicated region fallthrough
CT: control target
= control target key end

     0   :  { %s3816_s12 = smov 0   ;;  %s5540_s0 = inlined_call_operand.vmem [shape: bf16[2,20,1024], index: 0, kind: input, shape index: {}]   ;;  %s5541_s1 = inlined_call_operand.vmem [shape: bf16[1024,512], index: 1, kind: input, shape index: {}]   ;;  %s5542_s2 = inlined_call_operand.vmem [shape: f32[1,128], index: 2, kind: input, shape index: {}]   ;;  %s5543_s3 = inlined_call_operand.vmem [shape: bf16[2,20,128], index: 3, kind: output, shape index: {}]  }
   0x1 LB: > { %s2443_s13 = sadd.s32 4294967295, %s3794_s12   ;;  %p2447_p0 = scmp.ge.s32.totalorder %s3794_s12, 1  ;;  %s3794_s12 = sphi %s3816_s12, %s13_s12  }
   0x2   : > { %p137_p1 = scmp.lt.s32.totalorder %s3794_s12, 3 }
   0x4   : > { %p138_p2 = pnand %p2447_p0, %p137_p1 }
   0x5   : > { %p161_p3 = scmp.lt.s32.totalorder (!%p138_p2), %s2443_s13, 1 }
   0x6   : > { %141 = sbr.rel (%p138_p2) target bundleno = 436 (0x1b4), region = 32 }
   0xb   : > { %v2596_v0 = vld [vmem:[%s5541_s1 + $0xe0] sm:$0xf]  ;;  %v3546_v1 = vld [vmem:[%s5541_s1 + $0xec] sm:$0xf0]  ;;  %s5545_s13 = smov (!%p161_p3, %s2443_s13), 1 }
   0xc   : > { %v2724_v2 = vld [vmem:[%s5541_s1 + $0x1e0] sm:$0xf]  ;;  %v2597_v3 = vor.u32 %v3546_v1, %v2596_v0  ;;  %v3578_v4 = vld [vmem:[%s5541_s1 + $0x1ec] sm:$0xf0]  ;;  %s3777_s15 = smul.u32 96, %s5545_s13 }
   0xd   : > { %v2852_v5 = vld [vmem:[%s5541_s1 + $0x2e0] sm:$0xf]  ;;  %v3610_v6 = vld [vmem:[%s5541_s1 + $0x2ec] sm:$0xf0]  ;;  %v2725_v7 = vor.u32 %v3578_v4, %v2724_v2  ;;  %s3778_s27 = smul.u32 12, %s5545_s13 }
   0xe   : > { %v2853_v8 = vor.u32 %v3610_v6, %v2852_v5  ;;  %v2980_v9 = vld [vmem:[%s5541_s1 + $0x3e0] sm:$0xf]  ;;  %v3642_v10 = vld [vmem:[%s5541_s1 + $0x3ec] sm:$0xf0]  ;;  %1787 = vmatpush.bf16.msra.mxu0 %v2597_v3  ;;  %s4032_s24 = scalar_lea.vmem %s5540_s0, %s3777_s15 }
   0xf   : > { %v2580_v11 = vld [vmem:[%s5541_s1 + $0xc0] sm:$0xf]  ;;  %v2981_v12 = vor.u32 %v3642_v10, %v2980_v9  ;;  %v3542_v13 = vld [vmem:[%s5541_s1 + $0xcc] sm:$0xf0]  ;;  %1805 = vmatpush.bf16.msra.mxu1 %v2725_v7  ;;  %s170_s30 = scalar_lea.vmem %s5543_s3, %s3778_s27 }
  0x10   : > { %v2708_v14 = vld [vmem:[%s5541_s1 + $0x1c0] sm:$0xf]  ;;  %v3574_v15 = vld [vmem:[%s5541_s1 + $0x1cc] sm:$0xf0]  ;;  %1823 = vmatpush.bf16.msra.mxu2 %v2853_v8  ;;  %v2581_v16 = vor.u32 %v3542_v13, %v2580_v11 }
  0x11   : > { %v2709_v17 = vor.u32 %v3574_v15, %v2708_v14  ;;  %v2836_v18 = vld [vmem:[%s5541_s1 + $0x2c0] sm:$0xf]  ;;  %v3606_v19 = vld [vmem:[%s5541_s1 + $0x2cc] sm:$0xf0]  ;;  %1841 = vmatpush.bf16.msra.mxu3 %v2981_v12 }
  0x12   : > { %v2964_v20 = vld [vmem:[%s5541_s1 + $0x3c0] sm:$0xf]  ;;  %v2837_v21 = vor.u32 %v3606_v19, %v2836_v18  ;;  %v3638_v22 = vld [vmem:[%s5541_s1 + $0x3cc] sm:$0xf0]  ;;  %1788 = vmatpush.bf16.msra.mxu0 %v2581_v16 }
  0x13   : > { %v2564_v23 = vld [vmem:[%s5541_s1 + $0xa0] sm:$0xf]  ;;  %v3538_v24 = vld [vmem:[%s5541_s1 + $0xac] sm:$0xf0]  ;;  %v2965_v25 = vor.u32 %v3638_v22, %v2964_v20  ;;  %1806 = vmatpush.bf16.msra.mxu1 %v2709_v17 }
  0x14   : > { %v2692_v26 = vld [vmem:[%s5541_s1 + $0x1a0] sm:$0xf]  ;;  %v3570_v27 = vld [vmem:[%s5541_s1 + $0x1ac] sm:$0xf0]  ;;  %v2565_v29 = vor.u32 %v3538_v24, %v2564_v23  ;;  %1824 = vmatpush.bf16.msra.mxu2 %v2837_v21 }
  0x15   : > { %v2820_v28 = vld [vmem:[%s5541_s1 + $0x2a0] sm:$0xf]  ;;  %v3602_v30 = vld [vmem:[%s5541_s1 + $0x2ac] sm:$0xf0]  ;;  %v2693_v33 = vor.u32 %v3570_v27, %v2692_v26  ;;  %1842 = vmatpush.bf16.msra.mxu3 %v2965_v25 }
  0x16   : > { %v2948_v31 = vld [vmem:[%s5541_s1 + $0x3a0] sm:$0xf]  ;;  %v3634_v32 = vld [vmem:[%s5541_s1 + $0x3ac] sm:$0xf0]  ;;  %v2821_v34 = vor.u32 %v3602_v30, %v2820_v28  ;;  %1789 = vmatpush.bf16.msra.mxu0 %v2565_v29 }
  0x17   : > { %v2548_v35 = vld [vmem:[%s5541_s1 + $0x80] sm:$0xf]  ;;  %v3534_v36 = vld [vmem:[%s5541_s1 + $0x8c] sm:$0xf0]  ;;  %v2949_v38 = vor.u32 %v3634_v32, %v2948_v31  ;;  %1807 = vmatpush.bf16.msra.mxu1 %v2693_v33 }
  0x18   : > { %v2676_v37 = vld [vmem:[%s5541_s1 + $0x180] sm:$0xf]  ;;  %v3566_v39 = vld [vmem:[%s5541_s1 + $0x18c] sm:$0xf0]  ;;  %v2549_v44 = vor.u32 %v3534_v36, %v2548_v35  ;;  %1825 = vmatpush.bf16.msra.mxu2 %v2821_v34 }
  0x19   : > { %v2804_v40 = vld [vmem:[%s5541_s1 + $0x280] sm:$0xf]  ;;  %v3598_v41 = vld [vmem:[%s5541_s1 + $0x28c] sm:$0xf0]  ;;  %v2677_v45 = vor.u32 %v3566_v39, %v2676_v37  ;;  %1843 = vmatpush.bf16.msra.mxu3 %v2949_v38  ;;  %v3508_v39 = vld [vmem:[%s4032_s24 + $0x4] sm:$0xf] }
  0x1a   : > { %v2932_v42 = vld [vmem:[%s5541_s1 + $0x380] sm:$0xf]  ;;  %v3630_v43 = vld [vmem:[%s5541_s1 + $0x38c] sm:$0xf0]  ;;  %v2805_v46 = vor.u32 %v3598_v41, %v2804_v40  ;;  %1790 = vmatpush.bf16.msra.mxu0 %v2549_v44  ;;  %v2454_v44 = vld [vmem:[%s4032_s24 + $0x20] sm:$0xf0] }
  0x1b   : > { %v2532_v47 = vld [vmem:[%s5541_s1 + $0x60] sm:$0xf]  ;;  %v3530_v48 = vld [vmem:[%s5541_s1 + $0x6c] sm:$0xf0]  ;;  %v2933_v50 = vor.u32 %v3630_v43, %v2932_v42  ;;  %1808 = vmatpush.bf16.msra.mxu1 %v2677_v45  ;;  %v2460_v45 = vld [vmem:[%s4032_s24 + $0x8] sm:$0xf] }
  0x1c   : > { %v2660_v49 = vld [vmem:[%s5541_s1 + $0x160] sm:$0xf]  ;;  %v3562_v51 = vld [vmem:[%s5541_s1 + $0x16c] sm:$0xf0]  ;;  %v2533_v56 = vor.u32 %v3530_v48, %v2532_v47  ;;  %1826 = vmatpush.bf16.msra.mxu2 %v2805_v46  ;;  %v3513_v46 = vld [vmem:[%s4032_s24 + $0x24] sm:$0xf0] }
  0x1d   : > { %v2788_v52 = vld [vmem:[%s5541_s1 + $0x260] sm:$0xf]  ;;  %v3594_v53 = vld [vmem:[%s5541_s1 + $0x26c] sm:$0xf0]  ;;  %v2661_v57 = vor.u32 %v3562_v51, %v2660_v49  ;;  %1844 = vmatpush.bf16.msra.mxu3 %v2933_v50  ;;  %v3509_v49 = vld [vmem:[%s4032_s24 + $0xc] sm:$0xf] }
  0x1e   : > { %v2916_v54 = vld [vmem:[%s5541_s1 + $0x360] sm:$0xf]  ;;  %v3626_v55 = vld [vmem:[%s5541_s1 + $0x36c] sm:$0xf0]  ;;  %v2789_v58 = vor.u32 %v3594_v53, %v2788_v52  ;;  %1791 = vmatpush.bf16.msra.mxu0 %v2533_v56  ;;  %v2462_v50 = vld [vmem:[%s4032_s24 + $0x28] sm:$0xf0]  ;;  %v4068_v53 = vor.u32 %v3508_v39, %v2454_v44 }
  0x1f   : > { %v2516_v59 = vld [vmem:[%s5541_s1 + $0x40] sm:$0xf]  ;;  %v3526_v60 = vld [vmem:[%s5541_s1 + $0x4c] sm:$0xf0]  ;;  %v2917_v62 = vor.u32 %v3626_v55, %v2916_v54  ;;  %1809 = vmatpush.bf16.msra.mxu1 %v2661_v57  ;;  %v4070_v54 = vor.u32 %v3513_v46, %v2460_v45  ;;  %v4078_v57 = vor.u32 %v3509_v49, %v2462_v50 }
  0x20   : > { %v2644_v61 = vld [vmem:[%s5541_s1 + $0x140] sm:$0xf]  ;;  %v3558_v63 = vld [vmem:[%s5541_s1 + $0x14c] sm:$0xf0]  ;;  %v2517_v4 = vor.u32 %v3526_v60, %v2516_v59  ;;  %1827 = vmatpush.bf16.msra.mxu2 %v2789_v58 }
  0x21   : > { %v2772_v0 = vld [vmem:[%s5541_s1 + $0x240] sm:$0xf]  ;;  %v3590_v1 = vld [vmem:[%s5541_s1 + $0x24c] sm:$0xf0]  ;;  %v2645_v6 = vor.u32 %v3558_v63, %v2644_v61  ;;  %1845 = vmatpush.bf16.msra.mxu3 %v2917_v62 }
  0x22   : > { %v2900_v2 = vld [vmem:[%s5541_s1 + $0x340] sm:$0xf]  ;;  %v3622_v3 = vld [vmem:[%s5541_s1 + $0x34c] sm:$0xf0]  ;;  %v2773_v7 = vor.u32 %v3590_v1, %v2772_v0  ;;  %1792 = vmatpush.bf16.msra.mxu0 %v2517_v4 }
  0x23   : > { %v2500_v5 = vld [vmem:[%s5541_s1 + $0x20] sm:$0xf]  ;;  %v3522_v8 = vld [vmem:[%s5541_s1 + $0x2c] sm:$0xf0]  ;;  %v2901_v11 = vor.u32 %v3622_v3, %v2900_v2  ;;  %1810 = vmatpush.bf16.msra.mxu1 %v2645_v6 }
  0x24   : > { %v2628_v9 = vld [vmem:[%s5541_s1 + $0x120] sm:$0xf]  ;;  %v3554_v10 = vld [vmem:[%s5541_s1 + $0x12c] sm:$0xf0]  ;;  %v2501_v16 = vor.u32 %v3522_v8, %v2500_v5  ;;  %1828 = vmatpush.bf16.msra.mxu2 %v2773_v7 }
  0x25   : > { %v2756_v12 = vld [vmem:[%s5541_s1 + $0x220] sm:$0xf]  ;;  %v3586_v13 = vld [vmem:[%s5541_s1 + $0x22c] sm:$0xf0]  ;;  %v2629_v19 = vor.u32 %v3554_v10, %v2628_v9  ;;  %1846 = vmatpush.bf16.msra.mxu3 %v2901_v11 }
  0x26   : > { %v2884_v14 = vld [vmem:[%s5541_s1 + $0x320] sm:$0xf]  ;;  %v3618_v15 = vld [vmem:[%s5541_s1 + $0x32c] sm:$0xf0]  ;;  %v2757_v20 = vor.u32 %v3586_v13, %v2756_v12  ;;  %1793 = vmatpush.bf16.msra.mxu0 %v2501_v16 }
  0x27   : > { %v2484_v17 = vld [vmem:[%s5541_s1] sm:$0xf]  ;;  %v3518_v18 = vld [vmem:[%s5541_s1 + $0xc] sm:$0xf0]  ;;  %v2885_v24 = vor.u32 %v3618_v15, %v2884_v14  ;;  %1811 = vmatpush.bf16.msra.mxu1 %v2629_v19 }
  0x28   : > { %v2612_v21 = vld [vmem:[%s5541_s1 + $0x100] sm:$0xf]  ;;  %v3550_v22 = vld [vmem:[%s5541_s1 + $0x10c] sm:$0xf0]  ;;  %v2485_v30 = vor.u32 %v3518_v18, %v2484_v17  ;;  %1829 = vmatpush.bf16.msra.mxu2 %v2757_v20  ;;  %v180_v20 = vld [vmem:[%s4032_s24 + $0x48] sm:$0x33] }
  0x29   : > { %v2740_v23 = vld [vmem:[%s5541_s1 + $0x200] sm:$0xf]  ;;  %v3582_v25 = vld [vmem:[%s5541_s1 + $0x20c] sm:$0xf0]  ;;  %v2613_v35 = vor.u32 %v3550_v22, %v2612_v21  ;;  %1847 = vmatpush.bf16.msra.mxu3 %v2885_v24 }
  0x2a   : > { %v2868_v26 = vld [vmem:[%s5541_s1 + $0x300] sm:$0xf]  ;;  %v3614_v27 = vld [vmem:[%s5541_s1 + $0x30c] sm:$0xf0]  ;;  %v2741_v36 = vor.u32 %v3582_v25, %v2740_v23  ;;  %1794 = vmatpush.bf16.msra.mxu0 %v2485_v30 }
  0x2b   : > { %v3364_v28 = vld [vmem:[%s5541_s1 + $0x6e0] sm:$0xf]  ;;  %v3738_v29 = vld [vmem:[%s5541_s1 + $0x6ec] sm:$0xf0]  ;;  %v2869_v43 = vor.u32 %v3614_v27, %v2868_v26  ;;  %1812 = vmatpush.bf16.msra.mxu1 %v2613_v35 }
  0x2c   : > { %v3108_v31 = vld [vmem:[%s5541_s1 + $0x4e0] sm:$0xf]  ;;  %v3674_v32 = vld [vmem:[%s5541_s1 + $0x4ec] sm:$0xf0]  ;;  %v3365_v47 = vor.u32 %v3738_v29, %v3364_v28  ;;  %1830 = vmatpush.bf16.msra.mxu2 %v2741_v36  ;;  %v470_v36 = vunpack.c.h.b16 %v180_v20 }
  0x2d   : > { %v3236_v33 = vld [vmem:[%s5541_s1 + $0x5e0] sm:$0xf]  ;;  %v3706_v34 = vld [vmem:[%s5541_s1 + $0x5ec] sm:$0xf0]  ;;  %v3109_v58 = vor.u32 %v3674_v32, %v3108_v31  ;;  %1848 = vmatpush.bf16.msra.mxu3 %v2869_v43  ;;  %v469_v32 = vunpack.c.l.b16 %v180_v20  ;;  %v3576_v20 = vld [vmem:[%s5541_s1 + $0x1e4] sm:$0xf] }
  0x2e   : > { %v2452_v37 = vld [vmem:[%s4032_s24] sm:$0xf]  ;;  %v3770_v41 = vld [vmem:[%s5541_s1 + $0x7ec] sm:$0xf0]  ;;  %v3237_v51 = vor.u32 %v3706_v34, %v3236_v33  ;;  %1813 = vmatmul.bf16.vlgmr.msra.gmra.mxu1 %v4068_v53 }
  0x2f   : > { %v3512_v38 = vld [vmem:[%s4032_s24 + $0x1c] sm:$0xf0]  ;;  %v3734_v52 = vld [vmem:[%s5541_s1 + $0x6cc] sm:$0xf0]  ;;  %1831 = vmatmul.bf16.vlgmr.msra.gmra.mxu2 %v4070_v54  ;;  %1859 = vmatpush.bf16.msrb.mxu0 %v3109_v58  ;;  %v4180_v49 = vpack.c.b16 %v469_v32, %v469_v32 }
  0x30   : > { %v3492_v40 = vld [vmem:[%s5541_s1 + $0x7e0] sm:$0xf]  ;;  %v4061_v48 = vor.u32 %v3512_v38, %v2452_v37  ;;  %v3702_v56 = vld [vmem:[%s5541_s1 + $0x5cc] sm:$0xf0]  ;;  %1895 = vmatpush.bf16.msrb.mxu2 %v3365_v47  ;;  %1877 = vmatpush.bf16.msrb.mxu1 %v3237_v51 }
  0x31   : > { %v3348_v42 = vld [vmem:[%s5541_s1 + $0x6c0] sm:$0xf]  ;;  %v3493_v59 = vor.u32 %v3770_v41, %v3492_v40  ;;  %v3670_v62 = vld [vmem:[%s5541_s1 + $0x4cc] sm:$0xf0]  ;;  %1849 = vmatmul.bf16.vlgmr.msra.gmra.mxu3 %v4078_v57 }
  0x32   : > { %v3220_v55 = vld [vmem:[%s5541_s1 + $0x5c0] sm:$0xf]  ;;  %v3349_v60 = vor.u32 %v3734_v52, %v3348_v42  ;;  %1795 = vmatmul.bf16.vlgmr.msra.gmra.mxu0 %v4061_v48  ;;  %v3766_v1 = vld [vmem:[%s5541_s1 + $0x7cc] sm:$0xf0]  ;;  %v4188_v52 = vpack.c.b16 %v470_v36, %v470_v36 }
  0x33   : > { %v3092_v61 = vld [vmem:[%s5541_s1 + $0x4c0] sm:$0xf]  ;;  %v3221_v0 = vor.u32 %v3702_v56, %v3220_v55  ;;  %v3730_v3 = vld [vmem:[%s5541_s1 + $0x6ac] sm:$0xf0]  ;;  %1913 = vmatpush.bf16.msrb.mxu3 %v3493_v59 }
  0x34   : > { %v3476_v63 = vld [vmem:[%s5541_s1 + $0x7c0] sm:$0xf]  ;;  %v3698_v5 = vld [vmem:[%s5541_s1 + $0x5ac] sm:$0xf0]  ;;  %v3093_v6 = vor.u32 %v3670_v62, %v3092_v61  ;;  %1896 = vmatpush.bf16.msrb.mxu2 %v3349_v60 }
  0x35   : > { %v3332_v2 = vld [vmem:[%s5541_s1 + $0x6a0] sm:$0xf]  ;;  %v3477_v7 = vor.u32 %v3766_v1, %v3476_v63  ;;  %v3666_v10 = vld [vmem:[%s5541_s1 + $0x4ac] sm:$0xf0]  ;;  %1878 = vmatpush.bf16.msrb.mxu1 %v3221_v0 }
  0x36   : > { %v3204_v4 = vld [vmem:[%s5541_s1 + $0x5a0] sm:$0xf]  ;;  %v3333_v8 = vor.u32 %v3730_v3, %v3332_v2  ;;  %v3762_v13 = vld [vmem:[%s5541_s1 + $0x7ac] sm:$0xf0]  ;;  %1860 = vmatpush.bf16.msrb.mxu0 %v3093_v6 }
  0x37   : > { %v3076_v9 = vld [vmem:[%s5541_s1 + $0x4a0] sm:$0xf]  ;;  %v3205_v12 = vor.u32 %v3698_v5, %v3204_v4  ;;  %v3726_v15 = vld [vmem:[%s5541_s1 + $0x68c] sm:$0xf0]  ;;  %1914 = vmatpush.bf16.msrb.mxu3 %v3477_v7 }
  0x38   : > { %v3460_v11 = vld [vmem:[%s5541_s1 + $0x7a0] sm:$0xf]  ;;  %v3694_v17 = vld [vmem:[%s5541_s1 + $0x58c] sm:$0xf0]  ;;  %v3077_v19 = vor.u32 %v3666_v10, %v3076_v9  ;;  %1897 = vmatpush.bf16.msrb.mxu2 %v3333_v8 }
  0x39   : > { %v3316_v14 = vld [vmem:[%s5541_s1 + $0x680] sm:$0xf]  ;;  %v3461_v21 = vor.u32 %v3762_v13, %v3460_v11  ;;  %v3662_v24 = vld [vmem:[%s5541_s1 + $0x48c] sm:$0xf0]  ;;  %1879 = vmatpush.bf16.msrb.mxu1 %v3205_v12 }
  0x3a   : > { %v3188_v16 = vld [vmem:[%s5541_s1 + $0x580] sm:$0xf]  ;;  %v3317_v22 = vor.u32 %v3726_v15, %v3316_v14  ;;  %v3758_v27 = vld [vmem:[%s5541_s1 + $0x78c] sm:$0xf0]  ;;  %1861 = vmatpush.bf16.msrb.mxu0 %v3077_v19 }
  0x3b   : > { %v179_v18 = vld [vmem:[%s4032_s24 + $0x40] sm:$0x33]  ;;  %v3189_v26 = vor.u32 %v3694_v17, %v3188_v16  ;;  %v3722_v30 = vld [vmem:[%s5541_s1 + $0x66c] sm:$0xf0]  ;;  %1915 = vmatpush.bf16.msrb.mxu3 %v3461_v21  ;;  %v2854_v17 = vld [vmem:[%s5541_s1 + $0x2f0] sm:$0xf0] }
  0x3c   : > { %v3060_v23 = vld [vmem:[%s5541_s1 + $0x480] sm:$0xf]  ;;  %v467_v28 = vunpack.c.l.b16 %v179_v18  ;;  %v468_v31 = vunpack.c.h.b16 %v179_v18  ;;  %v3690_v34 = vld [vmem:[%s5541_s1 + $0x56c] sm:$0xf0]  ;;  %1898 = vmatpush.bf16.msrb.mxu2 %v3317_v22  ;;  %v3608_v16 = vld [vmem:[%s5541_s1 + $0x2e4] sm:$0xf] }
  0x3d   : > { %v3444_v25 = vld [vmem:[%s5541_s1 + $0x780] sm:$0xf]  ;;  %v3061_v35 = vor.u32 %v3662_v24, %v3060_v23  ;;  %v3658_v40 = vld [vmem:[%s5541_s1 + $0x46c] sm:$0xf0]  ;;  %1880 = vmatpush.bf16.msrb.mxu1 %v3189_v26  ;;  %v2726_v21 = vld [vmem:[%s5541_s1 + $0x1f0] sm:$0xf0]  ;;  %v2857_v32 = vor.u32 %v3608_v16, %v2854_v17 }
  0x3e   : > { %v3300_v29 = vld [vmem:[%s5541_s1 + $0x660] sm:$0xf]  ;;  %v3445_v37 = vor.u32 %v3758_v27, %v3444_v25  ;;  %v4167_v42 = vpack.c.b16 %v467_v28, %v467_v28  ;;  %v3754_v44 = vld [vmem:[%s5541_s1 + $0x76c] sm:$0xf0]  ;;  %v4178_v47 = vpack.c.b16 %v468_v31, %v468_v31  ;;  %v2470_v31 = vld [vmem:[%s4032_s24 + $0x30] sm:$0xf0]  ;;  %v2729_v36 = vor.u32 %v3576_v20, %v2726_v21 }
  0x3f   : > { %v3172_v33 = vld [vmem:[%s5541_s1 + $0x560] sm:$0xf]  ;;  %v3301_v38 = vor.u32 %v3722_v30, %v3300_v29  ;;  %v3718_v46 = vld [vmem:[%s5541_s1 + $0x64c] sm:$0xf0]  ;;  %1862 = vmatpush.bf16.msrb.mxu0 %v3061_v35  ;;  %1836 = vmatmul.bf16.gmra.mxu2 %v4180_v49  ;;  %v3510_v30 = vld [vmem:[%s4032_s24 + $0x14] sm:$0xf] }
  0x40   : > { %v3044_v39 = vld [vmem:[%s5541_s1 + $0x460] sm:$0xf]  ;;  %v3173_v43 = vor.u32 %v3690_v34, %v3172_v33  ;;  %v3686_v51 = vld [vmem:[%s5541_s1 + $0x54c] sm:$0xf0]  ;;  %1916 = vmatpush.bf16.msrb.mxu3 %v3445_v37  ;;  %1818 = vmatmul.bf16.gmra.mxu1 %v4178_v47  ;;  %v3544_v33 = vld [vmem:[%s5541_s1 + $0xe4] sm:$0xf] }
  0x41   : > { %v3428_v41 = vld [vmem:[%s5541_s1 + $0x760] sm:$0xf]  ;;  %v3045_v55 = vor.u32 %v3658_v40, %v3044_v39  ;;  %1899 = vmatpush.bf16.msrb.mxu2 %v3301_v38  ;;  %v3654_v60 = vld [vmem:[%s5541_s1 + $0x44c] sm:$0xf0]  ;;  %1854 = vmatmul.bf16.gmra.mxu3 %v4188_v52  ;;  %v2598_v34 = vld [vmem:[%s5541_s1 + $0xf0] sm:$0xf0] }
  0x42   : > { %v3284_v45 = vld [vmem:[%s5541_s1 + $0x640] sm:$0xf]  ;;  %v3429_v56 = vor.u32 %v3754_v44, %v3428_v41  ;;  %1800 = vmatmul.bf16.gmra.mxu0 %v4167_v42  ;;  %1881 = vmatpush.bf16.msrb.mxu1 %v3173_v43  ;;  %v3750_v63 = vld [vmem:[%s5541_s1 + $0x74c] sm:$0xf0]  ;;  %v3640_v35 = vld [vmem:[%s5541_s1 + $0x3e4] sm:$0xf] }
  0x43   : > { %v3156_v50 = vld [vmem:[%s5541_s1 + $0x540] sm:$0xf]  ;;  %v3285_v58 = vor.u32 %v3718_v46, %v3284_v45  ;;  %v3714_v1 = vld [vmem:[%s5541_s1 + $0x62c] sm:$0xf0]  ;;  %1863 = vmatpush.bf16.msrb.mxu0 %v3045_v55  ;;  %v2982_v37 = vld [vmem:[%s5541_s1 + $0x3f0] sm:$0xf0] }
  0x44   : > { %v3028_v59 = vld [vmem:[%s5541_s1 + $0x440] sm:$0xf]  ;;  %v3157_v62 = vor.u32 %v3686_v51, %v3156_v50  ;;  %v3682_v3 = vld [vmem:[%s5541_s1 + $0x52c] sm:$0xf0]  ;;  %1917 = vmatpush.bf16.msrb.mxu3 %v3429_v56  ;;  %v3604_v38 = vld [vmem:[%s5541_s1 + $0x2c4] sm:$0xf]  ;;  %v2601_v50 = vor.u32 %v3544_v33, %v2598_v34  ;;  %v2985_v56 = vor.u32 %v3640_v35, %v2982_v37 }
  0x45   : > { %v3412_v61 = vld [vmem:[%s5541_s1 + $0x740] sm:$0xf]  ;;  %v3029_v4 = vor.u32 %v3654_v60, %v3028_v59  ;;  %1900 = vmatpush.bf16.msrb.mxu2 %v3285_v58  ;;  %v3650_v8 = vld [vmem:[%s5541_s1 + $0x42c] sm:$0xf0]  ;;  %v2838_v39 = vld [vmem:[%s5541_s1 + $0x2d0] sm:$0xf0] }
  0x46   : > { %v3268_v0 = vld [vmem:[%s5541_s1 + $0x620] sm:$0xf]  ;;  %v3413_v6 = vor.u32 %v3750_v63, %v3412_v61  ;;  %v3746_v10 = vld [vmem:[%s5541_s1 + $0x72c] sm:$0xf0]  ;;  %1882 = vmatpush.bf16.msrb.mxu1 %v3157_v62  ;;  %v2476_v41 = vld [vmem:[%s4032_s24 + $0x18] sm:$0xf]  ;;  %v2841_v58 = vor.u32 %v3604_v38, %v2838_v39  ;;  %v4309_v63 = vor.u32 %v3510_v30, %v2470_v31 }
  0x47   : > { %v3140_v2 = vld [vmem:[%s5541_s1 + $0x520] sm:$0xf]  ;;  %v3269_v7 = vor.u32 %v3714_v1, %v3268_v0  ;;  %v3710_v13 = vld [vmem:[%s5541_s1 + $0x60c] sm:$0xf0]  ;;  %1864 = vmatpush.bf16.msrb.mxu0 %v3029_v4  ;;  %v3515_v43 = vld [vmem:[%s4032_s24 + $0x34] sm:$0xf0] }
  0x48   : > { %v3012_v5 = vld [vmem:[%s5541_s1 + $0x420] sm:$0xf]  ;;  %v3141_v11 = vor.u32 %v3682_v3, %v3140_v2  ;;  %v3678_v15 = vld [vmem:[%s5541_s1 + $0x50c] sm:$0xf0]  ;;  %1918 = vmatpush.bf16.msrb.mxu3 %v3413_v6  ;;  %v3511_v44 = vld [vmem:[%s4032_s24 + $0x1c] sm:$0xf]  ;;  %v4320_v3 = vor.u32 %v3515_v43, %v2476_v41 }
  0x49   : > { %v3396_v9 = vld [vmem:[%s5541_s1 + $0x720] sm:$0xf]  ;;  %v3013_v18 = vor.u32 %v3650_v8, %v3012_v5  ;;  %1901 = vmatpush.bf16.msrb.mxu2 %v3269_v7  ;;  %v3646_v24 = vld [vmem:[%s5541_s1 + $0x40c] sm:$0xf0]  ;;  %v2478_v46 = vld [vmem:[%s4032_s24 + $0x38] sm:$0xf0] }
  0x4a   : > { %v3252_v12 = vld [vmem:[%s5541_s1 + $0x600] sm:$0xf]  ;;  %v3397_v22 = vor.u32 %v3746_v10, %v3396_v9  ;;  %v3742_v26 = vld [vmem:[%s5541_s1 + $0x70c] sm:$0xf0]  ;;  %1883 = vmatpush.bf16.msrb.mxu1 %v3141_v11  ;;  %v3540_v51 = vld [vmem:[%s5541_s1 + $0xc4] sm:$0xf]  ;;  %v4322_v4 = vor.u32 %v3511_v44, %v2478_v46 }
  0x4b   : > { %v3124_v14 = vld [vmem:[%s5541_s1 + $0x500] sm:$0xf]  ;;  %v3253_v23 = vor.u32 %v3710_v13, %v3252_v12  ;;  %v2468_v28 = vld [vmem:[%s4032_s24 + $0x10] sm:$0xf]  ;;  %1865 = vmatpush.bf16.msrb.mxu0 %v3013_v18  ;;  %v2582_v55 = vld [vmem:[%s5541_s1 + $0xd0] sm:$0xf0] }
  0x4c   : > { %v2996_v19 = vld [vmem:[%s5541_s1 + $0x400] sm:$0xf]  ;;  %v3125_v27 = vor.u32 %v3678_v15, %v3124_v14  ;;  %v3514_v29 = vld [vmem:[%s4032_s24 + $0x2c] sm:$0xf0]  ;;  %1919 = vmatpush.bf16.msrb.mxu3 %v3397_v22  ;;  %v3572_v59 = vld [vmem:[%s5541_s1 + $0x1c4] sm:$0xf]  ;;  %v2585_v5 = vor.u32 %v3540_v51, %v2582_v55 }
  0x4d   : > { %v3380_v25 = vld [vmem:[%s5541_s1 + $0x700] sm:$0xf]  ;;  %v2997_v40 = vor.u32 %v3646_v24, %v2996_v19  ;;  %1902 = vmatpush.bf16.msrb.mxu2 %v3253_v23  ;;  %v2710_v60 = vld [vmem:[%s5541_s1 + $0x1d0] sm:$0xf0]  ;;  %v3636_v61 = vld [vmem:[%s5541_s1 + $0x3c4] sm:$0xf]  ;;  %v4307_v62 = vor.u32 %v3514_v29, %v2468_v28 }
  0x4e   : > { %v3381_v45 = vor.u32 %v3742_v26, %v3380_v25  ;;  %1884 = vmatpush.bf16.msrb.mxu1 %v3125_v27  ;;  %v2966_v0 = vld [vmem:[%s5541_s1 + $0x3d0] sm:$0xf0]  ;;  %v3600_v1 = vld [vmem:[%s5541_s1 + $0x2a4] sm:$0xf]  ;;  %v2713_v6 = vor.u32 %v3572_v59, %v2710_v60 }
  0x4f   : > { %v2822_v2 = vld [vmem:[%s5541_s1 + $0x2b0] sm:$0xf0]  ;;  %1866 = vmatpush.bf16.msrb.mxu0 %v2997_v40  ;;  %v3536_v7 = vld [vmem:[%s5541_s1 + $0xa4] sm:$0xf]  ;;  %v2969_v9 = vor.u32 %v3636_v61, %v2966_v0 }
  0x50   : > { %1920 = vmatpush.bf16.msrb.mxu3 %v3381_v45  ;;  %v2566_v8 = vld [vmem:[%s5541_s1 + $0xb0] sm:$0xf0]  ;;  %v2825_v10 = vor.u32 %v3600_v1, %v2822_v2  ;;  %v3568_v11 = vld [vmem:[%s5541_s1 + $0x1a4] sm:$0xf]  ;;  %1903 = vmatmul.bf16.vlgmr.msrb.gmra.mxu2 %v4320_v3 }
  0x51   : > { %1967 = vmatpush.bf16.msra.mxu2 %v2857_v32  ;;  %v2694_v12 = vld [vmem:[%s5541_s1 + $0x1b0] sm:$0xf0]  ;;  %v3632_v13 = vld [vmem:[%s5541_s1 + $0x3a4] sm:$0xf]  ;;  %1885 = vmatmul.bf16.vlgmr.msrb.gmra.mxu1 %v4309_v63  ;;  %v2569_v17 = vor.u32 %v3536_v7, %v2566_v8  ;;  %v182_v32 = vld [vmem:[%s4032_s24 + $0x58] sm:$0x33] }
  0x52   : > { %1949 = vmatpush.bf16.msra.mxu1 %v2729_v36  ;;  %1867 = vmatmul.bf16.vlgmr.msrb.gmra.mxu0 %v4307_v62  ;;  %v2950_v14 = vld [vmem:[%s5541_s1 + $0x3b0] sm:$0xf0]  ;;  %v3596_v15 = vld [vmem:[%s5541_s1 + $0x284] sm:$0xf]  ;;  %v2697_v18 = vor.u32 %v3568_v11, %v2694_v12  ;;  %v473_v46 = vunpack.c.l.b16 %v182_v32 }
  0x53   : > { %1931 = vmatpush.bf16.msra.mxu0 %v2601_v50  ;;  %v2806_v16 = vld [vmem:[%s5541_s1 + $0x290] sm:$0xf0]  ;;  %1921 = vmatmul.bf16.vlgmr.msrb.gmra.mxu3 %v4322_v4  ;;  %v3532_v19 = vld [vmem:[%s5541_s1 + $0x84] sm:$0xf]  ;;  %v2953_v21 = vor.u32 %v3632_v13, %v2950_v14  ;;  %v474_v50 = vunpack.c.h.b16 %v182_v32 }
  0x54   : > { %1985 = vmatpush.bf16.msra.mxu3 %v2985_v56  ;;  %v2550_v20 = vld [vmem:[%s5541_s1 + $0x90] sm:$0xf0]  ;;  %v2809_v22 = vor.u32 %v3596_v15, %v2806_v16  ;;  %v3564_v23 = vld [vmem:[%s5541_s1 + $0x184] sm:$0xf] }
  0x55   : > { %1968 = vmatpush.bf16.msra.mxu2 %v2841_v58  ;;  %v2678_v24 = vld [vmem:[%s5541_s1 + $0x190] sm:$0xf0]  ;;  %v3628_v25 = vld [vmem:[%s5541_s1 + $0x384] sm:$0xf]  ;;  %v2553_v30 = vor.u32 %v3532_v19, %v2550_v20 }
  0x56   : > { %1950 = vmatpush.bf16.msra.mxu1 %v2713_v6  ;;  %v2934_v26 = vld [vmem:[%s5541_s1 + $0x390] sm:$0xf0]  ;;  %v3592_v27 = vld [vmem:[%s5541_s1 + $0x264] sm:$0xf]  ;;  %v2681_v31 = vor.u32 %v3564_v23, %v2678_v24 }
  0x57   : > { %1932 = vmatpush.bf16.msra.mxu0 %v2585_v5  ;;  %v2790_v28 = vld [vmem:[%s5541_s1 + $0x270] sm:$0xf0]  ;;  %v3528_v33 = vld [vmem:[%s5541_s1 + $0x64] sm:$0xf]  ;;  %v2937_v35 = vor.u32 %v3628_v25, %v2934_v26 }
  0x58   : > { %1986 = vmatpush.bf16.msra.mxu3 %v2969_v9  ;;  %v181_v29 = vld [vmem:[%s4032_s24 + $0x50] sm:$0x33]  ;;  %v2793_v36 = vor.u32 %v3592_v27, %v2790_v28  ;;  %v3560_v37 = vld [vmem:[%s5541_s1 + $0x164] sm:$0xf]  ;;  %v4430_v9 = vpack.c.b16 %v473_v46, %v473_v46 }
  0x59   : > { %1969 = vmatpush.bf16.msra.mxu2 %v2825_v10  ;;  %v2534_v34 = vld [vmem:[%s5541_s1 + $0x70] sm:$0xf0]  ;;  %v3624_v39 = vld [vmem:[%s5541_s1 + $0x364] sm:$0xf]  ;;  %v471_v40 = vunpack.c.l.b16 %v181_v29  ;;  %v472_v41 = vunpack.c.h.b16 %v181_v29  ;;  %v4432_v10 = vpack.c.b16 %v474_v50, %v474_v50 }
  0x5a   : > { %1951 = vmatpush.bf16.msra.mxu1 %v2697_v18  ;;  %v2662_v38 = vld [vmem:[%s5541_s1 + $0x170] sm:$0xf0]  ;;  %v3588_v44 = vld [vmem:[%s5541_s1 + $0x244] sm:$0xf]  ;;  %v2537_v51 = vor.u32 %v3528_v33, %v2534_v34 }
  0x5b   : > { %1933 = vmatpush.bf16.msra.mxu0 %v2569_v17  ;;  %v2918_v43 = vld [vmem:[%s5541_s1 + $0x370] sm:$0xf0]  ;;  %v2665_v55 = vor.u32 %v3560_v37, %v2662_v38  ;;  %v3524_v56 = vld [vmem:[%s5541_s1 + $0x44] sm:$0xf]  ;;  %v4417_v2 = vpack.c.b16 %v471_v40, %v471_v40  ;;  %v4419_v5 = vpack.c.b16 %v472_v41, %v472_v41 }
  0x5c   : > { %1987 = vmatpush.bf16.msra.mxu3 %v2953_v21  ;;  %v2774_v45 = vld [vmem:[%s5541_s1 + $0x250] sm:$0xf0]  ;;  %v2921_v59 = vor.u32 %v3624_v39, %v2918_v43  ;;  %v3556_v61 = vld [vmem:[%s5541_s1 + $0x144] sm:$0xf] }
  0x5d   : > { %1970 = vmatpush.bf16.msra.mxu2 %v2809_v22  ;;  %v2518_v58 = vld [vmem:[%s5541_s1 + $0x50] sm:$0xf0]  ;;  %v2777_v60 = vor.u32 %v3588_v44, %v2774_v45  ;;  %v3620_v1 = vld [vmem:[%s5541_s1 + $0x344] sm:$0xf] }
  0x5e   : > { %1952 = vmatpush.bf16.msra.mxu1 %v2681_v31  ;;  %v2646_v0 = vld [vmem:[%s5541_s1 + $0x150] sm:$0xf0]  ;;  %v3584_v7 = vld [vmem:[%s5541_s1 + $0x224] sm:$0xf]  ;;  %v2521_v11 = vor.u32 %v3524_v56, %v2518_v58 }
  0x5f   : > { %1934 = vmatpush.bf16.msra.mxu0 %v2553_v30  ;;  %v2902_v6 = vld [vmem:[%s5541_s1 + $0x350] sm:$0xf0]  ;;  %v2649_v12 = vor.u32 %v3556_v61, %v2646_v0  ;;  %v3520_v13 = vld [vmem:[%s5541_s1 + $0x24] sm:$0xf] }
  0x60   : > { %1988 = vmatpush.bf16.msra.mxu3 %v2937_v35  ;;  %v2758_v8 = vld [vmem:[%s5541_s1 + $0x230] sm:$0xf0]  ;;  %v2905_v15 = vor.u32 %v3620_v1, %v2902_v6  ;;  %v3552_v17 = vld [vmem:[%s5541_s1 + $0x124] sm:$0xf]  ;;  %1908 = vmatmul.bf16.gmra.mxu2 %v4430_v9 }
  0x61   : > { %1971 = vmatpush.bf16.msra.mxu2 %v2793_v36  ;;  %v2502_v14 = vld [vmem:[%s5541_s1 + $0x30] sm:$0xf0]  ;;  %v2761_v16 = vor.u32 %v3584_v7, %v2758_v8  ;;  %v3616_v19 = vld [vmem:[%s5541_s1 + $0x324] sm:$0xf]  ;;  %1890 = vmatmul.bf16.gmra.mxu1 %v4419_v5 }
  0x62   : > { %1953 = vmatpush.bf16.msra.mxu1 %v2665_v55  ;;  %v2630_v18 = vld [vmem:[%s5541_s1 + $0x130] sm:$0xf0]  ;;  %1872 = vmatmul.bf16.gmra.mxu0 %v4417_v2  ;;  %v3580_v21 = vld [vmem:[%s5541_s1 + $0x204] sm:$0xf]  ;;  %v2505_v25 = vor.u32 %v3520_v13, %v2502_v14 }
  0x63   : > { %1935 = vmatpush.bf16.msra.mxu0 %v2537_v51  ;;  %v2886_v20 = vld [vmem:[%s5541_s1 + $0x330] sm:$0xf0]  ;;  %1926 = vmatmul.bf16.gmra.mxu3 %v4432_v10  ;;  %v3736_v23 = vld [vmem:[%s5541_s1 + $0x6e4] sm:$0xf]  ;;  %v2633_v26 = vor.u32 %v3552_v17, %v2630_v18 }
  0x64   : > { %1989 = vmatpush.bf16.msra.mxu3 %v2921_v59  ;;  %v2742_v22 = vld [vmem:[%s5541_s1 + $0x210] sm:$0xf0]  ;;  %v3516_v27 = vld [vmem:[%s5541_s1 + $0x4] sm:$0xf]  ;;  %v2889_v30 = vor.u32 %v3616_v19, %v2886_v20 }
  0x65   : > { %1972 = vmatpush.bf16.msra.mxu2 %v2777_v60  ;;  %v3366_v24 = vld [vmem:[%s5541_s1 + $0x6f0] sm:$0xf0]  ;;  %v3548_v29 = vld [vmem:[%s5541_s1 + $0x104] sm:$0xf]  ;;  %v2745_v31 = vor.u32 %v3580_v21, %v2742_v22 }
  0x66   : > { %1954 = vmatpush.bf16.msra.mxu1 %v2649_v12  ;;  %v2486_v28 = vld [vmem:[%s5541_s1 + $0x10] sm:$0xf0]  ;;  %v3612_v33 = vld [vmem:[%s5541_s1 + $0x304] sm:$0xf]  ;;  %v3369_v35 = vor.u32 %v3736_v23, %v3366_v24 }
  0x67   : > { %1936 = vmatpush.bf16.msra.mxu0 %v2521_v11  ;;  %v2614_v32 = vld [vmem:[%s5541_s1 + $0x110] sm:$0xf0]  ;;  %v3672_v36 = vld [vmem:[%s5541_s1 + $0x4e4] sm:$0xf]  ;;  %v2489_v43 = vor.u32 %v3516_v27, %v2486_v28 }
  0x68   : > { %1990 = vmatpush.bf16.msra.mxu3 %v2905_v15  ;;  %v2870_v34 = vld [vmem:[%s5541_s1 + $0x310] sm:$0xf0]  ;;  %v3704_v38 = vld [vmem:[%s5541_s1 + $0x5e4] sm:$0xf]  ;;  %v2617_v44 = vor.u32 %v3548_v29, %v2614_v32 }
  0x69   : > { %1973 = vmatpush.bf16.msra.mxu2 %v2761_v16  ;;  %v3110_v37 = vld [vmem:[%s5541_s1 + $0x4f0] sm:$0xf0]  ;;  %v3768_v40 = vld [vmem:[%s5541_s1 + $0x7e4] sm:$0xf]  ;;  %v2873_v50 = vor.u32 %v3612_v33, %v2870_v34 }
  0x6a   : > { %v3238_v39 = vld [vmem:[%s5541_s1 + $0x5f0] sm:$0xf0]  ;;  %1955 = vmatpush.bf16.msra.mxu1 %v2633_v26  ;;  %v3732_v45 = vld [vmem:[%s5541_s1 + $0x6c4] sm:$0xf]  ;;  %v3113_v51 = vor.u32 %v3672_v36, %v3110_v37 }
  0x6b   : > { %v3494_v41 = vld [vmem:[%s5541_s1 + $0x7f0] sm:$0xf0]  ;;  %1937 = vmatpush.bf16.msra.mxu0 %v2505_v25  ;;  %v3241_v55 = vor.u32 %v3704_v38, %v3238_v39  ;;  %v3668_v58 = vld [vmem:[%s5541_s1 + $0x4c4] sm:$0xf] }
  0x6c   : > { %v3350_v46 = vld [vmem:[%s5541_s1 + $0x6d0] sm:$0xf0]  ;;  %1991 = vmatpush.bf16.msra.mxu3 %v2889_v30  ;;  %v3497_v56 = vor.u32 %v3768_v40, %v3494_v41  ;;  %v3700_v61 = vld [vmem:[%s5541_s1 + $0x5c4] sm:$0xf] }
  0x6d   : > { %1974 = vmatpush.bf16.msra.mxu2 %v2745_v31  ;;  %v3094_v59 = vld [vmem:[%s5541_s1 + $0x4d0] sm:$0xf0]  ;;  %v3353_v60 = vor.u32 %v3732_v45, %v3350_v46  ;;  %v3764_v6 = vld [vmem:[%s5541_s1 + $0x7c4] sm:$0xf] }
  0x6e   : > { %1956 = vmatpush.bf16.msra.mxu1 %v2617_v44  ;;  %v3222_v0 = vld [vmem:[%s5541_s1 + $0x5d0] sm:$0xf0]  ;;  %v3097_v1 = vor.u32 %v3668_v58, %v3094_v59  ;;  %v3728_v8 = vld [vmem:[%s5541_s1 + $0x6a4] sm:$0xf] }
  0x6f   : > { %1938 = vmatpush.bf16.msra.mxu0 %v2489_v43  ;;  %v3478_v7 = vld [vmem:[%s5541_s1 + $0x7d0] sm:$0xf0]  ;;  %v3664_v12 = vld [vmem:[%s5541_s1 + $0x4a4] sm:$0xf]  ;;  %v3225_v14 = vor.u32 %v3700_v61, %v3222_v0 }
  0x70   : > { %1992 = vmatpush.bf16.msra.mxu3 %v2873_v50  ;;  %v3334_v11 = vld [vmem:[%s5541_s1 + $0x6b0] sm:$0xf0]  ;;  %v3481_v15 = vor.u32 %v3764_v6, %v3478_v7  ;;  %v3696_v16 = vld [vmem:[%s5541_s1 + $0x5a4] sm:$0xf]  ;;  %1975 = vmatmul.bf16.vlgmr.msra.gmra.mxu2 %v4070_v54 }
  0x71   : > { %2039 = vmatpush.bf16.msrb.mxu2 %v3369_v35  ;;  %v3078_v13 = vld [vmem:[%s5541_s1 + $0x4b0] sm:$0xf0]  ;;  %v3337_v18 = vor.u32 %v3728_v8, %v3334_v11  ;;  %v3760_v20 = vld [vmem:[%s5541_s1 + $0x7a4] sm:$0xf]  ;;  %1957 = vmatmul.bf16.vlgmr.msra.gmra.mxu1 %v4068_v53 }
  0x72   : > { %2021 = vmatpush.bf16.msrb.mxu1 %v3241_v55  ;;  %v3206_v17 = vld [vmem:[%s5541_s1 + $0x5b0] sm:$0xf0]  ;;  %v3081_v19 = vor.u32 %v3664_v12, %v3078_v13  ;;  %v3724_v22 = vld [vmem:[%s5541_s1 + $0x684] sm:$0xf]  ;;  %1939 = vmatmul.bf16.vlgmr.msra.gmra.mxu0 %v4061_v48 }
  0x73   : > { %2003 = vmatpush.bf16.msrb.mxu0 %v3113_v51  ;;  %v3462_v21 = vld [vmem:[%s5541_s1 + $0x7b0] sm:$0xf0]  ;;  %v3660_v24 = vld [vmem:[%s5541_s1 + $0x484] sm:$0xf]  ;;  %1993 = vmatmul.bf16.vlgmr.msra.gmra.mxu3 %v4078_v57  ;;  %v3209_v26 = vor.u32 %v3696_v16, %v3206_v17 }
  0x74   : > { %2057 = vmatpush.bf16.msrb.mxu3 %v3497_v56  ;;  %v3318_v23 = vld [vmem:[%s5541_s1 + $0x690] sm:$0xf0]  ;;  %v3465_v27 = vor.u32 %v3760_v20, %v3462_v21  ;;  %v3692_v28 = vld [vmem:[%s5541_s1 + $0x584] sm:$0xf] }
  0x75   : > { %2040 = vmatpush.bf16.msrb.mxu2 %v3353_v60  ;;  %v3062_v25 = vld [vmem:[%s5541_s1 + $0x490] sm:$0xf0]  ;;  %v3321_v30 = vor.u32 %v3724_v22, %v3318_v23  ;;  %v3756_v32 = vld [vmem:[%s5541_s1 + $0x784] sm:$0xf] }
  0x76   : > { %2022 = vmatpush.bf16.msrb.mxu1 %v3225_v14  ;;  %v3190_v29 = vld [vmem:[%s5541_s1 + $0x590] sm:$0xf0]  ;;  %v3065_v31 = vor.u32 %v3660_v24, %v3062_v25  ;;  %v3720_v34 = vld [vmem:[%s5541_s1 + $0x664] sm:$0xf] }
  0x77   : > { %2004 = vmatpush.bf16.msrb.mxu0 %v3097_v1  ;;  %v3446_v33 = vld [vmem:[%s5541_s1 + $0x790] sm:$0xf0]  ;;  %v3656_v36 = vld [vmem:[%s5541_s1 + $0x464] sm:$0xf]  ;;  %v3193_v38 = vor.u32 %v3692_v28, %v3190_v29  ;;  %v2604_v28 = vld [vmem:[%s5541_s1 + $0xe8] sm:$0xf] }
  0x78   : > { %2058 = vmatpush.bf16.msrb.mxu3 %v3481_v15  ;;  %v3302_v35 = vld [vmem:[%s5541_s1 + $0x670] sm:$0xf0]  ;;  %v3449_v39 = vor.u32 %v3756_v32, %v3446_v33  ;;  %v3688_v40 = vld [vmem:[%s5541_s1 + $0x564] sm:$0xf]  ;;  %v3547_v29 = vld [vmem:[%s5541_s1 + $0xf4] sm:$0xf0] }
  0x79   : > { %2041 = vmatpush.bf16.msrb.mxu2 %v3337_v18  ;;  %v3046_v37 = vld [vmem:[%s5541_s1 + $0x470] sm:$0xf0]  ;;  %v3305_v43 = vor.u32 %v3720_v34, %v3302_v35  ;;  %v3752_v45 = vld [vmem:[%s5541_s1 + $0x764] sm:$0xf] }
  0x7a   : > { %2023 = vmatpush.bf16.msrb.mxu1 %v3209_v26  ;;  %v3174_v41 = vld [vmem:[%s5541_s1 + $0x570] sm:$0xf0]  ;;  %v3049_v44 = vor.u32 %v3656_v36, %v3046_v37  ;;  %v3716_v50 = vld [vmem:[%s5541_s1 + $0x644] sm:$0xf]  ;;  %v2860_v26 = vld [vmem:[%s5541_s1 + $0x2e8] sm:$0xf] }
  0x7b   : > { %2005 = vmatpush.bf16.msrb.mxu0 %v3081_v19  ;;  %v3430_v46 = vld [vmem:[%s5541_s1 + $0x770] sm:$0xf0]  ;;  %v3652_v55 = vld [vmem:[%s5541_s1 + $0x444] sm:$0xf]  ;;  %v3177_v58 = vor.u32 %v3688_v40, %v3174_v41  ;;  %v2605_v41 = vor.u32 %v3547_v29, %v2604_v28  ;;  %v2684_v28 = vld [vmem:[%s5541_s1 + $0x188] sm:$0xf] }
  0x7c   : > { %2059 = vmatpush.bf16.msrb.mxu3 %v3465_v27  ;;  %v3286_v51 = vld [vmem:[%s5541_s1 + $0x650] sm:$0xf0]  ;;  %v3433_v59 = vor.u32 %v3752_v45, %v3430_v46  ;;  %v3684_v60 = vld [vmem:[%s5541_s1 + $0x544] sm:$0xf]  ;;  %v3611_v27 = vld [vmem:[%s5541_s1 + $0x2f4] sm:$0xf0] }
  0x7d   : > { %2042 = vmatpush.bf16.msrb.mxu2 %v3321_v30  ;;  %v3030_v56 = vld [vmem:[%s5541_s1 + $0x450] sm:$0xf0]  ;;  %v3289_v0 = vor.u32 %v3716_v50, %v3286_v51  ;;  %v3748_v6 = vld [vmem:[%s5541_s1 + $0x744] sm:$0xf]  ;;  %v2861_v40 = vor.u32 %v3611_v27, %v2860_v26  ;;  %v2844_v45 = vld [vmem:[%s5541_s1 + $0x2c8] sm:$0xf] }
  0x7e   : > { %2024 = vmatpush.bf16.msrb.mxu1 %v3193_v38  ;;  %v3158_v61 = vld [vmem:[%s5541_s1 + $0x550] sm:$0xf0]  ;;  %v3033_v1 = vor.u32 %v3652_v55, %v3030_v56  ;;  %v3712_v8 = vld [vmem:[%s5541_s1 + $0x624] sm:$0xf]  ;;  %v2732_v38 = vld [vmem:[%s5541_s1 + $0x1e8] sm:$0xf] }
  0x7f   : > { %2006 = vmatpush.bf16.msrb.mxu0 %v3065_v31  ;;  %v3414_v7 = vld [vmem:[%s5541_s1 + $0x750] sm:$0xf0]  ;;  %v3648_v12 = vld [vmem:[%s5541_s1 + $0x424] sm:$0xf]  ;;  %v3161_v14 = vor.u32 %v3684_v60, %v3158_v61  ;;  %v3607_v46 = vld [vmem:[%s5541_s1 + $0x2d4] sm:$0xf0] }
  0x80   : > { %2060 = vmatpush.bf16.msrb.mxu3 %v3449_v39  ;;  %v3270_v11 = vld [vmem:[%s5541_s1 + $0x630] sm:$0xf0]  ;;  %v3417_v15 = vor.u32 %v3748_v6, %v3414_v7  ;;  %v3680_v16 = vld [vmem:[%s5541_s1 + $0x524] sm:$0xf]  ;;  %1980 = vmatmul.bf16.gmra.mxu2 %v4180_v49  ;;  %v3579_v39 = vld [vmem:[%s5541_s1 + $0x1f4] sm:$0xf0]  ;;  %v2845_v61 = vor.u32 %v3607_v46, %v2844_v45 }
  0x81   : > { %2043 = vmatpush.bf16.msrb.mxu2 %v3305_v43  ;;  %v3014_v13 = vld [vmem:[%s5541_s1 + $0x430] sm:$0xf0]  ;;  %v3744_v18 = vld [vmem:[%s5541_s1 + $0x724] sm:$0xf]  ;;  %v3273_v19 = vor.u32 %v3712_v8, %v3270_v11  ;;  %1962 = vmatmul.bf16.gmra.mxu1 %v4178_v47  ;;  %v2988_v43 = vld [vmem:[%s5541_s1 + $0x3e8] sm:$0xf] }
  0x82   : > { %2025 = vmatpush.bf16.msrb.mxu1 %v3177_v58  ;;  %v3142_v17 = vld [vmem:[%s5541_s1 + $0x530] sm:$0xf0]  ;;  %v3017_v20 = vor.u32 %v3648_v12, %v3014_v13  ;;  %v3708_v22 = vld [vmem:[%s5541_s1 + $0x604] sm:$0xf]  ;;  %1944 = vmatmul.bf16.gmra.mxu0 %v4167_v42  ;;  %v2588_v50 = vld [vmem:[%s5541_s1 + $0xc8] sm:$0xf]  ;;  %v2733_v58 = vor.u32 %v3579_v39, %v2732_v38 }
  0x83   : > { %2007 = vmatpush.bf16.msrb.mxu0 %v3049_v44  ;;  %v3398_v21 = vld [vmem:[%s5541_s1 + $0x730] sm:$0xf0]  ;;  %v3644_v24 = vld [vmem:[%s5541_s1 + $0x404] sm:$0xf]  ;;  %1998 = vmatmul.bf16.gmra.mxu3 %v4188_v52  ;;  %v3145_v30 = vor.u32 %v3680_v16, %v3142_v17  ;;  %v3643_v44 = vld [vmem:[%s5541_s1 + $0x3f4] sm:$0xf0] }
  0x84   : > { %2061 = vmatpush.bf16.msrb.mxu3 %v3433_v59  ;;  %v3254_v23 = vld [vmem:[%s5541_s1 + $0x610] sm:$0xf0]  ;;  %v3401_v31 = vor.u32 %v3744_v18, %v3398_v21  ;;  %v3676_v32 = vld [vmem:[%s5541_s1 + $0x504] sm:$0xf]  ;;  %v3543_v51 = vld [vmem:[%s5541_s1 + $0xd4] sm:$0xf0]  ;;  %v2989_v59 = vor.u32 %v3643_v44, %v2988_v43 }
  0x85   : > { %2044 = vmatpush.bf16.msrb.mxu2 %v3289_v0  ;;  %v2998_v25 = vld [vmem:[%s5541_s1 + $0x410] sm:$0xf0]  ;;  %v3740_v34 = vld [vmem:[%s5541_s1 + $0x704] sm:$0xf]  ;;  %v3257_v35 = vor.u32 %v3708_v22, %v3254_v23  ;;  %v2716_v60 = vld [vmem:[%s5541_s1 + $0x1c8] sm:$0xf]  ;;  %v2589_v0 = vor.u32 %v3543_v51, %v2588_v50 }
  0x86   : > { %2026 = vmatpush.bf16.msrb.mxu1 %v3161_v14  ;;  %v3126_v33 = vld [vmem:[%s5541_s1 + $0x510] sm:$0xf0]  ;;  %v3001_v36 = vor.u32 %v3644_v24, %v2998_v25  ;;  %v2972_v6 = vld [vmem:[%s5541_s1 + $0x3c8] sm:$0xf]  ;;  %v3639_v7 = vld [vmem:[%s5541_s1 + $0x3d4] sm:$0xf0] }
  0x87   : > { %2008 = vmatpush.bf16.msrb.mxu0 %v3033_v1  ;;  %v3382_v37 = vld [vmem:[%s5541_s1 + $0x710] sm:$0xf0]  ;;  %v3129_v55 = vor.u32 %v3676_v32, %v3126_v33  ;;  %v3575_v1 = vld [vmem:[%s5541_s1 + $0x1d4] sm:$0xf0]  ;;  %v2828_v8 = vld [vmem:[%s5541_s1 + $0x2a8] sm:$0xf]  ;;  %v2973_v13 = vor.u32 %v3639_v7, %v2972_v6 }
  0x88   : > { %2062 = vmatpush.bf16.msrb.mxu3 %v3417_v15  ;;  %v3385_v56 = vor.u32 %v3740_v34, %v3382_v37  ;;  %v3603_v11 = vld [vmem:[%s5541_s1 + $0x2b4] sm:$0xf0]  ;;  %v2717_v12 = vor.u32 %v3575_v1, %v2716_v60  ;;  %v2572_v14 = vld [vmem:[%s5541_s1 + $0xa8] sm:$0xf] }
  0x89   : > { %2045 = vmatpush.bf16.msrb.mxu2 %v3273_v19  ;;  %v3539_v15 = vld [vmem:[%s5541_s1 + $0xb4] sm:$0xf0]  ;;  %v2700_v16 = vld [vmem:[%s5541_s1 + $0x1a8] sm:$0xf] }
  0x8a   : > { %2027 = vmatpush.bf16.msrb.mxu1 %v3145_v30  ;;  %v3571_v17 = vld [vmem:[%s5541_s1 + $0x1b4] sm:$0xf0]  ;;  %v2956_v18 = vld [vmem:[%s5541_s1 + $0x3a8] sm:$0xf]  ;;  %v2573_v21 = vor.u32 %v3539_v15, %v2572_v14 }
  0x8b   : > { %2009 = vmatpush.bf16.msrb.mxu0 %v3017_v20  ;;  %v3635_v19 = vld [vmem:[%s5541_s1 + $0x3b4] sm:$0xf0]  ;;  %v2829_v20 = vor.u32 %v3603_v11, %v2828_v8  ;;  %v2812_v22 = vld [vmem:[%s5541_s1 + $0x288] sm:$0xf]  ;;  %v2701_v24 = vor.u32 %v3571_v17, %v2700_v16 }
  0x8c   : > { %2063 = vmatpush.bf16.msrb.mxu3 %v3401_v31  ;;  %v3599_v23 = vld [vmem:[%s5541_s1 + $0x294] sm:$0xf0]  ;;  %v2957_v25 = vor.u32 %v3635_v19, %v2956_v18  ;;  %v2556_v26 = vld [vmem:[%s5541_s1 + $0x88] sm:$0xf] }
  0x8d   : > { %2046 = vmatpush.bf16.msrb.mxu2 %v3257_v35  ;;  %v3535_v27 = vld [vmem:[%s5541_s1 + $0x94] sm:$0xf0]  ;;  %v2940_v30 = vld [vmem:[%s5541_s1 + $0x388] sm:$0xf]  ;;  %v2813_v32 = vor.u32 %v3599_v23, %v2812_v22 }
  0x8e   : > { %2028 = vmatpush.bf16.msrb.mxu1 %v3129_v55  ;;  %v3567_v29 = vld [vmem:[%s5541_s1 + $0x194] sm:$0xf0]  ;;  %v2557_v33 = vor.u32 %v3535_v27, %v2556_v26  ;;  %v2796_v34 = vld [vmem:[%s5541_s1 + $0x268] sm:$0xf] }
  0x8f   : > { %2010 = vmatpush.bf16.msrb.mxu0 %v3001_v36  ;;  %v3631_v31 = vld [vmem:[%s5541_s1 + $0x394] sm:$0xf0]  ;;  %v2685_v36 = vor.u32 %v3567_v29, %v2684_v28  ;;  %v2540_v38 = vld [vmem:[%s5541_s1 + $0x68] sm:$0xf] }
  0x90   : > { %2064 = vmatpush.bf16.msrb.mxu3 %v3385_v56  ;;  %2047 = vmatmul.bf16.vlgmr.msrb.gmra.mxu2 %v4320_v3  ;;  %v3595_v35 = vld [vmem:[%s5541_s1 + $0x274] sm:$0xf0]  ;;  %v2941_v37 = vor.u32 %v3631_v31, %v2940_v30  ;;  %v2924_v43 = vld [vmem:[%s5541_s1 + $0x368] sm:$0xf] }
  0x91   : > { %2111 = vmatpush.bf16.msra.mxu2 %v2861_v40  ;;  %2029 = vmatmul.bf16.vlgmr.msrb.gmra.mxu1 %v4309_v63  ;;  %v3531_v39 = vld [vmem:[%s5541_s1 + $0x74] sm:$0xf0]  ;;  %v2668_v40 = vld [vmem:[%s5541_s1 + $0x168] sm:$0xf]  ;;  %v2797_v45 = vor.u32 %v3595_v35, %v2796_v34 }
  0x92   : > { %2093 = vmatpush.bf16.msra.mxu1 %v2733_v58  ;;  %2011 = vmatmul.bf16.vlgmr.msrb.gmra.mxu0 %v4307_v62  ;;  %v3627_v44 = vld [vmem:[%s5541_s1 + $0x374] sm:$0xf0]  ;;  %v2541_v46 = vor.u32 %v3531_v39, %v2540_v38  ;;  %v2780_v50 = vld [vmem:[%s5541_s1 + $0x248] sm:$0xf] }
  0x93   : > { %2075 = vmatpush.bf16.msra.mxu0 %v2605_v41  ;;  %2065 = vmatmul.bf16.vlgmr.msrb.gmra.mxu3 %v4322_v4  ;;  %v3563_v41 = vld [vmem:[%s5541_s1 + $0x174] sm:$0xf0]  ;;  %v2925_v56 = vor.u32 %v3627_v44, %v2924_v43  ;;  %v2524_v58 = vld [vmem:[%s5541_s1 + $0x48] sm:$0xf] }
  0x94   : > { %2129 = vmatpush.bf16.msra.mxu3 %v2989_v59  ;;  %v3591_v51 = vld [vmem:[%s5541_s1 + $0x254] sm:$0xf0]  ;;  %v2669_v55 = vor.u32 %v3563_v41, %v2668_v40  ;;  %v2652_v60 = vld [vmem:[%s5541_s1 + $0x148] sm:$0xf] }
  0x95   : > { %2112 = vmatpush.bf16.msra.mxu2 %v2845_v61  ;;  %v3527_v59 = vld [vmem:[%s5541_s1 + $0x54] sm:$0xf0]  ;;  %v2781_v6 = vor.u32 %v3591_v51, %v2780_v50  ;;  %v2764_v8 = vld [vmem:[%s5541_s1 + $0x228] sm:$0xf] }
  0x96   : > { %2094 = vmatpush.bf16.msra.mxu1 %v2717_v12  ;;  %v3559_v61 = vld [vmem:[%s5541_s1 + $0x154] sm:$0xf0]  ;;  %v2525_v7 = vor.u32 %v3527_v59, %v2524_v58  ;;  %v2508_v14 = vld [vmem:[%s5541_s1 + $0x28] sm:$0xf] }
  0x97   : > { %2076 = vmatpush.bf16.msra.mxu0 %v2589_v0  ;;  %v2908_v0 = vld [vmem:[%s5541_s1 + $0x348] sm:$0xf]  ;;  %v3623_v1 = vld [vmem:[%s5541_s1 + $0x354] sm:$0xf0]  ;;  %v2653_v12 = vor.u32 %v3559_v61, %v2652_v60 }
  0x98   : > { %2130 = vmatpush.bf16.msra.mxu3 %v2973_v13  ;;  %v3587_v11 = vld [vmem:[%s5541_s1 + $0x234] sm:$0xf0]  ;;  %v2909_v13 = vor.u32 %v3623_v1, %v2908_v0  ;;  %v2636_v16 = vld [vmem:[%s5541_s1 + $0x128] sm:$0xf] }
  0x99   : > { %2113 = vmatpush.bf16.msra.mxu2 %v2829_v20  ;;  %v3523_v15 = vld [vmem:[%s5541_s1 + $0x34] sm:$0xf0]  ;;  %v2892_v18 = vld [vmem:[%s5541_s1 + $0x328] sm:$0xf] }
  0x9a   : > { %2095 = vmatpush.bf16.msra.mxu1 %v2701_v24  ;;  %v3555_v17 = vld [vmem:[%s5541_s1 + $0x134] sm:$0xf0]  ;;  %v2748_v20 = vld [vmem:[%s5541_s1 + $0x208] sm:$0xf]  ;;  %v2509_v22 = vor.u32 %v3523_v15, %v2508_v14 }
  0x9b   : > { %2077 = vmatpush.bf16.msra.mxu0 %v2573_v21  ;;  %v3619_v19 = vld [vmem:[%s5541_s1 + $0x334] sm:$0xf0]  ;;  %v2765_v21 = vor.u32 %v3587_v11, %v2764_v8  ;;  %v2492_v24 = vld [vmem:[%s5541_s1 + $0x8] sm:$0xf]  ;;  %v2637_v26 = vor.u32 %v3555_v17, %v2636_v16 }
  0x9c   : > { %2131 = vmatpush.bf16.msra.mxu3 %v2957_v25  ;;  %v3583_v23 = vld [vmem:[%s5541_s1 + $0x214] sm:$0xf0]  ;;  %v2893_v27 = vor.u32 %v3619_v19, %v2892_v18  ;;  %v2620_v28 = vld [vmem:[%s5541_s1 + $0x108] sm:$0xf] }
  0x9d   : > { %2114 = vmatpush.bf16.msra.mxu2 %v2813_v32  ;;  %v3519_v25 = vld [vmem:[%s5541_s1 + $0x14] sm:$0xf0]  ;;  %v2876_v30 = vld [vmem:[%s5541_s1 + $0x308] sm:$0xf] }
  0x9e   : > { %2096 = vmatpush.bf16.msra.mxu1 %v2685_v36  ;;  %v3551_v29 = vld [vmem:[%s5541_s1 + $0x114] sm:$0xf0]  ;;  %v3372_v32 = vld [vmem:[%s5541_s1 + $0x6e8] sm:$0xf]  ;;  %v2493_v38 = vor.u32 %v3519_v25, %v2492_v24 }
  0x9f   : > { %2078 = vmatpush.bf16.msra.mxu0 %v2557_v33  ;;  %v3615_v31 = vld [vmem:[%s5541_s1 + $0x314] sm:$0xf0]  ;;  %v3116_v34 = vld [vmem:[%s5541_s1 + $0x4e8] sm:$0xf]  ;;  %v2621_v43 = vor.u32 %v3551_v29, %v2620_v28 }
  0xa0   : > { %2132 = vmatpush.bf16.msra.mxu3 %v2941_v37  ;;  %v3739_v33 = vld [vmem:[%s5541_s1 + $0x6f4] sm:$0xf0]  ;;  %2052 = vmatmul.bf16.gmra.mxu2 %v4430_v9  ;;  %v3244_v36 = vld [vmem:[%s5541_s1 + $0x5e8] sm:$0xf]  ;;  %v2749_v37 = vor.u32 %v3583_v23, %v2748_v20  ;;  %v2877_v44 = vor.u32 %v3615_v31, %v2876_v30 }
  0xa1   : > { %2115 = vmatpush.bf16.msra.mxu2 %v2797_v45  ;;  %2034 = vmatmul.bf16.gmra.mxu1 %v4419_v5  ;;  %v3675_v35 = vld [vmem:[%s5541_s1 + $0x4f4] sm:$0xf0]  ;;  %v3500_v40 = vld [vmem:[%s5541_s1 + $0x7e8] sm:$0xf]  ;;  %v3373_v45 = vor.u32 %v3739_v33, %v3372_v32 }
  0xa2   : > { %2097 = vmatpush.bf16.msra.mxu1 %v2669_v55  ;;  %2016 = vmatmul.bf16.gmra.mxu0 %v4417_v2  ;;  %v3707_v39 = vld [vmem:[%s5541_s1 + $0x5f4] sm:$0xf0]  ;;  %v3356_v50 = vld [vmem:[%s5541_s1 + $0x6c8] sm:$0xf] }
  0xa3   : > { %2079 = vmatpush.bf16.msra.mxu0 %v2541_v46  ;;  %2070 = vmatmul.bf16.gmra.mxu3 %v4432_v10  ;;  %v3771_v41 = vld [vmem:[%s5541_s1 + $0x7f4] sm:$0xf0]  ;;  %v3117_v46 = vor.u32 %v3675_v35, %v3116_v34  ;;  %v3245_v55 = vor.u32 %v3707_v39, %v3244_v36  ;;  %v3100_v58 = vld [vmem:[%s5541_s1 + $0x4c8] sm:$0xf] }
  0xa4   : > { %2133 = vmatpush.bf16.msra.mxu3 %v2925_v56  ;;  %v3735_v51 = vld [vmem:[%s5541_s1 + $0x6d4] sm:$0xf0]  ;;  %v3501_v56 = vor.u32 %v3771_v41, %v3500_v40  ;;  %v3228_v60 = vld [vmem:[%s5541_s1 + $0x5c8] sm:$0xf] }
  0xa5   : > { %2116 = vmatpush.bf16.msra.mxu2 %v2781_v6  ;;  %v3671_v59 = vld [vmem:[%s5541_s1 + $0x4d4] sm:$0xf0]  ;;  %v3484_v0 = vld [vmem:[%s5541_s1 + $0x7c8] sm:$0xf]  ;;  %v3357_v6 = vor.u32 %v3735_v51, %v3356_v50 }
  0xa6   : > { %2098 = vmatpush.bf16.msra.mxu1 %v2653_v12  ;;  %v3703_v61 = vld [vmem:[%s5541_s1 + $0x5d4] sm:$0xf0]  ;;  %v3340_v12 = vld [vmem:[%s5541_s1 + $0x6a8] sm:$0xf] }
  0xa7   : > { %2080 = vmatpush.bf16.msra.mxu0 %v2525_v7  ;;  %v3767_v1 = vld [vmem:[%s5541_s1 + $0x7d4] sm:$0xf0]  ;;  %v3101_v7 = vor.u32 %v3671_v59, %v3100_v58  ;;  %v3229_v8 = vor.u32 %v3703_v61, %v3228_v60  ;;  %v3084_v14 = vld [vmem:[%s5541_s1 + $0x4a8] sm:$0xf] }
  0xa8   : > { %2134 = vmatpush.bf16.msra.mxu3 %v2909_v13  ;;  %v3485_v11 = vor.u32 %v3767_v1, %v3484_v0  ;;  %v3731_v13 = vld [vmem:[%s5541_s1 + $0x6b4] sm:$0xf0]  ;;  %v3212_v16 = vld [vmem:[%s5541_s1 + $0x5a8] sm:$0xf] }
  0xa9   : > { %2117 = vmatpush.bf16.msra.mxu2 %v2765_v21  ;;  %v3667_v15 = vld [vmem:[%s5541_s1 + $0x4b4] sm:$0xf0]  ;;  %v3468_v19 = vld [vmem:[%s5541_s1 + $0x7a8] sm:$0xf]  ;;  %v3341_v23 = vor.u32 %v3731_v13, %v3340_v12 }
  0xaa   : > { %2099 = vmatpush.bf16.msra.mxu1 %v2637_v26  ;;  %v3699_v18 = vld [vmem:[%s5541_s1 + $0x5b4] sm:$0xf0]  ;;  %v3085_v24 = vor.u32 %v3667_v15, %v3084_v14  ;;  %v3324_v25 = vld [vmem:[%s5541_s1 + $0x688] sm:$0xf] }
  0xab   : > { %2081 = vmatpush.bf16.msra.mxu0 %v2509_v22  ;;  %v3763_v20 = vld [vmem:[%s5541_s1 + $0x7b4] sm:$0xf0]  ;;  %v1814_v21 = vpop.f32.mrf.mxu1  ;;  %v3068_v29 = vld [vmem:[%s5541_s1 + $0x488] sm:$0xf] }
  0xac   : > { %2135 = vmatpush.bf16.msra.mxu3 %v2893_v27  ;;  %v3727_v26 = vld [vmem:[%s5541_s1 + $0x694] sm:$0xf0]  ;;  %v3213_v27 = vor.u32 %v3699_v18, %v3212_v16  ;;  %v3469_v28 = vor.u32 %v3763_v20, %v3468_v19  ;;  %v3196_v31 = vld [vmem:[%s5541_s1 + $0x588] sm:$0xf] }
  0xad   : > { %2118 = vmatpush.bf16.msra.mxu2 %v2749_v37  ;;  %v3663_v30 = vld [vmem:[%s5541_s1 + $0x494] sm:$0xf0]  ;;  %v3452_v33 = vld [vmem:[%s5541_s1 + $0x788] sm:$0xf]  ;;  %v3325_v35 = vor.u32 %v3727_v26, %v3324_v25 }
  0xae   : > { %2100 = vmatpush.bf16.msra.mxu1 %v2621_v43  ;;  %v3695_v32 = vld [vmem:[%s5541_s1 + $0x594] sm:$0xf0]  ;;  %v3069_v36 = vor.u32 %v3663_v30, %v3068_v29  ;;  %v3308_v37 = vld [vmem:[%s5541_s1 + $0x668] sm:$0xf] }
  0xaf   : > { %2082 = vmatpush.bf16.msra.mxu0 %v2493_v38  ;;  %v1796_v17 = vpop.f32.mrf.mxu0  ;;  %v3759_v34 = vld [vmem:[%s5541_s1 + $0x794] sm:$0xf0]  ;;  %v3197_v40 = vor.u32 %v3695_v32, %v3196_v31  ;;  %v3052_v43 = vld [vmem:[%s5541_s1 + $0x468] sm:$0xf] }
  0xb0   : > { %2136 = vmatpush.bf16.msra.mxu3 %v2877_v44  ;;  %v1815_v22 = vadd.f32 %v1814_v21, %v1796_v17  ;;  %2119 = vmatmul.bf16.vlgmr.msra.gmra.mxu2 %v4070_v54  ;;  %v3723_v38 = vld [vmem:[%s5541_s1 + $0x674] sm:$0xf0]  ;;  %v3453_v41 = vor.u32 %v3759_v34, %v3452_v33  ;;  %v3036_v12 = vld [vmem:[%s5541_s1 + $0x448] sm:$0xf] }
  0xb1   : > { %2183 = vmatpush.bf16.msrb.mxu2 %v3373_v45  ;;  %2101 = vmatmul.bf16.vlgmr.msra.gmra.mxu1 %v4068_v53  ;;  %v3659_v44 = vld [vmem:[%s5541_s1 + $0x474] sm:$0xf0]  ;;  %v3180_v45 = vld [vmem:[%s5541_s1 + $0x568] sm:$0xf]  ;;  %v3309_v60 = vor.u32 %v3723_v38, %v3308_v37 }
  0xb2   : > { %2165 = vmatpush.bf16.msrb.mxu1 %v3245_v55  ;;  %2083 = vmatmul.bf16.vlgmr.msra.gmra.mxu0 %v4061_v48  ;;  %v1832_v39 = vpop.f32.mrf.mxu2  ;;  %v3691_v55 = vld [vmem:[%s5541_s1 + $0x574] sm:$0xf0]  ;;  %v3053_v1 = vor.u32 %v3659_v44, %v3052_v43  ;;  %v3164_v14 = vld [vmem:[%s5541_s1 + $0x548] sm:$0xf] }
  0xb3   : > { %2147 = vmatpush.bf16.msrb.mxu0 %v3117_v46  ;;  %2137 = vmatmul.bf16.vlgmr.msra.gmra.mxu3 %v4078_v57  ;;  %v1833_v46 = vadd.f32 %v1832_v39, %v1815_v22  ;;  %v3755_v58 = vld [vmem:[%s5541_s1 + $0x774] sm:$0xf0]  ;;  %v1816_v59 = vpop.f32.mrf.mxu1  ;;  %v3420_v16 = vld [vmem:[%s5541_s1 + $0x748] sm:$0xf] }
  0xb4   : > { %2201 = vmatpush.bf16.msrb.mxu3 %v3501_v56  ;;  %v1850_v50 = vpop.f32.mrf.mxu3  ;;  %v3436_v56 = vld [vmem:[%s5541_s1 + $0x768] sm:$0xf]  ;;  %v3655_v13 = vld [vmem:[%s5541_s1 + $0x454] sm:$0xf0] }
  0xb5   : > { %2184 = vmatpush.bf16.msrb.mxu2 %v3357_v6  ;;  %v5004_v61 = vadd.f32 %v1850_v50, %v1833_v46  ;;  %v3292_v6 = vld [vmem:[%s5541_s1 + $0x648] sm:$0xf]  ;;  %v3687_v15 = vld [vmem:[%s5541_s1 + $0x554] sm:$0xf0]  ;;  %v3037_v19 = vor.u32 %v3655_v13, %v3036_v12 }
  0xb6   : > { %2166 = vmatpush.bf16.msrb.mxu1 %v3229_v8  ;;  %v3181_v8 = vor.u32 %v3691_v55, %v3180_v45  ;;  %v3751_v17 = vld [vmem:[%s5541_s1 + $0x754] sm:$0xf0]  ;;  %v3276_v20 = vld [vmem:[%s5541_s1 + $0x628] sm:$0xf] }
  0xb7   : > { %2148 = vmatpush.bf16.msrb.mxu0 %v3101_v7  ;;  %v1798_v51 = vpop.f32.mrf.mxu0  ;;  %v3719_v7 = vld [vmem:[%s5541_s1 + $0x654] sm:$0xf0]  ;;  %v3020_v25 = vld [vmem:[%s5541_s1 + $0x428] sm:$0xf] }
  0xb8   : > { %2202 = vmatpush.bf16.msrb.mxu3 %v3485_v11  ;;  %v1817_v0 = vadd.f32 %v1816_v59, %v1798_v51  ;;  %v3437_v11 = vor.u32 %v3755_v58, %v3436_v56  ;;  %v3293_v18 = vor.u32 %v3719_v7, %v3292_v6  ;;  %v3715_v21 = vld [vmem:[%s5541_s1 + $0x634] sm:$0xf0]  ;;  %v3404_v32 = vld [vmem:[%s5541_s1 + $0x728] sm:$0xf]  ;;  %v3609_v56 = vld [vmem:[%s5541_s1 + $0x2ec] sm:$0xf] }
  0xb9   : > { %2185 = vmatpush.bf16.msrb.mxu2 %v3341_v23  ;;  %v3165_v23 = vor.u32 %v3687_v15, %v3164_v14  ;;  %v3651_v26 = vld [vmem:[%s5541_s1 + $0x434] sm:$0xf0]  ;;  %v3132_v46 = vld [vmem:[%s5541_s1 + $0x508] sm:$0xf]  ;;  %v2862_v58 = vld [vmem:[%s5541_s1 + $0x2f8] sm:$0xf0] }
  0xba   : > { %2167 = vmatpush.bf16.msrb.mxu1 %v3213_v27  ;;  %v1834_v22 = vpop.f32.mrf.mxu2  ;;  %v3148_v27 = vld [vmem:[%s5541_s1 + $0x528] sm:$0xf]  ;;  %v3683_v31 = vld [vmem:[%s5541_s1 + $0x534] sm:$0xf0]  ;;  %v3021_v39 = vor.u32 %v3651_v26, %v3020_v25  ;;  %v3545_v59 = vld [vmem:[%s5541_s1 + $0xec] sm:$0xf] }
  0xbb   : > { %2149 = vmatpush.bf16.msrb.mxu0 %v3085_v24  ;;  %v3421_v24 = vor.u32 %v3751_v17, %v3420_v16  ;;  %v3747_v33 = vld [vmem:[%s5541_s1 + $0x734] sm:$0xf0]  ;;  %v3149_v44 = vor.u32 %v3683_v31, %v3148_v27  ;;  %v3388_v51 = vld [vmem:[%s5541_s1 + $0x708] sm:$0xf]  ;;  %v2734_v7 = vld [vmem:[%s5541_s1 + $0x1f8] sm:$0xf0] }
  0xbc   : > { %2203 = vmatpush.bf16.msrb.mxu3 %v3469_v28  ;;  %v1835_v28 = vadd.f32 %v1834_v22, %v1817_v0  ;;  %v1852_v29 = vpop.f32.mrf.mxu3  ;;  %v3647_v43 = vld [vmem:[%s5541_s1 + $0x414] sm:$0xf0]  ;;  %v3405_v45 = vor.u32 %v3747_v33, %v3404_v32  ;;  %v3577_v0 = vld [vmem:[%s5541_s1 + $0x1ec] sm:$0xf]  ;;  %v2590_v26 = vld [vmem:[%s5541_s1 + $0xd8] sm:$0xf0] }
  0xbd   : > { %2186 = vmatpush.bf16.msrb.mxu2 %v3325_v35  ;;  %v1819_v34 = vpop.f32.mrf.mxu1  ;;  %v3277_v35 = vor.u32 %v3715_v21, %v3276_v20  ;;  %v3679_v50 = vld [vmem:[%s5541_s1 + $0x514] sm:$0xf0]  ;;  %v3605_v20 = vld [vmem:[%s5541_s1 + $0x2cc] sm:$0xf]  ;;  %v2846_v21 = vld [vmem:[%s5541_s1 + $0x2d8] sm:$0xf0] }
  0xbe   : > { %2168 = vmatpush.bf16.msrb.mxu1 %v3197_v40  ;;  %v5057_v37 = vadd.f32 %v1852_v29, %v1835_v28  ;;  %v3711_v40 = vld [vmem:[%s5541_s1 + $0x614] sm:$0xf0]  ;;  %v3133_v13 = vor.u32 %v3679_v50, %v3132_v46  ;;  %v3541_v25 = vld [vmem:[%s5541_s1 + $0xcc] sm:$0xf]  ;;  %v2718_v29 = vld [vmem:[%s5541_s1 + $0x1d8] sm:$0xf0]  ;;  %v2849_v32 = vor.u32 %v3605_v20, %v2846_v21 }
  0xbf   : > { %2150 = vmatpush.bf16.msrb.mxu0 %v3069_v36  ;;  %v1801_v30 = vpop.f32.mrf.mxu0  ;;  %v3260_v36 = vld [vmem:[%s5541_s1 + $0x608] sm:$0xf]  ;;  %v3743_v55 = vld [vmem:[%s5541_s1 + $0x714] sm:$0xf0]  ;;  %v3573_v27 = vld [vmem:[%s5541_s1 + $0x1cc] sm:$0xf]  ;;  %v2593_v33 = vor.u32 %v3541_v25, %v2590_v26 }
  0xc0   : > { %2204 = vmatpush.bf16.msrb.mxu3 %v3453_v41  ;;  %v1820_v38 = vadd.f32 %v1819_v34, %v1801_v30  ;;  %v3004_v41 = vld [vmem:[%s5541_s1 + $0x408] sm:$0xf]  ;;  %2124 = vmatmul.bf16.gmra.mxu2 %v4180_v49  ;;  %v3389_v14 = vor.u32 %v3743_v55, %v3388_v51  ;;  %v3637_v30 = vld [vmem:[%s5541_s1 + $0x3cc] sm:$0xf]  ;;  %v2974_v31 = vld [vmem:[%s5541_s1 + $0x3d8] sm:$0xf0]  ;;  %v2721_v34 = vor.u32 %v3573_v27, %v2718_v29 }
  0xc1   : > { %2187 = vmatpush.bf16.msrb.mxu2 %v3309_v60  ;;  %2106 = vmatmul.bf16.gmra.mxu1 %v4178_v47  ;;  %v2606_v60 = vld [vmem:[%s5541_s1 + $0xf8] sm:$0xf0]  ;;  %v3005_v6 = vor.u32 %v3647_v43, %v3004_v41  ;;  %v3569_v43 = vld [vmem:[%s5541_s1 + $0x1ac] sm:$0xf] }
  0xc2   : > { %2169 = vmatpush.bf16.msrb.mxu1 %v3181_v8  ;;  %2088 = vmatmul.bf16.gmra.mxu0 %v4167_v42  ;;  %v3641_v8 = vld [vmem:[%s5541_s1 + $0x3ec] sm:$0xf]  ;;  %v1837_v12 = vpop.f32.mrf.mxu2  ;;  %v2574_v41 = vld [vmem:[%s5541_s1 + $0xb8] sm:$0xf0] }
  0xc3   : > { %2151 = vmatpush.bf16.msrb.mxu0 %v3053_v1  ;;  %2142 = vmatmul.bf16.gmra.mxu3 %v4188_v52  ;;  %v3261_v1 = vor.u32 %v3711_v40, %v3260_v36  ;;  %v1838_v15 = vadd.f32 %v1837_v12, %v1820_v38  ;;  %v3601_v36 = vld [vmem:[%s5541_s1 + $0x2ac] sm:$0xf]  ;;  %v2830_v38 = vld [vmem:[%s5541_s1 + $0x2b8] sm:$0xf0] }
  0xc4   : > { %2205 = vmatpush.bf16.msrb.mxu3 %v3437_v11  ;;  %v2990_v11 = vld [vmem:[%s5541_s1 + $0x3f8] sm:$0xf0]  ;;  %v1855_v16 = vpop.f32.mrf.mxu3  ;;  %v3537_v40 = vld [vmem:[%s5541_s1 + $0xac] sm:$0xf] }
  0xc5   : > { %2188 = vmatpush.bf16.msrb.mxu2 %v3293_v18  ;;  %v2865_v18 = vor.u32 %v3609_v56, %v2862_v58  ;;  %v1821_v22 = vpop.f32.mrf.mxu1  ;;  %v5123_v28 = vadd.f32 %v1855_v16, %v1838_v15  ;;  %v3633_v46 = vld [vmem:[%s5541_s1 + $0x3ac] sm:$0xf]  ;;  %v2958_v50 = vld [vmem:[%s5541_s1 + $0x3b8] sm:$0xf0]  ;;  %v2833_v58 = vor.u32 %v3601_v36, %v2830_v38 }
  0xc6   : > { %2170 = vmatpush.bf16.msrb.mxu1 %v3165_v23  ;;  %v2737_v23 = vor.u32 %v3577_v0, %v2734_v7  ;;  %v2814_v0 = vld [vmem:[%s5541_s1 + $0x298] sm:$0xf0]  ;;  %v3533_v7 = vld [vmem:[%s5541_s1 + $0x8c] sm:$0xf] }
  0xc7   : > { %2152 = vmatpush.bf16.msrb.mxu0 %v3037_v19  ;;  %v1803_v17 = vpop.f32.mrf.mxu0  ;;  %v2609_v19 = vor.u32 %v3545_v59, %v2606_v60  ;;  %v2577_v59 = vor.u32 %v3537_v40, %v2574_v41  ;;  %v3597_v60 = vld [vmem:[%s5541_s1 + $0x28c] sm:$0xf]  ;;  %v2686_v12 = vld [vmem:[%s5541_s1 + $0x198] sm:$0xf0] }
  0xc8   : > { %2206 = vmatpush.bf16.msrb.mxu3 %v3421_v24  ;;  %v2993_v24 = vor.u32 %v3641_v8, %v2990_v11  ;;  %v3565_v8 = vld [vmem:[%s5541_s1 + $0x18c] sm:$0xf]  ;;  %v2817_v15 = vor.u32 %v3597_v60, %v2814_v0  ;;  %v2542_v22 = vld [vmem:[%s5541_s1 + $0x78] sm:$0xf0] }
  0xc9   : > { %2189 = vmatpush.bf16.msrb.mxu2 %v3277_v35  ;;  %v2977_v35 = vor.u32 %v3637_v30, %v2974_v31  ;;  %v3593_v17 = vld [vmem:[%s5541_s1 + $0x26c] sm:$0xf]  ;;  %v2670_v26 = vld [vmem:[%s5541_s1 + $0x178] sm:$0xf0] }
  0xca   : > { %2171 = vmatpush.bf16.msrb.mxu1 %v3149_v44  ;;  %v3529_v21 = vld [vmem:[%s5541_s1 + $0x6c] sm:$0xf]  ;;  %v2926_v29 = vld [vmem:[%s5541_s1 + $0x378] sm:$0xf0] }
  0xcb   : > { %2153 = vmatpush.bf16.msrb.mxu0 %v3021_v39  ;;  %v1839_v39 = vpop.f32.mrf.mxu2  ;;  %v3625_v27 = vld [vmem:[%s5541_s1 + $0x36c] sm:$0xf]  ;;  %v2782_v38 = vld [vmem:[%s5541_s1 + $0x258] sm:$0xf0] }
  0xcc   : > { %2207 = vmatpush.bf16.msrb.mxu3 %v3405_v45  ;;  %v1857_v44 = vpop.f32.mrf.mxu3  ;;  %v2702_v45 = vld [vmem:[%s5541_s1 + $0x1b8] sm:$0xf0]  ;;  %v3589_v36 = vld [vmem:[%s5541_s1 + $0x24c] sm:$0xf]  ;;  %v2929_v41 = vor.u32 %v3625_v27, %v2926_v29 }
  0xcd   : > { %2190 = vmatpush.bf16.msrb.mxu2 %v3261_v1  ;;  %v2705_v1 = vor.u32 %v3569_v43, %v2702_v45  ;;  %v2526_v43 = vld [vmem:[%s5541_s1 + $0x58] sm:$0xf0]  ;;  %v3557_v44 = vld [vmem:[%s5541_s1 + $0x14c] sm:$0xf] }
  0xce   : > { %2172 = vmatpush.bf16.msrb.mxu1 %v3133_v13  ;;  %v1886_v55 = vpop.f32.mrf.mxu1  ;;  %v3629_v13 = vld [vmem:[%s5541_s1 + $0x38c] sm:$0xf]  ;;  %v2622_v27 = vld [vmem:[%s5541_s1 + $0x118] sm:$0xf0] }
  0xcf   : > { %2154 = vmatpush.bf16.msrb.mxu0 %v3005_v6  ;;  %v1868_v51 = vpop.f32.mrf.mxu0  ;;  %v2961_v6 = vor.u32 %v3633_v46, %v2958_v50  ;;  %v2654_v46 = vld [vmem:[%s5541_s1 + $0x158] sm:$0xf0]  ;;  %v3621_v50 = vld [vmem:[%s5541_s1 + $0x34c] sm:$0xf] }
  0xd0   : > { %2208 = vmatpush.bf16.msrb.mxu3 %v3389_v14  ;;  %v1869_v56 = vadd.f32 %v1868_v51, %v5004_v61  ;;  %v2558_v61 = vld [vmem:[%s5541_s1 + $0x98] sm:$0xf0]  ;;  %2191 = vmatmul.bf16.vlgmr.msrb.gmra.mxu2 %v4320_v3  ;;  %v2657_v60 = vor.u32 %v3557_v44, %v2654_v46  ;;  %v3613_v29 = vld [vmem:[%s5541_s1 + $0x30c] sm:$0xf] }
  0xd1   : > { %2255 = vmatpush.bf16.msra.mxu2 %v2865_v18  ;;  %2173 = vmatmul.bf16.vlgmr.msrb.gmra.mxu1 %v4309_v63  ;;  %v2942_v14 = vld [vmem:[%s5541_s1 + $0x398] sm:$0xf0]  ;;  %v2561_v16 = vor.u32 %v3533_v7, %v2558_v61  ;;  %v3553_v7 = vld [vmem:[%s5541_s1 + $0x12c] sm:$0xf] }
  0xd2   : > { %2237 = vmatpush.bf16.msra.mxu1 %v2737_v23  ;;  %v1887_v11 = vadd.f32 %v1886_v55, %v1869_v56  ;;  %2155 = vmatmul.bf16.vlgmr.msrb.gmra.mxu0 %v4307_v62  ;;  %v2798_v18 = vld [vmem:[%s5541_s1 + $0x278] sm:$0xf0]  ;;  %v2945_v20 = vor.u32 %v3629_v13, %v2942_v14  ;;  %v3561_v23 = vld [vmem:[%s5541_s1 + $0x16c] sm:$0xf]  ;;  %v2785_v55 = vor.u32 %v3589_v36, %v2782_v38 }
  0xd3   : > { %2219 = vmatpush.bf16.msra.mxu0 %v2609_v19  ;;  %2209 = vmatmul.bf16.vlgmr.msrb.gmra.mxu3 %v4322_v4  ;;  %v2689_v19 = vor.u32 %v3565_v8, %v2686_v12  ;;  %v2673_v40 = vor.u32 %v3561_v23, %v2670_v26  ;;  %v2910_v51 = vld [vmem:[%s5541_s1 + $0x358] sm:$0xf0]  ;;  %v3617_v12 = vld [vmem:[%s5541_s1 + $0x32c] sm:$0xf] }
  0xd4   : > { %2273 = vmatpush.bf16.msra.mxu3 %v2993_v24  ;;  %v1904_v24 = vpop.f32.mrf.mxu2  ;;  %v2913_v0 = vor.u32 %v3621_v50, %v2910_v51  ;;  %v2894_v13 = vld [vmem:[%s5541_s1 + $0x338] sm:$0xf0]  ;;  %v3549_v26 = vld [vmem:[%s5541_s1 + $0x10c] sm:$0xf] }
  0xd5   : > { %2256 = vmatpush.bf16.msra.mxu2 %v2849_v32  ;;  %v1905_v30 = vadd.f32 %v1904_v24, %v1887_v11  ;;  %v2638_v11 = vld [vmem:[%s5541_s1 + $0x138] sm:$0xf0]  ;;  %v3705_v36 = vld [vmem:[%s5541_s1 + $0x5ec] sm:$0xf]  ;;  %v2625_v44 = vor.u32 %v3549_v26, %v2622_v27 }
  0xd6   : > { %2238 = vmatpush.bf16.msra.mxu1 %v2721_v34  ;;  %v1922_v25 = vpop.f32.mrf.mxu3  ;;  %v1888_v32 = vpop.f32.mrf.mxu1  ;;  %v2801_v34 = vor.u32 %v3593_v17, %v2798_v18  ;;  %v3581_v17 = vld [vmem:[%s5541_s1 + $0x20c] sm:$0xf]  ;;  %v2494_v23 = vld [vmem:[%s5541_s1 + $0x18] sm:$0xf0] }
  0xd7   : > { %2220 = vmatpush.bf16.msra.mxu0 %v2593_v33  ;;  %v1870_v31 = vpop.f32.mrf.mxu0  ;;  %v5218_v39 = vadd.f32 %v1922_v25, %v1905_v30  ;;  %v2897_v25 = vor.u32 %v3617_v12, %v2894_v13  ;;  %v3765_v12 = vld [vmem:[%s5541_s1 + $0x7cc] sm:$0xf]  ;;  %v3486_v13 = vld [vmem:[%s5541_s1 + $0x7d8] sm:$0xf0] }
  0xd8   : > { %2274 = vmatpush.bf16.msra.mxu3 %v2977_v35  ;;  %v1871_v33 = vadd.f32 %v1870_v31, %v5057_v37  ;;  %v2545_v35 = vor.u32 %v3529_v21, %v2542_v22  ;;  %v3525_v37 = vld [vmem:[%s5541_s1 + $0x4c] sm:$0xf]  ;;  %v2750_v21 = vld [vmem:[%s5541_s1 + $0x218] sm:$0xf0] }
  0xd9   : > { %2257 = vmatpush.bf16.msra.mxu2 %v2833_v58  ;;  %v2529_v56 = vor.u32 %v3525_v37, %v2526_v43  ;;  %v3585_v58 = vld [vmem:[%s5541_s1 + $0x22c] sm:$0xf]  ;;  %v2878_v31 = vld [vmem:[%s5541_s1 + $0x318] sm:$0xf0]  ;;  %v2753_v38 = vor.u32 %v3581_v17, %v2750_v21 }
  0xda   : > { %2239 = vmatpush.bf16.msra.mxu1 %v2705_v1  ;;  %v1889_v45 = vadd.f32 %v1888_v32, %v1871_v33  ;;  %v3521_v1 = vld [vmem:[%s5541_s1 + $0x2c] sm:$0xf]  ;;  %v3374_v33 = vld [vmem:[%s5541_s1 + $0x6f8] sm:$0xf0] }
  0xdb   : > { %2221 = vmatpush.bf16.msra.mxu0 %v2577_v59  ;;  %v2766_v59 = vld [vmem:[%s5541_s1 + $0x238] sm:$0xf0]  ;;  %v3517_v22 = vld [vmem:[%s5541_s1 + $0xc] sm:$0xf] }
  0xdc   : > { %2275 = vmatpush.bf16.msra.mxu3 %v2961_v6  ;;  %v2510_v6 = vld [vmem:[%s5541_s1 + $0x38] sm:$0xf0]  ;;  %v1906_v61 = vpop.f32.mrf.mxu2  ;;  %v3737_v32 = vld [vmem:[%s5541_s1 + $0x6ec] sm:$0xf] }
  0xdd   : > { %2258 = vmatpush.bf16.msra.mxu2 %v2817_v15  ;;  %v1907_v14 = vadd.f32 %v1906_v61, %v1889_v45  ;;  %v3769_v37 = vld [vmem:[%s5541_s1 + $0x7ec] sm:$0xf]  ;;  %v3502_v43 = vld [vmem:[%s5541_s1 + $0x7f8] sm:$0xf0]  ;;  %v2881_v45 = vor.u32 %v3613_v29, %v2878_v31  ;;  %v3377_v51 = vor.u32 %v3737_v32, %v3374_v33 }
  0xde   : > { %2240 = vmatpush.bf16.msra.mxu1 %v2689_v19  ;;  %v1924_v8 = vpop.f32.mrf.mxu3  ;;  %v2769_v19 = vor.u32 %v3585_v58, %v2766_v59  ;;  %v3358_v58 = vld [vmem:[%s5541_s1 + $0x6d8] sm:$0xf0]  ;;  %v3665_v21 = vld [vmem:[%s5541_s1 + $0x4ac] sm:$0xf] }
  0xdf   : > { %2222 = vmatpush.bf16.msra.mxu0 %v2561_v16  ;;  %v1873_v15 = vpop.f32.mrf.mxu0  ;;  %v1891_v16 = vpop.f32.mrf.mxu1  ;;  %v5275_v24 = vadd.f32 %v1924_v8, %v1907_v14  ;;  %v3102_v61 = vld [vmem:[%s5541_s1 + $0x4d8] sm:$0xf0]  ;;  %v3701_v8 = vld [vmem:[%s5541_s1 + $0x5cc] sm:$0xf] }
  0xe0   : > { %2276 = vmatpush.bf16.msra.mxu3 %v2945_v20  ;;  %v1874_v18 = vadd.f32 %v1873_v15, %v5123_v28  ;;  %v2513_v20 = vor.u32 %v3521_v1, %v2510_v6  ;;  %v2641_v28 = vor.u32 %v3553_v7, %v2638_v11  ;;  %2196 = vmatmul.bf16.gmra.mxu2 %v4430_v9  ;;  %v3669_v7 = vld [vmem:[%s5541_s1 + $0x4cc] sm:$0xf]  ;;  %v3230_v11 = vld [vmem:[%s5541_s1 + $0x5d8] sm:$0xf0] }
  0xe1   : > { %2259 = vmatpush.bf16.msra.mxu2 %v2801_v34  ;;  %2178 = vmatmul.bf16.gmra.mxu1 %v4419_v5  ;;  %v3673_v34 = vld [vmem:[%s5541_s1 + $0x4ec] sm:$0xf]  ;;  %v3505_v6 = vor.u32 %v3769_v37, %v3502_v43  ;;  %v3233_v17 = vor.u32 %v3701_v8, %v3230_v11  ;;  %v3214_v26 = vld [vmem:[%s5541_s1 + $0x5b8] sm:$0xf0] }
  0xe2   : > { %2241 = vmatpush.bf16.msra.mxu1 %v2673_v40  ;;  %v1892_v30 = vadd.f32 %v1891_v16, %v1874_v18  ;;  %2160 = vmatmul.bf16.gmra.mxu0 %v4417_v2  ;;  %v2497_v40 = vor.u32 %v3517_v22, %v2494_v23  ;;  %v3105_v16 = vor.u32 %v3669_v7, %v3102_v61  ;;  %v3086_v22 = vld [vmem:[%s5541_s1 + $0x4b8] sm:$0xf0]  ;;  %v3697_v23 = vld [vmem:[%s5541_s1 + $0x5ac] sm:$0xf] }
  0xe3   : > { %2223 = vmatpush.bf16.msra.mxu0 %v2545_v35  ;;  %2214 = vmatmul.bf16.gmra.mxu3 %v4432_v10  ;;  %v3118_v35 = vld [vmem:[%s5541_s1 + $0x4f8] sm:$0xf0]  ;;  %v3489_v18 = vor.u32 %v3765_v12, %v3486_v13  ;;  %v3761_v27 = vld [vmem:[%s5541_s1 + $0x7ac] sm:$0xf] }
  0xe4   : > { %2277 = vmatpush.bf16.msra.mxu3 %v2929_v41  ;;  %v3246_v41 = vld [vmem:[%s5541_s1 + $0x5f8] sm:$0xf0]  ;;  %v1909_v46 = vpop.f32.mrf.mxu2  ;;  %v3693_v43 = vld [vmem:[%s5541_s1 + $0x58c] sm:$0xf] }
  0xe5   : > { %2260 = vmatpush.bf16.msra.mxu2 %v2785_v55  ;;  %v3121_v55 = vor.u32 %v3673_v34, %v3118_v35  ;;  %v1910_v59 = vadd.f32 %v1909_v46, %v1892_v30  ;;  %v3249_v1 = vor.u32 %v3705_v36, %v3246_v41  ;;  %v3470_v29 = vld [vmem:[%s5541_s1 + $0x7b8] sm:$0xf0]  ;;  %v3089_v34 = vor.u32 %v3665_v21, %v3086_v22  ;;  %v3725_v35 = vld [vmem:[%s5541_s1 + $0x68c] sm:$0xf] }
  0xe6   : > { %2242 = vmatpush.bf16.msra.mxu1 %v2657_v60  ;;  %v1927_v50 = vpop.f32.mrf.mxu3  ;;  %v3326_v36 = vld [vmem:[%s5541_s1 + $0x698] sm:$0xf0]  ;;  %v3661_v41 = vld [vmem:[%s5541_s1 + $0x48c] sm:$0xf] }
  0xe7   : > { %2224 = vmatpush.bf16.msra.mxu0 %v2529_v56  ;;  %v3733_v56 = vld [vmem:[%s5541_s1 + $0x6cc] sm:$0xf]  ;;  %v1875_v60 = vpop.f32.mrf.mxu0  ;;  %v5341_v14 = vadd.f32 %v1927_v50, %v1910_v59  ;;  %v3070_v37 = vld [vmem:[%s5541_s1 + $0x498] sm:$0xf0] }
  0xe8   : > { %2278 = vmatpush.bf16.msra.mxu3 %v2913_v0  ;;  %v1893_v0 = vpop.f32.mrf.mxu1  ;;  %v3361_v15 = vor.u32 %v3733_v56, %v3358_v58  ;;  %v3454_v46 = vld [vmem:[%s5541_s1 + $0x798] sm:$0xf0]  ;;  %v3721_v50 = vld [vmem:[%s5541_s1 + $0x66c] sm:$0xf] }
  0xe9   : > { %2261 = vmatpush.bf16.msra.mxu2 %v2769_v19  ;;  %v3729_v19 = vld [vmem:[%s5541_s1 + $0x6ac] sm:$0xf]  ;;  %v3182_v0 = vld [vmem:[%s5541_s1 + $0x578] sm:$0xf0] }
  0xea   : > { %2243 = vmatpush.bf16.msra.mxu1 %v2641_v28  ;;  %v3689_v58 = vld [vmem:[%s5541_s1 + $0x56c] sm:$0xf]  ;;  %v3038_v21 = vld [vmem:[%s5541_s1 + $0x458] sm:$0xf0] }
  0xeb   : > { %2225 = vmatpush.bf16.msra.mxu0 %v2513_v20  ;;  %v3342_v20 = vld [vmem:[%s5541_s1 + $0x6b8] sm:$0xf0]  ;;  %v3685_v22 = vld [vmem:[%s5541_s1 + $0x54c] sm:$0xf] }
  0xec   : > { %2279 = vmatpush.bf16.msra.mxu3 %v2897_v25  ;;  %v1911_v28 = vpop.f32.mrf.mxu2  ;;  %v3345_v33 = vor.u32 %v3729_v19, %v3342_v20  ;;  %v3653_v20 = vld [vmem:[%s5541_s1 + $0x44c] sm:$0xf] }
  0xed   : > { %2262 = vmatpush.bf16.msra.mxu2 %v2753_v38  ;;  %v3217_v38 = vor.u32 %v3697_v23, %v3214_v26  ;;  %v3166_v23 = vld [vmem:[%s5541_s1 + $0x558] sm:$0xf0]  ;;  %v3749_v28 = vld [vmem:[%s5541_s1 + $0x74c] sm:$0xf] }
  0xee   : > { %2244 = vmatpush.bf16.msra.mxu1 %v2625_v44  ;;  %v1929_v25 = vpop.f32.mrf.mxu3  ;;  %v3198_v44 = vld [vmem:[%s5541_s1 + $0x598] sm:$0xf0] }
  0xef   : > { %2226 = vmatpush.bf16.msra.mxu0 %v2497_v40  ;;  %v1940_v30 = vpop.f32.mrf.mxu0  ;;  %v3473_v40 = vor.u32 %v3761_v27, %v3470_v29  ;;  %v3422_v25 = vld [vmem:[%s5541_s1 + $0x758] sm:$0xf0]  ;;  %v3041_v27 = vor.u32 %v3653_v20, %v3038_v21  ;;  %v3713_v29 = vld [vmem:[%s5541_s1 + $0x62c] sm:$0xf] }
  0xf0   : > { %2280 = vmatpush.bf16.msra.mxu3 %v2881_v45  ;;  %v1958_v31 = vpop.f32.mrf.mxu1  ;;  %v3757_v45 = vld [vmem:[%s5541_s1 + $0x78c] sm:$0xf]  ;;  %2263 = vmatmul.bf16.vlgmr.msra.gmra.mxu2 %v4070_v54 }
  0xf1   : > { %2327 = vmatpush.bf16.msrb.mxu2 %v3377_v51  ;;  %v1959_v32 = vadd.f32 %v1958_v31, %v1940_v30  ;;  %2245 = vmatmul.bf16.vlgmr.msra.gmra.mxu1 %v4068_v53  ;;  %v3073_v53 = vor.u32 %v3661_v41, %v3070_v37  ;;  %v3310_v51 = vld [vmem:[%s5541_s1 + $0x678] sm:$0xf0]  ;;  %v3457_v56 = vor.u32 %v3757_v45, %v3454_v46  ;;  %v3657_v54 = vld [vmem:[%s5541_s1 + $0x46c] sm:$0xf] }
  0xf2   : > { %2309 = vmatpush.bf16.msrb.mxu1 %v3249_v1  ;;  %2227 = vmatmul.bf16.vlgmr.msra.gmra.mxu0 %v4061_v48  ;;  %v3329_v48 = vor.u32 %v3725_v35, %v3326_v36  ;;  %v3753_v1 = vld [vmem:[%s5541_s1 + $0x76c] sm:$0xf]  ;;  %v3313_v12 = vor.u32 %v3721_v50, %v3310_v51  ;;  %v3278_v30 = vld [vmem:[%s5541_s1 + $0x638] sm:$0xf0]  ;;  %v3169_v31 = vor.u32 %v3685_v22, %v3166_v23 }
  0xf3   : > { %2291 = vmatpush.bf16.msrb.mxu0 %v3121_v55  ;;  %2281 = vmatmul.bf16.vlgmr.msra.gmra.mxu3 %v4078_v57  ;;  %v3201_v55 = vor.u32 %v3693_v43, %v3198_v44  ;;  %v3054_v57 = vld [vmem:[%s5541_s1 + $0x478] sm:$0xf0]  ;;  %v3681_v35 = vld [vmem:[%s5541_s1 + $0x52c] sm:$0xf] }
  0xf4   : > { %2345 = vmatpush.bf16.msrb.mxu3 %v3505_v6  ;;  %v1976_v59 = vpop.f32.mrf.mxu2  ;;  %v3438_v6 = vld [vmem:[%s5541_s1 + $0x778] sm:$0xf0]  ;;  %v3057_v13 = vor.u32 %v3657_v54, %v3054_v57  ;;  %v3745_v41 = vld [vmem:[%s5541_s1 + $0x72c] sm:$0xf] }
  0xf5   : > { %2328 = vmatpush.bf16.msrb.mxu2 %v3361_v15  ;;  %v1977_v7 = vadd.f32 %v1976_v59, %v1959_v32  ;;  %v3717_v15 = vld [vmem:[%s5541_s1 + $0x64c] sm:$0xf]  ;;  %v3441_v19 = vor.u32 %v3753_v1, %v3438_v6  ;;  %v3425_v32 = vor.u32 %v3749_v28, %v3422_v25  ;;  %v3406_v37 = vld [vmem:[%s5541_s1 + $0x738] sm:$0xf0] }
  0xf6   : > { %2310 = vmatpush.bf16.msrb.mxu1 %v3233_v17  ;;  %v1994_v60 = vpop.f32.mrf.mxu3  ;;  %v3709_v50 = vld [vmem:[%s5541_s1 + $0x60c] sm:$0xf]  ;;  %v3262_v51 = vld [vmem:[%s5541_s1 + $0x618] sm:$0xf0]  ;;  %v3409_v54 = vor.u32 %v3745_v41, %v3406_v37 }
  0xf7   : > { %2292 = vmatpush.bf16.msrb.mxu0 %v3105_v16  ;;  %v1942_v61 = vpop.f32.mrf.mxu0  ;;  %v3294_v16 = vld [vmem:[%s5541_s1 + $0x658] sm:$0xf0]  ;;  %v5425_v17 = vadd.f32 %v1994_v60, %v1977_v7  ;;  %v3645_v57 = vld [vmem:[%s5541_s1 + $0x40c] sm:$0xf] }
  0xf8   : > { %2346 = vmatpush.bf16.msrb.mxu3 %v3489_v18  ;;  %v1960_v8 = vpop.f32.mrf.mxu1  ;;  %v3185_v18 = vor.u32 %v3689_v58, %v3182_v0  ;;  %v3297_v26 = vor.u32 %v3717_v15, %v3294_v16  ;;  %v3006_v58 = vld [vmem:[%s5541_s1 + $0x418] sm:$0xf0]  ;;  %v3677_v59 = vld [vmem:[%s5541_s1 + $0x50c] sm:$0xf] }
  0xf9   : > { %2329 = vmatpush.bf16.msrb.mxu2 %v3345_v33  ;;  %v1961_v11 = vadd.f32 %v1960_v8, %v1942_v61  ;;  %v3649_v33 = vld [vmem:[%s5541_s1 + $0x42c] sm:$0xf]  ;;  %v3134_v60 = vld [vmem:[%s5541_s1 + $0x518] sm:$0xf0] }
  0xfa   : > { %2311 = vmatpush.bf16.msrb.mxu1 %v3217_v38  ;;  %v3741_v0 = vld [vmem:[%s5541_s1 + $0x70c] sm:$0xf]  ;;  %v3390_v1 = vld [vmem:[%s5541_s1 + $0x718] sm:$0xf0]  ;;  %v3137_v6 = vor.u32 %v3677_v59, %v3134_v60 }
  0xfb   : > { %2293 = vmatpush.bf16.msrb.mxu0 %v3089_v34  ;;  %v3022_v34 = vld [vmem:[%s5541_s1 + $0x438] sm:$0xf0]  ;;  %v3393_v7 = vor.u32 %v3741_v0, %v3390_v1 }
  0xfc   : > { %2347 = vmatpush.bf16.msrb.mxu3 %v3473_v40  ;;  %v1978_v36 = vpop.f32.mrf.mxu2  ;;  %v3150_v40 = vld [vmem:[%s5541_s1 + $0x538] sm:$0xf0] }
  0xfd   : > { %2330 = vmatpush.bf16.msrb.mxu2 %v3329_v48  ;;  %v1979_v43 = vadd.f32 %v1978_v36, %v1961_v11  ;;  %v3281_v48 = vor.u32 %v3713_v29, %v3278_v30 }
  0xfe   : > { %2312 = vmatpush.bf16.msrb.mxu1 %v3201_v55  ;;  %v1996_v38 = vpop.f32.mrf.mxu3 }
  0xff   : > { %2294 = vmatpush.bf16.msrb.mxu0 %v3073_v53  ;;  %v1945_v44 = vpop.f32.mrf.mxu0  ;;  %v3025_v53 = vor.u32 %v3649_v33, %v3022_v34  ;;  %v1997_v55 = vadd.f32 %v1996_v38, %v1979_v43 }
 0x100   : > { %2348 = vmatpush.bf16.msrb.mxu3 %v3457_v56  ;;  %v1963_v45 = vpop.f32.mrf.mxu1  ;;  %v3153_v56 = vor.u32 %v3681_v35, %v3150_v40  ;;  %2268 = vmatmul.bf16.gmra.mxu2 %v4180_v49 }
 0x101   : > { %2331 = vmatpush.bf16.msrb.mxu2 %v3313_v12  ;;  %v1964_v46 = vadd.f32 %v1963_v45, %v1945_v44  ;;  %2250 = vmatmul.bf16.gmra.mxu1 %v4178_v47  ;;  %v3009_v47 = vor.u32 %v3645_v57, %v3006_v58 }
 0x102   : > { %2313 = vmatpush.bf16.msrb.mxu1 %v3185_v18  ;;  %2232 = vmatmul.bf16.gmra.mxu0 %v4167_v42  ;;  %v3265_v42 = vor.u32 %v3709_v50, %v3262_v51 }
 0x103   : > { %2295 = vmatpush.bf16.msrb.mxu0 %v3057_v13  ;;  %2286 = vmatmul.bf16.gmra.mxu3 %v4188_v52 }
 0x104   : > { %2349 = vmatpush.bf16.msrb.mxu3 %v3441_v19  ;;  %v1981_v61 = vpop.f32.mrf.mxu2 }
 0x105   : > { %2332 = vmatpush.bf16.msrb.mxu2 %v3297_v26  ;;  %v1982_v11 = vadd.f32 %v1981_v61, %v1964_v46 }
 0x106   : > { %2314 = vmatpush.bf16.msrb.mxu1 %v3169_v31  ;;  %v1999_v8 = vpop.f32.mrf.mxu3 }
 0x107   : > { %2296 = vmatpush.bf16.msrb.mxu0 %v3041_v27  ;;  %v1947_v12 = vpop.f32.mrf.mxu0  ;;  %v2000_v15 = vadd.f32 %v1999_v8, %v1982_v11 }
 0x108   : > { %2350 = vmatpush.bf16.msrb.mxu3 %v3425_v32  ;;  %v1965_v13 = vpop.f32.mrf.mxu1 }
 0x109   : > { %2333 = vmatpush.bf16.msrb.mxu2 %v3281_v48 }
 0x10a   : > { %2315 = vmatpush.bf16.msrb.mxu1 %v3153_v56 }
 0x10b   : > { %2297 = vmatpush.bf16.msrb.mxu0 %v3025_v53 }
 0x10c   : > { %2351 = vmatpush.bf16.msrb.mxu3 %v3409_v54  ;;  %v1983_v49 = vpop.f32.mrf.mxu2 }
 0x10d   : > { %2334 = vmatpush.bf16.msrb.mxu2 %v3265_v42 }
 0x10e   : > { %2316 = vmatpush.bf16.msrb.mxu1 %v3137_v6  ;;  %v2001_v52 = vpop.f32.mrf.mxu3 }
 0x10f   : > { %2298 = vmatpush.bf16.msrb.mxu0 %v3009_v47  ;;  %v2012_v16 = vpop.f32.mrf.mxu0 }
 0x110   : > { %2352 = vmatpush.bf16.msrb.mxu3 %v3393_v7  ;;  %v2030_v18 = vpop.f32.mrf.mxu1  ;;  %v2013_v19 = vadd.f32 %v2012_v16, %v5425_v17  ;;  %2335 = vmatmul.bf16.vlgmr.msrb.gmra.mxu2 %v4320_v3 }
 0x111   : > { %2317 = vmatmul.bf16.vlgmr.msrb.gmra.mxu1 %v4309_v63 }
 0x112   : > { %v2031_v20 = vadd.f32 %v2030_v18, %v2013_v19  ;;  %2299 = vmatmul.bf16.vlgmr.msrb.gmra.mxu0 %v4307_v62 }
 0x113   : > { %2353 = vmatmul.bf16.vlgmr.msrb.gmra.mxu3 %v4322_v4 }
 0x114   : > { %v2048_v21 = vpop.f32.mrf.mxu2 }
 0x115   : > { %v2049_v23 = vadd.f32 %v2048_v21, %v2031_v20 }
 0x116   : > { %v2066_v22 = vpop.f32.mrf.mxu3 }
 0x117   : > { %v2014_v28 = vpop.f32.mrf.mxu0  ;;  %v5502_v27 = vadd.f32 %v2066_v22, %v2049_v23 }
 0x118   : > { %v2032_v25 = vpop.f32.mrf.mxu1  ;;  %v2015_v26 = vadd.f32 %v2014_v28, %v1997_v55 }
 0x119   : > { %v2363_v17 = vmax.f32 %v5218_v39, %v5502_v27 }
 0x11a   : > { %v2033_v29 = vadd.f32 %v2032_v25, %v2015_v26 }
 0x11c   : > { %v2050_v30 = vpop.f32.mrf.mxu2 }
 0x11d   : > { %v2051_v31 = vadd.f32 %v2050_v30, %v2033_v29 }
 0x11e   : > { %v2068_v62 = vpop.f32.mrf.mxu3 }
 0x11f   : > { %v2017_v63 = vpop.f32.mrf.mxu0  ;;  %v5506_v33 = vadd.f32 %v2068_v62, %v2051_v31 }
 0x120   : > { %v2035_v32 = vpop.f32.mrf.mxu1  ;;  %v2018_v3 = vadd.f32 %v2017_v63, %v2000_v15  ;;  %2340 = vmatmul.bf16.gmra.mxu2 %v4430_v9 }
 0x121   : > { %2322 = vmatmul.bf16.gmra.mxu1 %v4419_v5  ;;  %v2364_v34 = vmax.f32 %v5275_v24, %v5506_v33 }
 0x122   : > { %v2036_v4 = vadd.f32 %v2035_v32, %v2018_v3  ;;  %2304 = vmatmul.bf16.gmra.mxu0 %v4417_v2 }
 0x123   : > { %2358 = vmatmul.bf16.gmra.mxu3 %v4432_v10 }
 0x124   : > { %v2053_v35 = vpop.f32.mrf.mxu2 }
 0x125   : > { %v2054_v38 = vadd.f32 %v2053_v35, %v2036_v4 }
 0x126   : > { %v2071_v36 = vpop.f32.mrf.mxu3 }
 0x127   : > { %v2019_v40 = vpop.f32.mrf.mxu0  ;;  %v5514_v37 = vadd.f32 %v2071_v36, %v2054_v38 }
 0x128   : > { %v2037_v41 = vpop.f32.mrf.mxu1 }
 0x129   : > { %v2365_v43 = vmax.f32 %v5341_v14, %v5514_v37 }
 0x12c   : > { %v2055_v2 = vpop.f32.mrf.mxu2 }
 0x12e   : > { %v2073_v44 = vpop.f32.mrf.mxu3 }
 0x12f   : > { %v2084_v5 = vpop.f32.mrf.mxu0 }
 0x130   : > { %v2102_v45 = vpop.f32.mrf.mxu1 }
 0x131   : > { %v2103_v46 = vadd.f32 %v2102_v45, %v2084_v5 }
 0x134   : > { %v2120_v48 = vpop.f32.mrf.mxu2 }
 0x135   : > { %v2121_v9 = vadd.f32 %v2120_v48, %v2103_v46 }
 0x136   : > { %v2138_v53 = vpop.f32.mrf.mxu3 }
 0x137   : > { %v2086_v50 = vpop.f32.mrf.mxu0  ;;  %v2139_v55 = vadd.f32 %v2138_v53, %v2121_v9 }
 0x138   : > { %v2104_v10 = vpop.f32.mrf.mxu1 }
 0x139   : > { %v2105_v51 = vadd.f32 %v2104_v10, %v2086_v50 }
 0x13c   : > { %v2122_v56 = vpop.f32.mrf.mxu2 }
 0x13d   : > { %v2123_v57 = vadd.f32 %v2122_v56, %v2105_v51 }
 0x13e   : > { %v2140_v54 = vpop.f32.mrf.mxu3 }
 0x13f   : > { %v2089_v58 = vpop.f32.mrf.mxu0  ;;  %v2141_v0 = vadd.f32 %v2140_v54, %v2123_v57 }
 0x140   : > { %v2107_v59 = vpop.f32.mrf.mxu1 }
 0x141   : > { %v2108_v60 = vadd.f32 %v2107_v59, %v2089_v58 }
 0x144   : > { %v2125_v1 = vpop.f32.mrf.mxu2 }
 0x145   : > { %v2126_v47 = vadd.f32 %v2125_v1, %v2108_v60 }
 0x146   : > { %v2143_v42 = vpop.f32.mrf.mxu3 }
 0x147   : > { %v2091_v6 = vpop.f32.mrf.mxu0  ;;  %v2144_v61 = vadd.f32 %v2143_v42, %v2126_v47 }
 0x148   : > { %v2109_v7 = vpop.f32.mrf.mxu1 }
 0x14c   : > { %v2127_v8 = vpop.f32.mrf.mxu2 }
 0x14e   : > { %v2145_v11 = vpop.f32.mrf.mxu3 }
 0x14f   : > { %v2156_v12 = vpop.f32.mrf.mxu0 }
 0x150   : > { %v2174_v13 = vpop.f32.mrf.mxu1  ;;  %v2157_v15 = vadd.f32 %v2156_v12, %v2139_v55 }
 0x152   : > { %v2175_v49 = vadd.f32 %v2174_v13, %v2157_v15 }
 0x154   : > { %v2192_v52 = vpop.f32.mrf.mxu2 }
 0x155   : > { %v2193_v18 = vadd.f32 %v2192_v52, %v2175_v49 }
 0x156   : > { %v2210_v16 = vpop.f32.mrf.mxu3 }
 0x157   : > { %v2158_v19 = vpop.f32.mrf.mxu0  ;;  %v2211_v22 = vadd.f32 %v2210_v16, %v2193_v18 }
 0x158   : > { %v2176_v20 = vpop.f32.mrf.mxu1  ;;  %v2159_v21 = vadd.f32 %v2158_v19, %v2141_v0 }
 0x15a   : > { %v2177_v23 = vadd.f32 %v2176_v20, %v2159_v21 }
 0x15c   : > { %v2194_v28 = vpop.f32.mrf.mxu2 }
 0x15d   : > { %v2195_v26 = vadd.f32 %v2194_v28, %v2177_v23 }
 0x15e   : > { %v2212_v25 = vpop.f32.mrf.mxu3 }
 0x15f   : > { %v2161_v29 = vpop.f32.mrf.mxu0  ;;  %v2213_v31 = vadd.f32 %v2212_v25, %v2195_v26 }
 0x160   : > { %v2179_v30 = vpop.f32.mrf.mxu1  ;;  %v2162_v62 = vadd.f32 %v2161_v29, %v2144_v61 }
 0x162   : > { %v2180_v63 = vadd.f32 %v2179_v30, %v2162_v62 }
 0x164   : > { %v2197_v32 = vpop.f32.mrf.mxu2 }
 0x165   : > { %v2198_v4 = vadd.f32 %v2197_v32, %v2180_v63  ;;  %v3787_v63 = vld [vmem:[%s5542_s2] ss:$0 sm:$0xff] }
 0x166   : > { %v2215_v3 = vpop.f32.mrf.mxu3 }
 0x167   : > { %v2163_v35 = vpop.f32.mrf.mxu0  ;;  %v5518_v38 = vadd.f32 %v2215_v3, %v2198_v4 }
 0x168   : > { %v2181_v36 = vpop.f32.mrf.mxu1 }
 0x16c   : > { %v2199_v40 = vpop.f32.mrf.mxu2 }
 0x16e   : > { %v2217_v41 = vpop.f32.mrf.mxu3 }
 0x16f   : > { %v2228_v2 = vpop.f32.mrf.mxu0 }
 0x170   : > { %v2246_v44 = vpop.f32.mrf.mxu1 }
 0x171   : > { %v2247_v57 = vadd.f32 %v2246_v44, %v2228_v2 }
 0x174   : > { %v2264_v5 = vpop.f32.mrf.mxu2 }
 0x175   : > { %v2265_v58 = vadd.f32 %v2264_v5, %v2247_v57 }
 0x176   : > { %v2282_v45 = vpop.f32.mrf.mxu3 }
 0x177   : > { %v2230_v46 = vpop.f32.mrf.mxu0  ;;  %v2283_v0 = vadd.f32 %v2282_v45, %v2265_v58 }
 0x178   : > { %v2248_v48 = vpop.f32.mrf.mxu1 }
 0x179   : > { %v2249_v47 = vadd.f32 %v2248_v48, %v2230_v46 }
 0x17c   : > { %v2266_v53 = vpop.f32.mrf.mxu2 }
 0x17d   : > { %v2267_v7 = vadd.f32 %v2266_v53, %v2249_v47 }
 0x17e   : > { %v2284_v9 = vpop.f32.mrf.mxu3 }
 0x17f   : > { %v2233_v50 = vpop.f32.mrf.mxu0  ;;  %v2285_v12 = vadd.f32 %v2284_v9, %v2267_v7 }
 0x180   : > { %v2251_v10 = vpop.f32.mrf.mxu1 }
 0x181   : > { %v2252_v52 = vadd.f32 %v2251_v10, %v2233_v50 }
 0x184   : > { %v2269_v51 = vpop.f32.mrf.mxu2 }
 0x185   : > { %v2270_v19 = vadd.f32 %v2269_v51, %v2252_v52 }
 0x186   : > { %v2287_v55 = vpop.f32.mrf.mxu3 }
 0x187   : > { %v2235_v56 = vpop.f32.mrf.mxu0  ;;  %v2288_v26 = vadd.f32 %v2287_v55, %v2270_v19 }
 0x188   : > { %v2253_v54 = vpop.f32.mrf.mxu1 }
 0x18c   : > { %v2271_v59 = vpop.f32.mrf.mxu2 }
 0x18e   : > { %v2289_v60 = vpop.f32.mrf.mxu3 }
 0x18f   : > { %v2300_v1 = vpop.f32.mrf.mxu0 }
 0x190   : > { %v2318_v42 = vpop.f32.mrf.mxu1  ;;  %v2301_v6 = vadd.f32 %v2300_v1, %v2283_v0 }
 0x192   : > { %v2319_v61 = vadd.f32 %v2318_v42, %v2301_v6 }
 0x194   : > { %v2336_v8 = vpop.f32.mrf.mxu2 }
 0x195   : > { %v2337_v13 = vadd.f32 %v2336_v8, %v2319_v61 }
 0x196   : > { %v2354_v11 = vpop.f32.mrf.mxu3 }
 0x197   : > { %v2302_v15 = vpop.f32.mrf.mxu0  ;;  %v2355_v16 = vadd.f32 %v2354_v11, %v2337_v13 }
 0x198   : > { %v2320_v49 = vpop.f32.mrf.mxu1  ;;  %v2303_v18 = vadd.f32 %v2302_v15, %v2285_v12 }
 0x199   : > { %v2366_v20 = vmax.f32 %v2211_v22, %v2355_v16 }
 0x19a   : > { %v2321_v23 = vadd.f32 %v2320_v49, %v2303_v18 }
 0x19b   : > { %v2369_v21 = vmax.f32 %v2363_v17, %v2366_v20 }
 0x19c   : > { %v2338_v28 = vpop.f32.mrf.mxu2 }
 0x19d   : > { %v2339_v29 = vadd.f32 %v2338_v28, %v2321_v23  ;;  %v2376_v22 = vadd.f32 %v3787_v63, %v2369_v21 }
 0x19e   : > { %v2356_v25 = vpop.f32.mrf.mxu3 }
 0x19f   : > { %v2305_v30 = vpop.f32.mrf.mxu0  ;;  %v2357_v32 = vadd.f32 %v2356_v25, %v2339_v29  ;;  %v2379_v44 = vmax.f32 %v2376_v22, 0.0 }
 0x1a0   : > { %v2323_v62 = vpop.f32.mrf.mxu1  ;;  %v2306_v3 = vadd.f32 %v2305_v30, %v2288_v26 }
 0x1a1   : > { %v2367_v4 = vmax.f32 %v2213_v31, %v2357_v32 }
 0x1a2   : > { %v2324_v27 = vadd.f32 %v2323_v62, %v2306_v3 }
 0x1a3   : > { %v2370_v39 = vmax.f32 %v2364_v34, %v2367_v4 }
 0x1a4   : > { %v2341_v17 = vpop.f32.mrf.mxu2 }
 0x1a5   : > { %v2377_v36 = vadd.f32 %v3787_v63, %v2370_v39  ;;  %v2342_v40 = vadd.f32 %v2341_v17, %v2324_v27 }
 0x1a6   : > { %v2359_v35 = vpop.f32.mrf.mxu3 }
 0x1a7   : > { %v2307_v41 = vpop.f32.mrf.mxu0  ;;  %v2380_v5 = vmax.f32 %v2377_v36, 0.0  ;;  %v2360_v45 = vadd.f32 %v2359_v35, %v2342_v40 }
 0x1a8   : > { %v2325_v2 = vpop.f32.mrf.mxu1 }
 0x1a9   : > { %v3775_v31 = vpack.c.bf16 %v2380_v5, %v2379_v44  ;;  %v2368_v46 = vmax.f32 %v5518_v38, %v2360_v45 }
 0x1ab   : > { %v2371_v24 = vmax.f32 %v2365_v43, %v2368_v46  ;;  %3776 = vst [vmem:[%s170_s30] sm:$0xff] %v3775_v31  }
 0x1ac   : > { %v2343_v33 = vpop.f32.mrf.mxu2 }
 0x1ad   : > { %v2378_v48 = vadd.f32 %v3787_v63, %v2371_v24 }
 0x1ae   : > { %v2361_v34 = vpop.f32.mrf.mxu3 }
 0x1af   : > { %v2381_v53 = vmax.f32 %v2378_v48, 0.0 }
 0x1b1   : > { %v2384_v9 = vpack.c.bf16 %v2381_v53, %v2381_v53 }
 0x1b3   : > { %2387 = vst [vmem:[%s170_s30 + $0x8] sm:$0x3] %v2384_v9 }
 0x1b4 PF: > { %s13_s12 = sadd.s32 1, %s3794_s12  }
 0x1b5   : > { %p10_p4 = scmp.ge.s32.totalorder %s13_s12, 4  }
 0x1b7   :  { %12 = sbr.rel (!%p10_p4) target bundleno = 1 (0x1), region = 62 }

// kernel: ai_image_detector_forward.7
= control target key start
LH: loop header
LB: loop body
LE: loop exit
PB: predicated region body
PF: predicated region fallthrough
CT: control target
= control target key end

     0   :  { %s8538_s20 = smov 0   ;;  %s12572_s0 = inlined_call_operand.vmem [shape: bf16[2,1,2560], index: 0, kind: input, shape index: {}]   ;;  %s12573_s1 = inlined_call_operand.vmem [shape: bf16[2560,512], index: 1, kind: input, shape index: {}]   ;;  %s12574_s2 = inlined_call_operand.vmem [shape: f32[1,512], index: 2, kind: input, shape index: {}]   ;;  %s12575_s3 = inlined_call_operand.vmem [shape: f32[1,512], index: 3, kind: input, shape index: {}]   ;;  %s12576_s4 = inlined_call_operand.<no memory space> [shape: f32[1,1], index: 4, kind: input, shape index: {}]   ;;  %s12577_s5 = inlined_call_operand.vmem [shape: f32[2,1,1], index: 5, kind: output, shape index: {}]  }
   0x1   :  { %v10_v0 = vstv %s12576_s4 }
   0x2   :  { %11 = vst [vmem:[#allocation2] sm:$0x1] %v10_v0 }
   0x3 LB: > { %s5261_s21 = sadd.s32 4294967295, %s8503_s20   ;;  %p5265_p0 = scmp.ge.s32.totalorder %s8503_s20, 1  ;;  %s8503_s20 = sphi %s8538_s20, %s17_s20  }
   0x4   : > { %p188_p1 = scmp.lt.s32.totalorder %s8503_s20, 3 }
   0x6   : > { %p189_p2 = pnand %p5265_p0, %p188_p1 }
   0x7   : > { %p213_p3 = scmp.lt.s32.totalorder (!%p189_p2), %s5261_s21, 1 }
   0x8   : > { %192 = sbr.rel (%p189_p2) target bundleno = 961 (0x3c1), region = 40 }
   0xd   : > { %v5380_v1 = vld [vmem:[%s12573_s1 + $0xe0] sm:$0xf]  ;;  %v7858_v2 = vld [vmem:[%s12573_s1 + $0xec] sm:$0xf0]  ;;  %s12579_s21 = smov (!%p213_p3, %s5261_s21), 1  ;;  %vm5177_vm0 = vcmask 1040384  }
   0xe   : > { %v5508_v3 = vld [vmem:[%s12573_s1 + $0x1e0] sm:$0xf]  ;;  %v5381_v4 = vor.u32 %v7858_v2, %v5380_v1  ;;  %v7890_v5 = vld [vmem:[%s12573_s1 + $0x1ec] sm:$0xf0]  ;;  %s8468_s22 = smul.u32 20, %s12579_s21  ;;  %s219_s14 = scalar_lea.vmem %s12577_s5, %s12579_s21  ;;  %vm5212_vm5 = vcmask 0  }
   0xf   : > { %v5636_v6 = vld [vmem:[%s12573_s1 + $0x2e0] sm:$0xf]  ;;  %v7922_v7 = vld [vmem:[%s12573_s1 + $0x2ec] sm:$0xf0]  ;;  %v5509_v8 = vor.u32 %v7890_v5, %v5508_v3 }
  0x10   : > { %v5637_v9 = vor.u32 %v7922_v7, %v5636_v6  ;;  %v5764_v10 = vld [vmem:[%s12573_s1 + $0x3e0] sm:$0xf]  ;;  %v7954_v11 = vld [vmem:[%s12573_s1 + $0x3ec] sm:$0xf0]  ;;  %4119 = vmatpush.bf16.msra.mxu0 %v5381_v4  ;;  %s8862_s11 = scalar_lea.vmem %s12572_s0, %s8468_s22 }
  0x11   : > { %v5364_v12 = vld [vmem:[%s12573_s1 + $0xc0] sm:$0xf]  ;;  %v5765_v13 = vor.u32 %v7954_v11, %v5764_v10  ;;  %v7854_v14 = vld [vmem:[%s12573_s1 + $0xcc] sm:$0xf0]  ;;  %4132 = vmatpush.bf16.msra.mxu1 %v5509_v8 }
  0x12   : > { %v5492_v15 = vld [vmem:[%s12573_s1 + $0x1c0] sm:$0xf]  ;;  %v7886_v16 = vld [vmem:[%s12573_s1 + $0x1cc] sm:$0xf0]  ;;  %4145 = vmatpush.bf16.msra.mxu2 %v5637_v9  ;;  %v5365_v17 = vor.u32 %v7854_v14, %v5364_v12 }
  0x13   : > { %v5493_v18 = vor.u32 %v7886_v16, %v5492_v15  ;;  %v5620_v19 = vld [vmem:[%s12573_s1 + $0x2c0] sm:$0xf]  ;;  %v7918_v20 = vld [vmem:[%s12573_s1 + $0x2cc] sm:$0xf0]  ;;  %4158 = vmatpush.bf16.msra.mxu3 %v5765_v13 }
  0x14   : > { %v5748_v21 = vld [vmem:[%s12573_s1 + $0x3c0] sm:$0xf]  ;;  %v5621_v22 = vor.u32 %v7918_v20, %v5620_v19  ;;  %v7950_v23 = vld [vmem:[%s12573_s1 + $0x3cc] sm:$0xf0]  ;;  %4120 = vmatpush.bf16.msra.mxu0 %v5365_v17 }
  0x15   : > { %v5348_v24 = vld [vmem:[%s12573_s1 + $0xa0] sm:$0xf]  ;;  %v7850_v25 = vld [vmem:[%s12573_s1 + $0xac] sm:$0xf0]  ;;  %v5749_v26 = vor.u32 %v7950_v23, %v5748_v21  ;;  %4133 = vmatpush.bf16.msra.mxu1 %v5493_v18 }
  0x16   : > { %v5476_v27 = vld [vmem:[%s12573_s1 + $0x1a0] sm:$0xf]  ;;  %v7882_v28 = vld [vmem:[%s12573_s1 + $0x1ac] sm:$0xf0]  ;;  %v5349_v30 = vor.u32 %v7850_v25, %v5348_v24  ;;  %4146 = vmatpush.bf16.msra.mxu2 %v5621_v22 }
  0x17   : > { %v5604_v29 = vld [vmem:[%s12573_s1 + $0x2a0] sm:$0xf]  ;;  %v7914_v31 = vld [vmem:[%s12573_s1 + $0x2ac] sm:$0xf0]  ;;  %v5477_v34 = vor.u32 %v7882_v28, %v5476_v27  ;;  %4159 = vmatpush.bf16.msra.mxu3 %v5749_v26 }
  0x18   : > { %v5732_v32 = vld [vmem:[%s12573_s1 + $0x3a0] sm:$0xf]  ;;  %v7946_v33 = vld [vmem:[%s12573_s1 + $0x3ac] sm:$0xf0]  ;;  %v5605_v35 = vor.u32 %v7914_v31, %v5604_v29  ;;  %4121 = vmatpush.bf16.msra.mxu0 %v5349_v30 }
  0x19   : > { %v5332_v36 = vld [vmem:[%s12573_s1 + $0x80] sm:$0xf]  ;;  %v7846_v37 = vld [vmem:[%s12573_s1 + $0x8c] sm:$0xf0]  ;;  %v5733_v39 = vor.u32 %v7946_v33, %v5732_v32  ;;  %4134 = vmatpush.bf16.msra.mxu1 %v5477_v34 }
  0x1a   : > { %v5460_v38 = vld [vmem:[%s12573_s1 + $0x180] sm:$0xf]  ;;  %v7878_v40 = vld [vmem:[%s12573_s1 + $0x18c] sm:$0xf0]  ;;  %v5333_v45 = vor.u32 %v7846_v37, %v5332_v36  ;;  %4147 = vmatpush.bf16.msra.mxu2 %v5605_v35 }
  0x1b   : > { %v5588_v41 = vld [vmem:[%s12573_s1 + $0x280] sm:$0xf]  ;;  %v7910_v42 = vld [vmem:[%s12573_s1 + $0x28c] sm:$0xf0]  ;;  %v5461_v46 = vor.u32 %v7878_v40, %v5460_v38  ;;  %4160 = vmatpush.bf16.msra.mxu3 %v5733_v39 }
  0x1c   : > { %v5716_v43 = vld [vmem:[%s12573_s1 + $0x380] sm:$0xf]  ;;  %v7942_v44 = vld [vmem:[%s12573_s1 + $0x38c] sm:$0xf0]  ;;  %v5589_v47 = vor.u32 %v7910_v42, %v5588_v41  ;;  %4122 = vmatpush.bf16.msra.mxu0 %v5333_v45 }
  0x1d   : > { %v5316_v48 = vld [vmem:[%s12573_s1 + $0x60] sm:$0xf]  ;;  %v7842_v49 = vld [vmem:[%s12573_s1 + $0x6c] sm:$0xf0]  ;;  %v5717_v51 = vor.u32 %v7942_v44, %v5716_v43  ;;  %4135 = vmatpush.bf16.msra.mxu1 %v5461_v46 }
  0x1e   : > { %v5444_v50 = vld [vmem:[%s12573_s1 + $0x160] sm:$0xf]  ;;  %v7874_v52 = vld [vmem:[%s12573_s1 + $0x16c] sm:$0xf0]  ;;  %v5317_v57 = vor.u32 %v7842_v49, %v5316_v48  ;;  %4148 = vmatpush.bf16.msra.mxu2 %v5589_v47 }
  0x1f   : > { %v5572_v53 = vld [vmem:[%s12573_s1 + $0x260] sm:$0xf]  ;;  %v7906_v54 = vld [vmem:[%s12573_s1 + $0x26c] sm:$0xf0]  ;;  %v5445_v58 = vor.u32 %v7874_v52, %v5444_v50  ;;  %4161 = vmatpush.bf16.msra.mxu3 %v5717_v51 }
  0x20   : > { %v5700_v55 = vld [vmem:[%s12573_s1 + $0x360] sm:$0xf]  ;;  %v7938_v56 = vld [vmem:[%s12573_s1 + $0x36c] sm:$0xf0]  ;;  %v5573_v59 = vor.u32 %v7906_v54, %v5572_v53  ;;  %4123 = vmatpush.bf16.msra.mxu0 %v5317_v57 }
  0x21   : > { %v5300_v60 = vld [vmem:[%s12573_s1 + $0x40] sm:$0xf]  ;;  %v7838_v61 = vld [vmem:[%s12573_s1 + $0x4c] sm:$0xf0]  ;;  %v5701_v63 = vor.u32 %v7938_v56, %v5700_v55  ;;  %4136 = vmatpush.bf16.msra.mxu1 %v5445_v58 }
  0x22   : > { %v5428_v62 = vld [vmem:[%s12573_s1 + $0x140] sm:$0xf]  ;;  %v7870_v0 = vld [vmem:[%s12573_s1 + $0x14c] sm:$0xf0]  ;;  %v5301_v5 = vor.u32 %v7838_v61, %v5300_v60  ;;  %4149 = vmatpush.bf16.msra.mxu2 %v5573_v59 }
  0x23   : > { %v5556_v1 = vld [vmem:[%s12573_s1 + $0x240] sm:$0xf]  ;;  %v7902_v2 = vld [vmem:[%s12573_s1 + $0x24c] sm:$0xf0]  ;;  %v5429_v6 = vor.u32 %v7870_v0, %v5428_v62  ;;  %4162 = vmatpush.bf16.msra.mxu3 %v5701_v63 }
  0x24   : > { %v5684_v3 = vld [vmem:[%s12573_s1 + $0x340] sm:$0xf]  ;;  %v7934_v4 = vld [vmem:[%s12573_s1 + $0x34c] sm:$0xf0]  ;;  %v5557_v7 = vor.u32 %v7902_v2, %v5556_v1  ;;  %4124 = vmatpush.bf16.msra.mxu0 %v5301_v5 }
  0x25   : > { %v5284_v8 = vld [vmem:[%s12573_s1 + $0x20] sm:$0xf]  ;;  %v7834_v9 = vld [vmem:[%s12573_s1 + $0x2c] sm:$0xf0]  ;;  %v5685_v11 = vor.u32 %v7934_v4, %v5684_v3  ;;  %4137 = vmatpush.bf16.msra.mxu1 %v5429_v6 }
  0x26   : > { %v5412_v10 = vld [vmem:[%s12573_s1 + $0x120] sm:$0xf]  ;;  %v7866_v12 = vld [vmem:[%s12573_s1 + $0x12c] sm:$0xf0]  ;;  %v5285_v17 = vor.u32 %v7834_v9, %v5284_v8  ;;  %4150 = vmatpush.bf16.msra.mxu2 %v5557_v7 }
  0x27   : > { %v5540_v13 = vld [vmem:[%s12573_s1 + $0x220] sm:$0xf]  ;;  %v7898_v14 = vld [vmem:[%s12573_s1 + $0x22c] sm:$0xf0]  ;;  %v5413_v20 = vor.u32 %v7866_v12, %v5412_v10  ;;  %4163 = vmatpush.bf16.msra.mxu3 %v5685_v11 }
  0x28   : > { %v5668_v15 = vld [vmem:[%s12573_s1 + $0x320] sm:$0xf]  ;;  %v7930_v16 = vld [vmem:[%s12573_s1 + $0x32c] sm:$0xf0]  ;;  %v5541_v21 = vor.u32 %v7898_v14, %v5540_v13  ;;  %4125 = vmatpush.bf16.msra.mxu0 %v5285_v17 }
  0x29   : > { %v5268_v18 = vld [vmem:[%s12573_s1] sm:$0xf]  ;;  %v7830_v19 = vld [vmem:[%s12573_s1 + $0xc] sm:$0xf0]  ;;  %v5669_v25 = vor.u32 %v7930_v16, %v5668_v15  ;;  %4138 = vmatpush.bf16.msra.mxu1 %v5413_v20 }
  0x2a   : > { %v5396_v22 = vld [vmem:[%s12573_s1 + $0x100] sm:$0xf]  ;;  %v7862_v23 = vld [vmem:[%s12573_s1 + $0x10c] sm:$0xf0]  ;;  %v5269_v32 = vor.u32 %v7830_v19, %v5268_v18  ;;  %4151 = vmatpush.bf16.msra.mxu2 %v5541_v21 }
  0x2b   : > { %v5524_v24 = vld [vmem:[%s12573_s1 + $0x200] sm:$0xf]  ;;  %v7894_v26 = vld [vmem:[%s12573_s1 + $0x20c] sm:$0xf0]  ;;  %v5397_v36 = vor.u32 %v7862_v23, %v5396_v22  ;;  %4164 = vmatpush.bf16.msra.mxu3 %v5669_v25 }
  0x2c   : > { %v5652_v27 = vld [vmem:[%s12573_s1 + $0x300] sm:$0xf]  ;;  %v7926_v28 = vld [vmem:[%s12573_s1 + $0x30c] sm:$0xf0]  ;;  %v5525_v37 = vor.u32 %v7894_v26, %v5524_v24  ;;  %4126 = vmatpush.bf16.msra.mxu0 %v5269_v32 }
  0x2d   : > { %v5892_v29 = vld [vmem:[%s12573_s1 + $0x4e0] sm:$0xf]  ;;  %v7986_v30 = vld [vmem:[%s12573_s1 + $0x4ec] sm:$0xf0]  ;;  %v5653_v40 = vor.u32 %v7926_v28, %v5652_v27  ;;  %4139 = vmatpush.bf16.msra.mxu1 %v5397_v36 }
  0x2e   : > { %v6020_v31 = vld [vmem:[%s12573_s1 + $0x5e0] sm:$0xf]  ;;  %v8018_v33 = vld [vmem:[%s12573_s1 + $0x5ec] sm:$0xf0]  ;;  %v5893_v41 = vor.u32 %v7986_v30, %v5892_v29  ;;  %4152 = vmatpush.bf16.msra.mxu2 %v5525_v37 }
  0x2f   : > { %v6148_v34 = vld [vmem:[%s12573_s1 + $0x6e0] sm:$0xf]  ;;  %v8050_v35 = vld [vmem:[%s12573_s1 + $0x6ec] sm:$0xf0]  ;;  %v6021_v42 = vor.u32 %v8018_v33, %v6020_v31  ;;  %4165 = vmatpush.bf16.msra.mxu3 %v5653_v40 }
  0x30   : > { %v6276_v38 = vld [vmem:[%s12573_s1 + $0x7e0] sm:$0xf]  ;;  %v8082_v39 = vld [vmem:[%s12573_s1 + $0x7ec] sm:$0xf0]  ;;  %v6149_v43 = vor.u32 %v8050_v35, %v6148_v34  ;;  %4171 = vmatpush.bf16.msrb.mxu0 %v5893_v41 }
  0x31   : > { %v5876_v44 = vld [vmem:[%s12573_s1 + $0x4c0] sm:$0xf]  ;;  %v7982_v45 = vld [vmem:[%s12573_s1 + $0x4cc] sm:$0xf0]  ;;  %v6277_v47 = vor.u32 %v8082_v39, %v6276_v38  ;;  %4184 = vmatpush.bf16.msrb.mxu1 %v6021_v42 }
  0x32   : > { %v6004_v46 = vld [vmem:[%s12573_s1 + $0x5c0] sm:$0xf]  ;;  %v8014_v48 = vld [vmem:[%s12573_s1 + $0x5cc] sm:$0xf0]  ;;  %v5877_v53 = vor.u32 %v7982_v45, %v5876_v44  ;;  %4197 = vmatpush.bf16.msrb.mxu2 %v6149_v43 }
  0x33   : > { %v6132_v49 = vld [vmem:[%s12573_s1 + $0x6c0] sm:$0xf]  ;;  %v8046_v50 = vld [vmem:[%s12573_s1 + $0x6cc] sm:$0xf0]  ;;  %v6005_v54 = vor.u32 %v8014_v48, %v6004_v46  ;;  %4210 = vmatpush.bf16.msrb.mxu3 %v6277_v47 }
  0x34   : > { %v6260_v51 = vld [vmem:[%s12573_s1 + $0x7c0] sm:$0xf]  ;;  %v8078_v52 = vld [vmem:[%s12573_s1 + $0x7cc] sm:$0xf0]  ;;  %v6133_v55 = vor.u32 %v8046_v50, %v6132_v49  ;;  %4172 = vmatpush.bf16.msrb.mxu0 %v5877_v53 }
  0x35   : > { %v5860_v56 = vld [vmem:[%s12573_s1 + $0x4a0] sm:$0xf]  ;;  %v7978_v57 = vld [vmem:[%s12573_s1 + $0x4ac] sm:$0xf0]  ;;  %v6261_v59 = vor.u32 %v8078_v52, %v6260_v51  ;;  %4185 = vmatpush.bf16.msrb.mxu1 %v6005_v54  ;;  %v221_v54 = vld [vmem:[%s8862_s11 + $0x8] sm:$0xff] }
  0x36   : > { %v5988_v58 = vld [vmem:[%s12573_s1 + $0x5a0] sm:$0xf]  ;;  %v8010_v60 = vld [vmem:[%s12573_s1 + $0x5ac] sm:$0xf0]  ;;  %v5861_v1 = vor.u32 %v7978_v57, %v5860_v56  ;;  %4198 = vmatpush.bf16.msrb.mxu2 %v6133_v55 }
  0x37   : > { %v6116_v61 = vld [vmem:[%s12573_s1 + $0x6a0] sm:$0xf]  ;;  %v8042_v62 = vld [vmem:[%s12573_s1 + $0x6ac] sm:$0xf0]  ;;  %v5989_v3 = vor.u32 %v8010_v60, %v5988_v58  ;;  %4211 = vmatpush.bf16.msrb.mxu3 %v6261_v59 }
  0x38   : > { %v6244_v63 = vld [vmem:[%s12573_s1 + $0x7a0] sm:$0xf]  ;;  %v8074_v0 = vld [vmem:[%s12573_s1 + $0x7ac] sm:$0xf0]  ;;  %v6117_v4 = vor.u32 %v8042_v62, %v6116_v61  ;;  %4173 = vmatpush.bf16.msrb.mxu0 %v5861_v1 }
  0x39   : > { %v5844_v2 = vld [vmem:[%s12573_s1 + $0x480] sm:$0xf]  ;;  %v7974_v5 = vld [vmem:[%s12573_s1 + $0x48c] sm:$0xf0]  ;;  %v6245_v8 = vor.u32 %v8074_v0, %v6244_v63  ;;  %4186 = vmatpush.bf16.msrb.mxu1 %v5989_v3 }
  0x3a   : > { %v5972_v6 = vld [vmem:[%s12573_s1 + $0x580] sm:$0xf]  ;;  %v8006_v7 = vld [vmem:[%s12573_s1 + $0x58c] sm:$0xf0]  ;;  %v5845_v13 = vor.u32 %v7974_v5, %v5844_v2  ;;  %4199 = vmatpush.bf16.msrb.mxu2 %v6117_v4 }
  0x3b   : > { %v6100_v9 = vld [vmem:[%s12573_s1 + $0x680] sm:$0xf]  ;;  %v8038_v10 = vld [vmem:[%s12573_s1 + $0x68c] sm:$0xf0]  ;;  %v5973_v14 = vor.u32 %v8006_v7, %v5972_v6  ;;  %4212 = vmatpush.bf16.msrb.mxu3 %v6245_v8 }
  0x3c   : > { %v6228_v11 = vld [vmem:[%s12573_s1 + $0x780] sm:$0xf]  ;;  %v8070_v12 = vld [vmem:[%s12573_s1 + $0x78c] sm:$0xf0]  ;;  %v6101_v15 = vor.u32 %v8038_v10, %v6100_v9  ;;  %4174 = vmatpush.bf16.msrb.mxu0 %v5845_v13 }
  0x3d   : > { %v5828_v16 = vld [vmem:[%s12573_s1 + $0x460] sm:$0xf]  ;;  %v7970_v17 = vld [vmem:[%s12573_s1 + $0x46c] sm:$0xf0]  ;;  %v6229_v19 = vor.u32 %v8070_v12, %v6228_v11  ;;  %4187 = vmatpush.bf16.msrb.mxu1 %v5973_v14 }
  0x3e   : > { %v5956_v18 = vld [vmem:[%s12573_s1 + $0x560] sm:$0xf]  ;;  %v8002_v20 = vld [vmem:[%s12573_s1 + $0x56c] sm:$0xf0]  ;;  %v5829_v26 = vor.u32 %v7970_v17, %v5828_v16  ;;  %4200 = vmatpush.bf16.msrb.mxu2 %v6101_v15 }
  0x3f   : > { %v6084_v21 = vld [vmem:[%s12573_s1 + $0x660] sm:$0xf]  ;;  %v8034_v22 = vld [vmem:[%s12573_s1 + $0x66c] sm:$0xf0]  ;;  %v5957_v27 = vor.u32 %v8002_v20, %v5956_v18  ;;  %4213 = vmatpush.bf16.msrb.mxu3 %v6229_v19 }
  0x40   : > { %v6212_v23 = vld [vmem:[%s12573_s1 + $0x760] sm:$0xf]  ;;  %v8066_v24 = vld [vmem:[%s12573_s1 + $0x76c] sm:$0xf0]  ;;  %v6085_v28 = vor.u32 %v8034_v22, %v6084_v21  ;;  %4175 = vmatpush.bf16.msrb.mxu0 %v5829_v26 }
  0x41   : > { %v220_v25 = vld [vmem:[%s8862_s11] sm:$0xff]  ;;  %v7966_v30 = vld [vmem:[%s12573_s1 + $0x44c] sm:$0xf0]  ;;  %v6213_v32 = vor.u32 %v8066_v24, %v6212_v23  ;;  %4188 = vmatpush.bf16.msrb.mxu1 %v5957_v27 }
  0x42   : > { %865 = vst [vmem:[#allocation1] ss:$9 sm:$0xff] %v220_v25  ;;  %v5812_v29 = vld [vmem:[%s12573_s1 + $0x440] sm:$0xf]  ;;  %v7998_v33 = vld [vmem:[%s12573_s1 + $0x54c] sm:$0xf0]  ;;  %4201 = vmatpush.bf16.msrb.mxu2 %v6085_v28 }
  0x43   : > { %v5940_v31 = vld [vmem:[%s12573_s1 + $0x540] sm:$0xf]  ;;  %v8030_v35 = vld [vmem:[%s12573_s1 + $0x64c] sm:$0xf0]  ;;  %v5813_v38 = vor.u32 %v7966_v30, %v5812_v29  ;;  %4214 = vmatpush.bf16.msrb.mxu3 %v6213_v32 }
  0x44   : > { %v6068_v34 = vld [vmem:[%s12573_s1 + $0x640] sm:$0xf]  ;;  %v8062_v37 = vld [vmem:[%s12573_s1 + $0x74c] sm:$0xf0]  ;;  %v5941_v41 = vor.u32 %v7998_v33, %v5940_v31 }
  0x45   : > { %v6196_v36 = vld [vmem:[%s12573_s1 + $0x740] sm:$0xf]  ;;  %v7962_v40 = vld [vmem:[%s12573_s1 + $0x42c] sm:$0xf0]  ;;  %v6069_v42 = vor.u32 %v8030_v35, %v6068_v34  ;;  %4176 = vmatpush.bf16.msrb.mxu0 %v5813_v38 }
  0x46   : > { %v5796_v39 = vld [vmem:[%s12573_s1 + $0x420] sm:$0xf]  ;;  %v7994_v44 = vld [vmem:[%s12573_s1 + $0x52c] sm:$0xf0]  ;;  %v6197_v46 = vor.u32 %v8062_v37, %v6196_v36  ;;  %4189 = vmatpush.bf16.msrb.mxu1 %v5941_v41 }
  0x47   : > { %v5924_v43 = vld [vmem:[%s12573_s1 + $0x520] sm:$0xf]  ;;  %v8026_v47 = vld [vmem:[%s12573_s1 + $0x62c] sm:$0xf0]  ;;  %v5797_v56 = vor.u32 %v7962_v40, %v5796_v39  ;;  %4202 = vmatpush.bf16.msrb.mxu2 %v6069_v42 }
  0x48   : > { %v6052_v45 = vld [vmem:[%s12573_s1 + $0x620] sm:$0xf]  ;;  %v8058_v49 = vld [vmem:[%s12573_s1 + $0x72c] sm:$0xf0]  ;;  %v5925_v62 = vor.u32 %v7994_v44, %v5924_v43  ;;  %4215 = vmatpush.bf16.msrb.mxu3 %v6197_v46 }
  0x49   : > { %v6180_v48 = vld [vmem:[%s12573_s1 + $0x720] sm:$0xf]  ;;  %v8919_v50 = vld [vmem:[#allocation1 + $0x12] sm:$0xff]  ;;  %v8933_v57 = vld [vmem:[#allocation1 + $0x9] sm:$0xff]  ;;  %v6053_v63 = vor.u32 %v8026_v47, %v6052_v45  ;;  %4177 = vmatpush.bf16.msrb.mxu0 %v5797_v56 }
  0x4a   : > { %v8921_v51 = vld [vmem:[#allocation1] sm:$0xff]  ;;  %v7958_v53 = vld [vmem:[%s12573_s1 + $0x40c] sm:$0xf0]  ;;  %4153 = vmatmul.bf16.vlgmr.msra.gmra.mxu2 %v8919_v50  ;;  %v8956_v3 = vld [vmem:[#allocation1 + $0x36] sm:$0xff]  ;;  %v6181_v4 = vor.u32 %v8058_v49, %v6180_v48  ;;  %4140 = vmatmul.bf16.vlgmr.msra.gmra.mxu1 %v8933_v57 }
  0x4b   : > { %v5780_v52 = vld [vmem:[%s12573_s1 + $0x400] sm:$0xf]  ;;  %v7990_v59 = vld [vmem:[%s12573_s1 + $0x50c] sm:$0xf0]  ;;  %4127 = vmatmul.bf16.vlgmr.msra.gmra.mxu0 %v8921_v51  ;;  %v8959_v5 = vld [vmem:[#allocation1 + $0x24] sm:$0xff]  ;;  %4190 = vmatpush.bf16.msrb.mxu1 %v5925_v62 }
  0x4c   : > { %v8931_v55 = vld [vmem:[#allocation1 + $0x1b] sm:$0xff]  ;;  %v8022_v61 = vld [vmem:[%s12573_s1 + $0x60c] sm:$0xf0]  ;;  %v5781_v10 = vor.u32 %v7958_v53, %v5780_v52  ;;  %4203 = vmatpush.bf16.msrb.mxu2 %v6053_v63  ;;  %4216 = vmatpush.bf16.msrb.mxu3 %v6181_v4 }
  0x4d   : > { %v5908_v58 = vld [vmem:[%s12573_s1 + $0x500] sm:$0xf]  ;;  %v8054_v1 = vld [vmem:[%s12573_s1 + $0x70c] sm:$0xf0]  ;;  %4166 = vmatmul.bf16.vlgmr.msra.gmra.mxu3 %v8931_v55 }
  0x4e   : > { %v6036_v60 = vld [vmem:[%s12573_s1 + $0x600] sm:$0xf]  ;;  %v8963_v7 = vld [vmem:[#allocation1 + $0x2d] sm:$0xff]  ;;  %v5909_v14 = vor.u32 %v7990_v59, %v5908_v58  ;;  %4178 = vmatpush.bf16.msrb.mxu0 %v5781_v10 }
  0x4f   : > { %v6164_v0 = vld [vmem:[%s12573_s1 + $0x700] sm:$0xf]  ;;  %v8114_v8 = vld [vmem:[%s12573_s1 + $0x8ec] sm:$0xf0]  ;;  %v6037_v15 = vor.u32 %v8022_v61, %v6036_v60 }
  0x50   : > { %v6404_v2 = vld [vmem:[%s12573_s1 + $0x8e0] sm:$0xf]  ;;  %v8146_v11 = vld [vmem:[%s12573_s1 + $0x9ec] sm:$0xf0]  ;;  %v6165_v18 = vor.u32 %v8054_v1, %v6164_v0  ;;  %4191 = vmatpush.bf16.msrb.mxu1 %v5909_v14 }
  0x51   : > { %v8961_v6 = vld [vmem:[#allocation1 + $0x3f] sm:$0xff]  ;;  %v8178_v13 = vld [vmem:[%s12573_s1 + $0xaec] sm:$0xf0]  ;;  %v6405_v19 = vor.u32 %v8114_v8, %v6404_v2  ;;  %4204 = vmatpush.bf16.msrb.mxu2 %v6037_v15 }
  0x52   : > { %v6532_v9 = vld [vmem:[%s12573_s1 + $0x9e0] sm:$0xf]  ;;  %875 = vst [vmem:[#allocation1] ss:$9 sm:$0xff] %v221_v54  ;;  %v8210_v17 = vld [vmem:[%s12573_s1 + $0xbec] sm:$0xf0]  ;;  %4217 = vmatpush.bf16.msrb.mxu3 %v6165_v18 }
  0x53   : > { %v6660_v12 = vld [vmem:[%s12573_s1 + $0xae0] sm:$0xf]  ;;  %v6533_v20 = vor.u32 %v8146_v11, %v6532_v9  ;;  %v8110_v23 = vld [vmem:[%s12573_s1 + $0x8cc] sm:$0xf0]  ;;  %4223 = vmatpush.bf16.msra.mxu0 %v6405_v19 }
  0x54   : > { %v6788_v16 = vld [vmem:[%s12573_s1 + $0xbe0] sm:$0xf]  ;;  %v6661_v21 = vor.u32 %v8178_v13, %v6660_v12  ;;  %v8142_v26 = vld [vmem:[%s12573_s1 + $0x9cc] sm:$0xf0] }
  0x55   : > { %v6388_v22 = vld [vmem:[%s12573_s1 + $0x8c0] sm:$0xf]  ;;  %v6789_v25 = vor.u32 %v8210_v17, %v6788_v16  ;;  %v8174_v28 = vld [vmem:[%s12573_s1 + $0xacc] sm:$0xf0]  ;;  %4236 = vmatpush.bf16.msra.mxu1 %v6533_v20 }
  0x56   : > { %v6516_v24 = vld [vmem:[%s12573_s1 + $0x9c0] sm:$0xf]  ;;  %v8206_v30 = vld [vmem:[%s12573_s1 + $0xbcc] sm:$0xf0]  ;;  %v6389_v31 = vor.u32 %v8110_v23, %v6388_v22  ;;  %4249 = vmatpush.bf16.msra.mxu2 %v6661_v21 }
  0x57   : > { %v6644_v27 = vld [vmem:[%s12573_s1 + $0xac0] sm:$0xf]  ;;  %v6517_v32 = vor.u32 %v8142_v26, %v6516_v24  ;;  %v8106_v35 = vld [vmem:[%s12573_s1 + $0x8ac] sm:$0xf0]  ;;  %4262 = vmatpush.bf16.msra.mxu3 %v6789_v25 }
  0x58   : > { %v6772_v29 = vld [vmem:[%s12573_s1 + $0xbc0] sm:$0xf]  ;;  %v6645_v33 = vor.u32 %v8174_v28, %v6644_v27  ;;  %v8138_v38 = vld [vmem:[%s12573_s1 + $0x9ac] sm:$0xf0]  ;;  %4224 = vmatpush.bf16.msra.mxu0 %v6389_v31 }
  0x59   : > { %v6372_v34 = vld [vmem:[%s12573_s1 + $0x8a0] sm:$0xf]  ;;  %v6773_v37 = vor.u32 %v8206_v30, %v6772_v29  ;;  %v8170_v40 = vld [vmem:[%s12573_s1 + $0xaac] sm:$0xf0]  ;;  %4237 = vmatpush.bf16.msra.mxu1 %v6517_v32 }
  0x5a   : > { %v6500_v36 = vld [vmem:[%s12573_s1 + $0x9a0] sm:$0xf]  ;;  %v8202_v42 = vld [vmem:[%s12573_s1 + $0xbac] sm:$0xf0]  ;;  %v6373_v43 = vor.u32 %v8106_v35, %v6372_v34  ;;  %4250 = vmatpush.bf16.msra.mxu2 %v6645_v33  ;;  %4192 = vmatmul.bf16.vlgmr.msrb.gmra.mxu1 %v8963_v7 }
  0x5b   : > { %v6628_v39 = vld [vmem:[%s12573_s1 + $0xaa0] sm:$0xf]  ;;  %v6501_v44 = vor.u32 %v8138_v38, %v6500_v36  ;;  %v8102_v47 = vld [vmem:[%s12573_s1 + $0x88c] sm:$0xf0]  ;;  %4263 = vmatpush.bf16.msra.mxu3 %v6773_v37  ;;  %4205 = vmatmul.bf16.vlgmr.msrb.gmra.mxu2 %v8956_v3 }
  0x5c   : > { %v6756_v41 = vld [vmem:[%s12573_s1 + $0xba0] sm:$0xf]  ;;  %v6629_v45 = vor.u32 %v8170_v40, %v6628_v39  ;;  %v8134_v52 = vld [vmem:[%s12573_s1 + $0x98c] sm:$0xf0]  ;;  %4225 = vmatpush.bf16.msra.mxu0 %v6373_v43 }
  0x5d   : > { %v6356_v46 = vld [vmem:[%s12573_s1 + $0x880] sm:$0xf]  ;;  %v6757_v49 = vor.u32 %v8202_v42, %v6756_v41  ;;  %v8166_v54 = vld [vmem:[%s12573_s1 + $0xa8c] sm:$0xf0]  ;;  %4238 = vmatpush.bf16.msra.mxu1 %v6501_v44  ;;  %4179 = vmatmul.bf16.vlgmr.msrb.gmra.mxu0 %v8959_v5 }
  0x5e   : > { %v6484_v48 = vld [vmem:[%s12573_s1 + $0x980] sm:$0xf]  ;;  %v8198_v58 = vld [vmem:[%s12573_s1 + $0xb8c] sm:$0xf0]  ;;  %v6357_v59 = vor.u32 %v8102_v47, %v6356_v46  ;;  %4251 = vmatpush.bf16.msra.mxu2 %v6629_v45  ;;  %4218 = vmatmul.bf16.vlgmr.msrb.gmra.mxu3 %v8961_v6 }
  0x5f   : > { %v6612_v53 = vld [vmem:[%s12573_s1 + $0xa80] sm:$0xf]  ;;  %v6485_v60 = vor.u32 %v8134_v52, %v6484_v48  ;;  %v8098_v63 = vld [vmem:[%s12573_s1 + $0x86c] sm:$0xf0]  ;;  %4264 = vmatpush.bf16.msra.mxu3 %v6757_v49 }
  0x60   : > { %v6740_v56 = vld [vmem:[%s12573_s1 + $0xb80] sm:$0xf]  ;;  %v6613_v61 = vor.u32 %v8166_v54, %v6612_v53  ;;  %v8130_v2 = vld [vmem:[%s12573_s1 + $0x96c] sm:$0xf0]  ;;  %4226 = vmatpush.bf16.msra.mxu0 %v6357_v59 }
  0x61   : > { %v6340_v62 = vld [vmem:[%s12573_s1 + $0x860] sm:$0xf]  ;;  %v6741_v1 = vor.u32 %v8198_v58, %v6740_v56  ;;  %v8162_v8 = vld [vmem:[%s12573_s1 + $0xa6c] sm:$0xf0]  ;;  %4239 = vmatpush.bf16.msra.mxu1 %v6485_v60 }
  0x62   : > { %v6468_v0 = vld [vmem:[%s12573_s1 + $0x960] sm:$0xf]  ;;  %v8194_v10 = vld [vmem:[%s12573_s1 + $0xb6c] sm:$0xf0]  ;;  %v6341_v11 = vor.u32 %v8098_v63, %v6340_v62  ;;  %4252 = vmatpush.bf16.msra.mxu2 %v6613_v61 }
  0x63   : > { %v6596_v4 = vld [vmem:[%s12573_s1 + $0xa60] sm:$0xf]  ;;  %v6469_v12 = vor.u32 %v8130_v2, %v6468_v0  ;;  %v8094_v15 = vld [vmem:[%s12573_s1 + $0x84c] sm:$0xf0]  ;;  %4265 = vmatpush.bf16.msra.mxu3 %v6741_v1 }
  0x64   : > { %v6724_v9 = vld [vmem:[%s12573_s1 + $0xb60] sm:$0xf]  ;;  %v6597_v13 = vor.u32 %v8162_v8, %v6596_v4  ;;  %v8126_v18 = vld [vmem:[%s12573_s1 + $0x94c] sm:$0xf0]  ;;  %4227 = vmatpush.bf16.msra.mxu0 %v6341_v11 }
  0x65   : > { %v6324_v14 = vld [vmem:[%s12573_s1 + $0x840] sm:$0xf]  ;;  %v6725_v17 = vor.u32 %v8194_v10, %v6724_v9  ;;  %v8158_v20 = vld [vmem:[%s12573_s1 + $0xa4c] sm:$0xf0]  ;;  %4240 = vmatpush.bf16.msra.mxu1 %v6469_v12 }
  0x66   : > { %v6452_v16 = vld [vmem:[%s12573_s1 + $0x940] sm:$0xf]  ;;  %v8190_v22 = vld [vmem:[%s12573_s1 + $0xb4c] sm:$0xf0]  ;;  %v6325_v23 = vor.u32 %v8094_v15, %v6324_v14  ;;  %4253 = vmatpush.bf16.msra.mxu2 %v6597_v13 }
  0x67   : > { %v6580_v19 = vld [vmem:[%s12573_s1 + $0xa40] sm:$0xf]  ;;  %v6453_v24 = vor.u32 %v8126_v18, %v6452_v16  ;;  %v8090_v27 = vld [vmem:[%s12573_s1 + $0x82c] sm:$0xf0]  ;;  %4266 = vmatpush.bf16.msra.mxu3 %v6725_v17 }
  0x68   : > { %v6708_v21 = vld [vmem:[%s12573_s1 + $0xb40] sm:$0xf]  ;;  %v6581_v25 = vor.u32 %v8158_v20, %v6580_v19  ;;  %v8122_v30 = vld [vmem:[%s12573_s1 + $0x92c] sm:$0xf0]  ;;  %4228 = vmatpush.bf16.msra.mxu0 %v6325_v23 }
  0x69   : > { %v6308_v26 = vld [vmem:[%s12573_s1 + $0x820] sm:$0xf]  ;;  %v6709_v29 = vor.u32 %v8190_v22, %v6708_v21  ;;  %v8154_v32 = vld [vmem:[%s12573_s1 + $0xa2c] sm:$0xf0]  ;;  %4241 = vmatpush.bf16.msra.mxu1 %v6453_v24 }
  0x6a   : > { %v6436_v28 = vld [vmem:[%s12573_s1 + $0x920] sm:$0xf]  ;;  %v8186_v34 = vld [vmem:[%s12573_s1 + $0xb2c] sm:$0xf0]  ;;  %v6309_v35 = vor.u32 %v8090_v27, %v6308_v26  ;;  %4254 = vmatpush.bf16.msra.mxu2 %v6581_v25 }
  0x6b   : > { %v6564_v31 = vld [vmem:[%s12573_s1 + $0xa20] sm:$0xf]  ;;  %v8086_v37 = vld [vmem:[%s12573_s1 + $0x80c] sm:$0xf0]  ;;  %v6437_v38 = vor.u32 %v8122_v30, %v6436_v28  ;;  %4267 = vmatpush.bf16.msra.mxu3 %v6709_v29  ;;  %v9235_v29 = vld [vmem:[#allocation1 + $0x24] sm:$0xff] }
  0x6c   : > { %v6692_v33 = vld [vmem:[%s12573_s1 + $0xb20] sm:$0xf]  ;;  %v6565_v39 = vor.u32 %v8154_v32, %v6564_v31  ;;  %v8118_v41 = vld [vmem:[%s12573_s1 + $0x90c] sm:$0xf0]  ;;  %4229 = vmatpush.bf16.msra.mxu0 %v6309_v35  ;;  %v9238_v31 = vld [vmem:[#allocation1 + $0x36] sm:$0xff] }
  0x6d   : > { %v6292_v36 = vld [vmem:[%s12573_s1 + $0x800] sm:$0xf]  ;;  %v6693_v43 = vor.u32 %v8186_v34, %v6692_v33  ;;  %v8150_v44 = vld [vmem:[%s12573_s1 + $0xa0c] sm:$0xf0]  ;;  %4242 = vmatpush.bf16.msra.mxu1 %v6437_v38 }
  0x6e   : > { %v6420_v40 = vld [vmem:[%s12573_s1 + $0x900] sm:$0xf]  ;;  %v8182_v46 = vld [vmem:[%s12573_s1 + $0xb0c] sm:$0xf0]  ;;  %v6293_v52 = vor.u32 %v8086_v37, %v6292_v36  ;;  %4255 = vmatpush.bf16.msra.mxu2 %v6565_v39 }
  0x6f   : > { %v6548_v42 = vld [vmem:[%s12573_s1 + $0xa00] sm:$0xf]  ;;  %v8242_v48 = vld [vmem:[%s12573_s1 + $0xcec] sm:$0xf0]  ;;  %v6421_v58 = vor.u32 %v8118_v41, %v6420_v40  ;;  %4268 = vmatpush.bf16.msra.mxu3 %v6693_v43 }
  0x70   : > { %v6676_v45 = vld [vmem:[%s12573_s1 + $0xb00] sm:$0xf]  ;;  %v8274_v53 = vld [vmem:[%s12573_s1 + $0xdec] sm:$0xf0]  ;;  %v6549_v59 = vor.u32 %v8150_v44, %v6548_v42  ;;  %4230 = vmatpush.bf16.msra.mxu0 %v6293_v52 }
  0x71   : > { %v6916_v47 = vld [vmem:[%s12573_s1 + $0xce0] sm:$0xf]  ;;  %v8306_v56 = vld [vmem:[%s12573_s1 + $0xeec] sm:$0xf0]  ;;  %v6677_v62 = vor.u32 %v8182_v46, %v6676_v45  ;;  %4243 = vmatpush.bf16.msra.mxu1 %v6421_v58 }
  0x72   : > { %v7044_v49 = vld [vmem:[%s12573_s1 + $0xde0] sm:$0xf]  ;;  %v8338_v61 = vld [vmem:[%s12573_s1 + $0xfec] sm:$0xf0]  ;;  %v6917_v63 = vor.u32 %v8242_v48, %v6916_v47  ;;  %4256 = vmatpush.bf16.msra.mxu2 %v6549_v59 }
  0x73   : > { %v7172_v54 = vld [vmem:[%s12573_s1 + $0xee0] sm:$0xf]  ;;  %v7045_v0 = vor.u32 %v8274_v53, %v7044_v49  ;;  %v8238_v8 = vld [vmem:[%s12573_s1 + $0xccc] sm:$0xf0]  ;;  %4269 = vmatpush.bf16.msra.mxu3 %v6677_v62 }
  0x74   : > { %v7300_v60 = vld [vmem:[%s12573_s1 + $0xfe0] sm:$0xf]  ;;  %v7173_v1 = vor.u32 %v8306_v56, %v7172_v54  ;;  %v222_v10 = vld [vmem:[%s8862_s11 + $0x10] sm:$0xf]  ;;  %4275 = vmatpush.bf16.msrb.mxu0 %v6917_v63 }
  0x75   : > { %v9184_v2 = vld [vmem:[#allocation1] sm:$0xff]  ;;  %v7301_v11 = vor.u32 %v8338_v61, %v7300_v60  ;;  %v9196_v12 = vld [vmem:[#allocation1 + $0x12] sm:$0xff]  ;;  %v9198_v13 = vld [vmem:[#allocation1 + $0x9] sm:$0xff]  ;;  %4288 = vmatpush.bf16.msrb.mxu1 %v7045_v0 }
  0x76   : > { %v6900_v4 = vld [vmem:[%s12573_s1 + $0xcc0] sm:$0xf]  ;;  %v8270_v14 = vld [vmem:[%s12573_s1 + $0xdcc] sm:$0xf0]  ;;  %4301 = vmatpush.bf16.msrb.mxu2 %v7173_v1  ;;  %4231 = vmatmul.bf16.vlgmr.msra.gmra.mxu0 %v9184_v2 }
  0x77   : > { %v7028_v9 = vld [vmem:[%s12573_s1 + $0xdc0] sm:$0xf]  ;;  %v8302_v16 = vld [vmem:[%s12573_s1 + $0xecc] sm:$0xf0]  ;;  %v6901_v21 = vor.u32 %v8238_v8, %v6900_v4  ;;  %4314 = vmatpush.bf16.msrb.mxu3 %v7301_v11  ;;  %4257 = vmatmul.bf16.vlgmr.msra.gmra.mxu2 %v9196_v12 }
  0x78   : > { %v7156_v15 = vld [vmem:[%s12573_s1 + $0xec0] sm:$0xf]  ;;  %v8334_v19 = vld [vmem:[%s12573_s1 + $0xfcc] sm:$0xf0]  ;;  %v7029_v25 = vor.u32 %v8270_v14, %v7028_v9  ;;  %4244 = vmatmul.bf16.vlgmr.msra.gmra.mxu1 %v9198_v13 }
  0x79   : > { %v9209_v17 = vld [vmem:[#allocation1 + $0x1b] sm:$0xff]  ;;  %v8234_v22 = vld [vmem:[%s12573_s1 + $0xcac] sm:$0xf0]  ;;  %v7157_v26 = vor.u32 %v8302_v16, %v7156_v15  ;;  %4276 = vmatpush.bf16.msrb.mxu0 %v6901_v21 }
  0x7a   : > { %v7284_v18 = vld [vmem:[%s12573_s1 + $0xfc0] sm:$0xf]  ;;  %v8266_v24 = vld [vmem:[%s12573_s1 + $0xdac] sm:$0xf0]  ;;  %4270 = vmatmul.bf16.vlgmr.msra.gmra.mxu3 %v9209_v17  ;;  %4289 = vmatpush.bf16.msrb.mxu1 %v7029_v25 }
  0x7b   : > { %v6884_v20 = vld [vmem:[%s12573_s1 + $0xca0] sm:$0xf]  ;;  %v8298_v28 = vld [vmem:[%s12573_s1 + $0xeac] sm:$0xf0]  ;;  %v7285_v30 = vor.u32 %v8334_v19, %v7284_v18  ;;  %4302 = vmatpush.bf16.msrb.mxu2 %v7157_v26 }
  0x7c   : > { %v7012_v23 = vld [vmem:[%s12573_s1 + $0xda0] sm:$0xf]  ;;  %v9240_v32 = vld [vmem:[#allocation1 + $0x2d] sm:$0xff]  ;;  %v6885_v36 = vor.u32 %v8234_v22, %v6884_v20 }
  0x7d   : > { %v7140_v27 = vld [vmem:[%s12573_s1 + $0xea0] sm:$0xf]  ;;  %v8330_v35 = vld [vmem:[%s12573_s1 + $0xfac] sm:$0xf0]  ;;  %v7013_v37 = vor.u32 %v8266_v24, %v7012_v23  ;;  %4315 = vmatpush.bf16.msrb.mxu3 %v7285_v30 }
  0x7e   : > { %v9242_v33 = vld [vmem:[#allocation1 + $0x3f] sm:$0xff]  ;;  %v7141_v38 = vor.u32 %v8298_v28, %v7140_v27  ;;  %v8230_v40 = vld [vmem:[%s12573_s1 + $0xc8c] sm:$0xf0]  ;;  %4277 = vmatpush.bf16.msrb.mxu0 %v6885_v36 }
  0x7f   : > { %v7268_v34 = vld [vmem:[%s12573_s1 + $0xfa0] sm:$0xf]  ;;  %885 = vst [vmem:[#allocation1] ss:$9 sm:$0xff] %v222_v10  ;;  %v8262_v43 = vld [vmem:[%s12573_s1 + $0xd8c] sm:$0xf0]  ;;  %4290 = vmatpush.bf16.msrb.mxu1 %v7013_v37 }
  0x80   : > { %v6868_v39 = vld [vmem:[%s12573_s1 + $0xc80] sm:$0xf]  ;;  %v7269_v42 = vor.u32 %v8330_v35, %v7268_v34  ;;  %v8294_v45 = vld [vmem:[%s12573_s1 + $0xe8c] sm:$0xf0]  ;;  %4303 = vmatpush.bf16.msrb.mxu2 %v7141_v38 }
  0x81   : > { %v6996_v41 = vld [vmem:[%s12573_s1 + $0xd80] sm:$0xf]  ;;  %v8326_v47 = vld [vmem:[%s12573_s1 + $0xf8c] sm:$0xf0]  ;;  %v6869_v48 = vor.u32 %v8230_v40, %v6868_v39 }
  0x82   : > { %v7124_v44 = vld [vmem:[%s12573_s1 + $0xe80] sm:$0xf]  ;;  %v6997_v49 = vor.u32 %v8262_v43, %v6996_v41  ;;  %v8226_v54 = vld [vmem:[%s12573_s1 + $0xc6c] sm:$0xf0]  ;;  %4316 = vmatpush.bf16.msrb.mxu3 %v7269_v42 }
  0x83   : > { %v7252_v46 = vld [vmem:[%s12573_s1 + $0xf80] sm:$0xf]  ;;  %v7125_v52 = vor.u32 %v8294_v45, %v7124_v44  ;;  %v8258_v59 = vld [vmem:[%s12573_s1 + $0xd6c] sm:$0xf0]  ;;  %4278 = vmatpush.bf16.msrb.mxu0 %v6869_v48 }
  0x84   : > { %v6852_v53 = vld [vmem:[%s12573_s1 + $0xc60] sm:$0xf]  ;;  %v7253_v58 = vor.u32 %v8326_v47, %v7252_v46  ;;  %v8290_v61 = vld [vmem:[%s12573_s1 + $0xe6c] sm:$0xf0]  ;;  %4291 = vmatpush.bf16.msrb.mxu1 %v6997_v49 }
  0x85   : > { %v6980_v56 = vld [vmem:[%s12573_s1 + $0xd60] sm:$0xf]  ;;  %v8322_v63 = vld [vmem:[%s12573_s1 + $0xf6c] sm:$0xf0]  ;;  %v6853_v0 = vor.u32 %v8226_v54, %v6852_v53  ;;  %4304 = vmatpush.bf16.msrb.mxu2 %v7125_v52 }
  0x86   : > { %v7108_v60 = vld [vmem:[%s12573_s1 + $0xe60] sm:$0xf]  ;;  %v6981_v1 = vor.u32 %v8258_v59, %v6980_v56  ;;  %v8222_v9 = vld [vmem:[%s12573_s1 + $0xc4c] sm:$0xf0]  ;;  %4317 = vmatpush.bf16.msrb.mxu3 %v7253_v58 }
  0x87   : > { %v7236_v62 = vld [vmem:[%s12573_s1 + $0xf60] sm:$0xf]  ;;  %v7109_v4 = vor.u32 %v8290_v61, %v7108_v60  ;;  %v8254_v14 = vld [vmem:[%s12573_s1 + $0xd4c] sm:$0xf0]  ;;  %4279 = vmatpush.bf16.msrb.mxu0 %v6853_v0 }
  0x88   : > { %v6836_v8 = vld [vmem:[%s12573_s1 + $0xc40] sm:$0xf]  ;;  %v7237_v11 = vor.u32 %v8322_v63, %v7236_v62  ;;  %v8286_v16 = vld [vmem:[%s12573_s1 + $0xe4c] sm:$0xf0]  ;;  %4292 = vmatpush.bf16.msrb.mxu1 %v6981_v1 }
  0x89   : > { %v6964_v10 = vld [vmem:[%s12573_s1 + $0xd40] sm:$0xf]  ;;  %v8318_v19 = vld [vmem:[%s12573_s1 + $0xf4c] sm:$0xf0]  ;;  %v6837_v20 = vor.u32 %v8222_v9, %v6836_v8  ;;  %4305 = vmatpush.bf16.msrb.mxu2 %v7109_v4 }
  0x8a   : > { %v7092_v15 = vld [vmem:[%s12573_s1 + $0xe40] sm:$0xf]  ;;  %v6965_v21 = vor.u32 %v8254_v14, %v6964_v10  ;;  %v8218_v24 = vld [vmem:[%s12573_s1 + $0xc2c] sm:$0xf0]  ;;  %4318 = vmatpush.bf16.msrb.mxu3 %v7237_v11 }
  0x8b   : > { %v7220_v18 = vld [vmem:[%s12573_s1 + $0xf40] sm:$0xf]  ;;  %v7093_v22 = vor.u32 %v8286_v16, %v7092_v15  ;;  %v8250_v27 = vld [vmem:[%s12573_s1 + $0xd2c] sm:$0xf0]  ;;  %4280 = vmatpush.bf16.msrb.mxu0 %v6837_v20 }
  0x8c   : > { %v6820_v23 = vld [vmem:[%s12573_s1 + $0xc20] sm:$0xf]  ;;  %v7221_v26 = vor.u32 %v8318_v19, %v7220_v18  ;;  %v8282_v30 = vld [vmem:[%s12573_s1 + $0xe2c] sm:$0xf0]  ;;  %4293 = vmatpush.bf16.msrb.mxu1 %v6965_v21 }
  0x8d   : > { %v6948_v25 = vld [vmem:[%s12573_s1 + $0xd20] sm:$0xf]  ;;  %v8314_v35 = vld [vmem:[%s12573_s1 + $0xf2c] sm:$0xf0]  ;;  %v6821_v36 = vor.u32 %v8218_v24, %v6820_v23  ;;  %4306 = vmatpush.bf16.msrb.mxu2 %v7093_v22 }
  0x8e   : > { %v7076_v28 = vld [vmem:[%s12573_s1 + $0xe20] sm:$0xf]  ;;  %v8214_v38 = vld [vmem:[%s12573_s1 + $0xc0c] sm:$0xf0]  ;;  %v6949_v39 = vor.u32 %v8250_v27, %v6948_v25  ;;  %4319 = vmatpush.bf16.msrb.mxu3 %v7221_v26 }
  0x8f   : > { %v7204_v34 = vld [vmem:[%s12573_s1 + $0xf20] sm:$0xf]  ;;  %v7077_v40 = vor.u32 %v8282_v30, %v7076_v28  ;;  %v8246_v42 = vld [vmem:[%s12573_s1 + $0xd0c] sm:$0xf0]  ;;  %4281 = vmatpush.bf16.msrb.mxu0 %v6821_v36 }
  0x90   : > { %v6804_v37 = vld [vmem:[%s12573_s1 + $0xc00] sm:$0xf]  ;;  %v7205_v44 = vor.u32 %v8314_v35, %v7204_v34  ;;  %v8278_v45 = vld [vmem:[%s12573_s1 + $0xe0c] sm:$0xf0]  ;;  %4294 = vmatpush.bf16.msrb.mxu1 %v6949_v39 }
  0x91   : > { %v6932_v41 = vld [vmem:[%s12573_s1 + $0xd00] sm:$0xf]  ;;  %v8310_v47 = vld [vmem:[%s12573_s1 + $0xf0c] sm:$0xf0]  ;;  %v6805_v53 = vor.u32 %v8214_v38, %v6804_v37  ;;  %4307 = vmatpush.bf16.msrb.mxu2 %v7077_v40 }
  0x92   : > { %v7060_v43 = vld [vmem:[%s12573_s1 + $0xe00] sm:$0xf]  ;;  %v8370_v49 = vld [vmem:[%s12573_s1 + $0x10ec] sm:$0xf0]  ;;  %v6933_v59 = vor.u32 %v8246_v42, %v6932_v41  ;;  %4320 = vmatpush.bf16.msrb.mxu3 %v7205_v44 }
  0x93   : > { %v7188_v46 = vld [vmem:[%s12573_s1 + $0xf00] sm:$0xf]  ;;  %v8402_v54 = vld [vmem:[%s12573_s1 + $0x11ec] sm:$0xf0]  ;;  %v7061_v60 = vor.u32 %v8278_v45, %v7060_v43  ;;  %4282 = vmatpush.bf16.msrb.mxu0 %v6805_v53 }
  0x94   : > { %v7428_v48 = vld [vmem:[%s12573_s1 + $0x10e0] sm:$0xf]  ;;  %v8434_v58 = vld [vmem:[%s12573_s1 + $0x12ec] sm:$0xf0]  ;;  %v7189_v63 = vor.u32 %v8310_v47, %v7188_v46  ;;  %4295 = vmatpush.bf16.msrb.mxu1 %v6933_v59 }
  0x95   : > { %v7556_v52 = vld [vmem:[%s12573_s1 + $0x11e0] sm:$0xf]  ;;  %v8466_v62 = vld [vmem:[%s12573_s1 + $0x13ec] sm:$0xf0]  ;;  %v7429_v0 = vor.u32 %v8370_v49, %v7428_v48  ;;  %4308 = vmatpush.bf16.msrb.mxu2 %v7061_v60 }
  0x96   : > { %v7684_v56 = vld [vmem:[%s12573_s1 + $0x12e0] sm:$0xf]  ;;  %v7557_v1 = vor.u32 %v8402_v54, %v7556_v52  ;;  %v8366_v9 = vld [vmem:[%s12573_s1 + $0x10cc] sm:$0xf0]  ;;  %4321 = vmatpush.bf16.msrb.mxu3 %v7189_v63  ;;  %4283 = vmatmul.bf16.vlgmr.msrb.gmra.mxu0 %v9235_v29 }
  0x97   : > { %v7812_v61 = vld [vmem:[%s12573_s1 + $0x13e0] sm:$0xf]  ;;  %v7685_v4 = vor.u32 %v8434_v58, %v7684_v56  ;;  %v8398_v14 = vld [vmem:[%s12573_s1 + $0x11cc] sm:$0xf0]  ;;  %4327 = vmatpush.bf16.msra.mxu0 %v7429_v0  ;;  %4296 = vmatmul.bf16.vlgmr.msrb.gmra.mxu1 %v9240_v32 }
  0x98   : > { %v7412_v8 = vld [vmem:[%s12573_s1 + $0x10c0] sm:$0xf]  ;;  %v7813_v11 = vor.u32 %v8466_v62, %v7812_v61  ;;  %v8430_v16 = vld [vmem:[%s12573_s1 + $0x12cc] sm:$0xf0]  ;;  %4340 = vmatpush.bf16.msra.mxu1 %v7557_v1  ;;  %4309 = vmatmul.bf16.vlgmr.msrb.gmra.mxu2 %v9238_v31 }
  0x99   : > { %v7540_v10 = vld [vmem:[%s12573_s1 + $0x11c0] sm:$0xf]  ;;  %v8462_v19 = vld [vmem:[%s12573_s1 + $0x13cc] sm:$0xf0]  ;;  %v7413_v20 = vor.u32 %v8366_v9, %v7412_v8  ;;  %4353 = vmatpush.bf16.msra.mxu2 %v7685_v4  ;;  %4322 = vmatmul.bf16.vlgmr.msrb.gmra.mxu3 %v9242_v33 }
  0x9a   : > { %v7668_v15 = vld [vmem:[%s12573_s1 + $0x12c0] sm:$0xf]  ;;  %v7541_v21 = vor.u32 %v8398_v14, %v7540_v10  ;;  %v8362_v24 = vld [vmem:[%s12573_s1 + $0x10ac] sm:$0xf0]  ;;  %4366 = vmatpush.bf16.msra.mxu3 %v7813_v11 }
  0x9b   : > { %v7796_v18 = vld [vmem:[%s12573_s1 + $0x13c0] sm:$0xf]  ;;  %v7669_v22 = vor.u32 %v8430_v16, %v7668_v15  ;;  %v8394_v27 = vld [vmem:[%s12573_s1 + $0x11ac] sm:$0xf0]  ;;  %4328 = vmatpush.bf16.msra.mxu0 %v7413_v20 }
  0x9c   : > { %v7396_v23 = vld [vmem:[%s12573_s1 + $0x10a0] sm:$0xf]  ;;  %v7797_v26 = vor.u32 %v8462_v19, %v7796_v18  ;;  %v8426_v30 = vld [vmem:[%s12573_s1 + $0x12ac] sm:$0xf0]  ;;  %4341 = vmatpush.bf16.msra.mxu1 %v7541_v21 }
  0x9d   : > { %v7524_v25 = vld [vmem:[%s12573_s1 + $0x11a0] sm:$0xf]  ;;  %v8458_v35 = vld [vmem:[%s12573_s1 + $0x13ac] sm:$0xf0]  ;;  %v7397_v36 = vor.u32 %v8362_v24, %v7396_v23  ;;  %4354 = vmatpush.bf16.msra.mxu2 %v7669_v22 }
  0x9e   : > { %v7652_v28 = vld [vmem:[%s12573_s1 + $0x12a0] sm:$0xf]  ;;  %v7525_v37 = vor.u32 %v8394_v27, %v7524_v25  ;;  %v8358_v40 = vld [vmem:[%s12573_s1 + $0x108c] sm:$0xf0]  ;;  %4367 = vmatpush.bf16.msra.mxu3 %v7797_v26 }
  0x9f   : > { %v7780_v34 = vld [vmem:[%s12573_s1 + $0x13a0] sm:$0xf]  ;;  %v7653_v38 = vor.u32 %v8426_v30, %v7652_v28  ;;  %v8390_v43 = vld [vmem:[%s12573_s1 + $0x118c] sm:$0xf0]  ;;  %4329 = vmatpush.bf16.msra.mxu0 %v7397_v36 }
  0xa0   : > { %v7380_v39 = vld [vmem:[%s12573_s1 + $0x1080] sm:$0xf]  ;;  %v7781_v42 = vor.u32 %v8458_v35, %v7780_v34  ;;  %v8422_v45 = vld [vmem:[%s12573_s1 + $0x128c] sm:$0xf0]  ;;  %4342 = vmatpush.bf16.msra.mxu1 %v7525_v37 }
  0xa1   : > { %v7508_v41 = vld [vmem:[%s12573_s1 + $0x1180] sm:$0xf]  ;;  %v8454_v47 = vld [vmem:[%s12573_s1 + $0x138c] sm:$0xf0]  ;;  %v7381_v48 = vor.u32 %v8358_v40, %v7380_v39  ;;  %4355 = vmatpush.bf16.msra.mxu2 %v7653_v38 }
  0xa2   : > { %v7636_v44 = vld [vmem:[%s12573_s1 + $0x1280] sm:$0xf]  ;;  %v7509_v49 = vor.u32 %v8390_v43, %v7508_v41  ;;  %v8354_v54 = vld [vmem:[%s12573_s1 + $0x106c] sm:$0xf0]  ;;  %4368 = vmatpush.bf16.msra.mxu3 %v7781_v42 }
  0xa3   : > { %v7764_v46 = vld [vmem:[%s12573_s1 + $0x1380] sm:$0xf]  ;;  %v7637_v52 = vor.u32 %v8422_v45, %v7636_v44  ;;  %v8386_v59 = vld [vmem:[%s12573_s1 + $0x116c] sm:$0xf0]  ;;  %4330 = vmatpush.bf16.msra.mxu0 %v7381_v48  ;;  %v7856_v48 = vld [vmem:[%s12573_s1 + $0xe4] sm:$0xf] }
  0xa4   : > { %v7364_v53 = vld [vmem:[%s12573_s1 + $0x1060] sm:$0xf]  ;;  %v7765_v58 = vor.u32 %v8454_v47, %v7764_v46  ;;  %v8418_v61 = vld [vmem:[%s12573_s1 + $0x126c] sm:$0xf0]  ;;  %4343 = vmatpush.bf16.msra.mxu1 %v7509_v49  ;;  %v5382_v49 = vld [vmem:[%s12573_s1 + $0xf0] sm:$0xf0] }
  0xa5   : > { %v7492_v56 = vld [vmem:[%s12573_s1 + $0x1160] sm:$0xf]  ;;  %v8450_v63 = vld [vmem:[%s12573_s1 + $0x136c] sm:$0xf0]  ;;  %v7365_v0 = vor.u32 %v8354_v54, %v7364_v53  ;;  %4356 = vmatpush.bf16.msra.mxu2 %v7637_v52  ;;  %v7888_v52 = vld [vmem:[%s12573_s1 + $0x1e4] sm:$0xf] }
  0xa6   : > { %v7620_v60 = vld [vmem:[%s12573_s1 + $0x1260] sm:$0xf]  ;;  %v7493_v1 = vor.u32 %v8386_v59, %v7492_v56  ;;  %v8350_v9 = vld [vmem:[%s12573_s1 + $0x104c] sm:$0xf0]  ;;  %4369 = vmatpush.bf16.msra.mxu3 %v7765_v58  ;;  %v5510_v54 = vld [vmem:[%s12573_s1 + $0x1f0] sm:$0xf0] }
  0xa7   : > { %v7748_v62 = vld [vmem:[%s12573_s1 + $0x1360] sm:$0xf]  ;;  %v7621_v4 = vor.u32 %v8418_v61, %v7620_v60  ;;  %v8382_v14 = vld [vmem:[%s12573_s1 + $0x114c] sm:$0xf0]  ;;  %4331 = vmatpush.bf16.msra.mxu0 %v7365_v0  ;;  %v7920_v56 = vld [vmem:[%s12573_s1 + $0x2e4] sm:$0xf]  ;;  %v5385_v0 = vor.u32 %v7856_v48, %v5382_v49 }
  0xa8   : > { %v7348_v8 = vld [vmem:[%s12573_s1 + $0x1040] sm:$0xf]  ;;  %v7749_v11 = vor.u32 %v8450_v63, %v7748_v62  ;;  %v8414_v16 = vld [vmem:[%s12573_s1 + $0x124c] sm:$0xf0]  ;;  %4344 = vmatpush.bf16.msra.mxu1 %v7493_v1  ;;  %v5638_v58 = vld [vmem:[%s12573_s1 + $0x2f0] sm:$0xf0]  ;;  %v5513_v1 = vor.u32 %v7888_v52, %v5510_v54 }
  0xa9   : > { %v7476_v10 = vld [vmem:[%s12573_s1 + $0x1140] sm:$0xf]  ;;  %v8446_v19 = vld [vmem:[%s12573_s1 + $0x134c] sm:$0xf0]  ;;  %v7349_v20 = vor.u32 %v8350_v9, %v7348_v8  ;;  %4357 = vmatpush.bf16.msra.mxu2 %v7621_v4  ;;  %v7952_v61 = vld [vmem:[%s12573_s1 + $0x3e4] sm:$0xf]  ;;  %v5641_v4 = vor.u32 %v7920_v56, %v5638_v58 }
  0xaa   : > { %v7604_v15 = vld [vmem:[%s12573_s1 + $0x1240] sm:$0xf]  ;;  %v7477_v21 = vor.u32 %v8382_v14, %v7476_v10  ;;  %v8346_v24 = vld [vmem:[%s12573_s1 + $0x102c] sm:$0xf0]  ;;  %4370 = vmatpush.bf16.msra.mxu3 %v7749_v11  ;;  %v5766_v62 = vld [vmem:[%s12573_s1 + $0x3f0] sm:$0xf0] }
  0xab   : > { %v7732_v18 = vld [vmem:[%s12573_s1 + $0x1340] sm:$0xf]  ;;  %v7605_v22 = vor.u32 %v8414_v16, %v7604_v15  ;;  %v8378_v27 = vld [vmem:[%s12573_s1 + $0x112c] sm:$0xf0]  ;;  %4332 = vmatpush.bf16.msra.mxu0 %v7349_v20  ;;  %v7852_v8 = vld [vmem:[%s12573_s1 + $0xc4] sm:$0xf]  ;;  %v5769_v11 = vor.u32 %v7952_v61, %v5766_v62 }
  0xac   : > { %v7332_v23 = vld [vmem:[%s12573_s1 + $0x1020] sm:$0xf]  ;;  %v7733_v26 = vor.u32 %v8446_v19, %v7732_v18  ;;  %v8410_v30 = vld [vmem:[%s12573_s1 + $0x122c] sm:$0xf0]  ;;  %4345 = vmatpush.bf16.msra.mxu1 %v7477_v21  ;;  %v5366_v9 = vld [vmem:[%s12573_s1 + $0xd0] sm:$0xf0] }
  0xad   : > { %v7460_v25 = vld [vmem:[%s12573_s1 + $0x1120] sm:$0xf]  ;;  %v8442_v35 = vld [vmem:[%s12573_s1 + $0x132c] sm:$0xf0]  ;;  %v7333_v36 = vor.u32 %v8346_v24, %v7332_v23  ;;  %4358 = vmatpush.bf16.msra.mxu2 %v7605_v22  ;;  %v7884_v10 = vld [vmem:[%s12573_s1 + $0x1c4] sm:$0xf]  ;;  %v5369_v24 = vor.u32 %v7852_v8, %v5366_v9 }
  0xae   : > { %v7588_v28 = vld [vmem:[%s12573_s1 + $0x1220] sm:$0xf]  ;;  %v8342_v38 = vld [vmem:[%s12573_s1 + $0x100c] sm:$0xf0]  ;;  %v7461_v39 = vor.u32 %v8378_v27, %v7460_v25  ;;  %4371 = vmatpush.bf16.msra.mxu3 %v7733_v26  ;;  %v5494_v14 = vld [vmem:[%s12573_s1 + $0x1d0] sm:$0xf0] }
  0xaf   : > { %v7716_v34 = vld [vmem:[%s12573_s1 + $0x1320] sm:$0xf]  ;;  %v7589_v40 = vor.u32 %v8410_v30, %v7588_v28  ;;  %v8374_v42 = vld [vmem:[%s12573_s1 + $0x110c] sm:$0xf0]  ;;  %4333 = vmatpush.bf16.msra.mxu0 %v7333_v36  ;;  %v7916_v15 = vld [vmem:[%s12573_s1 + $0x2c4] sm:$0xf]  ;;  %v5497_v25 = vor.u32 %v7884_v10, %v5494_v14 }
  0xb0   : > { %v7316_v37 = vld [vmem:[%s12573_s1 + $0x1000] sm:$0xf]  ;;  %v7717_v44 = vor.u32 %v8442_v35, %v7716_v34  ;;  %v8406_v45 = vld [vmem:[%s12573_s1 + $0x120c] sm:$0xf0]  ;;  %4346 = vmatpush.bf16.msra.mxu1 %v7461_v39  ;;  %v5622_v16 = vld [vmem:[%s12573_s1 + $0x2d0] sm:$0xf0] }
  0xb1   : > { %v7444_v41 = vld [vmem:[%s12573_s1 + $0x1100] sm:$0xf]  ;;  %v8438_v47 = vld [vmem:[%s12573_s1 + $0x130c] sm:$0xf0]  ;;  %v7317_v53 = vor.u32 %v8342_v38, %v7316_v37  ;;  %4359 = vmatpush.bf16.msra.mxu2 %v7589_v40  ;;  %v7948_v19 = vld [vmem:[%s12573_s1 + $0x3c4] sm:$0xf]  ;;  %v5625_v26 = vor.u32 %v7916_v15, %v5622_v16 }
  0xb2   : > { %v7572_v43 = vld [vmem:[%s12573_s1 + $0x1200] sm:$0xf]  ;;  %v7445_v59 = vor.u32 %v8374_v42, %v7444_v41  ;;  %4372 = vmatpush.bf16.msra.mxu3 %v7717_v44  ;;  %v5750_v20 = vld [vmem:[%s12573_s1 + $0x3d0] sm:$0xf0]  ;;  %v887_v22 = vld [vmem:[#allocation1 + $0x9] sm:$0xff] }
  0xb3   : > { %v7700_v46 = vld [vmem:[%s12573_s1 + $0x1300] sm:$0xf]  ;;  %v7573_v60 = vor.u32 %v8406_v45, %v7572_v43  ;;  %4334 = vmatpush.bf16.msra.mxu0 %v7317_v53  ;;  %v888_v21 = vld [vmem:[#allocation1 + $0x12] sm:$0xff]  ;;  %v7848_v27 = vld [vmem:[%s12573_s1 + $0xa4] sm:$0xf]  ;;  %v5753_v34 = vor.u32 %v7948_v19, %v5750_v20 }
  0xb4   : > { %v7701_v63 = vor.u32 %v8438_v47, %v7700_v46  ;;  %4347 = vmatpush.bf16.msra.mxu1 %v7445_v59  ;;  %v886_v18 = vld [vmem:[#allocation1] sm:$0xff]  ;;  %v5350_v28 = vld [vmem:[%s12573_s1 + $0xb0] sm:$0xf0] }
  0xb5   : > { %4360 = vmatpush.bf16.msra.mxu2 %v7573_v60  ;;  %v889_v23 = vld [vmem:[#allocation1 + $0x1b] sm:$0xff]  ;;  %v7880_v30 = vld [vmem:[%s12573_s1 + $0x1a4] sm:$0xf]  ;;  %v5478_v35 = vld [vmem:[%s12573_s1 + $0x1b0] sm:$0xf0]  ;;  %v5353_v40 = vor.u32 %v7848_v27, %v5350_v28 }
  0xb6   : > { %4373 = vmatpush.bf16.msra.mxu3 %v7701_v63  ;;  %4335 = vmatmul.bf16.vlgmr.msra.gmra.mxu0 %v886_v18  ;;  %v7912_v36 = vld [vmem:[%s12573_s1 + $0x2a4] sm:$0xf]  ;;  %v5606_v37 = vld [vmem:[%s12573_s1 + $0x2b0] sm:$0xf0]  ;;  %v5481_v41 = vor.u32 %v7880_v30, %v5478_v35 }
  0xb7   : > { %4379 = vmatpush.bf16.msrb.mxu0 %v5385_v0  ;;  %4348 = vmatmul.bf16.vlgmr.msra.gmra.mxu1 %v887_v22  ;;  %v7944_v38 = vld [vmem:[%s12573_s1 + $0x3a4] sm:$0xf]  ;;  %v5734_v39 = vld [vmem:[%s12573_s1 + $0x3b0] sm:$0xf0]  ;;  %v5609_v42 = vor.u32 %v7912_v36, %v5606_v37 }
  0xb8   : > { %4392 = vmatpush.bf16.msrb.mxu1 %v5513_v1  ;;  %4361 = vmatmul.bf16.vlgmr.msra.gmra.mxu2 %v888_v21  ;;  %v7844_v43 = vld [vmem:[%s12573_s1 + $0x84] sm:$0xf]  ;;  %v5334_v44 = vld [vmem:[%s12573_s1 + $0x90] sm:$0xf0]  ;;  %v5737_v46 = vor.u32 %v7944_v38, %v5734_v39 }
  0xb9   : > { %4405 = vmatpush.bf16.msrb.mxu2 %v5641_v4  ;;  %4374 = vmatmul.bf16.vlgmr.msra.gmra.mxu3 %v889_v23  ;;  %v7876_v45 = vld [vmem:[%s12573_s1 + $0x184] sm:$0xf]  ;;  %v5462_v47 = vld [vmem:[%s12573_s1 + $0x190] sm:$0xf0]  ;;  %v5337_v54 = vor.u32 %v7844_v43, %v5334_v44 }
  0xba   : > { %4418 = vmatpush.bf16.msrb.mxu3 %v5769_v11  ;;  %v7908_v48 = vld [vmem:[%s12573_s1 + $0x284] sm:$0xf]  ;;  %v5590_v49 = vld [vmem:[%s12573_s1 + $0x290] sm:$0xf0]  ;;  %v5465_v56 = vor.u32 %v7876_v45, %v5462_v47 }
  0xbb   : > { %4380 = vmatpush.bf16.msrb.mxu0 %v5369_v24  ;;  %v7940_v52 = vld [vmem:[%s12573_s1 + $0x384] sm:$0xf]  ;;  %v5718_v53 = vld [vmem:[%s12573_s1 + $0x390] sm:$0xf0]  ;;  %v5593_v58 = vor.u32 %v7908_v48, %v5590_v49  ;;  %v863_v49 = vld [vmem:[%s12574_s2] sm:$0xf] }
  0xbc   : > { %4393 = vmatpush.bf16.msrb.mxu1 %v5497_v25  ;;  %v7840_v59 = vld [vmem:[%s12573_s1 + $0x64] sm:$0xf]  ;;  %v5318_v60 = vld [vmem:[%s12573_s1 + $0x70] sm:$0xf0]  ;;  %v5721_v62 = vor.u32 %v7940_v52, %v5718_v53 }
  0xbd   : > { %4406 = vmatpush.bf16.msrb.mxu2 %v5625_v26  ;;  %v7872_v61 = vld [vmem:[%s12573_s1 + $0x164] sm:$0xf]  ;;  %v5446_v63 = vld [vmem:[%s12573_s1 + $0x170] sm:$0xf0]  ;;  %v5321_v9 = vor.u32 %v7840_v59, %v5318_v60 }
  0xbe   : > { %4419 = vmatpush.bf16.msrb.mxu3 %v5753_v34  ;;  %v7904_v0 = vld [vmem:[%s12573_s1 + $0x264] sm:$0xf]  ;;  %v5574_v1 = vld [vmem:[%s12573_s1 + $0x270] sm:$0xf0]  ;;  %v5449_v10 = vor.u32 %v7872_v61, %v5446_v63 }
  0xbf   : > { %4381 = vmatpush.bf16.msrb.mxu0 %v5353_v40  ;;  %v7936_v4 = vld [vmem:[%s12573_s1 + $0x364] sm:$0xf]  ;;  %v5702_v8 = vld [vmem:[%s12573_s1 + $0x370] sm:$0xf0]  ;;  %v5577_v11 = vor.u32 %v7904_v0, %v5574_v1  ;;  %v4111_v0 = vperm.slane %v863_v49, 0 }
  0xc0   : > { %4394 = vmatpush.bf16.msrb.mxu1 %v5481_v41  ;;  %v7836_v14 = vld [vmem:[%s12573_s1 + $0x44] sm:$0xf]  ;;  %v5302_v15 = vld [vmem:[%s12573_s1 + $0x50] sm:$0xf0]  ;;  %v5705_v18 = vor.u32 %v7936_v4, %v5702_v8 }
  0xc1   : > { %4407 = vmatpush.bf16.msrb.mxu2 %v5609_v42  ;;  %v7868_v16 = vld [vmem:[%s12573_s1 + $0x144] sm:$0xf]  ;;  %v5430_v19 = vld [vmem:[%s12573_s1 + $0x150] sm:$0xf0]  ;;  %v5305_v24 = vor.u32 %v7836_v14, %v5302_v15 }
  0xc2   : > { %4420 = vmatpush.bf16.msrb.mxu3 %v5737_v46  ;;  %v7900_v20 = vld [vmem:[%s12573_s1 + $0x244] sm:$0xf]  ;;  %v5558_v21 = vld [vmem:[%s12573_s1 + $0x250] sm:$0xf0]  ;;  %v5433_v25 = vor.u32 %v7868_v16, %v5430_v19 }
  0xc3   : > { %4382 = vmatpush.bf16.msrb.mxu0 %v5337_v54  ;;  %v7932_v22 = vld [vmem:[%s12573_s1 + $0x344] sm:$0xf]  ;;  %v5686_v23 = vld [vmem:[%s12573_s1 + $0x350] sm:$0xf0]  ;;  %v5561_v26 = vor.u32 %v7900_v20, %v5558_v21 }
  0xc4   : > { %4395 = vmatpush.bf16.msrb.mxu1 %v5465_v56  ;;  %v7832_v27 = vld [vmem:[%s12573_s1 + $0x24] sm:$0xf]  ;;  %v5286_v28 = vld [vmem:[%s12573_s1 + $0x30] sm:$0xf0]  ;;  %v5689_v34 = vor.u32 %v7932_v22, %v5686_v23 }
  0xc5   : > { %4408 = vmatpush.bf16.msrb.mxu2 %v5593_v58  ;;  %v7864_v30 = vld [vmem:[%s12573_s1 + $0x124] sm:$0xf]  ;;  %v5414_v35 = vld [vmem:[%s12573_s1 + $0x130] sm:$0xf0]  ;;  %v5289_v41 = vor.u32 %v7832_v27, %v5286_v28 }
  0xc6   : > { %4421 = vmatpush.bf16.msrb.mxu3 %v5721_v62  ;;  %v7896_v36 = vld [vmem:[%s12573_s1 + $0x224] sm:$0xf]  ;;  %v5542_v37 = vld [vmem:[%s12573_s1 + $0x230] sm:$0xf0]  ;;  %v5417_v45 = vor.u32 %v7864_v30, %v5414_v35 }
  0xc7   : > { %4383 = vmatpush.bf16.msrb.mxu0 %v5321_v9  ;;  %v7928_v38 = vld [vmem:[%s12573_s1 + $0x324] sm:$0xf]  ;;  %v5670_v39 = vld [vmem:[%s12573_s1 + $0x330] sm:$0xf0]  ;;  %v5545_v46 = vor.u32 %v7896_v36, %v5542_v37 }
  0xc8   : > { %4396 = vmatpush.bf16.msrb.mxu1 %v5449_v10  ;;  %v7828_v40 = vld [vmem:[%s12573_s1 + $0x4] sm:$0xf]  ;;  %v5270_v42 = vld [vmem:[%s12573_s1 + $0x10] sm:$0xf0]  ;;  %v5673_v52 = vor.u32 %v7928_v38, %v5670_v39  ;;  %v4128_v16 = vpop.f32.mrf.mxu0 }
  0xc9   : > { %4409 = vmatpush.bf16.msrb.mxu2 %v5577_v11  ;;  %v7860_v43 = vld [vmem:[%s12573_s1 + $0x104] sm:$0xf]  ;;  %v5398_v44 = vld [vmem:[%s12573_s1 + $0x110] sm:$0xf0]  ;;  %v5273_v61 = vor.u32 %v7828_v40, %v5270_v42  ;;  %v4129_v22 = vadd.f32 %v4128_v16, %v4111_v0 }
  0xca   : > { %4422 = vmatpush.bf16.msrb.mxu3 %v5705_v18  ;;  %v7892_v47 = vld [vmem:[%s12573_s1 + $0x204] sm:$0xf]  ;;  %v5526_v48 = vld [vmem:[%s12573_s1 + $0x210] sm:$0xf0]  ;;  %v5401_v1 = vor.u32 %v7860_v43, %v5398_v44 }
  0xcb   : > { %4384 = vmatpush.bf16.msrb.mxu0 %v5305_v24  ;;  %v7924_v53 = vld [vmem:[%s12573_s1 + $0x304] sm:$0xf]  ;;  %v5654_v54 = vld [vmem:[%s12573_s1 + $0x310] sm:$0xf0]  ;;  %v5529_v4 = vor.u32 %v7892_v47, %v5526_v48 }
  0xcc   : > { %4397 = vmatpush.bf16.msrb.mxu1 %v5433_v25  ;;  %v7984_v56 = vld [vmem:[%s12573_s1 + $0x4e4] sm:$0xf]  ;;  %v5894_v58 = vld [vmem:[%s12573_s1 + $0x4f0] sm:$0xf0]  ;;  %v5657_v10 = vor.u32 %v7924_v53, %v5654_v54 }
  0xcd   : > { %4410 = vmatpush.bf16.msrb.mxu2 %v5561_v26  ;;  %v8016_v59 = vld [vmem:[%s12573_s1 + $0x5e4] sm:$0xf]  ;;  %v6022_v60 = vld [vmem:[%s12573_s1 + $0x5f0] sm:$0xf0]  ;;  %v5897_v11 = vor.u32 %v7984_v56, %v5894_v58  ;;  %v4141_v26 = vpop.f32.mrf.mxu1  ;;  %v4154_v37 = vpop.f32.mrf.mxu2 }
  0xce   : > { %4423 = vmatpush.bf16.msrb.mxu3 %v5689_v34  ;;  %v8048_v62 = vld [vmem:[%s12573_s1 + $0x6e4] sm:$0xf]  ;;  %v6150_v63 = vld [vmem:[%s12573_s1 + $0x6f0] sm:$0xf0]  ;;  %v6025_v14 = vor.u32 %v8016_v59, %v6022_v60  ;;  %v4142_v34 = vadd.f32 %v4141_v26, %v4129_v22 }
  0xcf   : > { %4385 = vmatpush.bf16.msrb.mxu0 %v5289_v41  ;;  %v8080_v8 = vld [vmem:[%s12573_s1 + $0x7e4] sm:$0xf]  ;;  %v6278_v9 = vld [vmem:[%s12573_s1 + $0x7f0] sm:$0xf0]  ;;  %v6153_v15 = vor.u32 %v8048_v62, %v6150_v63 }
  0xd0   : > { %4398 = vmatpush.bf16.msrb.mxu1 %v5417_v45  ;;  %v7980_v18 = vld [vmem:[%s12573_s1 + $0x4c4] sm:$0xf]  ;;  %v5878_v19 = vld [vmem:[%s12573_s1 + $0x4d0] sm:$0xf0]  ;;  %v6281_v21 = vor.u32 %v8080_v8, %v6278_v9  ;;  %v4155_v42 = vadd.f32 %v4154_v37, %v4142_v34  ;;  %v4167_v49 = vpop.f32.mrf.mxu3  ;;  %v4130_v56 = vpop.f32.mrf.mxu0 }
  0xd1   : > { %4411 = vmatpush.bf16.msrb.mxu2 %v5545_v46  ;;  %v8012_v20 = vld [vmem:[%s12573_s1 + $0x5c4] sm:$0xf]  ;;  %v6006_v23 = vld [vmem:[%s12573_s1 + $0x5d0] sm:$0xf0]  ;;  %v5881_v30 = vor.u32 %v7980_v18, %v5878_v19 }
  0xd2   : > { %4424 = vmatpush.bf16.msrb.mxu3 %v5673_v52  ;;  %v8044_v24 = vld [vmem:[%s12573_s1 + $0x6c4] sm:$0xf]  ;;  %v6134_v25 = vld [vmem:[%s12573_s1 + $0x6d0] sm:$0xf0]  ;;  %v6009_v35 = vor.u32 %v8012_v20, %v6006_v23  ;;  %v4168_v54 = vadd.f32 %v4167_v49, %v4155_v42 }
  0xd3   : > { %4386 = vmatpush.bf16.msrb.mxu0 %v5273_v61  ;;  %v8076_v27 = vld [vmem:[%s12573_s1 + $0x7c4] sm:$0xf]  ;;  %v6262_v28 = vld [vmem:[%s12573_s1 + $0x7d0] sm:$0xf0]  ;;  %v6137_v36 = vor.u32 %v8044_v24, %v6134_v25 }
  0xd4   : > { %4399 = vmatpush.bf16.msrb.mxu1 %v5401_v1  ;;  %v7976_v38 = vld [vmem:[%s12573_s1 + $0x4a4] sm:$0xf]  ;;  %v5862_v39 = vld [vmem:[%s12573_s1 + $0x4b0] sm:$0xf0]  ;;  %v6265_v41 = vor.u32 %v8076_v27, %v6262_v28 }
  0xd5   : > { %4412 = vmatpush.bf16.msrb.mxu2 %v5529_v4  ;;  %v8008_v40 = vld [vmem:[%s12573_s1 + $0x5a4] sm:$0xf]  ;;  %v5990_v43 = vld [vmem:[%s12573_s1 + $0x5b0] sm:$0xf0]  ;;  %v5865_v48 = vor.u32 %v7976_v38, %v5862_v39  ;;  %v4143_v1 = vpop.f32.mrf.mxu1 }
  0xd6   : > { %4425 = vmatpush.bf16.msrb.mxu3 %v5657_v10  ;;  %v8040_v44 = vld [vmem:[%s12573_s1 + $0x6a4] sm:$0xf]  ;;  %v6118_v45 = vld [vmem:[%s12573_s1 + $0x6b0] sm:$0xf0]  ;;  %4387 = vmatmul.bf16.vlgmr.msrb.gmra.mxu0 %v8921_v51  ;;  %v5993_v52 = vor.u32 %v8008_v40, %v5990_v43 }
  0xd7   : > { %4431 = vmatpush.bf16.msra.mxu0 %v5897_v11  ;;  %v8072_v46 = vld [vmem:[%s12573_s1 + $0x7a4] sm:$0xf]  ;;  %v6246_v47 = vld [vmem:[%s12573_s1 + $0x7b0] sm:$0xf0]  ;;  %4400 = vmatmul.bf16.vlgmr.msrb.gmra.mxu1 %v8933_v57  ;;  %v6121_v53 = vor.u32 %v8040_v44, %v6118_v45 }
  0xd8   : > { %4444 = vmatpush.bf16.msra.mxu1 %v6025_v14  ;;  %4413 = vmatmul.bf16.vlgmr.msrb.gmra.mxu2 %v8919_v50  ;;  %v7972_v58 = vld [vmem:[%s12573_s1 + $0x484] sm:$0xf]  ;;  %v5846_v59 = vld [vmem:[%s12573_s1 + $0x490] sm:$0xf0]  ;;  %v6249_v61 = vor.u32 %v8072_v46, %v6246_v47  ;;  %v4156_v14 = vpop.f32.mrf.mxu2  ;;  %v4169_v26 = vpop.f32.mrf.mxu3 }
  0xd9   : > { %4457 = vmatpush.bf16.msra.mxu2 %v6153_v15  ;;  %4426 = vmatmul.bf16.vlgmr.msrb.gmra.mxu3 %v8931_v55  ;;  %v8004_v60 = vld [vmem:[%s12573_s1 + $0x584] sm:$0xf]  ;;  %v5974_v62 = vld [vmem:[%s12573_s1 + $0x590] sm:$0xf0]  ;;  %v5849_v9 = vor.u32 %v7972_v58, %v5846_v59 }
  0xda   : > { %4470 = vmatpush.bf16.msra.mxu3 %v6281_v21  ;;  %v8036_v63 = vld [vmem:[%s12573_s1 + $0x684] sm:$0xf]  ;;  %v6102_v0 = vld [vmem:[%s12573_s1 + $0x690] sm:$0xf0]  ;;  %v5977_v10 = vor.u32 %v8004_v60, %v5974_v62  ;;  %v4180_v40 = vpop.f32.mrf.mxu0 }
  0xdb   : > { %4432 = vmatpush.bf16.msra.mxu0 %v5881_v30  ;;  %v8068_v4 = vld [vmem:[%s12573_s1 + $0x784] sm:$0xf]  ;;  %v6230_v8 = vld [vmem:[%s12573_s1 + $0x790] sm:$0xf0]  ;;  %v6105_v11 = vor.u32 %v8036_v63, %v6102_v0  ;;  %v4181_v43 = vadd.f32 %v4180_v40, %v4168_v54 }
  0xdc   : > { %4445 = vmatpush.bf16.msra.mxu1 %v6009_v35  ;;  %v7968_v15 = vld [vmem:[%s12573_s1 + $0x464] sm:$0xf]  ;;  %v5830_v16 = vld [vmem:[%s12573_s1 + $0x470] sm:$0xf0]  ;;  %v6233_v19 = vor.u32 %v8068_v4, %v6230_v8 }
  0xdd   : > { %4458 = vmatpush.bf16.msra.mxu2 %v6137_v36  ;;  %v8000_v18 = vld [vmem:[%s12573_s1 + $0x564] sm:$0xf]  ;;  %v5958_v20 = vld [vmem:[%s12573_s1 + $0x570] sm:$0xf0]  ;;  %v5833_v25 = vor.u32 %v7968_v15, %v5830_v16  ;;  %v4193_v45 = vpop.f32.mrf.mxu1 }
  0xde   : > { %4471 = vmatpush.bf16.msra.mxu3 %v6265_v41  ;;  %v8032_v21 = vld [vmem:[%s12573_s1 + $0x664] sm:$0xf]  ;;  %v6086_v22 = vld [vmem:[%s12573_s1 + $0x670] sm:$0xf0]  ;;  %v5961_v27 = vor.u32 %v8000_v18, %v5958_v20  ;;  %v4194_v56 = vadd.f32 %v4193_v45, %v4181_v43 }
  0xdf   : > { %4433 = vmatpush.bf16.msra.mxu0 %v5865_v48  ;;  %v8064_v23 = vld [vmem:[%s12573_s1 + $0x764] sm:$0xf]  ;;  %v6214_v24 = vld [vmem:[%s12573_s1 + $0x770] sm:$0xf0]  ;;  %v6089_v28 = vor.u32 %v8032_v21, %v6086_v22 }
  0xe0   : > { %4446 = vmatpush.bf16.msra.mxu1 %v5993_v52  ;;  %v7964_v30 = vld [vmem:[%s12573_s1 + $0x444] sm:$0xf]  ;;  %v5814_v34 = vld [vmem:[%s12573_s1 + $0x450] sm:$0xf0]  ;;  %v6217_v36 = vor.u32 %v8064_v23, %v6214_v24  ;;  %v4206_v48 = vpop.f32.mrf.mxu2 }
  0xe1   : > { %4459 = vmatpush.bf16.msra.mxu2 %v6121_v53  ;;  %v7996_v35 = vld [vmem:[%s12573_s1 + $0x544] sm:$0xf]  ;;  %v5942_v37 = vld [vmem:[%s12573_s1 + $0x550] sm:$0xf0]  ;;  %v5817_v44 = vor.u32 %v7964_v30, %v5814_v34  ;;  %v4207_v63 = vadd.f32 %v4206_v48, %v4194_v56  ;;  %v4219_v16 = vpop.f32.mrf.mxu3 }
  0xe2   : > { %4472 = vmatpush.bf16.msra.mxu3 %v6249_v61  ;;  %v8028_v38 = vld [vmem:[%s12573_s1 + $0x644] sm:$0xf]  ;;  %v6070_v39 = vld [vmem:[%s12573_s1 + $0x650] sm:$0xf0]  ;;  %v5945_v46 = vor.u32 %v7996_v35, %v5942_v37 }
  0xe3   : > { %4434 = vmatpush.bf16.msra.mxu0 %v5849_v9  ;;  %v8060_v41 = vld [vmem:[%s12573_s1 + $0x744] sm:$0xf]  ;;  %v6198_v42 = vld [vmem:[%s12573_s1 + $0x750] sm:$0xf0]  ;;  %v6073_v47 = vor.u32 %v8028_v38, %v6070_v39  ;;  %v9960_v21 = vadd.f32 %v4219_v16, %v4207_v63 }
  0xe4   : > { %4447 = vmatpush.bf16.msra.mxu1 %v5977_v10  ;;  %v7960_v49 = vld [vmem:[%s12573_s1 + $0x424] sm:$0xf]  ;;  %v5798_v52 = vld [vmem:[%s12573_s1 + $0x430] sm:$0xf0]  ;;  %v6201_v54 = vor.u32 %v8060_v41, %v6198_v42 }
  0xe5   : > { %4460 = vmatpush.bf16.msra.mxu2 %v6105_v11  ;;  %v7992_v53 = vld [vmem:[%s12573_s1 + $0x524] sm:$0xf]  ;;  %v5926_v58 = vld [vmem:[%s12573_s1 + $0x530] sm:$0xf0]  ;;  %v5801_v0 = vor.u32 %v7960_v49, %v5798_v52  ;;  %v4195_v34 = vpop.f32.mrf.mxu1 }
  0xe6   : > { %4473 = vmatpush.bf16.msra.mxu3 %v6233_v19  ;;  %v8024_v59 = vld [vmem:[%s12573_s1 + $0x624] sm:$0xf]  ;;  %v6054_v60 = vld [vmem:[%s12573_s1 + $0x630] sm:$0xf0]  ;;  %v5929_v8 = vor.u32 %v7992_v53, %v5926_v58 }
  0xe7   : > { %4435 = vmatpush.bf16.msra.mxu0 %v5833_v25  ;;  %v8056_v61 = vld [vmem:[%s12573_s1 + $0x724] sm:$0xf]  ;;  %v6182_v62 = vld [vmem:[%s12573_s1 + $0x730] sm:$0xf0]  ;;  %v6057_v9 = vor.u32 %v8024_v59, %v6054_v60  ;;  %v4182_v25 = vpop.f32.mrf.mxu0 }
  0xe8   : > { %4448 = vmatpush.bf16.msra.mxu1 %v5961_v27  ;;  %v7956_v1 = vld [vmem:[%s12573_s1 + $0x404] sm:$0xf]  ;;  %v5782_v4 = vld [vmem:[%s12573_s1 + $0x410] sm:$0xf0]  ;;  %v6185_v15 = vor.u32 %v8056_v61, %v6182_v62  ;;  %v4208_v39 = vpop.f32.mrf.mxu2 }
  0xe9   : > { %4461 = vmatpush.bf16.msra.mxu2 %v6089_v28  ;;  %v7988_v10 = vld [vmem:[%s12573_s1 + $0x504] sm:$0xf]  ;;  %v5910_v11 = vld [vmem:[%s12573_s1 + $0x510] sm:$0xf0]  ;;  %v5785_v26 = vor.u32 %v7956_v1, %v5782_v4  ;;  %v4221_v58 = vpop.f32.mrf.mxu3 }
  0xea   : > { %4474 = vmatpush.bf16.msra.mxu3 %v6217_v36  ;;  %v8020_v14 = vld [vmem:[%s12573_s1 + $0x604] sm:$0xf]  ;;  %v6038_v18 = vld [vmem:[%s12573_s1 + $0x610] sm:$0xf0]  ;;  %v5913_v35 = vor.u32 %v7988_v10, %v5910_v11 }
  0xeb   : > { %4436 = vmatpush.bf16.msra.mxu0 %v5817_v44  ;;  %v8052_v19 = vld [vmem:[%s12573_s1 + $0x704] sm:$0xf]  ;;  %v6166_v20 = vld [vmem:[%s12573_s1 + $0x710] sm:$0xf0]  ;;  %v6041_v36 = vor.u32 %v8020_v14, %v6038_v18 }
  0xec   : > { %4449 = vmatpush.bf16.msra.mxu1 %v5945_v46  ;;  %v8112_v22 = vld [vmem:[%s12573_s1 + $0x8e4] sm:$0xf]  ;;  %v6406_v23 = vld [vmem:[%s12573_s1 + $0x8f0] sm:$0xf0]  ;;  %v6169_v40 = vor.u32 %v8052_v19, %v6166_v20 }
  0xed   : > { %4462 = vmatpush.bf16.msra.mxu2 %v6073_v47  ;;  %v8144_v24 = vld [vmem:[%s12573_s1 + $0x9e4] sm:$0xf]  ;;  %v6534_v27 = vld [vmem:[%s12573_s1 + $0x9f0] sm:$0xf0]  ;;  %v6409_v41 = vor.u32 %v8112_v22, %v6406_v23 }
  0xee   : > { %4475 = vmatpush.bf16.msra.mxu3 %v6201_v54  ;;  %v8176_v28 = vld [vmem:[%s12573_s1 + $0xae4] sm:$0xf]  ;;  %v6662_v30 = vld [vmem:[%s12573_s1 + $0xaf0] sm:$0xf0]  ;;  %v6537_v42 = vor.u32 %v8144_v24, %v6534_v27 }
  0xef   : > { %4437 = vmatpush.bf16.msra.mxu0 %v5801_v0  ;;  %v8208_v37 = vld [vmem:[%s12573_s1 + $0xbe4] sm:$0xf]  ;;  %v6790_v38 = vld [vmem:[%s12573_s1 + $0xbf0] sm:$0xf0]  ;;  %v6665_v43 = vor.u32 %v8176_v28, %v6662_v30 }
  0xf0   : > { %4450 = vmatpush.bf16.msra.mxu1 %v5929_v8  ;;  %v8108_v44 = vld [vmem:[%s12573_s1 + $0x8c4] sm:$0xf]  ;;  %v6390_v45 = vld [vmem:[%s12573_s1 + $0x8d0] sm:$0xf0]  ;;  %v6793_v47 = vor.u32 %v8208_v37, %v6790_v38 }
  0xf1   : > { %4463 = vmatpush.bf16.msra.mxu2 %v6057_v9  ;;  %v8140_v46 = vld [vmem:[%s12573_s1 + $0x9c4] sm:$0xf]  ;;  %v6518_v48 = vld [vmem:[%s12573_s1 + $0x9d0] sm:$0xf0]  ;;  %v6393_v56 = vor.u32 %v8108_v44, %v6390_v45 }
  0xf2   : > { %4476 = vmatpush.bf16.msra.mxu3 %v6185_v15  ;;  %v8172_v49 = vld [vmem:[%s12573_s1 + $0xac4] sm:$0xf]  ;;  %v6646_v52 = vld [vmem:[%s12573_s1 + $0xad0] sm:$0xf0]  ;;  %v6521_v59 = vor.u32 %v8140_v46, %v6518_v48 }
  0xf3   : > { %4438 = vmatpush.bf16.msra.mxu0 %v5785_v26  ;;  %v8204_v53 = vld [vmem:[%s12573_s1 + $0xbc4] sm:$0xf]  ;;  %v6774_v54 = vld [vmem:[%s12573_s1 + $0xbd0] sm:$0xf0]  ;;  %v6649_v60 = vor.u32 %v8172_v49, %v6646_v52  ;;  %v4232_v25 = vpop.f32.mrf.mxu0 }
  0xf4   : > { %4451 = vmatpush.bf16.msra.mxu1 %v5913_v35  ;;  %v8104_v61 = vld [vmem:[%s12573_s1 + $0x8a4] sm:$0xf]  ;;  %v6374_v62 = vld [vmem:[%s12573_s1 + $0x8b0] sm:$0xf0]  ;;  %v6777_v0 = vor.u32 %v8204_v53, %v6774_v54  ;;  %v4233_v28 = vadd.f32 %v4232_v25, %v9960_v21 }
  0xf5   : > { %4464 = vmatpush.bf16.msra.mxu2 %v6041_v36  ;;  %v8136_v63 = vld [vmem:[%s12573_s1 + $0x9a4] sm:$0xf]  ;;  %v6502_v1 = vld [vmem:[%s12573_s1 + $0x9b0] sm:$0xf0]  ;;  %v6377_v11 = vor.u32 %v8104_v61, %v6374_v62  ;;  %v4245_v34 = vpop.f32.mrf.mxu1 }
  0xf6   : > { %4477 = vmatpush.bf16.msra.mxu3 %v6169_v40  ;;  %v8168_v4 = vld [vmem:[%s12573_s1 + $0xaa4] sm:$0xf]  ;;  %v6630_v8 = vld [vmem:[%s12573_s1 + $0xab0] sm:$0xf0]  ;;  %4439 = vmatmul.bf16.vlgmr.msra.gmra.mxu0 %v8959_v5  ;;  %v6505_v14 = vor.u32 %v8136_v63, %v6502_v1  ;;  %v4246_v40 = vadd.f32 %v4245_v34, %v4233_v28 }
  0xf7   : > { %4483 = vmatpush.bf16.msrb.mxu0 %v6409_v41  ;;  %v8200_v9 = vld [vmem:[%s12573_s1 + $0xba4] sm:$0xf]  ;;  %v6758_v10 = vld [vmem:[%s12573_s1 + $0xbb0] sm:$0xf0]  ;;  %4452 = vmatmul.bf16.vlgmr.msra.gmra.mxu1 %v8963_v7  ;;  %v6633_v15 = vor.u32 %v8168_v4, %v6630_v8 }
  0xf8   : > { %4496 = vmatpush.bf16.msrb.mxu1 %v6537_v42  ;;  %4465 = vmatmul.bf16.vlgmr.msra.gmra.mxu2 %v8956_v3  ;;  %v8100_v16 = vld [vmem:[%s12573_s1 + $0x884] sm:$0xf]  ;;  %v6358_v18 = vld [vmem:[%s12573_s1 + $0x890] sm:$0xf0]  ;;  %v6761_v20 = vor.u32 %v8200_v9, %v6758_v10 }
  0xf9   : > { %4509 = vmatpush.bf16.msrb.mxu2 %v6665_v43  ;;  %4478 = vmatmul.bf16.vlgmr.msra.gmra.mxu3 %v8961_v6  ;;  %v8132_v19 = vld [vmem:[%s12573_s1 + $0x984] sm:$0xf]  ;;  %v6486_v22 = vld [vmem:[%s12573_s1 + $0x990] sm:$0xf0]  ;;  %v6361_v30 = vor.u32 %v8100_v16, %v6358_v18 }
  0xfa   : > { %4522 = vmatpush.bf16.msrb.mxu3 %v6793_v47  ;;  %v8164_v23 = vld [vmem:[%s12573_s1 + $0xa84] sm:$0xf]  ;;  %v6614_v24 = vld [vmem:[%s12573_s1 + $0xa90] sm:$0xf0]  ;;  %v6489_v35 = vor.u32 %v8132_v19, %v6486_v22 }
  0xfb   : > { %4484 = vmatpush.bf16.msrb.mxu0 %v6393_v56  ;;  %v8196_v26 = vld [vmem:[%s12573_s1 + $0xb84] sm:$0xf]  ;;  %v6742_v27 = vld [vmem:[%s12573_s1 + $0xb90] sm:$0xf0]  ;;  %v6617_v36 = vor.u32 %v8164_v23, %v6614_v24  ;;  %v4258_v56 = vpop.f32.mrf.mxu2  ;;  %v4234_v1 = vpop.f32.mrf.mxu0 }
  0xfc   : > { %4497 = vmatpush.bf16.msrb.mxu1 %v6521_v59  ;;  %v8096_v37 = vld [vmem:[%s12573_s1 + $0x864] sm:$0xf]  ;;  %v6342_v38 = vld [vmem:[%s12573_s1 + $0x870] sm:$0xf0]  ;;  %v6745_v21 = vor.u32 %v8196_v26, %v6742_v27  ;;  %v4259_v61 = vadd.f32 %v4258_v56, %v4246_v40 }
  0xfd   : > { %4510 = vmatpush.bf16.msrb.mxu2 %v6649_v60  ;;  %v8128_v39 = vld [vmem:[%s12573_s1 + $0x964] sm:$0xf]  ;;  %v6470_v41 = vld [vmem:[%s12573_s1 + $0x970] sm:$0xf0]  ;;  %v6345_v46 = vor.u32 %v8096_v37, %v6342_v38  ;;  %v4271_v62 = vpop.f32.mrf.mxu3  ;;  %v4247_v8 = vpop.f32.mrf.mxu1 }
  0xfe   : > { %4523 = vmatpush.bf16.msrb.mxu3 %v6777_v0  ;;  %v8160_v42 = vld [vmem:[%s12573_s1 + $0xa64] sm:$0xf]  ;;  %v6598_v43 = vld [vmem:[%s12573_s1 + $0xa70] sm:$0xf0]  ;;  %v6473_v47 = vor.u32 %v8128_v39, %v6470_v41  ;;  %v10111_v9 = vadd.f32 %v4271_v62, %v4259_v61 }
  0xff   : > { %4485 = vmatpush.bf16.msrb.mxu0 %v6377_v11  ;;  %v8192_v44 = vld [vmem:[%s12573_s1 + $0xb64] sm:$0xf]  ;;  %v6726_v45 = vld [vmem:[%s12573_s1 + $0xb70] sm:$0xf0]  ;;  %v6601_v48 = vor.u32 %v8160_v42, %v6598_v43 }
 0x100   : > { %4498 = vmatpush.bf16.msrb.mxu1 %v6505_v14  ;;  %v8092_v49 = vld [vmem:[%s12573_s1 + $0x844] sm:$0xf]  ;;  %v6326_v52 = vld [vmem:[%s12573_s1 + $0x850] sm:$0xf0]  ;;  %v6729_v54 = vor.u32 %v8192_v44, %v6726_v45 }
 0x101   : > { %4511 = vmatpush.bf16.msrb.mxu2 %v6633_v15  ;;  %v8124_v53 = vld [vmem:[%s12573_s1 + $0x944] sm:$0xf]  ;;  %v6454_v58 = vld [vmem:[%s12573_s1 + $0x950] sm:$0xf0]  ;;  %v6329_v4 = vor.u32 %v8092_v49, %v6326_v52 }
 0x102   : > { %4524 = vmatpush.bf16.msrb.mxu3 %v6761_v20  ;;  %v8156_v59 = vld [vmem:[%s12573_s1 + $0xa44] sm:$0xf]  ;;  %v6582_v60 = vld [vmem:[%s12573_s1 + $0xa50] sm:$0xf0]  ;;  %v6457_v10 = vor.u32 %v8124_v53, %v6454_v58 }
 0x103   : > { %4486 = vmatpush.bf16.msrb.mxu0 %v6361_v30  ;;  %v8188_v63 = vld [vmem:[%s12573_s1 + $0xb44] sm:$0xf]  ;;  %v6710_v0 = vld [vmem:[%s12573_s1 + $0xb50] sm:$0xf0]  ;;  %v6585_v11 = vor.u32 %v8156_v59, %v6582_v60  ;;  %v4260_v40 = vpop.f32.mrf.mxu2 }
 0x104   : > { %4499 = vmatpush.bf16.msrb.mxu1 %v6489_v35  ;;  %v8088_v14 = vld [vmem:[%s12573_s1 + $0x824] sm:$0xf]  ;;  %v6310_v15 = vld [vmem:[%s12573_s1 + $0x830] sm:$0xf0]  ;;  %v6713_v18 = vor.u32 %v8188_v63, %v6710_v0 }
 0x105   : > { %4512 = vmatpush.bf16.msrb.mxu2 %v6617_v36  ;;  %v8120_v16 = vld [vmem:[%s12573_s1 + $0x924] sm:$0xf]  ;;  %v6438_v19 = vld [vmem:[%s12573_s1 + $0x930] sm:$0xf0]  ;;  %v6313_v25 = vor.u32 %v8088_v14, %v6310_v15  ;;  %v4273_v44 = vpop.f32.mrf.mxu3 }
 0x106   : > { %4525 = vmatpush.bf16.msrb.mxu3 %v6745_v21  ;;  %v8152_v20 = vld [vmem:[%s12573_s1 + $0xa24] sm:$0xf]  ;;  %v6566_v22 = vld [vmem:[%s12573_s1 + $0xa30] sm:$0xf0]  ;;  %v6441_v28 = vor.u32 %v8120_v16, %v6438_v19 }
 0x107   : > { %4487 = vmatpush.bf16.msrb.mxu0 %v6345_v46  ;;  %v8184_v23 = vld [vmem:[%s12573_s1 + $0xb24] sm:$0xf]  ;;  %v6694_v24 = vld [vmem:[%s12573_s1 + $0xb30] sm:$0xf0]  ;;  %v6569_v30 = vor.u32 %v8152_v20, %v6566_v22 }
 0x108   : > { %4500 = vmatpush.bf16.msrb.mxu1 %v6473_v47  ;;  %v8084_v26 = vld [vmem:[%s12573_s1 + $0x804] sm:$0xf]  ;;  %v6294_v27 = vld [vmem:[%s12573_s1 + $0x810] sm:$0xf0]  ;;  %v6697_v37 = vor.u32 %v8184_v23, %v6694_v24 }
 0x109   : > { %4513 = vmatpush.bf16.msrb.mxu2 %v6601_v48  ;;  %v8116_v34 = vld [vmem:[%s12573_s1 + $0x904] sm:$0xf]  ;;  %v6422_v35 = vld [vmem:[%s12573_s1 + $0x910] sm:$0xf0]  ;;  %v6297_v45 = vor.u32 %v8084_v26, %v6294_v27 }
 0x10a   : > { %4526 = vmatpush.bf16.msrb.mxu3 %v6729_v54  ;;  %v8148_v36 = vld [vmem:[%s12573_s1 + $0xa04] sm:$0xf]  ;;  %v6550_v38 = vld [vmem:[%s12573_s1 + $0xa10] sm:$0xf0]  ;;  %v6425_v49 = vor.u32 %v8116_v34, %v6422_v35 }
 0x10b   : > { %4488 = vmatpush.bf16.msrb.mxu0 %v6329_v4  ;;  %v8180_v39 = vld [vmem:[%s12573_s1 + $0xb04] sm:$0xf]  ;;  %v6678_v21 = vld [vmem:[%s12573_s1 + $0xb10] sm:$0xf0]  ;;  %v6553_v52 = vor.u32 %v8148_v36, %v6550_v38 }
 0x10c   : > { %4501 = vmatpush.bf16.msrb.mxu1 %v6457_v10  ;;  %v8240_v41 = vld [vmem:[%s12573_s1 + $0xce4] sm:$0xf]  ;;  %v6918_v42 = vld [vmem:[%s12573_s1 + $0xcf0] sm:$0xf0]  ;;  %v6681_v56 = vor.u32 %v8180_v39, %v6678_v21 }
 0x10d   : > { %4514 = vmatpush.bf16.msrb.mxu2 %v6585_v11  ;;  %v8272_v43 = vld [vmem:[%s12573_s1 + $0xde4] sm:$0xf]  ;;  %v7046_v46 = vld [vmem:[%s12573_s1 + $0xdf0] sm:$0xf0]  ;;  %v6921_v58 = vor.u32 %v8240_v41, %v6918_v42 }
 0x10e   : > { %4527 = vmatpush.bf16.msrb.mxu3 %v6713_v18  ;;  %v8304_v47 = vld [vmem:[%s12573_s1 + $0xee4] sm:$0xf]  ;;  %v7174_v48 = vld [vmem:[%s12573_s1 + $0xef0] sm:$0xf0]  ;;  %v7049_v59 = vor.u32 %v8272_v43, %v7046_v46 }
 0x10f   : > { %4489 = vmatpush.bf16.msrb.mxu0 %v6313_v25  ;;  %v8336_v53 = vld [vmem:[%s12573_s1 + $0xfe4] sm:$0xf]  ;;  %v7302_v54 = vld [vmem:[%s12573_s1 + $0xff0] sm:$0xf0]  ;;  %v7177_v60 = vor.u32 %v8304_v47, %v7174_v48 }
 0x110   : > { %4502 = vmatpush.bf16.msrb.mxu1 %v6441_v28  ;;  %v8236_v61 = vld [vmem:[%s12573_s1 + $0xcc4] sm:$0xf]  ;;  %v6902_v62 = vld [vmem:[%s12573_s1 + $0xcd0] sm:$0xf0]  ;;  %v7305_v0 = vor.u32 %v8336_v53, %v7302_v54 }
 0x111   : > { %4515 = vmatpush.bf16.msrb.mxu2 %v6569_v30  ;;  %v8268_v63 = vld [vmem:[%s12573_s1 + $0xdc4] sm:$0xf]  ;;  %v7030_v1 = vld [vmem:[%s12573_s1 + $0xdd0] sm:$0xf0]  ;;  %v6905_v14 = vor.u32 %v8236_v61, %v6902_v62 }
 0x112   : > { %4528 = vmatpush.bf16.msrb.mxu3 %v6697_v37  ;;  %v8300_v4 = vld [vmem:[%s12573_s1 + $0xec4] sm:$0xf]  ;;  %v7158_v8 = vld [vmem:[%s12573_s1 + $0xed0] sm:$0xf0]  ;;  %v7033_v15 = vor.u32 %v8268_v63, %v7030_v1 }
 0x113   : > { %4490 = vmatpush.bf16.msrb.mxu0 %v6297_v45  ;;  %v8332_v10 = vld [vmem:[%s12573_s1 + $0xfc4] sm:$0xf]  ;;  %v7286_v11 = vld [vmem:[%s12573_s1 + $0xfd0] sm:$0xf0]  ;;  %v7161_v16 = vor.u32 %v8300_v4, %v7158_v8  ;;  %v4284_v41 = vpop.f32.mrf.mxu0 }
 0x114   : > { %4503 = vmatpush.bf16.msrb.mxu1 %v6425_v49  ;;  %v8232_v18 = vld [vmem:[%s12573_s1 + $0xca4] sm:$0xf]  ;;  %v6886_v19 = vld [vmem:[%s12573_s1 + $0xcb0] sm:$0xf0]  ;;  %v7289_v22 = vor.u32 %v8332_v10, %v7286_v11  ;;  %v4285_v44 = vadd.f32 %v4284_v41, %v10111_v9  ;;  %v4297_v46 = vpop.f32.mrf.mxu1 }
 0x115   : > { %4516 = vmatpush.bf16.msrb.mxu2 %v6553_v52  ;;  %v8264_v20 = vld [vmem:[%s12573_s1 + $0xda4] sm:$0xf]  ;;  %v7014_v23 = vld [vmem:[%s12573_s1 + $0xdb0] sm:$0xf0]  ;;  %v6889_v28 = vor.u32 %v8232_v18, %v6886_v19 }
 0x116   : > { %4529 = vmatpush.bf16.msrb.mxu3 %v6681_v56  ;;  %4491 = vmatmul.bf16.vlgmr.msrb.gmra.mxu0 %v9184_v2  ;;  %v8296_v24 = vld [vmem:[%s12573_s1 + $0xea4] sm:$0xf]  ;;  %v7142_v25 = vld [vmem:[%s12573_s1 + $0xeb0] sm:$0xf0]  ;;  %v7017_v30 = vor.u32 %v8264_v20, %v7014_v23  ;;  %v4298_v54 = vadd.f32 %v4297_v46, %v4285_v44 }
 0x117   : > { %4535 = vmatpush.bf16.msra.mxu0 %v6921_v58  ;;  %4504 = vmatmul.bf16.vlgmr.msrb.gmra.mxu1 %v9198_v13  ;;  %v8328_v26 = vld [vmem:[%s12573_s1 + $0xfa4] sm:$0xf]  ;;  %v7270_v27 = vld [vmem:[%s12573_s1 + $0xfb0] sm:$0xf0]  ;;  %v7145_v34 = vor.u32 %v8296_v24, %v7142_v25 }
 0x118   : > { %4548 = vmatpush.bf16.msra.mxu1 %v7049_v59  ;;  %4517 = vmatmul.bf16.vlgmr.msrb.gmra.mxu2 %v9196_v12  ;;  %v8228_v35 = vld [vmem:[%s12573_s1 + $0xc84] sm:$0xf]  ;;  %v6870_v36 = vld [vmem:[%s12573_s1 + $0xc90] sm:$0xf0]  ;;  %v7273_v38 = vor.u32 %v8328_v26, %v7270_v27 }
 0x119   : > { %4561 = vmatpush.bf16.msra.mxu2 %v7177_v60  ;;  %4530 = vmatmul.bf16.vlgmr.msrb.gmra.mxu3 %v9209_v17  ;;  %v8260_v37 = vld [vmem:[%s12573_s1 + $0xd84] sm:$0xf]  ;;  %v6998_v39 = vld [vmem:[%s12573_s1 + $0xd90] sm:$0xf0]  ;;  %v6873_v45 = vor.u32 %v8228_v35, %v6870_v36 }
 0x11a   : > { %4574 = vmatpush.bf16.msra.mxu3 %v7305_v0  ;;  %v8292_v21 = vld [vmem:[%s12573_s1 + $0xe84] sm:$0xf]  ;;  %v7126_v40 = vld [vmem:[%s12573_s1 + $0xe90] sm:$0xf0]  ;;  %v7001_v47 = vor.u32 %v8260_v37, %v6998_v39 }
 0x11b   : > { %4536 = vmatpush.bf16.msra.mxu0 %v6905_v14  ;;  %v8324_v42 = vld [vmem:[%s12573_s1 + $0xf84] sm:$0xf]  ;;  %v7254_v43 = vld [vmem:[%s12573_s1 + $0xf90] sm:$0xf0]  ;;  %v7129_v48 = vor.u32 %v8292_v21, %v7126_v40  ;;  %v4310_v11 = vpop.f32.mrf.mxu2  ;;  %v4286_v23 = vpop.f32.mrf.mxu0 }
 0x11c   : > { %4549 = vmatpush.bf16.msra.mxu1 %v7033_v15  ;;  %v8224_v49 = vld [vmem:[%s12573_s1 + $0xc64] sm:$0xf]  ;;  %v6854_v52 = vld [vmem:[%s12573_s1 + $0xc70] sm:$0xf0]  ;;  %v7257_v9 = vor.u32 %v8324_v42, %v7254_v43  ;;  %v4311_v18 = vadd.f32 %v4310_v11, %v4298_v54  ;;  %v4323_v19 = vpop.f32.mrf.mxu3  ;;  %v4299_v25 = vpop.f32.mrf.mxu1 }
 0x11d   : > { %4562 = vmatpush.bf16.msra.mxu2 %v7161_v16  ;;  %v8256_v53 = vld [vmem:[%s12573_s1 + $0xd64] sm:$0xf]  ;;  %v6982_v56 = vld [vmem:[%s12573_s1 + $0xd70] sm:$0xf0]  ;;  %v6857_v62 = vor.u32 %v8224_v49, %v6854_v52 }
 0x11e   : > { %4575 = vmatpush.bf16.msra.mxu3 %v7289_v22  ;;  %v8288_v58 = vld [vmem:[%s12573_s1 + $0xe64] sm:$0xf]  ;;  %v7110_v59 = vld [vmem:[%s12573_s1 + $0xe70] sm:$0xf0]  ;;  %v6985_v63 = vor.u32 %v8256_v53, %v6982_v56  ;;  %v10310_v26 = vadd.f32 %v4323_v19, %v4311_v18 }
 0x11f   : > { %4537 = vmatpush.bf16.msra.mxu0 %v6889_v28  ;;  %v8320_v60 = vld [vmem:[%s12573_s1 + $0xf64] sm:$0xf]  ;;  %v7238_v61 = vld [vmem:[%s12573_s1 + $0xf70] sm:$0xf0]  ;;  %v7113_v0 = vor.u32 %v8288_v58, %v7110_v59 }
 0x120   : > { %4550 = vmatpush.bf16.msra.mxu1 %v7017_v30  ;;  %v8220_v1 = vld [vmem:[%s12573_s1 + $0xc44] sm:$0xf]  ;;  %v6838_v4 = vld [vmem:[%s12573_s1 + $0xc50] sm:$0xf0]  ;;  %v7241_v10 = vor.u32 %v8320_v60, %v7238_v61 }
 0x121   : > { %4563 = vmatpush.bf16.msra.mxu2 %v7145_v34  ;;  %v8252_v8 = vld [vmem:[%s12573_s1 + $0xd44] sm:$0xf]  ;;  %v6966_v14 = vld [vmem:[%s12573_s1 + $0xd50] sm:$0xf0]  ;;  %v6841_v24 = vor.u32 %v8220_v1, %v6838_v4 }
 0x122   : > { %4576 = vmatpush.bf16.msra.mxu3 %v7273_v38  ;;  %v8284_v15 = vld [vmem:[%s12573_s1 + $0xe44] sm:$0xf]  ;;  %v7094_v16 = vld [vmem:[%s12573_s1 + $0xe50] sm:$0xf0]  ;;  %v6969_v27 = vor.u32 %v8252_v8, %v6966_v14 }
 0x123   : > { %4538 = vmatpush.bf16.msra.mxu0 %v6873_v45  ;;  %v8316_v20 = vld [vmem:[%s12573_s1 + $0xf44] sm:$0xf]  ;;  %v7222_v22 = vld [vmem:[%s12573_s1 + $0xf50] sm:$0xf0]  ;;  %v7097_v28 = vor.u32 %v8284_v15, %v7094_v16  ;;  %v4312_v54 = vpop.f32.mrf.mxu2 }
 0x124   : > { %4551 = vmatpush.bf16.msra.mxu1 %v7001_v47  ;;  %v8216_v30 = vld [vmem:[%s12573_s1 + $0xc24] sm:$0xf]  ;;  %v6822_v34 = vld [vmem:[%s12573_s1 + $0xc30] sm:$0xf0]  ;;  %v7225_v36 = vor.u32 %v8316_v20, %v7222_v22  ;;  %v4325_v60 = vpop.f32.mrf.mxu3 }
 0x125   : > { %4564 = vmatpush.bf16.msra.mxu2 %v7129_v48  ;;  %v8248_v35 = vld [vmem:[%s12573_s1 + $0xd24] sm:$0xf]  ;;  %v6950_v37 = vld [vmem:[%s12573_s1 + $0xd30] sm:$0xf0]  ;;  %v6825_v41 = vor.u32 %v8216_v30, %v6822_v34 }
 0x126   : > { %4577 = vmatpush.bf16.msra.mxu3 %v7257_v9  ;;  %v8280_v38 = vld [vmem:[%s12573_s1 + $0xe24] sm:$0xf]  ;;  %v7078_v39 = vld [vmem:[%s12573_s1 + $0xe30] sm:$0xf0]  ;;  %v6953_v44 = vor.u32 %v8248_v35, %v6950_v37 }
 0x127   : > { %4539 = vmatpush.bf16.msra.mxu0 %v6857_v62  ;;  %v8312_v21 = vld [vmem:[%s12573_s1 + $0xf24] sm:$0xf]  ;;  %v7206_v40 = vld [vmem:[%s12573_s1 + $0xf30] sm:$0xf0]  ;;  %v7081_v45 = vor.u32 %v8280_v38, %v7078_v39 }
 0x128   : > { %4552 = vmatpush.bf16.msra.mxu1 %v6985_v63  ;;  %v8212_v42 = vld [vmem:[%s12573_s1 + $0xc04] sm:$0xf]  ;;  %v6806_v43 = vld [vmem:[%s12573_s1 + $0xc10] sm:$0xf0]  ;;  %v7209_v49 = vor.u32 %v8312_v21, %v7206_v40 }
 0x129   : > { %4565 = vmatpush.bf16.msra.mxu2 %v7113_v0  ;;  %v8244_v46 = vld [vmem:[%s12573_s1 + $0xd04] sm:$0xf]  ;;  %v6934_v47 = vld [vmem:[%s12573_s1 + $0xd10] sm:$0xf0]  ;;  %v6809_v61 = vor.u32 %v8212_v42, %v6806_v43 }
 0x12a   : > { %4578 = vmatpush.bf16.msra.mxu3 %v7241_v10  ;;  %v8276_v48 = vld [vmem:[%s12573_s1 + $0xe04] sm:$0xf]  ;;  %v7062_v52 = vld [vmem:[%s12573_s1 + $0xe10] sm:$0xf0]  ;;  %v6937_v1 = vor.u32 %v8244_v46, %v6934_v47 }
 0x12b   : > { %4540 = vmatpush.bf16.msra.mxu0 %v6841_v24  ;;  %v8308_v53 = vld [vmem:[%s12573_s1 + $0xf04] sm:$0xf]  ;;  %v7190_v9 = vld [vmem:[%s12573_s1 + $0xf10] sm:$0xf0]  ;;  %v7065_v4 = vor.u32 %v8276_v48, %v7062_v52 }
 0x12c   : > { %4553 = vmatpush.bf16.msra.mxu1 %v6969_v27  ;;  %v8368_v56 = vld [vmem:[%s12573_s1 + $0x10e4] sm:$0xf]  ;;  %v7430_v58 = vld [vmem:[%s12573_s1 + $0x10f0] sm:$0xf0]  ;;  %v7193_v11 = vor.u32 %v8308_v53, %v7190_v9 }
 0x12d   : > { %4566 = vmatpush.bf16.msra.mxu2 %v7097_v28  ;;  %v8400_v59 = vld [vmem:[%s12573_s1 + $0x11e4] sm:$0xf]  ;;  %v7558_v62 = vld [vmem:[%s12573_s1 + $0x11f0] sm:$0xf0]  ;;  %v7433_v14 = vor.u32 %v8368_v56, %v7430_v58 }
 0x12e   : > { %4579 = vmatpush.bf16.msra.mxu3 %v7225_v36  ;;  %v8432_v63 = vld [vmem:[%s12573_s1 + $0x12e4] sm:$0xf]  ;;  %v7686_v0 = vld [vmem:[%s12573_s1 + $0x12f0] sm:$0xf0]  ;;  %v7561_v15 = vor.u32 %v8400_v59, %v7558_v62 }
 0x12f   : > { %4541 = vmatpush.bf16.msra.mxu0 %v6825_v41  ;;  %v8464_v8 = vld [vmem:[%s12573_s1 + $0x13e4] sm:$0xf]  ;;  %v7814_v10 = vld [vmem:[%s12573_s1 + $0x13f0] sm:$0xf0]  ;;  %v7689_v16 = vor.u32 %v8432_v63, %v7686_v0 }
 0x130   : > { %4554 = vmatpush.bf16.msra.mxu1 %v6953_v44  ;;  %v8364_v18 = vld [vmem:[%s12573_s1 + $0x10c4] sm:$0xf]  ;;  %v7414_v19 = vld [vmem:[%s12573_s1 + $0x10d0] sm:$0xf0]  ;;  %v7817_v22 = vor.u32 %v8464_v8, %v7814_v10 }
 0x131   : > { %4567 = vmatpush.bf16.msra.mxu2 %v7081_v45  ;;  %v8396_v20 = vld [vmem:[%s12573_s1 + $0x11c4] sm:$0xf]  ;;  %v7542_v23 = vld [vmem:[%s12573_s1 + $0x11d0] sm:$0xf0]  ;;  %v7417_v30 = vor.u32 %v8364_v18, %v7414_v19 }
 0x132   : > { %4580 = vmatpush.bf16.msra.mxu3 %v7209_v49  ;;  %v8428_v24 = vld [vmem:[%s12573_s1 + $0x12c4] sm:$0xf]  ;;  %v7670_v25 = vld [vmem:[%s12573_s1 + $0x12d0] sm:$0xf0]  ;;  %v7545_v34 = vor.u32 %v8396_v20, %v7542_v23 }
 0x133   : > { %4542 = vmatpush.bf16.msra.mxu0 %v6809_v61  ;;  %v8460_v27 = vld [vmem:[%s12573_s1 + $0x13c4] sm:$0xf]  ;;  %v7798_v28 = vld [vmem:[%s12573_s1 + $0x13d0] sm:$0xf0]  ;;  %v7673_v35 = vor.u32 %v8428_v24, %v7670_v25  ;;  %v4336_v56 = vpop.f32.mrf.mxu0 }
 0x134   : > { %4555 = vmatpush.bf16.msra.mxu1 %v6937_v1  ;;  %v8360_v36 = vld [vmem:[%s12573_s1 + $0x10a4] sm:$0xf]  ;;  %v7398_v37 = vld [vmem:[%s12573_s1 + $0x10b0] sm:$0xf0]  ;;  %v7801_v39 = vor.u32 %v8460_v27, %v7798_v28  ;;  %v4337_v60 = vadd.f32 %v4336_v56, %v10310_v26  ;;  %v4349_v62 = vpop.f32.mrf.mxu1 }
 0x135   : > { %4568 = vmatpush.bf16.msra.mxu2 %v7065_v4  ;;  %v8392_v38 = vld [vmem:[%s12573_s1 + $0x11a4] sm:$0xf]  ;;  %v7526_v21 = vld [vmem:[%s12573_s1 + $0x11b0] sm:$0xf0]  ;;  %v7401_v44 = vor.u32 %v8360_v36, %v7398_v37 }
 0x136   : > { %4581 = vmatpush.bf16.msra.mxu3 %v7193_v11  ;;  %4543 = vmatmul.bf16.vlgmr.msra.gmra.mxu0 %v9235_v29  ;;  %v8424_v40 = vld [vmem:[%s12573_s1 + $0x12a4] sm:$0xf]  ;;  %v7654_v41 = vld [vmem:[%s12573_s1 + $0x12b0] sm:$0xf0]  ;;  %v7529_v45 = vor.u32 %v8392_v38, %v7526_v21  ;;  %v4350_v10 = vadd.f32 %v4349_v62, %v4337_v60 }
 0x137   : > { %4587 = vmatpush.bf16.msrb.mxu0 %v7433_v14  ;;  %4556 = vmatmul.bf16.vlgmr.msra.gmra.mxu1 %v9240_v32  ;;  %v8456_v42 = vld [vmem:[%s12573_s1 + $0x13a4] sm:$0xf]  ;;  %v7782_v43 = vld [vmem:[%s12573_s1 + $0x13b0] sm:$0xf0]  ;;  %v7657_v46 = vor.u32 %v8424_v40, %v7654_v41 }
 0x138   : > { %4600 = vmatpush.bf16.msrb.mxu1 %v7561_v15  ;;  %4569 = vmatmul.bf16.vlgmr.msra.gmra.mxu2 %v9238_v31  ;;  %v8356_v47 = vld [vmem:[%s12573_s1 + $0x1084] sm:$0xf]  ;;  %v7382_v48 = vld [vmem:[%s12573_s1 + $0x1090] sm:$0xf0]  ;;  %v7785_v52 = vor.u32 %v8456_v42, %v7782_v43 }
 0x139   : > { %4613 = vmatpush.bf16.msrb.mxu2 %v7689_v16  ;;  %4582 = vmatmul.bf16.vlgmr.msra.gmra.mxu3 %v9242_v33  ;;  %v8388_v49 = vld [vmem:[%s12573_s1 + $0x1184] sm:$0xf]  ;;  %v7510_v53 = vld [vmem:[%s12573_s1 + $0x1190] sm:$0xf0]  ;;  %v7385_v61 = vor.u32 %v8356_v47, %v7382_v48 }
 0x13a   : > { %4626 = vmatpush.bf16.msrb.mxu3 %v7817_v22  ;;  %v8420_v9 = vld [vmem:[%s12573_s1 + $0x1284] sm:$0xf]  ;;  %v7638_v54 = vld [vmem:[%s12573_s1 + $0x1290] sm:$0xf0]  ;;  %v7513_v63 = vor.u32 %v8388_v49, %v7510_v53 }
 0x13b   : > { %4588 = vmatpush.bf16.msrb.mxu0 %v7417_v30  ;;  %v8452_v58 = vld [vmem:[%s12573_s1 + $0x1384] sm:$0xf]  ;;  %v7766_v59 = vld [vmem:[%s12573_s1 + $0x1390] sm:$0xf0]  ;;  %v7641_v0 = vor.u32 %v8420_v9, %v7638_v54  ;;  %v4362_v28 = vpop.f32.mrf.mxu2  ;;  %v4338_v21 = vpop.f32.mrf.mxu0 }
 0x13c   : > { %4601 = vmatpush.bf16.msrb.mxu1 %v7545_v34  ;;  %v8352_v1 = vld [vmem:[%s12573_s1 + $0x1064] sm:$0xf]  ;;  %v7366_v4 = vld [vmem:[%s12573_s1 + $0x1070] sm:$0xf0]  ;;  %v7769_v26 = vor.u32 %v8452_v58, %v7766_v59  ;;  %v4363_v36 = vadd.f32 %v4362_v28, %v4350_v10  ;;  %v4375_v37 = vpop.f32.mrf.mxu3  ;;  %v4351_v41 = vpop.f32.mrf.mxu1  ;;  %v7887_v21 = vld [vmem:[%s12573_s1 + $0x1d4] sm:$0xf0] }
 0x13d   : > { %4614 = vmatpush.bf16.msrb.mxu2 %v7673_v35  ;;  %v8384_v8 = vld [vmem:[%s12573_s1 + $0x1164] sm:$0xf]  ;;  %v7494_v11 = vld [vmem:[%s12573_s1 + $0x1170] sm:$0xf0]  ;;  %v7369_v19 = vor.u32 %v8352_v1, %v7366_v4  ;;  %v7919_v41 = vld [vmem:[%s12573_s1 + $0x2d4] sm:$0xf0] }
 0x13e   : > { %4627 = vmatpush.bf16.msrb.mxu3 %v7801_v39  ;;  %v8416_v14 = vld [vmem:[%s12573_s1 + $0x1264] sm:$0xf]  ;;  %v7622_v15 = vld [vmem:[%s12573_s1 + $0x1270] sm:$0xf0]  ;;  %v7497_v20 = vor.u32 %v8384_v8, %v7494_v11  ;;  %v10509_v42 = vadd.f32 %v4375_v37, %v4363_v36  ;;  %v5388_v11 = vld [vmem:[%s12573_s1 + $0xe8] sm:$0xf] }
 0x13f   : > { %4589 = vmatpush.bf16.msrb.mxu0 %v7401_v44  ;;  %v8448_v16 = vld [vmem:[%s12573_s1 + $0x1364] sm:$0xf]  ;;  %v7750_v18 = vld [vmem:[%s12573_s1 + $0x1370] sm:$0xf0]  ;;  %v7625_v22 = vor.u32 %v8416_v14, %v7622_v15  ;;  %v7859_v14 = vld [vmem:[%s12573_s1 + $0xf4] sm:$0xf0] }
 0x140   : > { %4602 = vmatpush.bf16.msrb.mxu1 %v7529_v45  ;;  %v8348_v23 = vld [vmem:[%s12573_s1 + $0x1044] sm:$0xf]  ;;  %v7350_v24 = vld [vmem:[%s12573_s1 + $0x1050] sm:$0xf0]  ;;  %v7753_v27 = vor.u32 %v8448_v16, %v7750_v18  ;;  %v5516_v15 = vld [vmem:[%s12573_s1 + $0x1e8] sm:$0xf] }
 0x141   : > { %4615 = vmatpush.bf16.msrb.mxu2 %v7657_v46  ;;  %v8380_v25 = vld [vmem:[%s12573_s1 + $0x1144] sm:$0xf]  ;;  %v7478_v30 = vld [vmem:[%s12573_s1 + $0x1150] sm:$0xf0]  ;;  %v7353_v40 = vor.u32 %v8348_v23, %v7350_v24  ;;  %v5372_v36 = vld [vmem:[%s12573_s1 + $0xc8] sm:$0xf] }
 0x142   : > { %4628 = vmatpush.bf16.msrb.mxu3 %v7785_v52  ;;  %v8412_v34 = vld [vmem:[%s12573_s1 + $0x1244] sm:$0xf]  ;;  %v7606_v35 = vld [vmem:[%s12573_s1 + $0x1250] sm:$0xf0]  ;;  %v7481_v43 = vor.u32 %v8380_v25, %v7478_v30  ;;  %v5772_v25 = vld [vmem:[%s12573_s1 + $0x3e8] sm:$0xf]  ;;  %v5389_v30 = vor.u32 %v7859_v14, %v5388_v11 }
 0x143   : > { %4590 = vmatpush.bf16.msrb.mxu0 %v7385_v61  ;;  %v8444_v38 = vld [vmem:[%s12573_s1 + $0x1344] sm:$0xf]  ;;  %v7734_v39 = vld [vmem:[%s12573_s1 + $0x1350] sm:$0xf0]  ;;  %v7609_v44 = vor.u32 %v8412_v34, %v7606_v35  ;;  %v4364_v10 = vpop.f32.mrf.mxu2  ;;  %v7855_v37 = vld [vmem:[%s12573_s1 + $0xd4] sm:$0xf0] }
 0x144   : > { %4603 = vmatpush.bf16.msrb.mxu1 %v7513_v63  ;;  %v8344_v45 = vld [vmem:[%s12573_s1 + $0x1024] sm:$0xf]  ;;  %v7334_v46 = vld [vmem:[%s12573_s1 + $0x1030] sm:$0xf0]  ;;  %v7737_v48 = vor.u32 %v8444_v38, %v7734_v39  ;;  %v4377_v16 = vpop.f32.mrf.mxu3  ;;  %v5500_v38 = vld [vmem:[%s12573_s1 + $0x1c8] sm:$0xf] }
 0x145   : > { %4616 = vmatpush.bf16.msrb.mxu2 %v7641_v0  ;;  %v8376_v47 = vld [vmem:[%s12573_s1 + $0x1124] sm:$0xf]  ;;  %v7462_v49 = vld [vmem:[%s12573_s1 + $0x1130] sm:$0xf0]  ;;  %v7337_v56 = vor.u32 %v8344_v45, %v7334_v46  ;;  %v5373_v45 = vor.u32 %v7855_v37, %v5372_v36  ;;  %v5501_v46 = vor.u32 %v7887_v21, %v5500_v38  ;;  %v5468_v10 = vld [vmem:[%s12573_s1 + $0x188] sm:$0xf] }
 0x146   : > { %4629 = vmatpush.bf16.msrb.mxu3 %v7769_v26  ;;  %v8408_v52 = vld [vmem:[%s12573_s1 + $0x1224] sm:$0xf]  ;;  %v7590_v53 = vld [vmem:[%s12573_s1 + $0x1230] sm:$0xf0]  ;;  %v7465_v60 = vor.u32 %v8376_v47, %v7462_v49  ;;  %v7851_v49 = vld [vmem:[%s12573_s1 + $0xb4] sm:$0xf0] }
 0x147   : > { %4591 = vmatpush.bf16.msrb.mxu0 %v7369_v19  ;;  %v8440_v9 = vld [vmem:[%s12573_s1 + $0x1324] sm:$0xf]  ;;  %v7718_v54 = vld [vmem:[%s12573_s1 + $0x1330] sm:$0xf0]  ;;  %v7593_v61 = vor.u32 %v8408_v52, %v7590_v53  ;;  %v7891_v19 = vld [vmem:[%s12573_s1 + $0x1f4] sm:$0xf0] }
 0x148   : > { %4604 = vmatpush.bf16.msrb.mxu1 %v7497_v20  ;;  %v8340_v58 = vld [vmem:[%s12573_s1 + $0x1004] sm:$0xf]  ;;  %v7318_v59 = vld [vmem:[%s12573_s1 + $0x1010] sm:$0xf0]  ;;  %v7721_v1 = vor.u32 %v8440_v9, %v7718_v54  ;;  %v5644_v20 = vld [vmem:[%s12573_s1 + $0x2e8] sm:$0xf]  ;;  %v5517_v34 = vor.u32 %v7891_v19, %v5516_v15 }
 0x149   : > { %4617 = vmatpush.bf16.msrb.mxu2 %v7625_v22  ;;  %v8372_v62 = vld [vmem:[%s12573_s1 + $0x1104] sm:$0xf]  ;;  %v7446_v63 = vld [vmem:[%s12573_s1 + $0x1110] sm:$0xf0]  ;;  %v7321_v18 = vor.u32 %v8340_v58, %v7318_v59  ;;  %v7923_v22 = vld [vmem:[%s12573_s1 + $0x2f4] sm:$0xf0] }
 0x14a   : > { %4630 = vmatpush.bf16.msrb.mxu3 %v7753_v27  ;;  %v8404_v0 = vld [vmem:[%s12573_s1 + $0x1204] sm:$0xf]  ;;  %v7574_v4 = vld [vmem:[%s12573_s1 + $0x1210] sm:$0xf0]  ;;  %v7449_v23 = vor.u32 %v8372_v62, %v7446_v63  ;;  %v7955_v27 = vld [vmem:[%s12573_s1 + $0x3f4] sm:$0xf0]  ;;  %v5645_v35 = vor.u32 %v7923_v22, %v5644_v20 }
 0x14b   : > { %4592 = vmatpush.bf16.msrb.mxu0 %v7353_v40  ;;  %v8436_v8 = vld [vmem:[%s12573_s1 + $0x1304] sm:$0xf]  ;;  %v7702_v26 = vld [vmem:[%s12573_s1 + $0x1310] sm:$0xf0]  ;;  %v7577_v24 = vor.u32 %v8404_v0, %v7574_v4  ;;  %v5773_v39 = vor.u32 %v7955_v27, %v5772_v25  ;;  %v5628_v40 = vld [vmem:[%s12573_s1 + $0x2c8] sm:$0xf] }
 0x14c   : > { %4605 = vmatpush.bf16.msrb.mxu1 %v7481_v43  ;;  %v7705_v28 = vor.u32 %v8436_v8, %v7702_v26  ;;  %v5756_v43 = vld [vmem:[%s12573_s1 + $0x3c8] sm:$0xf]  ;;  %v5629_v47 = vor.u32 %v7919_v41, %v5628_v40  ;;  %v8481_v53 = vld [vmem:[#allocation1] sm:$0xff]  ;;  %v7883_v54 = vld [vmem:[%s12573_s1 + $0x1b4] sm:$0xf0] }
 0x14d   : > { %4618 = vmatpush.bf16.msrb.mxu2 %v7609_v44  ;;  %v7951_v44 = vld [vmem:[%s12573_s1 + $0x3d4] sm:$0xf0]  ;;  %v5484_v52 = vld [vmem:[%s12573_s1 + $0x1a8] sm:$0xf]  ;;  %v8485_v11 = vld [vmem:[%s12574_s2] sm:$0xf] }
 0x14e   : > { %4631 = vmatpush.bf16.msrb.mxu3 %v7737_v48  ;;  %v5356_v48 = vld [vmem:[%s12573_s1 + $0xa8] sm:$0xf]  ;;  %v5757_v9 = vor.u32 %v7951_v44, %v5756_v43  ;;  %v7915_v58 = vld [vmem:[%s12573_s1 + $0x2b4] sm:$0xf0]  ;;  %v5485_v4 = vor.u32 %v7883_v54, %v5484_v52  ;;  %v4112_v14 = vperm.slane %v8485_v11, 1 }
 0x14f   : > { %4593 = vmatpush.bf16.msrb.mxu0 %v7337_v56  ;;  %v5612_v56 = vld [vmem:[%s12573_s1 + $0x2a8] sm:$0xf]  ;;  %v8482_v59 = vld [vmem:[#allocation1 + $0x12] sm:$0xff]  ;;  %v8484_v63 = vld [vmem:[#allocation1 + $0x1b] sm:$0xff]  ;;  %v5357_v0 = vor.u32 %v7851_v49, %v5356_v48 }
 0x150   : > { %4606 = vmatpush.bf16.msrb.mxu1 %v7465_v60  ;;  %v8483_v60 = vld [vmem:[#allocation1 + $0x9] sm:$0xff]  ;;  %v7947_v62 = vld [vmem:[%s12573_s1 + $0x3b4] sm:$0xf0]  ;;  %v5613_v8 = vor.u32 %v7915_v58, %v5612_v56 }
 0x151   : > { %4619 = vmatpush.bf16.msrb.mxu2 %v7593_v61  ;;  %v5740_v61 = vld [vmem:[%s12573_s1 + $0x3a8] sm:$0xf]  ;;  %v7847_v26 = vld [vmem:[%s12573_s1 + $0x94] sm:$0xf0] }
 0x152   : > { %4632 = vmatpush.bf16.msrb.mxu3 %v7721_v1  ;;  %v5340_v1 = vld [vmem:[%s12573_s1 + $0x88] sm:$0xf]  ;;  %v5741_v15 = vor.u32 %v7947_v62, %v5740_v61  ;;  %v7879_v16 = vld [vmem:[%s12573_s1 + $0x194] sm:$0xf0] }
 0x153   : > { %4594 = vmatpush.bf16.msrb.mxu0 %v7321_v18  ;;  %v5596_v18 = vld [vmem:[%s12573_s1 + $0x288] sm:$0xf]  ;;  %v7911_v19 = vld [vmem:[%s12573_s1 + $0x294] sm:$0xf0]  ;;  %v5469_v25 = vor.u32 %v7879_v16, %v5468_v10 }
 0x154   : > { %4607 = vmatpush.bf16.msrb.mxu1 %v7449_v23  ;;  %v5724_v20 = vld [vmem:[%s12573_s1 + $0x388] sm:$0xf]  ;;  %v7943_v22 = vld [vmem:[%s12573_s1 + $0x394] sm:$0xf0]  ;;  %v5341_v23 = vor.u32 %v7847_v26, %v5340_v1  ;;  %v5597_v27 = vor.u32 %v7911_v19, %v5596_v18  ;;  %v4401_v36 = vpop.f32.mrf.mxu1 }
 0x155   : > { %4620 = vmatpush.bf16.msrb.mxu2 %v7577_v24  ;;  %v4388_v24 = vpop.f32.mrf.mxu0  ;;  %v5725_v37 = vor.u32 %v7943_v22, %v5724_v20  ;;  %v7875_v38 = vld [vmem:[%s12573_s1 + $0x174] sm:$0xf0]  ;;  %v5708_v40 = vld [vmem:[%s12573_s1 + $0x368] sm:$0xf] }
 0x156   : > { %4633 = vmatpush.bf16.msrb.mxu3 %v7705_v28  ;;  %4595 = vmatmul.bf16.vlgmr.msrb.gmra.mxu0 %v8481_v53  ;;  %v5324_v28 = vld [vmem:[%s12573_s1 + $0x68] sm:$0xf]  ;;  %v7907_v21 = vld [vmem:[%s12573_s1 + $0x274] sm:$0xf0] }
 0x157   : > { %4639 = vmatpush.bf16.msra.mxu0 %v5389_v30  ;;  %4608 = vmatmul.bf16.vlgmr.msrb.gmra.mxu1 %v8483_v60  ;;  %v7843_v30 = vld [vmem:[%s12573_s1 + $0x74] sm:$0xf0]  ;;  %v5436_v49 = vld [vmem:[%s12573_s1 + $0x148] sm:$0xf] }
 0x158   : > { %4652 = vmatpush.bf16.msra.mxu1 %v5517_v34  ;;  %4621 = vmatmul.bf16.vlgmr.msrb.gmra.mxu2 %v8482_v59  ;;  %v5452_v34 = vld [vmem:[%s12573_s1 + $0x168] sm:$0xf]  ;;  %v7939_v41 = vld [vmem:[%s12573_s1 + $0x374] sm:$0xf0]  ;;  %v5325_v44 = vor.u32 %v7843_v30, %v5324_v28 }
 0x159   : > { %4665 = vmatpush.bf16.msra.mxu2 %v5645_v35  ;;  %4634 = vmatmul.bf16.vlgmr.msrb.gmra.mxu3 %v8484_v63  ;;  %v4389_v35 = vadd.f32 %v4388_v24, %v4112_v14  ;;  %v7839_v48 = vld [vmem:[%s12573_s1 + $0x54] sm:$0xf0]  ;;  %v5709_v53 = vor.u32 %v7939_v41, %v5708_v40  ;;  %v5564_v54 = vld [vmem:[%s12573_s1 + $0x248] sm:$0xf] }
 0x15a   : > { %4678 = vmatpush.bf16.msra.mxu3 %v5773_v39  ;;  %v5580_v39 = vld [vmem:[%s12573_s1 + $0x268] sm:$0xf]  ;;  %v7903_v56 = vld [vmem:[%s12573_s1 + $0x254] sm:$0xf0] }
 0x15b   : > { %4640 = vmatpush.bf16.msra.mxu0 %v5373_v45  ;;  %v4402_v43 = vadd.f32 %v4401_v36, %v4389_v35  ;;  %v5453_v45 = vor.u32 %v7875_v38, %v5452_v34  ;;  %v4414_v52 = vpop.f32.mrf.mxu2  ;;  %v5692_v60 = vld [vmem:[%s12573_s1 + $0x348] sm:$0xf]  ;;  %v7935_v61 = vld [vmem:[%s12573_s1 + $0x354] sm:$0xf0] }
 0x15c   : > { %4653 = vmatpush.bf16.msra.mxu1 %v5501_v46  ;;  %v5581_v46 = vor.u32 %v7907_v21, %v5580_v39  ;;  %v4427_v59 = vpop.f32.mrf.mxu3  ;;  %v7835_v26 = vld [vmem:[%s12573_s1 + $0x34] sm:$0xf0]  ;;  %v5420_v10 = vld [vmem:[%s12573_s1 + $0x128] sm:$0xf]  ;;  %v4403_v11 = vpop.f32.mrf.mxu1  ;;  %v5693_v14 = vor.u32 %v7935_v61, %v5692_v60 }
 0x15d   : > { %4666 = vmatpush.bf16.msra.mxu2 %v5629_v47  ;;  %v5308_v47 = vld [vmem:[%s12573_s1 + $0x48] sm:$0xf]  ;;  %v4415_v58 = vadd.f32 %v4414_v52, %v4402_v43  ;;  %v7899_v18 = vld [vmem:[%s12573_s1 + $0x234] sm:$0xf0] }
 0x15e   : > { %4679 = vmatpush.bf16.msra.mxu3 %v5757_v9  ;;  %v7871_v9 = vld [vmem:[%s12573_s1 + $0x154] sm:$0xf0]  ;;  %v5309_v62 = vor.u32 %v7839_v48, %v5308_v47  ;;  %v5548_v16 = vld [vmem:[%s12573_s1 + $0x228] sm:$0xf] }
 0x15f   : > { %4641 = vmatpush.bf16.msra.mxu0 %v5357_v0  ;;  %v10706_v63 = vadd.f32 %v4427_v59, %v4415_v58  ;;  %v4390_v0 = vpop.f32.mrf.mxu0  ;;  %v5437_v1 = vor.u32 %v7871_v9, %v5436_v49  ;;  %v5676_v19 = vld [vmem:[%s12573_s1 + $0x328] sm:$0xf]  ;;  %v7931_v20 = vld [vmem:[%s12573_s1 + $0x334] sm:$0xf0] }
 0x160   : > { %4654 = vmatpush.bf16.msra.mxu1 %v5485_v4  ;;  %v5565_v4 = vor.u32 %v7903_v56, %v5564_v54  ;;  %v7831_v24 = vld [vmem:[%s12573_s1 + $0x14] sm:$0xf0]  ;;  %v5404_v28 = vld [vmem:[%s12573_s1 + $0x108] sm:$0xf]  ;;  %v5677_v36 = vor.u32 %v7931_v20, %v5676_v19 }
 0x161   : > { %4667 = vmatpush.bf16.msra.mxu2 %v5613_v8  ;;  %v5292_v8 = vld [vmem:[%s12573_s1 + $0x28] sm:$0xf]  ;;  %v7863_v30 = vld [vmem:[%s12573_s1 + $0x114] sm:$0xf0] }
 0x162   : > { %4680 = vmatpush.bf16.msra.mxu3 %v5741_v15  ;;  %v7867_v15 = vld [vmem:[%s12573_s1 + $0x134] sm:$0xf0]  ;;  %v5293_v22 = vor.u32 %v7835_v26, %v5292_v8  ;;  %v5532_v34 = vld [vmem:[%s12573_s1 + $0x208] sm:$0xf]  ;;  %v5405_v48 = vor.u32 %v7863_v30, %v5404_v28 }
 0x163   : > { %4642 = vmatpush.bf16.msra.mxu0 %v5341_v23  ;;  %v5276_v23 = vld [vmem:[%s12573_s1 + $0x8] sm:$0xf]  ;;  %v4416_v35 = vpop.f32.mrf.mxu2  ;;  %v7927_v39 = vld [vmem:[%s12573_s1 + $0x314] sm:$0xf0] }
 0x164   : > { %4655 = vmatpush.bf16.msra.mxu1 %v5469_v25  ;;  %v5421_v25 = vor.u32 %v7867_v15, %v5420_v10  ;;  %v5660_v38 = vld [vmem:[%s12573_s1 + $0x308] sm:$0xf]  ;;  %v4429_v21 = vpop.f32.mrf.mxu3  ;;  %v7987_v41 = vld [vmem:[%s12573_s1 + $0x4f4] sm:$0xf0] }
 0x165   : > { %4668 = vmatpush.bf16.msra.mxu2 %v5597_v27  ;;  %v5549_v27 = vor.u32 %v7899_v18, %v5548_v16  ;;  %v5900_v40 = vld [vmem:[%s12573_s1 + $0x4e8] sm:$0xf]  ;;  %v8051_v47 = vld [vmem:[%s12573_s1 + $0x6f4] sm:$0xf0]  ;;  %v5661_v9 = vor.u32 %v7927_v39, %v5660_v38 }
 0x166   : > { %4681 = vmatpush.bf16.msra.mxu3 %v5725_v37  ;;  %v7895_v37 = vld [vmem:[%s12573_s1 + $0x214] sm:$0xf0]  ;;  %v6028_v43 = vld [vmem:[%s12573_s1 + $0x5e8] sm:$0xf]  ;;  %v5901_v54 = vor.u32 %v7987_v41, %v5900_v40 }
 0x167   : > { %4643 = vmatpush.bf16.msra.mxu0 %v5325_v44  ;;  %v5277_v44 = vor.u32 %v7831_v24, %v5276_v23  ;;  %v5533_v49 = vor.u32 %v7895_v37, %v5532_v34  ;;  %v6284_v52 = vld [vmem:[%s12573_s1 + $0x7e8] sm:$0xf]  ;;  %v7983_v60 = vld [vmem:[%s12573_s1 + $0x4d4] sm:$0xf0] }
 0x168   : > { %4656 = vmatpush.bf16.msra.mxu1 %v5453_v45  ;;  %v8019_v45 = vld [vmem:[%s12573_s1 + $0x5f4] sm:$0xf0]  ;;  %v5884_v59 = vld [vmem:[%s12573_s1 + $0x4c8] sm:$0xf] }
 0x169   : > { %4669 = vmatpush.bf16.msra.mxu2 %v5581_v46  ;;  %v6156_v46 = vld [vmem:[%s12573_s1 + $0x6e8] sm:$0xf]  ;;  %v6029_v56 = vor.u32 %v8019_v45, %v6028_v43  ;;  %v8015_v0 = vld [vmem:[%s12573_s1 + $0x5d4] sm:$0xf0]  ;;  %v5885_v10 = vor.u32 %v7983_v60, %v5884_v59 }
 0x16a   : > { %4682 = vmatpush.bf16.msra.mxu3 %v5709_v53  ;;  %v8083_v53 = vld [vmem:[%s12573_s1 + $0x7f4] sm:$0xf0]  ;;  %v6157_v58 = vor.u32 %v8051_v47, %v6156_v46  ;;  %v6012_v61 = vld [vmem:[%s12573_s1 + $0x5c8] sm:$0xf] }
 0x16b   : > { %4644 = vmatpush.bf16.msra.mxu0 %v5309_v62  ;;  %v6285_v62 = vor.u32 %v8083_v53, %v6284_v52  ;;  %v6268_v8 = vld [vmem:[%s12573_s1 + $0x7c8] sm:$0xf]  ;;  %v8079_v26 = vld [vmem:[%s12573_s1 + $0x7d4] sm:$0xf0]  ;;  %v6013_v11 = vor.u32 %v8015_v0, %v6012_v61 }
 0x16c   : > { %4657 = vmatpush.bf16.msra.mxu1 %v5437_v1  ;;  %v6140_v1 = vld [vmem:[%s12573_s1 + $0x6c8] sm:$0xf]  ;;  %v7979_v16 = vld [vmem:[%s12573_s1 + $0x4b4] sm:$0xf0]  ;;  %v6269_v19 = vor.u32 %v8079_v26, %v6268_v8 }
 0x16d   : > { %4670 = vmatpush.bf16.msra.mxu2 %v5565_v4  ;;  %v8047_v4 = vld [vmem:[%s12573_s1 + $0x6d4] sm:$0xf0]  ;;  %v5868_v15 = vld [vmem:[%s12573_s1 + $0x4a8] sm:$0xf] }
 0x16e   : > { %4683 = vmatpush.bf16.msra.mxu3 %v5693_v14  ;;  %v6141_v14 = vor.u32 %v8047_v4, %v6140_v1  ;;  %v5996_v18 = vld [vmem:[%s12573_s1 + $0x5a8] sm:$0xf]  ;;  %v8011_v20 = vld [vmem:[%s12573_s1 + $0x5b4] sm:$0xf0] }
 0x16f   : > { %4645 = vmatpush.bf16.msra.mxu0 %v5293_v22  ;;  %v6124_v22 = vld [vmem:[%s12573_s1 + $0x6a8] sm:$0xf]  ;;  %v8043_v23 = vld [vmem:[%s12573_s1 + $0x6b4] sm:$0xf0]  ;;  %v5997_v28 = vor.u32 %v8011_v20, %v5996_v18 }
 0x170   : > { %4658 = vmatpush.bf16.msra.mxu1 %v5421_v25  ;;  %v6252_v24 = vld [vmem:[%s12573_s1 + $0x7a8] sm:$0xf]  ;;  %v8075_v25 = vld [vmem:[%s12573_s1 + $0x7b4] sm:$0xf0]  ;;  %v6125_v30 = vor.u32 %v8043_v23, %v6124_v22 }
 0x171   : > { %4671 = vmatpush.bf16.msra.mxu2 %v5549_v27  ;;  %v5869_v27 = vor.u32 %v7979_v16, %v5868_v15  ;;  %v5852_v34 = vld [vmem:[%s12573_s1 + $0x488] sm:$0xf]  ;;  %v7975_v35 = vld [vmem:[%s12573_s1 + $0x494] sm:$0xf0]  ;;  %v6253_v37 = vor.u32 %v8075_v25, %v6252_v24 }
 0x172   : > { %4684 = vmatpush.bf16.msra.mxu3 %v5677_v36  ;;  %v5980_v36 = vld [vmem:[%s12573_s1 + $0x588] sm:$0xf]  ;;  %v8007_v38 = vld [vmem:[%s12573_s1 + $0x594] sm:$0xf0]  ;;  %v5853_v43 = vor.u32 %v7975_v35, %v5852_v34 }
 0x173   : > { %4646 = vmatpush.bf16.msra.mxu0 %v5277_v44  ;;  %v6108_v39 = vld [vmem:[%s12573_s1 + $0x688] sm:$0xf]  ;;  %v8039_v21 = vld [vmem:[%s12573_s1 + $0x694] sm:$0xf0]  ;;  %v4440_v44 = vpop.f32.mrf.mxu0  ;;  %v5981_v45 = vor.u32 %v8007_v38, %v5980_v36 }
 0x174   : > { %4659 = vmatpush.bf16.msra.mxu1 %v5405_v48  ;;  %v6236_v40 = vld [vmem:[%s12573_s1 + $0x788] sm:$0xf]  ;;  %v8071_v41 = vld [vmem:[%s12573_s1 + $0x794] sm:$0xf0]  ;;  %v6109_v46 = vor.u32 %v8039_v21, %v6108_v39  ;;  %v4441_v52 = vadd.f32 %v4440_v44, %v10706_v63  ;;  %v4453_v53 = vpop.f32.mrf.mxu1 }
 0x175   : > { %4672 = vmatpush.bf16.msra.mxu2 %v5533_v49  ;;  %v5836_v47 = vld [vmem:[%s12573_s1 + $0x468] sm:$0xf]  ;;  %v7971_v48 = vld [vmem:[%s12573_s1 + $0x474] sm:$0xf0] }
 0x176   : > { %4685 = vmatpush.bf16.msra.mxu3 %v5661_v9  ;;  %4647 = vmatmul.bf16.vlgmr.msra.gmra.mxu0 %v8921_v51  ;;  %v5964_v49 = vld [vmem:[%s12573_s1 + $0x568] sm:$0xf]  ;;  %v6237_v9 = vor.u32 %v8071_v41, %v6236_v40  ;;  %v8067_v63 = vld [vmem:[%s12573_s1 + $0x774] sm:$0xf0]  ;;  %v4454_v60 = vadd.f32 %v4453_v53, %v4441_v52  ;;  %v5837_v61 = vor.u32 %v7971_v48, %v5836_v47 }
 0x177   : > { %4691 = vmatpush.bf16.msrb.mxu0 %v5901_v54  ;;  %4660 = vmatmul.bf16.vlgmr.msra.gmra.mxu1 %v8933_v57  ;;  %v8003_v54 = vld [vmem:[%s12573_s1 + $0x574] sm:$0xf0]  ;;  %v6220_v59 = vld [vmem:[%s12573_s1 + $0x768] sm:$0xf] }
 0x178   : > { %4704 = vmatpush.bf16.msrb.mxu1 %v6029_v56  ;;  %4673 = vmatmul.bf16.vlgmr.msra.gmra.mxu2 %v8919_v50  ;;  %v6092_v56 = vld [vmem:[%s12573_s1 + $0x668] sm:$0xf]  ;;  %v7967_v4 = vld [vmem:[%s12573_s1 + $0x454] sm:$0xf0] }
 0x179   : > { %4717 = vmatpush.bf16.msrb.mxu2 %v6157_v58  ;;  %4686 = vmatmul.bf16.vlgmr.msra.gmra.mxu3 %v8931_v55  ;;  %v8035_v58 = vld [vmem:[%s12573_s1 + $0x674] sm:$0xf0]  ;;  %v5820_v1 = vld [vmem:[%s12573_s1 + $0x448] sm:$0xf] }
 0x17a   : > { %4730 = vmatpush.bf16.msrb.mxu3 %v6285_v62  ;;  %v5965_v62 = vor.u32 %v8003_v54, %v5964_v49  ;;  %v6093_v0 = vor.u32 %v8035_v58, %v6092_v56  ;;  %v5948_v8 = vld [vmem:[%s12573_s1 + $0x548] sm:$0xf]  ;;  %v8031_v15 = vld [vmem:[%s12573_s1 + $0x654] sm:$0xf0]  ;;  %v5821_v22 = vor.u32 %v7967_v4, %v5820_v1 }
 0x17b   : > { %4692 = vmatpush.bf16.msrb.mxu0 %v5885_v10  ;;  %v4466_v26 = vpop.f32.mrf.mxu2  ;;  %v6221_v10 = vor.u32 %v8067_v63, %v6220_v59  ;;  %v8063_v20 = vld [vmem:[%s12573_s1 + $0x754] sm:$0xf0]  ;;  %v4442_v24 = vpop.f32.mrf.mxu0  ;;  %v5932_v34 = vld [vmem:[%s12573_s1 + $0x528] sm:$0xf] }
 0x17c   : > { %4705 = vmatpush.bf16.msrb.mxu1 %v6013_v11  ;;  %v7999_v11 = vld [vmem:[%s12573_s1 + $0x554] sm:$0xf0]  ;;  %v4467_v16 = vadd.f32 %v4466_v26, %v4454_v60  ;;  %v4479_v18 = vpop.f32.mrf.mxu3  ;;  %v4455_v35 = vpop.f32.mrf.mxu1  ;;  %v6060_v38 = vld [vmem:[%s12573_s1 + $0x628] sm:$0xf] }
 0x17d   : > { %4718 = vmatpush.bf16.msrb.mxu2 %v6141_v14  ;;  %v6076_v14 = vld [vmem:[%s12573_s1 + $0x648] sm:$0xf]  ;;  %v5949_v25 = vor.u32 %v7999_v11, %v5948_v8  ;;  %v8027_v39 = vld [vmem:[%s12573_s1 + $0x634] sm:$0xf0] }
 0x17e   : > { %4731 = vmatpush.bf16.msrb.mxu3 %v6269_v19  ;;  %v6204_v19 = vld [vmem:[%s12573_s1 + $0x748] sm:$0xf]  ;;  %v10905_v23 = vadd.f32 %v4479_v18, %v4467_v16  ;;  %v8059_v40 = vld [vmem:[%s12573_s1 + $0x734] sm:$0xf0] }
 0x17f   : > { %4693 = vmatpush.bf16.msrb.mxu0 %v5869_v27  ;;  %v6077_v27 = vor.u32 %v8031_v15, %v6076_v14  ;;  %v6205_v36 = vor.u32 %v8063_v20, %v6204_v19  ;;  %v6188_v21 = vld [vmem:[%s12573_s1 + $0x728] sm:$0xf]  ;;  %v7959_v44 = vld [vmem:[%s12573_s1 + $0x414] sm:$0xf0] }
 0x180   : > { %4706 = vmatpush.bf16.msrb.mxu1 %v5997_v28  ;;  %v5804_v28 = vld [vmem:[%s12573_s1 + $0x428] sm:$0xf]  ;;  %v7991_v48 = vld [vmem:[%s12573_s1 + $0x514] sm:$0xf0]  ;;  %v6189_v53 = vor.u32 %v8059_v40, %v6188_v21 }
 0x181   : > { %4719 = vmatpush.bf16.msrb.mxu2 %v6125_v30  ;;  %v7963_v30 = vld [vmem:[%s12573_s1 + $0x434] sm:$0xf0]  ;;  %v5916_v47 = vld [vmem:[%s12573_s1 + $0x508] sm:$0xf] }
 0x182   : > { %4732 = vmatpush.bf16.msrb.mxu3 %v6253_v37  ;;  %v7995_v37 = vld [vmem:[%s12573_s1 + $0x534] sm:$0xf0]  ;;  %v5805_v41 = vor.u32 %v7963_v30, %v5804_v28  ;;  %v6044_v49 = vld [vmem:[%s12573_s1 + $0x608] sm:$0xf]  ;;  %v5917_v4 = vor.u32 %v7991_v48, %v5916_v47 }
 0x183   : > { %4694 = vmatpush.bf16.msrb.mxu0 %v5853_v43  ;;  %v5788_v43 = vld [vmem:[%s12573_s1 + $0x408] sm:$0xf]  ;;  %v4468_v52 = vpop.f32.mrf.mxu2  ;;  %v8055_v56 = vld [vmem:[%s12573_s1 + $0x714] sm:$0xf0] }
 0x184   : > { %4707 = vmatpush.bf16.msrb.mxu1 %v5981_v45  ;;  %v5933_v45 = vor.u32 %v7995_v37, %v5932_v34  ;;  %v6172_v54 = vld [vmem:[%s12573_s1 + $0x708] sm:$0xf]  ;;  %v4481_v58 = vpop.f32.mrf.mxu3  ;;  %v8115_v63 = vld [vmem:[%s12573_s1 + $0x8f4] sm:$0xf0] }
 0x185   : > { %4720 = vmatpush.bf16.msrb.mxu2 %v6109_v46  ;;  %v6061_v46 = vor.u32 %v8027_v39, %v6060_v38  ;;  %v6412_v59 = vld [vmem:[%s12573_s1 + $0x8e8] sm:$0xf]  ;;  %v8179_v1 = vld [vmem:[%s12573_s1 + $0xaf4] sm:$0xf0]  ;;  %v6173_v11 = vor.u32 %v8055_v56, %v6172_v54 }
 0x186   : > { %4733 = vmatpush.bf16.msrb.mxu3 %v6237_v9  ;;  %v8023_v9 = vld [vmem:[%s12573_s1 + $0x614] sm:$0xf0]  ;;  %v6540_v60 = vld [vmem:[%s12573_s1 + $0x9e8] sm:$0xf]  ;;  %v6413_v14 = vor.u32 %v8115_v63, %v6412_v59 }
 0x187   : > { %4695 = vmatpush.bf16.msrb.mxu0 %v5837_v61  ;;  %v5789_v61 = vor.u32 %v7959_v44, %v5788_v43  ;;  %v6045_v8 = vor.u32 %v8023_v9, %v6044_v49  ;;  %v6796_v26 = vld [vmem:[%s12573_s1 + $0xbe8] sm:$0xf]  ;;  %v8111_v19 = vld [vmem:[%s12573_s1 + $0x8d4] sm:$0xf0] }
 0x188   : > { %4708 = vmatpush.bf16.msrb.mxu1 %v5965_v62  ;;  %v8147_v62 = vld [vmem:[%s12573_s1 + $0x9f4] sm:$0xf0]  ;;  %v6396_v18 = vld [vmem:[%s12573_s1 + $0x8c8] sm:$0xf] }
 0x189   : > { %4721 = vmatpush.bf16.msrb.mxu2 %v6093_v0  ;;  %v6668_v0 = vld [vmem:[%s12573_s1 + $0xae8] sm:$0xf]  ;;  %v6541_v15 = vor.u32 %v8147_v62, %v6540_v60  ;;  %v8143_v24 = vld [vmem:[%s12573_s1 + $0x9d4] sm:$0xf0]  ;;  %v6397_v34 = vor.u32 %v8111_v19, %v6396_v18 }
 0x18a   : > { %4734 = vmatpush.bf16.msrb.mxu3 %v6221_v10  ;;  %v8211_v10 = vld [vmem:[%s12573_s1 + $0xbf4] sm:$0xf0]  ;;  %v6669_v16 = vor.u32 %v8179_v1, %v6668_v0  ;;  %v6524_v20 = vld [vmem:[%s12573_s1 + $0x9c8] sm:$0xf] }
 0x18b   : > { %4696 = vmatpush.bf16.msrb.mxu0 %v5821_v22  ;;  %v6797_v22 = vor.u32 %v8211_v10, %v6796_v26  ;;  %v6780_v28 = vld [vmem:[%s12573_s1 + $0xbc8] sm:$0xf]  ;;  %v8207_v30 = vld [vmem:[%s12573_s1 + $0xbd4] sm:$0xf0]  ;;  %v6525_v35 = vor.u32 %v8143_v24, %v6524_v20 }
 0x18c   : > { %4709 = vmatpush.bf16.msrb.mxu1 %v5949_v25  ;;  %v6652_v25 = vld [vmem:[%s12573_s1 + $0xac8] sm:$0xf]  ;;  %v8107_v38 = vld [vmem:[%s12573_s1 + $0x8b4] sm:$0xf0]  ;;  %v6781_v21 = vor.u32 %v8207_v30, %v6780_v28 }
 0x18d   : > { %4722 = vmatpush.bf16.msrb.mxu2 %v6077_v27  ;;  %v8175_v27 = vld [vmem:[%s12573_s1 + $0xad4] sm:$0xf0]  ;;  %v6380_v37 = vld [vmem:[%s12573_s1 + $0x8a8] sm:$0xf] }
 0x18e   : > { %4735 = vmatpush.bf16.msrb.mxu3 %v6205_v36  ;;  %v6653_v36 = vor.u32 %v8175_v27, %v6652_v25  ;;  %v6508_v39 = vld [vmem:[%s12573_s1 + $0x9a8] sm:$0xf]  ;;  %v8139_v40 = vld [vmem:[%s12573_s1 + $0x9b4] sm:$0xf0] }
 0x18f   : > { %4697 = vmatpush.bf16.msrb.mxu0 %v5805_v41  ;;  %v6636_v41 = vld [vmem:[%s12573_s1 + $0xaa8] sm:$0xf]  ;;  %v8171_v43 = vld [vmem:[%s12573_s1 + $0xab4] sm:$0xf0]  ;;  %v6509_v47 = vor.u32 %v8139_v40, %v6508_v39 }
 0x190   : > { %4710 = vmatpush.bf16.msrb.mxu1 %v5933_v45  ;;  %v6764_v44 = vld [vmem:[%s12573_s1 + $0xba8] sm:$0xf]  ;;  %v8203_v45 = vld [vmem:[%s12573_s1 + $0xbb4] sm:$0xf0]  ;;  %v6637_v48 = vor.u32 %v8171_v43, %v6636_v41 }
 0x191   : > { %4723 = vmatpush.bf16.msrb.mxu2 %v6061_v46  ;;  %v6381_v46 = vor.u32 %v8107_v38, %v6380_v37  ;;  %v6364_v49 = vld [vmem:[%s12573_s1 + $0x888] sm:$0xf]  ;;  %v8103_v52 = vld [vmem:[%s12573_s1 + $0x894] sm:$0xf0]  ;;  %v6765_v9 = vor.u32 %v8203_v45, %v6764_v44 }
 0x192   : > { %4736 = vmatpush.bf16.msrb.mxu3 %v6189_v53  ;;  %v6492_v53 = vld [vmem:[%s12573_s1 + $0x988] sm:$0xf]  ;;  %v8135_v54 = vld [vmem:[%s12573_s1 + $0x994] sm:$0xf0]  ;;  %v6365_v62 = vor.u32 %v8103_v52, %v6364_v49 }
 0x193   : > { %4698 = vmatpush.bf16.msrb.mxu0 %v5789_v61  ;;  %v6620_v56 = vld [vmem:[%s12573_s1 + $0xa88] sm:$0xf]  ;;  %v8167_v58 = vld [vmem:[%s12573_s1 + $0xa94] sm:$0xf0]  ;;  %v4492_v59 = vpop.f32.mrf.mxu0  ;;  %v6493_v1 = vor.u32 %v8135_v54, %v6492_v53 }
 0x194   : > { %4711 = vmatpush.bf16.msrb.mxu1 %v5917_v4  ;;  %v6748_v63 = vld [vmem:[%s12573_s1 + $0xb88] sm:$0xf]  ;;  %v8199_v60 = vld [vmem:[%s12573_s1 + $0xb94] sm:$0xf0]  ;;  %v4493_v61 = vadd.f32 %v4492_v59, %v10905_v23  ;;  %v4505_v0 = vpop.f32.mrf.mxu1  ;;  %v6621_v4 = vor.u32 %v8167_v58, %v6620_v56 }
 0x195   : > { %4724 = vmatpush.bf16.msrb.mxu2 %v6045_v8  ;;  %v6348_v8 = vld [vmem:[%s12573_s1 + $0x868] sm:$0xf]  ;;  %v8099_v26 = vld [vmem:[%s12573_s1 + $0x874] sm:$0xf0]  ;;  %v6749_v23 = vor.u32 %v8199_v60, %v6748_v63 }
 0x196   : > { %4737 = vmatpush.bf16.msrb.mxu3 %v6173_v11  ;;  %4699 = vmatmul.bf16.vlgmr.msrb.gmra.mxu0 %v8959_v5  ;;  %v6476_v10 = vld [vmem:[%s12573_s1 + $0x968] sm:$0xf]  ;;  %v4506_v11 = vadd.f32 %v4505_v0, %v4493_v61  ;;  %v8195_v19 = vld [vmem:[%s12573_s1 + $0xb74] sm:$0xf0]  ;;  %v6349_v20 = vor.u32 %v8099_v26, %v6348_v8 }
 0x197   : > { %4743 = vmatpush.bf16.msra.mxu0 %v6413_v14  ;;  %4712 = vmatmul.bf16.vlgmr.msrb.gmra.mxu1 %v8963_v7  ;;  %v8131_v14 = vld [vmem:[%s12573_s1 + $0x974] sm:$0xf0]  ;;  %v6732_v18 = vld [vmem:[%s12573_s1 + $0xb68] sm:$0xf] }
 0x198   : > { %4756 = vmatpush.bf16.msra.mxu1 %v6541_v15  ;;  %4725 = vmatmul.bf16.vlgmr.msrb.gmra.mxu2 %v8956_v3  ;;  %v6604_v15 = vld [vmem:[%s12573_s1 + $0xa68] sm:$0xf]  ;;  %v8095_v27 = vld [vmem:[%s12573_s1 + $0x854] sm:$0xf0]  ;;  %v6733_v30 = vor.u32 %v8195_v19, %v6732_v18 }
 0x199   : > { %4769 = vmatpush.bf16.msra.mxu2 %v6669_v16  ;;  %4738 = vmatmul.bf16.vlgmr.msrb.gmra.mxu3 %v8961_v6  ;;  %v8163_v16 = vld [vmem:[%s12573_s1 + $0xa74] sm:$0xf0]  ;;  %v6332_v25 = vld [vmem:[%s12573_s1 + $0x848] sm:$0xf] }
 0x19a   : > { %4782 = vmatpush.bf16.msra.mxu3 %v6797_v22  ;;  %v6477_v22 = vor.u32 %v8131_v14, %v6476_v10  ;;  %v6605_v24 = vor.u32 %v8163_v16, %v6604_v15  ;;  %v6460_v28 = vld [vmem:[%s12573_s1 + $0x948] sm:$0xf]  ;;  %v8159_v37 = vld [vmem:[%s12573_s1 + $0xa54] sm:$0xf0]  ;;  %v6333_v43 = vor.u32 %v8095_v27, %v6332_v25 }
 0x19b   : > { %4744 = vmatpush.bf16.msra.mxu0 %v6397_v34  ;;  %v4518_v34 = vpop.f32.mrf.mxu2  ;;  %v8191_v40 = vld [vmem:[%s12573_s1 + $0xb54] sm:$0xf0]  ;;  %v4494_v41 = vpop.f32.mrf.mxu0  ;;  %v6444_v52 = vld [vmem:[%s12573_s1 + $0x928] sm:$0xf] }
 0x19c   : > { %4757 = vmatpush.bf16.msra.mxu1 %v6525_v35  ;;  %v8127_v35 = vld [vmem:[%s12573_s1 + $0x954] sm:$0xf0]  ;;  %v4519_v38 = vadd.f32 %v4518_v34, %v4506_v11  ;;  %v4531_v39 = vpop.f32.mrf.mxu3  ;;  %v4507_v44 = vpop.f32.mrf.mxu1  ;;  %v6572_v54 = vld [vmem:[%s12573_s1 + $0xa28] sm:$0xf] }
 0x19d   : > { %4770 = vmatpush.bf16.msra.mxu2 %v6653_v36  ;;  %v6588_v36 = vld [vmem:[%s12573_s1 + $0xa48] sm:$0xf]  ;;  %v8091_v49 = vld [vmem:[%s12573_s1 + $0x834] sm:$0xf0] }
 0x19e   : > { %4783 = vmatpush.bf16.msra.mxu3 %v6781_v21  ;;  %v6716_v21 = vld [vmem:[%s12573_s1 + $0xb48] sm:$0xf]  ;;  %v11104_v45 = vadd.f32 %v4531_v39, %v4519_v38  ;;  %v8155_v56 = vld [vmem:[%s12573_s1 + $0xa34] sm:$0xf0] }
 0x19f   : > { %4745 = vmatpush.bf16.msra.mxu0 %v6381_v46  ;;  %v6461_v46 = vor.u32 %v8127_v35, %v6460_v28  ;;  %v6717_v53 = vor.u32 %v8191_v40, %v6716_v21  ;;  %v6700_v58 = vld [vmem:[%s12573_s1 + $0xb28] sm:$0xf]  ;;  %v8187_v59 = vld [vmem:[%s12573_s1 + $0xb34] sm:$0xf0]  ;;  %v6573_v0 = vor.u32 %v8155_v56, %v6572_v54 }
 0x1a0   : > { %4758 = vmatpush.bf16.msra.mxu1 %v6509_v47  ;;  %v6589_v47 = vor.u32 %v8159_v37, %v6588_v36  ;;  %v6300_v60 = vld [vmem:[%s12573_s1 + $0x808] sm:$0xf]  ;;  %v8087_v61 = vld [vmem:[%s12573_s1 + $0x814] sm:$0xf0]  ;;  %v6701_v26 = vor.u32 %v8187_v59, %v6700_v58 }
 0x1a1   : > { %4771 = vmatpush.bf16.msra.mxu2 %v6637_v48  ;;  %v6316_v48 = vld [vmem:[%s12573_s1 + $0x828] sm:$0xf]  ;;  %v8151_v10 = vld [vmem:[%s12573_s1 + $0xa14] sm:$0xf0] }
 0x1a2   : > { %4784 = vmatpush.bf16.msra.mxu3 %v6765_v9  ;;  %v8123_v9 = vld [vmem:[%s12573_s1 + $0x934] sm:$0xf0]  ;;  %v6317_v63 = vor.u32 %v8091_v49, %v6316_v48  ;;  %v6556_v8 = vld [vmem:[%s12573_s1 + $0xa08] sm:$0xf] }
 0x1a3   : > { %4746 = vmatpush.bf16.msra.mxu0 %v6365_v62  ;;  %v6445_v62 = vor.u32 %v8123_v9, %v6444_v52  ;;  %v8183_v11 = vld [vmem:[%s12573_s1 + $0xb14] sm:$0xf0]  ;;  %v4520_v14 = vpop.f32.mrf.mxu2  ;;  %v6924_v15 = vld [vmem:[%s12573_s1 + $0xce8] sm:$0xf]  ;;  %v6557_v28 = vor.u32 %v8151_v10, %v6556_v8 }
 0x1a4   : > { %4759 = vmatpush.bf16.msra.mxu1 %v6493_v1  ;;  %v6428_v1 = vld [vmem:[%s12573_s1 + $0x908] sm:$0xf]  ;;  %v8243_v16 = vld [vmem:[%s12573_s1 + $0xcf4] sm:$0xf0]  ;;  %v4533_v19 = vpop.f32.mrf.mxu3 }
 0x1a5   : > { %4772 = vmatpush.bf16.msra.mxu2 %v6621_v4  ;;  %v8119_v4 = vld [vmem:[%s12573_s1 + $0x914] sm:$0xf0]  ;;  %v7052_v18 = vld [vmem:[%s12573_s1 + $0xde8] sm:$0xf]  ;;  %v6925_v36 = vor.u32 %v8243_v16, %v6924_v15 }
 0x1a6   : > { %4785 = vmatpush.bf16.msra.mxu3 %v6749_v23  ;;  %v6684_v23 = vld [vmem:[%s12573_s1 + $0xb08] sm:$0xf]  ;;  %v8307_v25 = vld [vmem:[%s12573_s1 + $0xef4] sm:$0xf0]  ;;  %v6429_v27 = vor.u32 %v8119_v4, %v6428_v1 }
 0x1a7   : > { %4747 = vmatpush.bf16.msra.mxu0 %v6349_v20  ;;  %v6301_v20 = vor.u32 %v8087_v61, %v6300_v60  ;;  %v8339_v34 = vld [vmem:[%s12573_s1 + $0xff4] sm:$0xf0]  ;;  %v6685_v35 = vor.u32 %v8183_v11, %v6684_v23  ;;  %v6908_v39 = vld [vmem:[%s12573_s1 + $0xcc8] sm:$0xf] }
 0x1a8   : > { %4760 = vmatpush.bf16.msra.mxu1 %v6477_v22  ;;  %v8275_v22 = vld [vmem:[%s12573_s1 + $0xdf4] sm:$0xf0]  ;;  %v7036_v40 = vld [vmem:[%s12573_s1 + $0xdc8] sm:$0xf] }
 0x1a9   : > { %4773 = vmatpush.bf16.msra.mxu2 %v6605_v24  ;;  %v7180_v24 = vld [vmem:[%s12573_s1 + $0xee8] sm:$0xf]  ;;  %v7053_v37 = vor.u32 %v8275_v22, %v7052_v18  ;;  %v8239_v21 = vld [vmem:[%s12573_s1 + $0xcd4] sm:$0xf0] }
 0x1aa   : > { %4786 = vmatpush.bf16.msra.mxu3 %v6733_v30  ;;  %v7308_v30 = vld [vmem:[%s12573_s1 + $0xfe8] sm:$0xf]  ;;  %v7181_v38 = vor.u32 %v8307_v25, %v7180_v24  ;;  %v8335_v48 = vld [vmem:[%s12573_s1 + $0xfd4] sm:$0xf0]  ;;  %v6909_v49 = vor.u32 %v8239_v21, %v6908_v39 }
 0x1ab   : > { %4748 = vmatpush.bf16.msra.mxu0 %v6333_v43  ;;  %v7309_v41 = vor.u32 %v8339_v34, %v7308_v30  ;;  %v8271_v43 = vld [vmem:[%s12573_s1 + $0xdd4] sm:$0xf0]  ;;  %v7164_v44 = vld [vmem:[%s12573_s1 + $0xec8] sm:$0xf] }
 0x1ac   : > { %4761 = vmatpush.bf16.msra.mxu1 %v6461_v46  ;;  %v8303_v46 = vld [vmem:[%s12573_s1 + $0xed4] sm:$0xf0]  ;;  %v7037_v52 = vor.u32 %v8271_v43, %v7036_v40  ;;  %v6892_v9 = vld [vmem:[%s12573_s1 + $0xca8] sm:$0xf] }
 0x1ad   : > { %4774 = vmatpush.bf16.msra.mxu2 %v6589_v47  ;;  %v7292_v47 = vld [vmem:[%s12573_s1 + $0xfc8] sm:$0xf]  ;;  %v8235_v54 = vld [vmem:[%s12573_s1 + $0xcb4] sm:$0xf0] }
 0x1ae   : > { %4787 = vmatpush.bf16.msra.mxu3 %v6717_v53  ;;  %v7165_v53 = vor.u32 %v8303_v46, %v7164_v44  ;;  %v7020_v56 = vld [vmem:[%s12573_s1 + $0xda8] sm:$0xf]  ;;  %v7293_v58 = vor.u32 %v8335_v48, %v7292_v47  ;;  %v8267_v59 = vld [vmem:[%s12573_s1 + $0xdb4] sm:$0xf0] }
 0x1af   : > { %4749 = vmatpush.bf16.msra.mxu0 %v6317_v63  ;;  %v7148_v63 = vld [vmem:[%s12573_s1 + $0xea8] sm:$0xf]  ;;  %v8299_v60 = vld [vmem:[%s12573_s1 + $0xeb4] sm:$0xf0]  ;;  %v7021_v1 = vor.u32 %v8267_v59, %v7020_v56 }
 0x1b0   : > { %4762 = vmatpush.bf16.msra.mxu1 %v6445_v62  ;;  %v7276_v61 = vld [vmem:[%s12573_s1 + $0xfa8] sm:$0xf]  ;;  %v8331_v62 = vld [vmem:[%s12573_s1 + $0xfb4] sm:$0xf0]  ;;  %v7149_v4 = vor.u32 %v8299_v60, %v7148_v63 }
 0x1b1   : > { %4775 = vmatpush.bf16.msra.mxu2 %v6573_v0  ;;  %v6893_v0 = vor.u32 %v8235_v54, %v6892_v9  ;;  %v6876_v8 = vld [vmem:[%s12573_s1 + $0xc88] sm:$0xf]  ;;  %v7277_v23 = vor.u32 %v8331_v62, %v7276_v61  ;;  %v8263_v11 = vld [vmem:[%s12573_s1 + $0xd94] sm:$0xf0] }
 0x1b2   : > { %4788 = vmatpush.bf16.msra.mxu3 %v6701_v26  ;;  %v8231_v26 = vld [vmem:[%s12573_s1 + $0xc94] sm:$0xf0]  ;;  %v7004_v10 = vld [vmem:[%s12573_s1 + $0xd88] sm:$0xf] }
 0x1b3   : > { %4750 = vmatpush.bf16.msra.mxu0 %v6301_v20  ;;  %v7132_v14 = vld [vmem:[%s12573_s1 + $0xe88] sm:$0xf]  ;;  %v8295_v15 = vld [vmem:[%s12573_s1 + $0xe94] sm:$0xf0]  ;;  %v4544_v16 = vpop.f32.mrf.mxu0  ;;  %v6877_v22 = vor.u32 %v8231_v26, %v6876_v8  ;;  %v7005_v25 = vor.u32 %v8263_v11, %v7004_v10 }
 0x1b4   : > { %4763 = vmatpush.bf16.msra.mxu1 %v6429_v27  ;;  %v7260_v18 = vld [vmem:[%s12573_s1 + $0xf88] sm:$0xf]  ;;  %v8327_v19 = vld [vmem:[%s12573_s1 + $0xf94] sm:$0xf0]  ;;  %v4545_v20 = vadd.f32 %v4544_v16, %v11104_v45  ;;  %v4557_v24 = vpop.f32.mrf.mxu1  ;;  %v7133_v27 = vor.u32 %v8295_v15, %v7132_v14 }
 0x1b5   : > { %4776 = vmatpush.bf16.msra.mxu2 %v6557_v28  ;;  %v6860_v28 = vld [vmem:[%s12573_s1 + $0xc68] sm:$0xf]  ;;  %v8227_v30 = vld [vmem:[%s12573_s1 + $0xc74] sm:$0xf0]  ;;  %v7261_v45 = vor.u32 %v8327_v19, %v7260_v18 }
 0x1b6   : > { %4789 = vmatpush.bf16.msra.mxu3 %v6685_v35  ;;  %4751 = vmatmul.bf16.vlgmr.msra.gmra.mxu0 %v9184_v2  ;;  %v6988_v34 = vld [vmem:[%s12573_s1 + $0xd68] sm:$0xf]  ;;  %v4558_v35 = vadd.f32 %v4557_v24, %v4545_v20  ;;  %v8323_v21 = vld [vmem:[%s12573_s1 + $0xf74] sm:$0xf0]  ;;  %v6861_v40 = vor.u32 %v8227_v30, %v6860_v28 }
 0x1b7   : > { %4795 = vmatpush.bf16.msrb.mxu0 %v6925_v36  ;;  %4764 = vmatmul.bf16.vlgmr.msra.gmra.mxu1 %v9198_v13  ;;  %v8259_v36 = vld [vmem:[%s12573_s1 + $0xd74] sm:$0xf0]  ;;  %v7244_v39 = vld [vmem:[%s12573_s1 + $0xf68] sm:$0xf] }
 0x1b8   : > { %4808 = vmatpush.bf16.msrb.mxu1 %v7053_v37  ;;  %4777 = vmatmul.bf16.vlgmr.msra.gmra.mxu2 %v9196_v12  ;;  %v7116_v37 = vld [vmem:[%s12573_s1 + $0xe68] sm:$0xf]  ;;  %v8223_v46 = vld [vmem:[%s12573_s1 + $0xc54] sm:$0xf0]  ;;  %v7245_v48 = vor.u32 %v8323_v21, %v7244_v39 }
 0x1b9   : > { %4821 = vmatpush.bf16.msrb.mxu2 %v7181_v38  ;;  %4790 = vmatmul.bf16.vlgmr.msra.gmra.mxu3 %v9209_v17  ;;  %v8291_v38 = vld [vmem:[%s12573_s1 + $0xe74] sm:$0xf0]  ;;  %v6844_v44 = vld [vmem:[%s12573_s1 + $0xc48] sm:$0xf] }
 0x1ba   : > { %4834 = vmatpush.bf16.msrb.mxu3 %v7309_v41  ;;  %v6989_v41 = vor.u32 %v8259_v36, %v6988_v34  ;;  %v7117_v43 = vor.u32 %v8291_v38, %v7116_v37  ;;  %v6972_v47 = vld [vmem:[%s12573_s1 + $0xd48] sm:$0xf]  ;;  %v8287_v9 = vld [vmem:[%s12573_s1 + $0xe54] sm:$0xf0]  ;;  %v6845_v60 = vor.u32 %v8223_v46, %v6844_v44 }
 0x1bb   : > { %4796 = vmatpush.bf16.msrb.mxu0 %v6909_v49  ;;  %v4570_v49 = vpop.f32.mrf.mxu2  ;;  %v8319_v59 = vld [vmem:[%s12573_s1 + $0xf54] sm:$0xf0]  ;;  %v4546_v63 = vpop.f32.mrf.mxu0  ;;  %v6956_v26 = vld [vmem:[%s12573_s1 + $0xd28] sm:$0xf] }
 0x1bc   : > { %4809 = vmatpush.bf16.msrb.mxu1 %v7037_v52  ;;  %v8255_v52 = vld [vmem:[%s12573_s1 + $0xd54] sm:$0xf0]  ;;  %v4571_v54 = vadd.f32 %v4570_v49, %v4558_v35  ;;  %v4583_v56 = vpop.f32.mrf.mxu3  ;;  %v4559_v61 = vpop.f32.mrf.mxu1  ;;  %v7084_v11 = vld [vmem:[%s12573_s1 + $0xe28] sm:$0xf] }
 0x1bd   : > { %4822 = vmatpush.bf16.msrb.mxu2 %v7165_v53  ;;  %v7100_v53 = vld [vmem:[%s12573_s1 + $0xe48] sm:$0xf]  ;;  %v8219_v8 = vld [vmem:[%s12573_s1 + $0xc34] sm:$0xf0] }
 0x1be   : > { %4835 = vmatpush.bf16.msrb.mxu3 %v7293_v58  ;;  %v7228_v58 = vld [vmem:[%s12573_s1 + $0xf48] sm:$0xf]  ;;  %v11303_v62 = vadd.f32 %v4583_v56, %v4571_v54  ;;  %v8283_v14 = vld [vmem:[%s12573_s1 + $0xe34] sm:$0xf0] }
 0x1bf   : > { %4797 = vmatpush.bf16.msrb.mxu0 %v6893_v0  ;;  %v6973_v0 = vor.u32 %v8255_v52, %v6972_v47  ;;  %v7229_v10 = vor.u32 %v8319_v59, %v7228_v58  ;;  %v7212_v15 = vld [vmem:[%s12573_s1 + $0xf28] sm:$0xf]  ;;  %v8315_v16 = vld [vmem:[%s12573_s1 + $0xf34] sm:$0xf0]  ;;  %v7085_v24 = vor.u32 %v8283_v14, %v7084_v11 }
 0x1c0   : > { %4810 = vmatpush.bf16.msrb.mxu1 %v7021_v1  ;;  %v7101_v1 = vor.u32 %v8287_v9, %v7100_v53  ;;  %v6812_v19 = vld [vmem:[%s12573_s1 + $0xc08] sm:$0xf]  ;;  %v8215_v20 = vld [vmem:[%s12573_s1 + $0xc14] sm:$0xf0]  ;;  %v7213_v30 = vor.u32 %v8315_v16, %v7212_v15 }
 0x1c1   : > { %4823 = vmatpush.bf16.msrb.mxu2 %v7149_v4  ;;  %v6828_v4 = vld [vmem:[%s12573_s1 + $0xc28] sm:$0xf]  ;;  %v8279_v34 = vld [vmem:[%s12573_s1 + $0xe14] sm:$0xf0] }
 0x1c2   : > { %4836 = vmatpush.bf16.msrb.mxu3 %v7277_v23  ;;  %v8251_v23 = vld [vmem:[%s12573_s1 + $0xd34] sm:$0xf0]  ;;  %v6829_v18 = vor.u32 %v8219_v8, %v6828_v4  ;;  %v7068_v28 = vld [vmem:[%s12573_s1 + $0xe08] sm:$0xf] }
 0x1c3   : > { %4798 = vmatpush.bf16.msrb.mxu0 %v6877_v22  ;;  %v6957_v22 = vor.u32 %v8251_v23, %v6956_v26  ;;  %v8311_v35 = vld [vmem:[%s12573_s1 + $0xf14] sm:$0xf0]  ;;  %v4572_v36 = vpop.f32.mrf.mxu2  ;;  %v7436_v37 = vld [vmem:[%s12573_s1 + $0x10e8] sm:$0xf]  ;;  %v7069_v47 = vor.u32 %v8279_v34, %v7068_v28 }
 0x1c4   : > { %4811 = vmatpush.bf16.msrb.mxu1 %v7005_v25  ;;  %v6940_v25 = vld [vmem:[%s12573_s1 + $0xd08] sm:$0xf]  ;;  %v8371_v38 = vld [vmem:[%s12573_s1 + $0x10f4] sm:$0xf0]  ;;  %v4585_v21 = vpop.f32.mrf.mxu3 }
 0x1c5   : > { %4824 = vmatpush.bf16.msrb.mxu2 %v7133_v27  ;;  %v8247_v27 = vld [vmem:[%s12573_s1 + $0xd14] sm:$0xf0]  ;;  %v7564_v39 = vld [vmem:[%s12573_s1 + $0x11e8] sm:$0xf]  ;;  %v7437_v53 = vor.u32 %v8371_v38, %v7436_v37 }
 0x1c6   : > { %4837 = vmatpush.bf16.msrb.mxu3 %v7261_v45  ;;  %v7196_v45 = vld [vmem:[%s12573_s1 + $0xf08] sm:$0xf]  ;;  %v8435_v44 = vld [vmem:[%s12573_s1 + $0x12f4] sm:$0xf0]  ;;  %v6941_v46 = vor.u32 %v8247_v27, %v6940_v25 }
 0x1c7   : > { %4799 = vmatpush.bf16.msrb.mxu0 %v6861_v40  ;;  %v6813_v40 = vor.u32 %v8215_v20, %v6812_v19  ;;  %v8467_v49 = vld [vmem:[%s12573_s1 + $0x13f4] sm:$0xf0]  ;;  %v7197_v52 = vor.u32 %v8311_v35, %v7196_v45  ;;  %v7420_v56 = vld [vmem:[%s12573_s1 + $0x10c8] sm:$0xf] }
 0x1c8   : > { %4812 = vmatpush.bf16.msrb.mxu1 %v6989_v41  ;;  %v8403_v41 = vld [vmem:[%s12573_s1 + $0x11f4] sm:$0xf0]  ;;  %v7548_v59 = vld [vmem:[%s12573_s1 + $0x11c8] sm:$0xf] }
 0x1c9   : > { %4825 = vmatpush.bf16.msrb.mxu2 %v7117_v43  ;;  %v7692_v43 = vld [vmem:[%s12573_s1 + $0x12e8] sm:$0xf]  ;;  %v7565_v9 = vor.u32 %v8403_v41, %v7564_v39  ;;  %v8367_v58 = vld [vmem:[%s12573_s1 + $0x10d4] sm:$0xf0] }
 0x1ca   : > { %4838 = vmatpush.bf16.msrb.mxu3 %v7245_v48  ;;  %v7820_v48 = vld [vmem:[%s12573_s1 + $0x13e8] sm:$0xf]  ;;  %v7693_v54 = vor.u32 %v8435_v44, %v7692_v43  ;;  %v8463_v4 = vld [vmem:[%s12573_s1 + $0x13d4] sm:$0xf0]  ;;  %v7421_v8 = vor.u32 %v8367_v58, %v7420_v56 }
 0x1cb   : > { %4800 = vmatpush.bf16.msrb.mxu0 %v6845_v60  ;;  %v7821_v63 = vor.u32 %v8467_v49, %v7820_v48  ;;  %v8399_v60 = vld [vmem:[%s12573_s1 + $0x11d4] sm:$0xf0]  ;;  %v7676_v61 = vld [vmem:[%s12573_s1 + $0x12c8] sm:$0xf] }
 0x1cc   : > { %4813 = vmatpush.bf16.msrb.mxu1 %v6973_v0  ;;  %v8431_v0 = vld [vmem:[%s12573_s1 + $0x12d4] sm:$0xf0]  ;;  %v7549_v26 = vor.u32 %v8399_v60, %v7548_v59  ;;  %v7404_v23 = vld [vmem:[%s12573_s1 + $0x10a8] sm:$0xf]  ;;  %v5163_v59 = vld [vmem:[%s12575_s3] sm:$0xf] }
 0x1cd   : > { %4826 = vmatpush.bf16.msrb.mxu2 %v7101_v1  ;;  %v7804_v1 = vld [vmem:[%s12573_s1 + $0x13c8] sm:$0xf]  ;;  %v8363_v11 = vld [vmem:[%s12573_s1 + $0x10b4] sm:$0xf0] }
 0x1ce   : > { %4839 = vmatpush.bf16.msrb.mxu3 %v7229_v10  ;;  %v7677_v10 = vor.u32 %v8431_v0, %v7676_v61  ;;  %v7532_v14 = vld [vmem:[%s12573_s1 + $0x11a8] sm:$0xf]  ;;  %v7805_v15 = vor.u32 %v8463_v4, %v7804_v1  ;;  %v8395_v16 = vld [vmem:[%s12573_s1 + $0x11b4] sm:$0xf0] }
 0x1cf   : > { %4801 = vmatpush.bf16.msrb.mxu0 %v6829_v18  ;;  %v7660_v18 = vld [vmem:[%s12573_s1 + $0x12a8] sm:$0xf]  ;;  %v8427_v19 = vld [vmem:[%s12573_s1 + $0x12b4] sm:$0xf0]  ;;  %v7533_v25 = vor.u32 %v8395_v16, %v7532_v14  ;;  %v5159_v14 = vmax.f32 %v10509_v42, 0.0 }
 0x1d0   : > { %4814 = vmatpush.bf16.msrb.mxu1 %v6957_v22  ;;  %v7788_v20 = vld [vmem:[%s12573_s1 + $0x13a8] sm:$0xf]  ;;  %v8459_v22 = vld [vmem:[%s12573_s1 + $0x13b4] sm:$0xf0]  ;;  %v7661_v27 = vor.u32 %v8427_v19, %v7660_v18 }
 0x1d1   : > { %4827 = vmatpush.bf16.msrb.mxu2 %v7085_v24  ;;  %v7405_v24 = vor.u32 %v8363_v11, %v7404_v23  ;;  %v7388_v28 = vld [vmem:[%s12573_s1 + $0x1088] sm:$0xf]  ;;  %v7789_v45 = vor.u32 %v8459_v22, %v7788_v20  ;;  %v8391_v35 = vld [vmem:[%s12573_s1 + $0x1194] sm:$0xf0] }
 0x1d2   : > { %4840 = vmatpush.bf16.msrb.mxu3 %v7213_v30  ;;  %v8359_v30 = vld [vmem:[%s12573_s1 + $0x1094] sm:$0xf0]  ;;  %v7516_v34 = vld [vmem:[%s12573_s1 + $0x1188] sm:$0xf] }
 0x1d3   : > { %4802 = vmatpush.bf16.msrb.mxu0 %v6813_v40  ;;  %v7644_v36 = vld [vmem:[%s12573_s1 + $0x1288] sm:$0xf]  ;;  %v8423_v37 = vld [vmem:[%s12573_s1 + $0x1294] sm:$0xf0]  ;;  %v4596_v38 = vpop.f32.mrf.mxu0  ;;  %v7389_v41 = vor.u32 %v8359_v30, %v7388_v28  ;;  %v7517_v44 = vor.u32 %v8391_v35, %v7516_v34 }
 0x1d4   : > { %4815 = vmatpush.bf16.msrb.mxu1 %v6941_v46  ;;  %v7772_v39 = vld [vmem:[%s12573_s1 + $0x1388] sm:$0xf]  ;;  %v8455_v21 = vld [vmem:[%s12573_s1 + $0x1394] sm:$0xf0]  ;;  %v4597_v40 = vadd.f32 %v4596_v38, %v11303_v62  ;;  %v4609_v43 = vpop.f32.mrf.mxu1  ;;  %v7645_v46 = vor.u32 %v8423_v37, %v7644_v36 }
 0x1d5   : > { %4828 = vmatpush.bf16.msrb.mxu2 %v7069_v47  ;;  %v7372_v47 = vld [vmem:[%s12573_s1 + $0x1068] sm:$0xf]  ;;  %v8355_v48 = vld [vmem:[%s12573_s1 + $0x1074] sm:$0xf0]  ;;  %v7773_v62 = vor.u32 %v8455_v21, %v7772_v39 }
 0x1d6   : > { %4841 = vmatpush.bf16.msrb.mxu3 %v7197_v52  ;;  %4803 = vmatmul.bf16.vlgmr.msrb.gmra.mxu0 %v9235_v29  ;;  %v7500_v49 = vld [vmem:[%s12573_s1 + $0x1168] sm:$0xf]  ;;  %v4610_v52 = vadd.f32 %v4609_v43, %v4597_v40  ;;  %v8451_v58 = vld [vmem:[%s12573_s1 + $0x1374] sm:$0xf0] }
 0x1d7   : > { %4847 = vmatpush.bf16.msra.mxu0 %v7437_v53  ;;  %4816 = vmatmul.bf16.vlgmr.msrb.gmra.mxu1 %v9240_v32  ;;  %v8387_v53 = vld [vmem:[%s12573_s1 + $0x1174] sm:$0xf0]  ;;  %v7756_v56 = vld [vmem:[%s12573_s1 + $0x1368] sm:$0xf] }
 0x1d8   : > { %4860 = vmatpush.bf16.msra.mxu1 %v7565_v9  ;;  %4829 = vmatmul.bf16.vlgmr.msrb.gmra.mxu2 %v9238_v31  ;;  %v7628_v9 = vld [vmem:[%s12573_s1 + $0x1268] sm:$0xf]  ;;  %v7501_v60 = vor.u32 %v8387_v53, %v7500_v49  ;;  %v8351_v1 = vld [vmem:[%s12573_s1 + $0x1054] sm:$0xf0] }
 0x1d9   : > { %4873 = vmatpush.bf16.msra.mxu2 %v7693_v54  ;;  %4842 = vmatmul.bf16.vlgmr.msrb.gmra.mxu3 %v9242_v33  ;;  %v8419_v54 = vld [vmem:[%s12573_s1 + $0x1274] sm:$0xf0]  ;;  %v7356_v0 = vld [vmem:[%s12573_s1 + $0x1048] sm:$0xf] }
 0x1da   : > { %4886 = vmatpush.bf16.msra.mxu3 %v7821_v63  ;;  %v7373_v63 = vor.u32 %v8355_v48, %v7372_v47  ;;  %v7629_v61 = vor.u32 %v8419_v54, %v7628_v9  ;;  %v7484_v4 = vld [vmem:[%s12573_s1 + $0x1148] sm:$0xf]  ;;  %v8415_v11 = vld [vmem:[%s12573_s1 + $0x1254] sm:$0xf0] }
 0x1db   : > { %4848 = vmatpush.bf16.msra.mxu0 %v7421_v8  ;;  %v7757_v8 = vor.u32 %v8451_v58, %v7756_v56  ;;  %v7612_v23 = vld [vmem:[%s12573_s1 + $0x1248] sm:$0xf]  ;;  %v8447_v20 = vld [vmem:[%s12573_s1 + $0x1354] sm:$0xf0]  ;;  %v4598_v22 = vpop.f32.mrf.mxu0 }
 0x1dc   : > { %4861 = vmatpush.bf16.msra.mxu1 %v7549_v26  ;;  %v4622_v26 = vpop.f32.mrf.mxu2  ;;  %v4635_v18 = vpop.f32.mrf.mxu3  ;;  %v7740_v19 = vld [vmem:[%s12573_s1 + $0x1348] sm:$0xf]  ;;  %v7613_v30 = vor.u32 %v8415_v11, %v7612_v23  ;;  %v8379_v37 = vld [vmem:[%s12573_s1 + $0x1134] sm:$0xf0]  ;;  %v7921_v23 = vld [vmem:[%s12573_s1 + $0x2ec] sm:$0xf] }
 0x1dd   : > { %4874 = vmatpush.bf16.msra.mxu2 %v7677_v10  ;;  %v8383_v10 = vld [vmem:[%s12573_s1 + $0x1154] sm:$0xf0]  ;;  %v4623_v16 = vadd.f32 %v4622_v26, %v4610_v52  ;;  %v7340_v34 = vld [vmem:[%s12573_s1 + $0x1028] sm:$0xf]  ;;  %v7741_v36 = vor.u32 %v8447_v20, %v7740_v19  ;;  %v5646_v11 = vld [vmem:[%s12573_s1 + $0x2f8] sm:$0xf0] }
 0x1de   : > { %4887 = vmatpush.bf16.msra.mxu3 %v7805_v15  ;;  %v5165_v15 = vperm.slane %v5163_v59, 0  ;;  %v7485_v42 = vor.u32 %v8383_v10, %v7484_v4  ;;  %v7468_v35 = vld [vmem:[%s12573_s1 + $0x1128] sm:$0xf]  ;;  %v8411_v39 = vld [vmem:[%s12573_s1 + $0x1234] sm:$0xf0] }
 0x1df   : > { %4849 = vmatpush.bf16.msra.mxu0 %v7405_v24  ;;  %v5166_v24 = vperm.slane %v5163_v59, 1  ;;  %v4636_v28 = vadd.f32 %v4635_v18, %v4623_v16  ;;  %v7596_v38 = vld [vmem:[%s12573_s1 + $0x1228] sm:$0xf]  ;;  %v8443_v43 = vld [vmem:[%s12573_s1 + $0x1334] sm:$0xf0] }
 0x1e0   : > { %4862 = vmatpush.bf16.msra.mxu1 %v7533_v25  ;;  %v7357_v25 = vor.u32 %v8351_v1, %v7356_v0  ;;  %v5173_v21 = vmul.f32 %v5165_v15, %v5159_v14  ;;  %v8343_v47 = vld [vmem:[%s12573_s1 + $0x1014] sm:$0xf0]  ;;  %v7452_v48 = vld [vmem:[%s12573_s1 + $0x1108] sm:$0xf]  ;;  %v7597_v52 = vor.u32 %v8411_v39, %v7596_v38  ;;  %v7889_v0 = vld [vmem:[%s12573_s1 + $0x1ec] sm:$0xf] }
 0x1e1   : > { %4875 = vmatpush.bf16.msra.mxu2 %v7661_v27  ;;  %v4611_v27 = vpop.f32.mrf.mxu1  ;;  %v5160_v40 = vmax.f32 %v4636_v28, 0.0  ;;  %v8375_v53 = vld [vmem:[%s12573_s1 + $0x1114] sm:$0xf0]  ;;  %v7580_v9 = vld [vmem:[%s12573_s1 + $0x1208] sm:$0xf] }
 0x1e2   : > { %4888 = vmatpush.bf16.msra.mxu3 %v7789_v45  ;;  %v8347_v45 = vld [vmem:[%s12573_s1 + $0x1034] sm:$0xf0]  ;;  %v7708_v58 = vld [vmem:[%s12573_s1 + $0x1308] sm:$0xf]  ;;  %v5178_v4 = vsel %vm5177_vm0, %v5173_v21, 0.0  ;;  %v7453_v15 = vor.u32 %v8375_v53, %v7452_v48 }
 0x1e3   : > { %4850 = vmatpush.bf16.msra.mxu0 %v7389_v41  ;;  %v7724_v41 = vld [vmem:[%s12573_s1 + $0x1328] sm:$0xf]  ;;  %v5174_v49 = vmul.f32 %v5166_v24, %v5160_v40  ;;  %v8407_v54 = vld [vmem:[%s12573_s1 + $0x1214] sm:$0xf0]  ;;  %v5518_v10 = vld [vmem:[%s12573_s1 + $0x1f8] sm:$0xf0] }
 0x1e4   : > { %4863 = vmatpush.bf16.msra.mxu1 %v7517_v44  ;;  %v7341_v44 = vor.u32 %v8347_v45, %v7340_v34  ;;  %v7725_v56 = vor.u32 %v8443_v43, %v7724_v41  ;;  %v8439_v59 = vld [vmem:[%s12573_s1 + $0x1314] sm:$0xf0]  ;;  %v4637_v1 = vpop.f32.mrf.mxu3  ;;  %v7581_v16 = vor.u32 %v8407_v54, %v7580_v9  ;;  %v7953_v18 = vld [vmem:[%s12573_s1 + $0x3ec] sm:$0xf]  ;;  %v5774_v19 = vld [vmem:[%s12573_s1 + $0x3f8] sm:$0xf0]  ;;  %v5521_v24 = vor.u32 %v7889_v0, %v5518_v10 }
 0x1e5   : > { %4876 = vmatpush.bf16.msra.mxu2 %v7645_v46  ;;  %v7324_v46 = vld [vmem:[%s12573_s1 + $0x1008] sm:$0xf]  ;;  %v7709_v20 = vor.u32 %v8439_v59, %v7708_v58  ;;  %v7853_v27 = vld [vmem:[%s12573_s1 + $0xcc] sm:$0xf]  ;;  %v5374_v28 = vld [vmem:[%s12573_s1 + $0xd8] sm:$0xf0] }
 0x1e6   : > { %4889 = vmatpush.bf16.msra.mxu3 %v7773_v62  ;;  %v7469_v62 = vor.u32 %v8379_v37, %v7468_v35  ;;  %v7325_v26 = vor.u32 %v8343_v47, %v7324_v46  ;;  %v5502_v34 = vld [vmem:[%s12573_s1 + $0x1d8] sm:$0xf0]  ;;  %v7917_v45 = vld [vmem:[%s12573_s1 + $0x2cc] sm:$0xf]  ;;  %v5377_v38 = vor.u32 %v7853_v27, %v5374_v28  ;;  %v8490_v0 = vld [vmem:[%s12574_s2] sm:$0xf] }
 0x1e7   : > { %4851 = vmatpush.bf16.msra.mxu0 %v7373_v63  ;;  %v7857_v63 = vld [vmem:[%s12573_s1 + $0xec] sm:$0xf]  ;;  %v5630_v35 = vld [vmem:[%s12573_s1 + $0x2d8] sm:$0xf0]  ;;  %v4113_v1 = vperm.slane %v8490_v0, 2 }
 0x1e8   : > { %4864 = vmatpush.bf16.msra.mxu1 %v7501_v60  ;;  %v4624_v60 = vpop.f32.mrf.mxu2  ;;  %v5758_v37 = vld [vmem:[%s12573_s1 + $0x3d8] sm:$0xf0]  ;;  %v5633_v21 = vor.u32 %v7917_v45, %v5630_v35  ;;  %v7849_v40 = vld [vmem:[%s12573_s1 + $0xac] sm:$0xf] }
 0x1e9   : > { %4877 = vmatpush.bf16.msra.mxu2 %v7629_v61  ;;  %v5390_v61 = vld [vmem:[%s12573_s1 + $0xf8] sm:$0xf0]  ;;  %v7881_v43 = vld [vmem:[%s12573_s1 + $0x1ac] sm:$0xf] }
 0x1ea   : > { %4890 = vmatpush.bf16.msra.mxu3 %v7757_v8  ;;  %v5179_v8 = vsel %vm5177_vm0, %v5174_v49, 0.0  ;;  %v5393_v22 = vor.u32 %v7857_v63, %v5390_v61  ;;  %v5358_v41 = vld [vmem:[%s12573_s1 + $0xb8] sm:$0xf0]  ;;  %v7913_v48 = vld [vmem:[%s12573_s1 + $0x2ac] sm:$0xf] }
 0x1eb   : > { %4852 = vmatpush.bf16.msra.mxu0 %v7357_v25  ;;  %v11574_v14 = vadd.f32 %v5179_v8, %v5178_v4  ;;  %v5649_v25 = vor.u32 %v7921_v23, %v5646_v11  ;;  %v5486_v47 = vld [vmem:[%s12573_s1 + $0x1b8] sm:$0xf0]  ;;  %v7945_v53 = vld [vmem:[%s12573_s1 + $0x3ac] sm:$0xf] }
 0x1ec   : > { %4865 = vmatpush.bf16.msra.mxu1 %v7485_v42  ;;  %v7885_v42 = vld [vmem:[%s12573_s1 + $0x1cc] sm:$0xf]  ;;  %v5614_v49 = vld [vmem:[%s12573_s1 + $0x2b8] sm:$0xf0]  ;;  %v5489_v59 = vor.u32 %v7881_v43, %v5486_v47 }
 0x1ed   : > { %4878 = vmatpush.bf16.msra.mxu2 %v7613_v30  ;;  %v5777_v30 = vor.u32 %v7953_v18, %v5774_v19  ;;  %v5505_v39 = vor.u32 %v7885_v42, %v5502_v34  ;;  %v5742_v9 = vld [vmem:[%s12573_s1 + $0x3b8] sm:$0xf0]  ;;  %v7845_v58 = vld [vmem:[%s12573_s1 + $0x8c] sm:$0xf]  ;;  %v5617_v63 = vor.u32 %v7913_v48, %v5614_v49 }
 0x1ee   : > { %4891 = vmatpush.bf16.msra.mxu3 %v7741_v36  ;;  %v7949_v36 = vld [vmem:[%s12573_s1 + $0x3cc] sm:$0xf]  ;;  %v8489_v54 = vld [vmem:[#allocation1 + $0x1b] sm:$0xff]  ;;  %v5745_v4 = vor.u32 %v7945_v53, %v5742_v9 }
 0x1ef   : > { %4853 = vmatpush.bf16.msra.mxu0 %v7341_v44  ;;  %v8486_v44 = vld [vmem:[#allocation1] sm:$0xff]  ;;  %v5761_v46 = vor.u32 %v7949_v36, %v5758_v37  ;;  %v5342_v60 = vld [vmem:[%s12573_s1 + $0x98] sm:$0xf0]  ;;  %v7877_v61 = vld [vmem:[%s12573_s1 + $0x18c] sm:$0xf] }
 0x1f0   : > { %4866 = vmatpush.bf16.msra.mxu1 %v7469_v62  ;;  %v8487_v62 = vld [vmem:[#allocation1 + $0x12] sm:$0xff]  ;;  %v5470_v8 = vld [vmem:[%s12573_s1 + $0x198] sm:$0xf0]  ;;  %v7941_v23 = vld [vmem:[%s12573_s1 + $0x38c] sm:$0xf] }
 0x1f1   : > { %4879 = vmatpush.bf16.msra.mxu2 %v7597_v52  ;;  %v8488_v52 = vld [vmem:[#allocation1 + $0x9] sm:$0xff]  ;;  %v5598_v10 = vld [vmem:[%s12573_s1 + $0x298] sm:$0xf0]  ;;  %v5473_v18 = vor.u32 %v7877_v61, %v5470_v8 }
 0x1f2   : > { %4892 = vmatpush.bf16.msra.mxu3 %v7725_v56  ;;  %v5361_v56 = vor.u32 %v7849_v40, %v5358_v41  ;;  %v5726_v11 = vld [vmem:[%s12573_s1 + $0x398] sm:$0xf0]  ;;  %v7937_v45 = vld [vmem:[%s12573_s1 + $0x36c] sm:$0xf] }
 0x1f3   : > { %4854 = vmatpush.bf16.msra.mxu0 %v7325_v26  ;;  %v7909_v26 = vld [vmem:[%s12573_s1 + $0x28c] sm:$0xf]  ;;  %v5729_v28 = vor.u32 %v7941_v23, %v5726_v11  ;;  %v5454_v42 = vld [vmem:[%s12573_s1 + $0x178] sm:$0xf0] }
 0x1f4   : > { %4867 = vmatpush.bf16.msra.mxu1 %v7453_v15  ;;  %v5345_v15 = vor.u32 %v7845_v58, %v5342_v60  ;;  %v5601_v19 = vor.u32 %v7909_v26, %v5598_v10  ;;  %v4661_v27 = vpop.f32.mrf.mxu1  ;;  %v5582_v34 = vld [vmem:[%s12573_s1 + $0x278] sm:$0xf0]  ;;  %v7869_v41 = vld [vmem:[%s12573_s1 + $0x14c] sm:$0xf] }
 0x1f5   : > { %4880 = vmatpush.bf16.msra.mxu2 %v7581_v16  ;;  %v4648_v16 = vpop.f32.mrf.mxu0  ;;  %v5710_v35 = vld [vmem:[%s12573_s1 + $0x378] sm:$0xf0]  ;;  %v7901_v47 = vld [vmem:[%s12573_s1 + $0x24c] sm:$0xf] }
 0x1f6   : > { %4893 = vmatpush.bf16.msra.mxu3 %v7709_v20  ;;  %4855 = vmatmul.bf16.vlgmr.msra.gmra.mxu0 %v8486_v44  ;;  %v7841_v20 = vld [vmem:[%s12573_s1 + $0x6c] sm:$0xf]  ;;  %v5310_v40 = vld [vmem:[%s12573_s1 + $0x58] sm:$0xf0]  ;;  %v5713_v44 = vor.u32 %v7937_v45, %v5710_v35 }
 0x1f7   : > { %4899 = vmatpush.bf16.msrb.mxu0 %v5393_v22  ;;  %4868 = vmatmul.bf16.vlgmr.msra.gmra.mxu1 %v8488_v52  ;;  %v5326_v22 = vld [vmem:[%s12573_s1 + $0x78] sm:$0xf0]  ;;  %v7933_v52 = vld [vmem:[%s12573_s1 + $0x34c] sm:$0xf] }
 0x1f8   : > { %4912 = vmatpush.bf16.msrb.mxu1 %v5521_v24  ;;  %4881 = vmatmul.bf16.vlgmr.msra.gmra.mxu2 %v8487_v62  ;;  %v7873_v24 = vld [vmem:[%s12573_s1 + $0x16c] sm:$0xf]  ;;  %v5329_v37 = vor.u32 %v7841_v20, %v5326_v22  ;;  %v5566_v48 = vld [vmem:[%s12573_s1 + $0x258] sm:$0xf0] }
 0x1f9   : > { %4925 = vmatpush.bf16.msrb.mxu2 %v5649_v25  ;;  %4894 = vmatmul.bf16.vlgmr.msra.gmra.mxu3 %v8489_v54  ;;  %v4649_v25 = vadd.f32 %v4648_v16, %v4113_v1  ;;  %v5694_v53 = vld [vmem:[%s12573_s1 + $0x358] sm:$0xf0]  ;;  %v7865_v61 = vld [vmem:[%s12573_s1 + $0x12c] sm:$0xf] }
 0x1fa   : > { %4938 = vmatpush.bf16.msrb.mxu3 %v5777_v30  ;;  %v7905_v30 = vld [vmem:[%s12573_s1 + $0x26c] sm:$0xf]  ;;  %v5294_v60 = vld [vmem:[%s12573_s1 + $0x38] sm:$0xf0]  ;;  %v5697_v1 = vor.u32 %v7933_v52, %v5694_v53 }
 0x1fb   : > { %4900 = vmatpush.bf16.msrb.mxu0 %v5377_v38  ;;  %v4662_v36 = vadd.f32 %v4661_v27, %v4649_v25  ;;  %v5457_v38 = vor.u32 %v7873_v24, %v5454_v42  ;;  %v4674_v43 = vpop.f32.mrf.mxu2  ;;  %v7897_v8 = vld [vmem:[%s12573_s1 + $0x22c] sm:$0xf]  ;;  %v5550_v26 = vld [vmem:[%s12573_s1 + $0x238] sm:$0xf0] }
 0x1fc   : > { %4913 = vmatpush.bf16.msrb.mxu1 %v5505_v39  ;;  %v5585_v39 = vor.u32 %v7905_v30, %v5582_v34  ;;  %v4687_v62 = vpop.f32.mrf.mxu3  ;;  %v4663_v0 = vpop.f32.mrf.mxu1  ;;  %v7929_v10 = vld [vmem:[%s12573_s1 + $0x32c] sm:$0xf]  ;;  %v5678_v23 = vld [vmem:[%s12573_s1 + $0x338] sm:$0xf0] }
 0x1fd   : > { %4926 = vmatpush.bf16.msrb.mxu2 %v5633_v21  ;;  %v7837_v21 = vld [vmem:[%s12573_s1 + $0x4c] sm:$0xf]  ;;  %v4675_v49 = vadd.f32 %v4674_v43, %v4662_v36  ;;  %v5278_v16 = vld [vmem:[%s12573_s1 + $0x18] sm:$0xf0]  ;;  %v5681_v27 = vor.u32 %v7929_v10, %v5678_v23 }
 0x1fe   : > { %4939 = vmatpush.bf16.msrb.mxu3 %v5761_v46  ;;  %v5438_v46 = vld [vmem:[%s12573_s1 + $0x158] sm:$0xf0]  ;;  %v5313_v9 = vor.u32 %v7837_v21, %v5310_v40  ;;  %v7861_v20 = vld [vmem:[%s12573_s1 + $0x10c] sm:$0xf] }
 0x1ff   : > { %4901 = vmatpush.bf16.msrb.mxu0 %v5361_v56  ;;  %v11705_v54 = vadd.f32 %v4687_v62, %v4675_v49  ;;  %v4650_v56 = vpop.f32.mrf.mxu0  ;;  %v5441_v58 = vor.u32 %v7869_v41, %v5438_v46  ;;  %v5406_v22 = vld [vmem:[%s12573_s1 + $0x118] sm:$0xf0]  ;;  %v7893_v24 = vld [vmem:[%s12573_s1 + $0x20c] sm:$0xf] }
 0x200   : > { %4914 = vmatpush.bf16.msrb.mxu1 %v5489_v59  ;;  %v5569_v59 = vor.u32 %v7901_v47, %v5566_v48  ;;  %v7925_v42 = vld [vmem:[%s12573_s1 + $0x30c] sm:$0xf]  ;;  %v5662_v30 = vld [vmem:[%s12573_s1 + $0x318] sm:$0xf0]  ;;  %v5409_v40 = vor.u32 %v7861_v20, %v5406_v22 }
 0x201   : > { %4927 = vmatpush.bf16.msrb.mxu2 %v5617_v63  ;;  %v7833_v63 = vld [vmem:[%s12573_s1 + $0x2c] sm:$0xf]  ;;  %v5902_v35 = vld [vmem:[%s12573_s1 + $0x4f8] sm:$0xf0]  ;;  %v5665_v46 = vor.u32 %v7925_v42, %v5662_v30 }
 0x202   : > { %4940 = vmatpush.bf16.msrb.mxu3 %v5745_v4  ;;  %v5422_v4 = vld [vmem:[%s12573_s1 + $0x138] sm:$0xf0]  ;;  %v5297_v11 = vor.u32 %v7833_v63, %v5294_v60  ;;  %v7985_v45 = vld [vmem:[%s12573_s1 + $0x4ec] sm:$0xf] }
 0x203   : > { %4902 = vmatpush.bf16.msrb.mxu0 %v5345_v15  ;;  %v7829_v15 = vld [vmem:[%s12573_s1 + $0xc] sm:$0xf]  ;;  %v4676_v25 = vpop.f32.mrf.mxu2  ;;  %v6158_v21 = vld [vmem:[%s12573_s1 + $0x6f8] sm:$0xf0]  ;;  %v5905_v47 = vor.u32 %v7985_v45, %v5902_v35 }
 0x204   : > { %4915 = vmatpush.bf16.msrb.mxu1 %v5473_v18  ;;  %v5425_v18 = vor.u32 %v7865_v61, %v5422_v4  ;;  %v4689_v34 = vpop.f32.mrf.mxu3  ;;  %v8017_v36 = vld [vmem:[%s12573_s1 + $0x5ec] sm:$0xf]  ;;  %v5886_v52 = vld [vmem:[%s12573_s1 + $0x4d8] sm:$0xf0] }
 0x205   : > { %4928 = vmatpush.bf16.msrb.mxu2 %v5601_v19  ;;  %v5553_v19 = vor.u32 %v7897_v8, %v5550_v26  ;;  %v8081_v43 = vld [vmem:[%s12573_s1 + $0x7ec] sm:$0xf]  ;;  %v6014_v56 = vld [vmem:[%s12573_s1 + $0x5d8] sm:$0xf0] }
 0x206   : > { %4941 = vmatpush.bf16.msrb.mxu3 %v5729_v28  ;;  %v5534_v28 = vld [vmem:[%s12573_s1 + $0x218] sm:$0xf0]  ;;  %v7981_v62 = vld [vmem:[%s12573_s1 + $0x4cc] sm:$0xf] }
 0x207   : > { %4903 = vmatpush.bf16.msrb.mxu0 %v5329_v37  ;;  %v5281_v37 = vor.u32 %v7829_v15, %v5278_v16  ;;  %v5537_v41 = vor.u32 %v7893_v24, %v5534_v28  ;;  %v8013_v53 = vld [vmem:[%s12573_s1 + $0x5cc] sm:$0xf]  ;;  %v6270_v60 = vld [vmem:[%s12573_s1 + $0x7d8] sm:$0xf0]  ;;  %v5889_v61 = vor.u32 %v7981_v62, %v5886_v52 }
 0x208   : > { %4916 = vmatpush.bf16.msrb.mxu1 %v5457_v38  ;;  %v6030_v38 = vld [vmem:[%s12573_s1 + $0x5f8] sm:$0xf0]  ;;  %v8077_v63 = vld [vmem:[%s12573_s1 + $0x7cc] sm:$0xf]  ;;  %v6017_v0 = vor.u32 %v8013_v53, %v6014_v56 }
 0x209   : > { %4929 = vmatpush.bf16.msrb.mxu2 %v5585_v39  ;;  %v8049_v39 = vld [vmem:[%s12573_s1 + $0x6ec] sm:$0xf]  ;;  %v6033_v48 = vor.u32 %v8017_v36, %v6030_v38  ;;  %v5870_v8 = vld [vmem:[%s12573_s1 + $0x4b8] sm:$0xf0]  ;;  %v6273_v10 = vor.u32 %v8077_v63, %v6270_v60 }
 0x20a   : > { %4942 = vmatpush.bf16.msrb.mxu3 %v5713_v44  ;;  %v6286_v44 = vld [vmem:[%s12573_s1 + $0x7f8] sm:$0xf0]  ;;  %v6161_v49 = vor.u32 %v8049_v39, %v6158_v21  ;;  %v7977_v4 = vld [vmem:[%s12573_s1 + $0x4ac] sm:$0xf] }
 0x20b   : > { %4904 = vmatpush.bf16.msrb.mxu0 %v5313_v9  ;;  %v6289_v9 = vor.u32 %v8081_v43, %v6286_v44  ;;  %v8009_v26 = vld [vmem:[%s12573_s1 + $0x5ac] sm:$0xf]  ;;  %v5998_v23 = vld [vmem:[%s12573_s1 + $0x5b8] sm:$0xf0] }
 0x20c   : > { %4917 = vmatpush.bf16.msrb.mxu1 %v5441_v58  ;;  %v8045_v58 = vld [vmem:[%s12573_s1 + $0x6cc] sm:$0xf]  ;;  %v6126_v15 = vld [vmem:[%s12573_s1 + $0x6b8] sm:$0xf0]  ;;  %v6001_v20 = vor.u32 %v8009_v26, %v5998_v23 }
 0x20d   : > { %4930 = vmatpush.bf16.msrb.mxu2 %v5569_v59  ;;  %v6142_v59 = vld [vmem:[%s12573_s1 + $0x6d8] sm:$0xf0]  ;;  %v8073_v16 = vld [vmem:[%s12573_s1 + $0x7ac] sm:$0xf] }
 0x20e   : > { %4943 = vmatpush.bf16.msrb.mxu3 %v5697_v1  ;;  %v6145_v1 = vor.u32 %v8045_v58, %v6142_v59  ;;  %v7973_v22 = vld [vmem:[%s12573_s1 + $0x48c] sm:$0xf]  ;;  %v5854_v24 = vld [vmem:[%s12573_s1 + $0x498] sm:$0xf0] }
 0x20f   : > { %4905 = vmatpush.bf16.msrb.mxu0 %v5297_v11  ;;  %v8041_v11 = vld [vmem:[%s12573_s1 + $0x6ac] sm:$0xf]  ;;  %v6238_v42 = vld [vmem:[%s12573_s1 + $0x798] sm:$0xf0]  ;;  %v5857_v30 = vor.u32 %v7973_v22, %v5854_v24 }
 0x210   : > { %4918 = vmatpush.bf16.msrb.mxu1 %v5425_v18  ;;  %v6254_v18 = vld [vmem:[%s12573_s1 + $0x7b8] sm:$0xf0]  ;;  %v8037_v25 = vld [vmem:[%s12573_s1 + $0x68c] sm:$0xf] }
 0x211   : > { %4931 = vmatpush.bf16.msrb.mxu2 %v5553_v19  ;;  %v5873_v19 = vor.u32 %v7977_v4, %v5870_v8  ;;  %v8069_v28 = vld [vmem:[%s12573_s1 + $0x78c] sm:$0xf]  ;;  %v6094_v44 = vld [vmem:[%s12573_s1 + $0x678] sm:$0xf0] }
 0x212   : > { %4944 = vmatpush.bf16.msrb.mxu3 %v5681_v27  ;;  %v6110_v27 = vld [vmem:[%s12573_s1 + $0x698] sm:$0xf0]  ;;  %v7969_v36 = vld [vmem:[%s12573_s1 + $0x46c] sm:$0xf] }
 0x213   : > { %4906 = vmatpush.bf16.msrb.mxu0 %v5281_v37  ;;  %v4700_v34 = vpop.f32.mrf.mxu0  ;;  %v6113_v35 = vor.u32 %v8037_v25, %v6110_v27  ;;  %v5838_v37 = vld [vmem:[%s12573_s1 + $0x478] sm:$0xf0]  ;;  %v8001_v38 = vld [vmem:[%s12573_s1 + $0x56c] sm:$0xf] }
 0x214   : > { %4919 = vmatpush.bf16.msrb.mxu1 %v5409_v40  ;;  %v4701_v39 = vadd.f32 %v4700_v34, %v11705_v54  ;;  %v4713_v21 = vpop.f32.mrf.mxu1  ;;  %v6241_v40 = vor.u32 %v8069_v28, %v6238_v42  ;;  %v8033_v43 = vld [vmem:[%s12573_s1 + $0x66c] sm:$0xf]  ;;  %v6222_v54 = vld [vmem:[%s12573_s1 + $0x778] sm:$0xf0] }
 0x215   : > { %4932 = vmatpush.bf16.msrb.mxu2 %v5537_v41  ;;  %v5966_v41 = vld [vmem:[%s12573_s1 + $0x578] sm:$0xf0]  ;;  %v6097_v62 = vor.u32 %v8033_v43, %v6094_v44  ;;  %v7965_v52 = vld [vmem:[%s12573_s1 + $0x44c] sm:$0xf] }
 0x216   : > { %4945 = vmatpush.bf16.msrb.mxu3 %v5665_v46  ;;  %4907 = vmatmul.bf16.vlgmr.msrb.gmra.mxu0 %v8921_v51  ;;  %v8005_v51 = vld [vmem:[%s12573_s1 + $0x58c] sm:$0xf]  ;;  %v5822_v53 = vld [vmem:[%s12573_s1 + $0x458] sm:$0xf0] }
 0x217   : > { %4951 = vmatpush.bf16.msra.mxu0 %v5905_v47  ;;  %4920 = vmatmul.bf16.vlgmr.msrb.gmra.mxu1 %v8933_v57  ;;  %v5982_v57 = vld [vmem:[%s12573_s1 + $0x598] sm:$0xf0]  ;;  %v8065_v46 = vld [vmem:[%s12573_s1 + $0x76c] sm:$0xf]  ;;  %v4714_v47 = vadd.f32 %v4713_v21, %v4701_v39  ;;  %v5825_v8 = vor.u32 %v7965_v52, %v5822_v53 }
 0x218   : > { %4964 = vmatpush.bf16.msra.mxu1 %v6033_v48  ;;  %4933 = vmatmul.bf16.vlgmr.msrb.gmra.mxu2 %v8919_v50  ;;  %v6129_v50 = vor.u32 %v8041_v11, %v6126_v15  ;;  %v5985_v45 = vor.u32 %v8005_v51, %v5982_v57  ;;  %v5841_v48 = vor.u32 %v7969_v36, %v5838_v37  ;;  %v5950_v59 = vld [vmem:[%s12573_s1 + $0x558] sm:$0xf0]  ;;  %v8029_v63 = vld [vmem:[%s12573_s1 + $0x64c] sm:$0xf] }
 0x219   : > { %4977 = vmatpush.bf16.msra.mxu2 %v6161_v49  ;;  %4946 = vmatmul.bf16.vlgmr.msrb.gmra.mxu3 %v8931_v55  ;;  %v6257_v55 = vor.u32 %v8073_v16, %v6254_v18  ;;  %v5969_v49 = vor.u32 %v8001_v38, %v5966_v41  ;;  %v6225_v58 = vor.u32 %v8065_v46, %v6222_v54  ;;  %v6078_v60 = vld [vmem:[%s12573_s1 + $0x658] sm:$0xf0]  ;;  %v7961_v15 = vld [vmem:[%s12573_s1 + $0x42c] sm:$0xf] }
 0x21a   : > { %4990 = vmatpush.bf16.msra.mxu3 %v6289_v9  ;;  %v7997_v9 = vld [vmem:[%s12573_s1 + $0x54c] sm:$0xf]  ;;  %v6206_v4 = vld [vmem:[%s12573_s1 + $0x758] sm:$0xf0]  ;;  %v6081_v11 = vor.u32 %v8029_v63, %v6078_v60 }
 0x21b   : > { %4952 = vmatpush.bf16.msra.mxu0 %v5889_v61  ;;  %v4726_v56 = vpop.f32.mrf.mxu2  ;;  %v5953_v23 = vor.u32 %v7997_v9, %v5950_v59  ;;  %v5806_v16 = vld [vmem:[%s12573_s1 + $0x438] sm:$0xf0]  ;;  %v7993_v18 = vld [vmem:[%s12573_s1 + $0x52c] sm:$0xf] }
 0x21c   : > { %4965 = vmatpush.bf16.msra.mxu1 %v6017_v0  ;;  %v4727_v61 = vadd.f32 %v4726_v56, %v4714_v47  ;;  %v4739_v0 = vpop.f32.mrf.mxu3  ;;  %v8025_v22 = vld [vmem:[%s12573_s1 + $0x62c] sm:$0xf]  ;;  %v6062_v24 = vld [vmem:[%s12573_s1 + $0x638] sm:$0xf0]  ;;  %v5809_v57 = vor.u32 %v7961_v15, %v5806_v16 }
 0x21d   : > { %4978 = vmatpush.bf16.msra.mxu2 %v6145_v1  ;;  %v8061_v1 = vld [vmem:[%s12573_s1 + $0x74c] sm:$0xf]  ;;  %v5790_v27 = vld [vmem:[%s12573_s1 + $0x418] sm:$0xf0]  ;;  %v6065_v42 = vor.u32 %v8025_v22, %v6062_v24 }
 0x21e   : > { %4991 = vmatpush.bf16.msra.mxu3 %v6273_v10  ;;  %v11904_v26 = vadd.f32 %v4739_v0, %v4727_v61  ;;  %v4702_v10 = vpop.f32.mrf.mxu0  ;;  %v8057_v51 = vld [vmem:[%s12573_s1 + $0x72c] sm:$0xf]  ;;  %v5918_v34 = vld [vmem:[%s12573_s1 + $0x518] sm:$0xf0] }
 0x21f   : > { %4953 = vmatpush.bf16.msra.mxu0 %v5873_v19  ;;  %v4715_v19 = vpop.f32.mrf.mxu1  ;;  %v7957_v25 = vld [vmem:[%s12573_s1 + $0x40c] sm:$0xf]  ;;  %v6046_v37 = vld [vmem:[%s12573_s1 + $0x618] sm:$0xf0] }
 0x220   : > { %4966 = vmatpush.bf16.msra.mxu1 %v6001_v20  ;;  %v6209_v20 = vor.u32 %v8061_v1, %v6206_v4  ;;  %v8053_v38 = vld [vmem:[%s12573_s1 + $0x70c] sm:$0xf]  ;;  %v6174_v39 = vld [vmem:[%s12573_s1 + $0x718] sm:$0xf0]  ;;  %v5793_v44 = vor.u32 %v7957_v25, %v5790_v27 }
 0x221   : > { %4979 = vmatpush.bf16.msra.mxu2 %v6129_v50  ;;  %v5934_v50 = vld [vmem:[%s12573_s1 + $0x538] sm:$0xf0]  ;;  %v8145_v43 = vld [vmem:[%s12573_s1 + $0x9ec] sm:$0xf]  ;;  %v6177_v53 = vor.u32 %v8053_v38, %v6174_v39 }
 0x222   : > { %4992 = vmatpush.bf16.msra.mxu3 %v6257_v55  ;;  %v6190_v55 = vld [vmem:[%s12573_s1 + $0x738] sm:$0xf0]  ;;  %v5937_v28 = vor.u32 %v7993_v18, %v5934_v50  ;;  %v8177_v54 = vld [vmem:[%s12573_s1 + $0xaec] sm:$0xf] }
 0x223   : > { %4954 = vmatpush.bf16.msra.mxu0 %v5857_v30  ;;  %v7989_v30 = vld [vmem:[%s12573_s1 + $0x50c] sm:$0xf]  ;;  %v6193_v36 = vor.u32 %v8057_v51, %v6190_v55  ;;  %v6414_v41 = vld [vmem:[%s12573_s1 + $0x8f8] sm:$0xf0] }
 0x224   : > { %4967 = vmatpush.bf16.msra.mxu1 %v5985_v45  ;;  %v8021_v45 = vld [vmem:[%s12573_s1 + $0x60c] sm:$0xf]  ;;  %v4741_v21 = vpop.f32.mrf.mxu3  ;;  %v6542_v46 = vld [vmem:[%s12573_s1 + $0x9f8] sm:$0xf0] }
 0x225   : > { %4980 = vmatpush.bf16.msra.mxu2 %v6113_v35  ;;  %v4728_v35 = vpop.f32.mrf.mxu2  ;;  %v6670_v47 = vld [vmem:[%s12573_s1 + $0xaf8] sm:$0xf0]  ;;  %v6545_v56 = vor.u32 %v8145_v43, %v6542_v46  ;;  %v8109_v59 = vld [vmem:[%s12573_s1 + $0x8cc] sm:$0xf] }
 0x226   : > { %4993 = vmatpush.bf16.msra.mxu3 %v6241_v40  ;;  %v8113_v40 = vld [vmem:[%s12573_s1 + $0x8ec] sm:$0xf]  ;;  %v6798_v52 = vld [vmem:[%s12573_s1 + $0xbf8] sm:$0xf0] }
 0x227   : > { %4955 = vmatpush.bf16.msra.mxu0 %v5841_v48  ;;  %v5921_v48 = vor.u32 %v7989_v30, %v5918_v34  ;;  %v6417_v9 = vor.u32 %v8113_v40, %v6414_v41  ;;  %v6398_v63 = vld [vmem:[%s12573_s1 + $0x8d8] sm:$0xf0]  ;;  %v8141_v60 = vld [vmem:[%s12573_s1 + $0x9cc] sm:$0xf] }
 0x228   : > { %4968 = vmatpush.bf16.msra.mxu1 %v5969_v49  ;;  %v6049_v49 = vor.u32 %v8021_v45, %v6046_v37  ;;  %v6526_v0 = vld [vmem:[%s12573_s1 + $0x9d8] sm:$0xf0]  ;;  %v8173_v1 = vld [vmem:[%s12573_s1 + $0xacc] sm:$0xf] }
 0x229   : > { %4981 = vmatpush.bf16.msra.mxu2 %v6097_v62  ;;  %v8209_v62 = vld [vmem:[%s12573_s1 + $0xbec] sm:$0xf]  ;;  %v6654_v4 = vld [vmem:[%s12573_s1 + $0xad8] sm:$0xf0] }
 0x22a   : > { %4994 = vmatpush.bf16.msra.mxu3 %v6225_v58  ;;  %v6673_v58 = vor.u32 %v8177_v54, %v6670_v47  ;;  %v6801_v61 = vor.u32 %v8209_v62, %v6798_v52  ;;  %v6782_v10 = vld [vmem:[%s12573_s1 + $0xbd8] sm:$0xf0]  ;;  %v6657_v15 = vor.u32 %v8173_v1, %v6654_v4  ;;  %v8105_v16 = vld [vmem:[%s12573_s1 + $0x8ac] sm:$0xf] }
 0x22b   : > { %4956 = vmatpush.bf16.msra.mxu0 %v5825_v8  ;;  %v8205_v8 = vld [vmem:[%s12573_s1 + $0xbcc] sm:$0xf]  ;;  %v6382_v18 = vld [vmem:[%s12573_s1 + $0x8b8] sm:$0xf0] }
 0x22c   : > { %4969 = vmatpush.bf16.msra.mxu1 %v5953_v23  ;;  %v6401_v23 = vor.u32 %v8109_v59, %v6398_v63  ;;  %v8137_v19 = vld [vmem:[%s12573_s1 + $0x9ac] sm:$0xf]  ;;  %v6510_v50 = vld [vmem:[%s12573_s1 + $0x9b8] sm:$0xf0]  ;;  %v6385_v55 = vor.u32 %v8105_v16, %v6382_v18 }
 0x22d   : > { %4982 = vmatpush.bf16.msra.mxu2 %v6081_v11  ;;  %v6529_v11 = vor.u32 %v8141_v60, %v6526_v0  ;;  %v8169_v22 = vld [vmem:[%s12573_s1 + $0xaac] sm:$0xf]  ;;  %v6638_v24 = vld [vmem:[%s12573_s1 + $0xab8] sm:$0xf0] }
 0x22e   : > { %4995 = vmatpush.bf16.msra.mxu3 %v6209_v20  ;;  %v6785_v20 = vor.u32 %v8205_v8, %v6782_v10  ;;  %v8201_v51 = vld [vmem:[%s12573_s1 + $0xbac] sm:$0xf]  ;;  %v6641_v25 = vor.u32 %v8169_v22, %v6638_v24  ;;  %v6622_v30 = vld [vmem:[%s12573_s1 + $0xa98] sm:$0xf0] }
 0x22f   : > { %4957 = vmatpush.bf16.msra.mxu0 %v5809_v57  ;;  %v6513_v57 = vor.u32 %v8137_v19, %v6510_v50  ;;  %v8101_v27 = vld [vmem:[%s12573_s1 + $0x88c] sm:$0xf]  ;;  %v6750_v35 = vld [vmem:[%s12573_s1 + $0xb98] sm:$0xf0] }
 0x230   : > { %4970 = vmatpush.bf16.msra.mxu1 %v5937_v28  ;;  %v6366_v28 = vld [vmem:[%s12573_s1 + $0x898] sm:$0xf0]  ;;  %v8197_v45 = vld [vmem:[%s12573_s1 + $0xb8c] sm:$0xf] }
 0x231   : > { %4983 = vmatpush.bf16.msra.mxu2 %v6065_v42  ;;  %v8165_v42 = vld [vmem:[%s12573_s1 + $0xa8c] sm:$0xf]  ;;  %v6369_v37 = vor.u32 %v8101_v27, %v6366_v28  ;;  %v6350_v41 = vld [vmem:[%s12573_s1 + $0x878] sm:$0xf0] }
 0x232   : > { %4996 = vmatpush.bf16.msra.mxu3 %v6193_v36  ;;  %v6625_v21 = vor.u32 %v8165_v42, %v6622_v30  ;;  %v8097_v40 = vld [vmem:[%s12573_s1 + $0x86c] sm:$0xf]  ;;  %v6478_v46 = vld [vmem:[%s12573_s1 + $0x978] sm:$0xf0] }
 0x233   : > { %4958 = vmatpush.bf16.msra.mxu0 %v5793_v44  ;;  %v4752_v34 = vpop.f32.mrf.mxu0  ;;  %v8129_v43 = vld [vmem:[%s12573_s1 + $0x96c] sm:$0xf]  ;;  %v6606_v47 = vld [vmem:[%s12573_s1 + $0xa78] sm:$0xf0]  ;;  %v6353_v62 = vor.u32 %v8097_v40, %v6350_v41 }
 0x234   : > { %4971 = vmatpush.bf16.msra.mxu1 %v5921_v48  ;;  %v4753_v36 = vadd.f32 %v4752_v34, %v11904_v26  ;;  %v4765_v38 = vpop.f32.mrf.mxu1  ;;  %v6753_v26 = vor.u32 %v8197_v45, %v6750_v35  ;;  %v8161_v54 = vld [vmem:[%s12573_s1 + $0xa6c] sm:$0xf]  ;;  %v6481_v52 = vor.u32 %v8129_v43, %v6478_v46  ;;  %v6462_v60 = vld [vmem:[%s12573_s1 + $0x958] sm:$0xf0] }
 0x235   : > { %4984 = vmatpush.bf16.msra.mxu2 %v6049_v49  ;;  %v8193_v48 = vld [vmem:[%s12573_s1 + $0xb6c] sm:$0xf]  ;;  %v6734_v49 = vld [vmem:[%s12573_s1 + $0xb78] sm:$0xf0] }
 0x236   : > { %4997 = vmatpush.bf16.msra.mxu3 %v6177_v53  ;;  %4959 = vmatmul.bf16.vlgmr.msra.gmra.mxu0 %v8959_v5  ;;  %v8133_v5 = vld [vmem:[%s12573_s1 + $0x98c] sm:$0xf]  ;;  %v4766_v44 = vadd.f32 %v4765_v38, %v4753_v36  ;;  %v6609_v53 = vor.u32 %v8161_v54, %v6606_v47  ;;  %v6737_v59 = vor.u32 %v8193_v48, %v6734_v49  ;;  %v6590_v0 = vld [vmem:[%s12573_s1 + $0xa58] sm:$0xf0] }
 0x237   : > { %5003 = vmatpush.bf16.msrb.mxu0 %v6417_v9  ;;  %4972 = vmatmul.bf16.vlgmr.msra.gmra.mxu1 %v8963_v7  ;;  %v6494_v7 = vld [vmem:[%s12573_s1 + $0x998] sm:$0xf0]  ;;  %v8093_v9 = vld [vmem:[%s12573_s1 + $0x84c] sm:$0xf] }
 0x238   : > { %5016 = vmatpush.bf16.msrb.mxu1 %v6545_v56  ;;  %4985 = vmatmul.bf16.vlgmr.msra.gmra.mxu2 %v8956_v3  ;;  %v6766_v3 = vld [vmem:[%s12573_s1 + $0xbb8] sm:$0xf0]  ;;  %v6497_v39 = vor.u32 %v8133_v5, %v6494_v7  ;;  %v8189_v8 = vld [vmem:[%s12573_s1 + $0xb4c] sm:$0xf] }
 0x239   : > { %5029 = vmatpush.bf16.msrb.mxu2 %v6673_v58  ;;  %4998 = vmatmul.bf16.vlgmr.msra.gmra.mxu3 %v8961_v6  ;;  %v6769_v6 = vor.u32 %v8201_v51, %v6766_v3  ;;  %v6334_v56 = vld [vmem:[%s12573_s1 + $0x858] sm:$0xf0]  ;;  %v8125_v58 = vld [vmem:[%s12573_s1 + $0x94c] sm:$0xf] }
 0x23a   : > { %5042 = vmatpush.bf16.msrb.mxu3 %v6801_v61  ;;  %v8157_v61 = vld [vmem:[%s12573_s1 + $0xa4c] sm:$0xf]  ;;  %v6718_v10 = vld [vmem:[%s12573_s1 + $0xb58] sm:$0xf0]  ;;  %v6465_v18 = vor.u32 %v8125_v58, %v6462_v60 }
 0x23b   : > { %5004 = vmatpush.bf16.msrb.mxu0 %v6401_v23  ;;  %v4778_v63 = vpop.f32.mrf.mxu2  ;;  %v4754_v23 = vpop.f32.mrf.mxu0  ;;  %v6593_v19 = vor.u32 %v8157_v61, %v6590_v0  ;;  %v6318_v50 = vld [vmem:[%s12573_s1 + $0x838] sm:$0xf0]  ;;  %v8121_v22 = vld [vmem:[%s12573_s1 + $0x92c] sm:$0xf]  ;;  %v6721_v24 = vor.u32 %v8189_v8, %v6718_v10 }
 0x23c   : > { %5017 = vmatpush.bf16.msrb.mxu1 %v6529_v11  ;;  %v4779_v1 = vadd.f32 %v4778_v63, %v4766_v44  ;;  %v4791_v4 = vpop.f32.mrf.mxu3  ;;  %v6337_v11 = vor.u32 %v8093_v9, %v6334_v56  ;;  %v6446_v51 = vld [vmem:[%s12573_s1 + $0x938] sm:$0xf0]  ;;  %v8153_v3 = vld [vmem:[%s12573_s1 + $0xa2c] sm:$0xf] }
 0x23d   : > { %5030 = vmatpush.bf16.msrb.mxu2 %v6657_v15  ;;  %v4767_v15 = vpop.f32.mrf.mxu1  ;;  %v8085_v28 = vld [vmem:[%s12573_s1 + $0x80c] sm:$0xf]  ;;  %v6302_v5 = vld [vmem:[%s12573_s1 + $0x818] sm:$0xf0] }
 0x23e   : > { %5043 = vmatpush.bf16.msrb.mxu3 %v6785_v20  ;;  %v12103_v16 = vadd.f32 %v4791_v4, %v4779_v1  ;;  %v8089_v20 = vld [vmem:[%s12573_s1 + $0x82c] sm:$0xf]  ;;  %v6430_v30 = vld [vmem:[%s12573_s1 + $0x918] sm:$0xf0]  ;;  %v6305_v43 = vor.u32 %v8085_v28, %v6302_v5 }
 0x23f   : > { %5005 = vmatpush.bf16.msrb.mxu0 %v6385_v55  ;;  %v6574_v55 = vld [vmem:[%s12573_s1 + $0xa38] sm:$0xf0]  ;;  %v6321_v27 = vor.u32 %v8089_v20, %v6318_v50  ;;  %v8117_v42 = vld [vmem:[%s12573_s1 + $0x90c] sm:$0xf] }
 0x240   : > { %5018 = vmatpush.bf16.msrb.mxu1 %v6513_v57  ;;  %v8185_v57 = vld [vmem:[%s12573_s1 + $0xb2c] sm:$0xf]  ;;  %v6577_v7 = vor.u32 %v8153_v3, %v6574_v55  ;;  %v6558_v35 = vld [vmem:[%s12573_s1 + $0xa18] sm:$0xf0]  ;;  %v6433_v54 = vor.u32 %v8117_v42, %v6430_v30 }
 0x241   : > { %5031 = vmatpush.bf16.msrb.mxu2 %v6641_v25  ;;  %v6702_v25 = vld [vmem:[%s12573_s1 + $0xb38] sm:$0xf0]  ;;  %v8149_v34 = vld [vmem:[%s12573_s1 + $0xa0c] sm:$0xf] }
 0x242   : > { %5044 = vmatpush.bf16.msrb.mxu3 %v6769_v6  ;;  %v6449_v6 = vor.u32 %v8121_v22, %v6446_v51  ;;  %v6705_v45 = vor.u32 %v8185_v57, %v6702_v25  ;;  %v8181_v36 = vld [vmem:[%s12573_s1 + $0xb0c] sm:$0xf]  ;;  %v7182_v46 = vld [vmem:[%s12573_s1 + $0xef8] sm:$0xf0]  ;;  %v6561_v47 = vor.u32 %v8149_v34, %v6558_v35 }
 0x243   : > { %5006 = vmatpush.bf16.msrb.mxu0 %v6369_v37  ;;  %v6686_v37 = vld [vmem:[%s12573_s1 + $0xb18] sm:$0xf0]  ;;  %v4780_v38 = vpop.f32.mrf.mxu2  ;;  %v8273_v40 = vld [vmem:[%s12573_s1 + $0xdec] sm:$0xf] }
 0x244   : > { %5019 = vmatpush.bf16.msrb.mxu1 %v6497_v39  ;;  %v8241_v39 = vld [vmem:[%s12573_s1 + $0xcec] sm:$0xf]  ;;  %v4793_v41 = vpop.f32.mrf.mxu3  ;;  %v7310_v49 = vld [vmem:[%s12573_s1 + $0xff8] sm:$0xf0] }
 0x245   : > { %5032 = vmatpush.bf16.msrb.mxu2 %v6625_v21  ;;  %v6926_v21 = vld [vmem:[%s12573_s1 + $0xcf8] sm:$0xf0]  ;;  %v8305_v44 = vld [vmem:[%s12573_s1 + $0xeec] sm:$0xf] }
 0x246   : > { %5045 = vmatpush.bf16.msrb.mxu3 %v6753_v26  ;;  %v7054_v26 = vld [vmem:[%s12573_s1 + $0xdf8] sm:$0xf0]  ;;  %v8337_v48 = vld [vmem:[%s12573_s1 + $0xfec] sm:$0xf]  ;;  %v7185_v9 = vor.u32 %v8305_v44, %v7182_v46 }
 0x247   : > { %5007 = vmatpush.bf16.msrb.mxu0 %v6353_v62  ;;  %v6689_v62 = vor.u32 %v8181_v36, %v6686_v37  ;;  %v8237_v56 = vld [vmem:[%s12573_s1 + $0xccc] sm:$0xf]  ;;  %v6910_v58 = vld [vmem:[%s12573_s1 + $0xcd8] sm:$0xf0]  ;;  %v7313_v63 = vor.u32 %v8337_v48, %v7310_v49 }
 0x248   : > { %5020 = vmatpush.bf16.msrb.mxu1 %v6481_v52  ;;  %v6929_v52 = vor.u32 %v8241_v39, %v6926_v21  ;;  %v7038_v60 = vld [vmem:[%s12573_s1 + $0xdd8] sm:$0xf0]  ;;  %v8301_v61 = vld [vmem:[%s12573_s1 + $0xecc] sm:$0xf]  ;;  %v6913_v8 = vor.u32 %v8237_v56, %v6910_v58 }
 0x249   : > { %5033 = vmatpush.bf16.msrb.mxu2 %v6609_v53  ;;  %v7057_v53 = vor.u32 %v8273_v40, %v7054_v26  ;;  %v7166_v0 = vld [vmem:[%s12573_s1 + $0xed8] sm:$0xf0]  ;;  %v8333_v1 = vld [vmem:[%s12573_s1 + $0xfcc] sm:$0xf] }
 0x24a   : > { %5046 = vmatpush.bf16.msrb.mxu3 %v6737_v59  ;;  %v8269_v59 = vld [vmem:[%s12573_s1 + $0xdcc] sm:$0xf]  ;;  %v7294_v4 = vld [vmem:[%s12573_s1 + $0xfd8] sm:$0xf0]  ;;  %v7169_v23 = vor.u32 %v8301_v61, %v7166_v0 }
 0x24b   : > { %5008 = vmatpush.bf16.msrb.mxu0 %v6337_v11  ;;  %v7041_v10 = vor.u32 %v8269_v59, %v7038_v60  ;;  %v8233_v11 = vld [vmem:[%s12573_s1 + $0xcac] sm:$0xf]  ;;  %v6894_v15 = vld [vmem:[%s12573_s1 + $0xcb8] sm:$0xf0] }
 0x24c   : > { %5021 = vmatpush.bf16.msrb.mxu1 %v6465_v18  ;;  %v8265_v18 = vld [vmem:[%s12573_s1 + $0xdac] sm:$0xf]  ;;  %v7022_v20 = vld [vmem:[%s12573_s1 + $0xdb8] sm:$0xf0]  ;;  %v6897_v51 = vor.u32 %v8233_v11, %v6894_v15 }
 0x24d   : > { %5034 = vmatpush.bf16.msrb.mxu2 %v6593_v19  ;;  %v7297_v19 = vor.u32 %v8333_v1, %v7294_v4  ;;  %v8297_v50 = vld [vmem:[%s12573_s1 + $0xeac] sm:$0xf]  ;;  %v7150_v22 = vld [vmem:[%s12573_s1 + $0xeb8] sm:$0xf0]  ;;  %v7025_v3 = vor.u32 %v8265_v18, %v7022_v20 }
 0x24e   : > { %5047 = vmatpush.bf16.msrb.mxu3 %v6721_v24  ;;  %v7278_v24 = vld [vmem:[%s12573_s1 + $0xfb8] sm:$0xf0]  ;;  %v7153_v55 = vor.u32 %v8297_v50, %v7150_v22  ;;  %v8261_v57 = vld [vmem:[%s12573_s1 + $0xd8c] sm:$0xf] }
 0x24f   : > { %5009 = vmatpush.bf16.msrb.mxu0 %v6321_v27  ;;  %v7006_v25 = vld [vmem:[%s12573_s1 + $0xd98] sm:$0xf0]  ;;  %v8293_v27 = vld [vmem:[%s12573_s1 + $0xe8c] sm:$0xf] }
 0x250   : > { %5022 = vmatpush.bf16.msrb.mxu1 %v6449_v6  ;;  %v7134_v28 = vld [vmem:[%s12573_s1 + $0xe98] sm:$0xf0]  ;;  %v8325_v6 = vld [vmem:[%s12573_s1 + $0xf8c] sm:$0xf] }
 0x251   : > { %5035 = vmatpush.bf16.msrb.mxu2 %v6577_v7  ;;  %v7262_v7 = vld [vmem:[%s12573_s1 + $0xf98] sm:$0xf0]  ;;  %v7137_v35 = vor.u32 %v8293_v27, %v7134_v28  ;;  %v8225_v36 = vld [vmem:[%s12573_s1 + $0xc6c] sm:$0xf] }
 0x252   : > { %5048 = vmatpush.bf16.msrb.mxu3 %v6705_v45  ;;  %v7009_v45 = vor.u32 %v8261_v57, %v7006_v25  ;;  %v6862_v37 = vld [vmem:[%s12573_s1 + $0xc78] sm:$0xf0]  ;;  %v8257_v38 = vld [vmem:[%s12573_s1 + $0xd6c] sm:$0xf] }
 0x253   : > { %5010 = vmatpush.bf16.msrb.mxu0 %v6305_v43  ;;  %v4804_v5 = vpop.f32.mrf.mxu0  ;;  %v6990_v21 = vld [vmem:[%s12573_s1 + $0xd78] sm:$0xf0]  ;;  %v8289_v40 = vld [vmem:[%s12573_s1 + $0xe6c] sm:$0xf]  ;;  %v6865_v44 = vor.u32 %v8225_v36, %v6862_v37 }
 0x254   : > { %5023 = vmatpush.bf16.msrb.mxu1 %v6433_v54  ;;  %v4805_v42 = vadd.f32 %v4804_v5, %v12103_v16  ;;  %v4817_v34 = vpop.f32.mrf.mxu1  ;;  %v7265_v16 = vor.u32 %v8325_v6, %v7262_v7  ;;  %v7118_v41 = vld [vmem:[%s12573_s1 + $0xe78] sm:$0xf0]  ;;  %v8321_v43 = vld [vmem:[%s12573_s1 + $0xf6c] sm:$0xf]  ;;  %v6993_v46 = vor.u32 %v8257_v38, %v6990_v21 }
 0x255   : > { %5036 = vmatpush.bf16.msrb.mxu2 %v6561_v47  ;;  %v7246_v26 = vld [vmem:[%s12573_s1 + $0xf78] sm:$0xf0]  ;;  %v7121_v54 = vor.u32 %v8289_v40, %v7118_v41  ;;  %v8221_v47 = vld [vmem:[%s12573_s1 + $0xc4c] sm:$0xf] }
 0x256   : > { %5049 = vmatpush.bf16.msrb.mxu3 %v6689_v62  ;;  %5011 = vmatmul.bf16.vlgmr.msrb.gmra.mxu0 %v9184_v2  ;;  %v8329_v2 = vld [vmem:[%s12573_s1 + $0xfac] sm:$0xf]  ;;  %v4818_v39 = vadd.f32 %v4817_v34, %v4805_v42  ;;  %v6846_v48 = vld [vmem:[%s12573_s1 + $0xc58] sm:$0xf0]  ;;  %v7249_v62 = vor.u32 %v8321_v43, %v7246_v26 }
 0x257   : > { %5055 = vmatpush.bf16.msra.mxu0 %v6929_v52  ;;  %5024 = vmatmul.bf16.vlgmr.msrb.gmra.mxu1 %v9198_v13  ;;  %v6878_v13 = vld [vmem:[%s12573_s1 + $0xc98] sm:$0xf0]  ;;  %v8253_v49 = vld [vmem:[%s12573_s1 + $0xd4c] sm:$0xf]  ;;  %v6849_v0 = vor.u32 %v8221_v47, %v6846_v48 }
 0x258   : > { %5068 = vmatpush.bf16.msra.mxu1 %v7057_v53  ;;  %5037 = vmatmul.bf16.vlgmr.msrb.gmra.mxu2 %v9196_v12  ;;  %v8229_v12 = vld [vmem:[%s12573_s1 + $0xc8c] sm:$0xf]  ;;  %v6974_v53 = vld [vmem:[%s12573_s1 + $0xd58] sm:$0xf0] }
 0x259   : > { %5081 = vmatpush.bf16.msra.mxu2 %v7185_v9  ;;  %5050 = vmatmul.bf16.vlgmr.msrb.gmra.mxu3 %v9209_v17  ;;  %v7281_v17 = vor.u32 %v8329_v2, %v7278_v24  ;;  %v6881_v30 = vor.u32 %v8229_v12, %v6878_v13  ;;  %v8285_v9 = vld [vmem:[%s12573_s1 + $0xe4c] sm:$0xf]  ;;  %v7102_v56 = vld [vmem:[%s12573_s1 + $0xe58] sm:$0xf0] }
 0x25a   : > { %5094 = vmatpush.bf16.msra.mxu3 %v7313_v63  ;;  %v8317_v63 = vld [vmem:[%s12573_s1 + $0xf4c] sm:$0xf]  ;;  %v7230_v60 = vld [vmem:[%s12573_s1 + $0xf58] sm:$0xf0] }
 0x25b   : > { %5056 = vmatpush.bf16.msra.mxu0 %v6913_v8  ;;  %v4830_v52 = vpop.f32.mrf.mxu2  ;;  %v4806_v61 = vpop.f32.mrf.mxu0  ;;  %v6977_v8 = vor.u32 %v8253_v49, %v6974_v53  ;;  %v6830_v11 = vld [vmem:[%s12573_s1 + $0xc38] sm:$0xf0]  ;;  %v8249_v15 = vld [vmem:[%s12573_s1 + $0xd2c] sm:$0xf]  ;;  %v7233_v18 = vor.u32 %v8317_v63, %v7230_v60 }
 0x25c   : > { %5069 = vmatpush.bf16.msra.mxu1 %v7041_v10  ;;  %v4831_v58 = vadd.f32 %v4830_v52, %v4818_v39  ;;  %v4843_v59 = vpop.f32.mrf.mxu3  ;;  %v4819_v1 = vpop.f32.mrf.mxu1  ;;  %v7105_v10 = vor.u32 %v8285_v9, %v7102_v56  ;;  %v8281_v20 = vld [vmem:[%s12573_s1 + $0xe2c] sm:$0xf]  ;;  %v7086_v50 = vld [vmem:[%s12573_s1 + $0xe38] sm:$0xf0] }
 0x25d   : > { %5082 = vmatpush.bf16.msra.mxu2 %v7169_v23  ;;  %v8217_v23 = vld [vmem:[%s12573_s1 + $0xc2c] sm:$0xf]  ;;  %v7214_v2 = vld [vmem:[%s12573_s1 + $0xf38] sm:$0xf0]  ;;  %v7089_v12 = vor.u32 %v8281_v20, %v7086_v50 }
 0x25e   : > { %5095 = vmatpush.bf16.msra.mxu3 %v7297_v19  ;;  %v12302_v4 = vadd.f32 %v4843_v59, %v4831_v58  ;;  %v6958_v19 = vld [vmem:[%s12573_s1 + $0xd38] sm:$0xf0]  ;;  %v8313_v22 = vld [vmem:[%s12573_s1 + $0xf2c] sm:$0xf]  ;;  %v6833_v24 = vor.u32 %v8217_v23, %v6830_v11 }
 0x25f   : > { %5057 = vmatpush.bf16.msra.mxu0 %v6897_v51  ;;  %v8213_v51 = vld [vmem:[%s12573_s1 + $0xc0c] sm:$0xf]  ;;  %v6942_v57 = vld [vmem:[%s12573_s1 + $0xd18] sm:$0xf0]  ;;  %v7217_v25 = vor.u32 %v8313_v22, %v7214_v2 }
 0x260   : > { %5070 = vmatpush.bf16.msra.mxu1 %v7025_v3  ;;  %v6814_v3 = vld [vmem:[%s12573_s1 + $0xc18] sm:$0xf0]  ;;  %v8245_v13 = vld [vmem:[%s12573_s1 + $0xd0c] sm:$0xf] }
 0x261   : > { %5083 = vmatpush.bf16.msra.mxu2 %v7153_v55  ;;  %v6961_v55 = vor.u32 %v8249_v15, %v6958_v19  ;;  %v7070_v27 = vld [vmem:[%s12573_s1 + $0xe18] sm:$0xf0]  ;;  %v8309_v28 = vld [vmem:[%s12573_s1 + $0xf0c] sm:$0xf]  ;;  %v6945_v38 = vor.u32 %v8245_v13, %v6942_v57 }
 0x262   : > { %5096 = vmatpush.bf16.msra.mxu3 %v7281_v17  ;;  %v8277_v17 = vld [vmem:[%s12573_s1 + $0xe0c] sm:$0xf]  ;;  %v7198_v5 = vld [vmem:[%s12573_s1 + $0xf18] sm:$0xf0] }
 0x263   : > { %5058 = vmatpush.bf16.msra.mxu0 %v6881_v30  ;;  %v4832_v6 = vpop.f32.mrf.mxu2  ;;  %v8369_v7 = vld [vmem:[%s12573_s1 + $0x10ec] sm:$0xf]  ;;  %v7438_v42 = vld [vmem:[%s12573_s1 + $0x10f8] sm:$0xf0]  ;;  %v7201_v40 = vor.u32 %v8309_v28, %v7198_v5 }
 0x264   : > { %5071 = vmatpush.bf16.msra.mxu1 %v7009_v45  ;;  %v8401_v30 = vld [vmem:[%s12573_s1 + $0x11ec] sm:$0xf]  ;;  %v4845_v34 = vpop.f32.mrf.mxu3  ;;  %v6817_v45 = vor.u32 %v8213_v51, %v6814_v3  ;;  %v7694_v37 = vld [vmem:[%s12573_s1 + $0x12f8] sm:$0xf0]  ;;  %v7441_v41 = vor.u32 %v8369_v7, %v7438_v42 }
 0x265   : > { %5084 = vmatpush.bf16.msra.mxu2 %v7137_v35  ;;  %v7566_v35 = vld [vmem:[%s12573_s1 + $0x11f8] sm:$0xf0]  ;;  %v8433_v36 = vld [vmem:[%s12573_s1 + $0x12ec] sm:$0xf] }
 0x266   : > { %5097 = vmatpush.bf16.msra.mxu3 %v7265_v16  ;;  %v7073_v16 = vor.u32 %v8277_v17, %v7070_v27  ;;  %v8465_v39 = vld [vmem:[%s12573_s1 + $0x13ec] sm:$0xf]  ;;  %v7822_v21 = vld [vmem:[%s12573_s1 + $0x13f8] sm:$0xf0]  ;;  %v7569_v43 = vor.u32 %v8401_v30, %v7566_v35  ;;  %v7697_v26 = vor.u32 %v8433_v36, %v7694_v37 }
 0x267   : > { %5059 = vmatpush.bf16.msra.mxu0 %v6865_v44  ;;  %v8365_v44 = vld [vmem:[%s12573_s1 + $0x10cc] sm:$0xf]  ;;  %v7825_v47 = vor.u32 %v8465_v39, %v7822_v21  ;;  %v7550_v48 = vld [vmem:[%s12573_s1 + $0x11d8] sm:$0xf0] }
 0x268   : > { %5072 = vmatpush.bf16.msra.mxu1 %v6993_v46  ;;  %v7422_v46 = vld [vmem:[%s12573_s1 + $0x10d8] sm:$0xf0]  ;;  %v8429_v49 = vld [vmem:[%s12573_s1 + $0x12cc] sm:$0xf] }
 0x269   : > { %5085 = vmatpush.bf16.msra.mxu2 %v7121_v54  ;;  %v8397_v54 = vld [vmem:[%s12573_s1 + $0x11cc] sm:$0xf]  ;;  %v7806_v53 = vld [vmem:[%s12573_s1 + $0x13d8] sm:$0xf0]  ;;  %v7425_v9 = vor.u32 %v8365_v44, %v7422_v46 }
 0x26a   : > { %5098 = vmatpush.bf16.msra.mxu3 %v7249_v62  ;;  %v7678_v62 = vld [vmem:[%s12573_s1 + $0x12d8] sm:$0xf0]  ;;  %v8461_v52 = vld [vmem:[%s12573_s1 + $0x13cc] sm:$0xf]  ;;  %v7553_v56 = vor.u32 %v8397_v54, %v7550_v48  ;;  %v12504_v54 = vld [vmem:[%s12575_s3] sm:$0xf] }
 0x26b   : > { %5060 = vmatpush.bf16.msra.mxu0 %v6849_v0  ;;  %v7681_v58 = vor.u32 %v8429_v49, %v7678_v62  ;;  %v8361_v59 = vld [vmem:[%s12573_s1 + $0x10ac] sm:$0xf]  ;;  %v7406_v63 = vld [vmem:[%s12573_s1 + $0x10b8] sm:$0xf0]  ;;  %v7809_v61 = vor.u32 %v8461_v52, %v7806_v53 }
 0x26c   : > { %5073 = vmatpush.bf16.msra.mxu1 %v6977_v8  ;;  %v8393_v60 = vld [vmem:[%s12573_s1 + $0x11ac] sm:$0xf]  ;;  %v7534_v0 = vld [vmem:[%s12573_s1 + $0x11b8] sm:$0xf0]  ;;  %v7409_v23 = vor.u32 %v8361_v59, %v7406_v63 }
 0x26d   : > { %5086 = vmatpush.bf16.msra.mxu2 %v7105_v10  ;;  %v8425_v1 = vld [vmem:[%s12573_s1 + $0x12ac] sm:$0xf]  ;;  %v7662_v8 = vld [vmem:[%s12573_s1 + $0x12b8] sm:$0xf0]  ;;  %v7537_v11 = vor.u32 %v8393_v60, %v7534_v0 }
 0x26e   : > { %5099 = vmatpush.bf16.msra.mxu3 %v7233_v18  ;;  %v7790_v10 = vld [vmem:[%s12573_s1 + $0x13b8] sm:$0xf0]  ;;  %v7665_v15 = vor.u32 %v8425_v1, %v7662_v8  ;;  %v8389_v18 = vld [vmem:[%s12573_s1 + $0x118c] sm:$0xf] }
 0x26f   : > { %5061 = vmatpush.bf16.msra.mxu0 %v6833_v24  ;;  %v7518_v19 = vld [vmem:[%s12573_s1 + $0x1198] sm:$0xf0]  ;;  %v8421_v20 = vld [vmem:[%s12573_s1 + $0x128c] sm:$0xf] }
 0x270   : > { %5074 = vmatpush.bf16.msra.mxu1 %v6961_v55  ;;  %v7646_v50 = vld [vmem:[%s12573_s1 + $0x1298] sm:$0xf0]  ;;  %v8453_v2 = vld [vmem:[%s12573_s1 + $0x138c] sm:$0xf] }
 0x271   : > { %5087 = vmatpush.bf16.msra.mxu2 %v7089_v12  ;;  %v7774_v24 = vld [vmem:[%s12573_s1 + $0x1398] sm:$0xf0]  ;;  %v7521_v12 = vor.u32 %v8389_v18, %v7518_v19  ;;  %v7649_v13 = vor.u32 %v8421_v20, %v7646_v50  ;;  %v8353_v57 = vld [vmem:[%s12573_s1 + $0x106c] sm:$0xf] }
 0x272   : > { %5100 = vmatpush.bf16.msra.mxu3 %v7217_v25  ;;  %v7374_v17 = vld [vmem:[%s12573_s1 + $0x1078] sm:$0xf0]  ;;  %v8385_v25 = vld [vmem:[%s12573_s1 + $0x116c] sm:$0xf] }
 0x273   : > { %5062 = vmatpush.bf16.msra.mxu0 %v6817_v45  ;;  %v4856_v22 = vpop.f32.mrf.mxu0  ;;  %v7502_v28 = vld [vmem:[%s12573_s1 + $0x1178] sm:$0xf0]  ;;  %v8417_v5 = vld [vmem:[%s12573_s1 + $0x126c] sm:$0xf]  ;;  %v7377_v30 = vor.u32 %v8353_v57, %v7374_v17  ;;  %v8492_v17 = vld [vmem:[#allocation1] sm:$0xff] }
 0x274   : > { %5075 = vmatpush.bf16.msra.mxu1 %v6945_v38  ;;  %v4857_v51 = vadd.f32 %v4856_v22, %v12302_v4  ;;  %v4869_v55 = vpop.f32.mrf.mxu1  ;;  %v7777_v4 = vor.u32 %v8453_v2, %v7774_v24  ;;  %v7630_v6 = vld [vmem:[%s12573_s1 + $0x1278] sm:$0xf0]  ;;  %v8449_v7 = vld [vmem:[%s12573_s1 + $0x136c] sm:$0xf]  ;;  %v7505_v34 = vor.u32 %v8385_v25, %v7502_v28 }
 0x275   : > { %5088 = vmatpush.bf16.msra.mxu2 %v7073_v16  ;;  %v7758_v42 = vld [vmem:[%s12573_s1 + $0x1378] sm:$0xf0]  ;;  %v7633_v45 = vor.u32 %v8417_v5, %v7630_v6  ;;  %v8349_v35 = vld [vmem:[%s12573_s1 + $0x104c] sm:$0xf] }
 0x276   : > { %5101 = vmatpush.bf16.msra.mxu3 %v7201_v40  ;;  %5063 = vmatmul.bf16.vlgmr.msra.gmra.mxu0 %v9235_v29  ;;  %v8457_v29 = vld [vmem:[%s12573_s1 + $0x13ac] sm:$0xf]  ;;  %v4870_v27 = vadd.f32 %v4869_v55, %v4857_v51  ;;  %v7358_v36 = vld [vmem:[%s12573_s1 + $0x1058] sm:$0xf0]  ;;  %v7761_v38 = vor.u32 %v8449_v7, %v7758_v42 }
 0x277   : > { %5107 = vmatpush.bf16.msrb.mxu0 %v7441_v41  ;;  %5076 = vmatmul.bf16.vlgmr.msra.gmra.mxu1 %v9240_v32  ;;  %v7390_v32 = vld [vmem:[%s12573_s1 + $0x1098] sm:$0xf0]  ;;  %v8381_v37 = vld [vmem:[%s12573_s1 + $0x114c] sm:$0xf]  ;;  %v7361_v48 = vor.u32 %v8349_v35, %v7358_v36 }
 0x278   : > { %5120 = vmatpush.bf16.msrb.mxu1 %v7569_v43  ;;  %5089 = vmatmul.bf16.vlgmr.msra.gmra.mxu2 %v9238_v31  ;;  %v8357_v31 = vld [vmem:[%s12573_s1 + $0x108c] sm:$0xf]  ;;  %v7486_v39 = vld [vmem:[%s12573_s1 + $0x1158] sm:$0xf0] }
 0x279   : > { %5133 = vmatpush.bf16.msrb.mxu2 %v7697_v26  ;;  %5102 = vmatmul.bf16.vlgmr.msra.gmra.mxu3 %v9242_v33  ;;  %v7793_v33 = vor.u32 %v8457_v29, %v7790_v10  ;;  %v7393_v3 = vor.u32 %v8357_v31, %v7390_v32  ;;  %v8413_v21 = vld [vmem:[%s12573_s1 + $0x124c] sm:$0xf]  ;;  %v7614_v40 = vld [vmem:[%s12573_s1 + $0x1258] sm:$0xf0]  ;;  %v7489_v52 = vor.u32 %v8381_v37, %v7486_v39 }
 0x27a   : > { %5146 = vmatpush.bf16.msrb.mxu3 %v7825_v47  ;;  %v8445_v26 = vld [vmem:[%s12573_s1 + $0x134c] sm:$0xf]  ;;  %v7742_v44 = vld [vmem:[%s12573_s1 + $0x1358] sm:$0xf0]  ;;  %v5167_v47 = vperm.slane %v12504_v54, 2  ;;  %v7617_v53 = vor.u32 %v8413_v21, %v7614_v40 }
 0x27b   : > { %5108 = vmatpush.bf16.msrb.mxu0 %v7425_v9  ;;  %v4882_v16 = vpop.f32.mrf.mxu2  ;;  %v4858_v46 = vpop.f32.mrf.mxu0  ;;  %v8345_v9 = vld [vmem:[%s12573_s1 + $0x102c] sm:$0xf]  ;;  %v7745_v59 = vor.u32 %v8445_v26, %v7742_v44  ;;  %v7470_v63 = vld [vmem:[%s12573_s1 + $0x1138] sm:$0xf0] }
 0x27c   : > { %5121 = vmatpush.bf16.msrb.mxu1 %v7553_v56  ;;  %v4883_v41 = vadd.f32 %v4882_v16, %v4870_v27  ;;  %v4895_v43 = vpop.f32.mrf.mxu3  ;;  %v4871_v49 = vpop.f32.mrf.mxu1  ;;  %v7342_v56 = vld [vmem:[%s12573_s1 + $0x1038] sm:$0xf0]  ;;  %v8409_v60 = vld [vmem:[%s12573_s1 + $0x122c] sm:$0xf] }
 0x27d   : > { %5134 = vmatpush.bf16.msrb.mxu2 %v7681_v58  ;;  %v8377_v58 = vld [vmem:[%s12573_s1 + $0x112c] sm:$0xf]  ;;  %v7726_v8 = vld [vmem:[%s12573_s1 + $0x1338] sm:$0xf0]  ;;  %v7345_v29 = vor.u32 %v8345_v9, %v7342_v56 }
 0x27e   : > { %5147 = vmatpush.bf16.msrb.mxu3 %v7809_v61  ;;  %v4896_v62 = vadd.f32 %v4895_v43, %v4883_v41  ;;  %v7598_v61 = vld [vmem:[%s12573_s1 + $0x1238] sm:$0xf0]  ;;  %v8441_v1 = vld [vmem:[%s12573_s1 + $0x132c] sm:$0xf] }
 0x27f   : > { %5109 = vmatpush.bf16.msrb.mxu0 %v7409_v23  ;;  %v7473_v23 = vor.u32 %v8377_v58, %v7470_v63  ;;  %v7326_v31 = vld [vmem:[%s12573_s1 + $0x1018] sm:$0xf0]  ;;  %v8373_v32 = vld [vmem:[%s12573_s1 + $0x110c] sm:$0xf]  ;;  %v7729_v18 = vor.u32 %v8441_v1, %v7726_v8 }
 0x280   : > { %5122 = vmatpush.bf16.msrb.mxu1 %v7537_v11  ;;  %v5161_v0 = vmax.f32 %v4896_v62, 0.0  ;;  %v7601_v11 = vor.u32 %v8409_v60, %v7598_v61  ;;  %v8405_v19 = vld [vmem:[%s12573_s1 + $0x120c] sm:$0xf]  ;;  %v7582_v20 = vld [vmem:[%s12573_s1 + $0x1218] sm:$0xf0] }
 0x281   : > { %5135 = vmatpush.bf16.msrb.mxu2 %v7665_v15  ;;  %v8341_v15 = vld [vmem:[%s12573_s1 + $0x100c] sm:$0xf]  ;;  %v7710_v2 = vld [vmem:[%s12573_s1 + $0x1318] sm:$0xf0] }
 0x282   : > { %5148 = vmatpush.bf16.msrb.mxu3 %v7793_v33  ;;  %v5175_v10 = vmul.f32 %v5167_v47, %v5161_v0  ;;  %v7454_v33 = vld [vmem:[%s12573_s1 + $0x1118] sm:$0xf0]  ;;  %v8437_v22 = vld [vmem:[%s12573_s1 + $0x130c] sm:$0xf] }
 0x283   : > { %5110 = vmatpush.bf16.msrb.mxu0 %v7393_v3  ;;  %v4884_v50 = vpop.f32.mrf.mxu2  ;;  %v7329_v3 = vor.u32 %v8341_v15, %v7326_v31  ;;  %v7713_v57 = vor.u32 %v8437_v22, %v7710_v2  ;;  %v8493_v25 = vld [vmem:[#allocation1 + $0x9] sm:$0xff]  ;;  %v8495_v27 = vld [vmem:[#allocation1 + $0x1b] sm:$0xff] }
 0x284   : > { %5123 = vmatpush.bf16.msrb.mxu1 %v7521_v12  ;;  %v4897_v24 = vpop.f32.mrf.mxu3  ;;  %v5181_v51 = vsel %vm5177_vm0, %v5175_v10, 0.0  ;;  %v7457_v12 = vor.u32 %v8373_v32, %v7454_v33 }
 0x285   : > { %5136 = vmatpush.bf16.msrb.mxu2 %v7649_v13  ;;  %v12557_v55 = vadd.f32 %v5181_v51, %v11574_v14  ;;  %v7585_v13 = vor.u32 %v8405_v19, %v7582_v20  ;;  %v8496_v14 = vld [vmem:[%s12574_s2] sm:$0xf] }
 0x286   : > { %5149 = vmatpush.bf16.msrb.mxu3 %v7777_v4  ;;  %v8494_v4 = vld [vmem:[#allocation1 + $0x12] sm:$0xff]  ;;  %v4114_v28 = vperm.slane %v8496_v14, 3 }
 0x287   : > { %5111 = vmatpush.bf16.msrb.mxu0 %v7377_v30 }
 0x288   : > { %5124 = vmatpush.bf16.msrb.mxu1 %v7505_v34 }
 0x289   : > { %5137 = vmatpush.bf16.msrb.mxu2 %v7633_v45 }
 0x28a   : > { %5150 = vmatpush.bf16.msrb.mxu3 %v7761_v38 }
 0x28b   : > { %5112 = vmatpush.bf16.msrb.mxu0 %v7361_v48 }
 0x28c   : > { %5125 = vmatpush.bf16.msrb.mxu1 %v7489_v52 }
 0x28d   : > { %5138 = vmatpush.bf16.msrb.mxu2 %v7617_v53 }
 0x28e   : > { %5151 = vmatpush.bf16.msrb.mxu3 %v7745_v59 }
 0x28f   : > { %5113 = vmatpush.bf16.msrb.mxu0 %v7345_v29 }
 0x290   : > { %5126 = vmatpush.bf16.msrb.mxu1 %v7473_v23 }
 0x291   : > { %5139 = vmatpush.bf16.msrb.mxu2 %v7601_v11 }
 0x292   : > { %5152 = vmatpush.bf16.msrb.mxu3 %v7729_v18 }
 0x293   : > { %5114 = vmatpush.bf16.msrb.mxu0 %v7329_v3  ;;  %v4908_v5 = vpop.f32.mrf.mxu0 }
 0x294   : > { %5127 = vmatpush.bf16.msrb.mxu1 %v7457_v12  ;;  %v4909_v6 = vadd.f32 %v4908_v5, %v4114_v28  ;;  %v4921_v7 = vpop.f32.mrf.mxu1 }
 0x295   : > { %5140 = vmatpush.bf16.msrb.mxu2 %v7585_v13 }
 0x296   : > { %5153 = vmatpush.bf16.msrb.mxu3 %v7713_v57  ;;  %5115 = vmatmul.bf16.vlgmr.msrb.gmra.mxu0 %v8492_v17  ;;  %v4922_v42 = vadd.f32 %v4921_v7, %v4909_v6 }
 0x297   : > { %5128 = vmatmul.bf16.vlgmr.msrb.gmra.mxu1 %v8493_v25 }
 0x298   : > { %5141 = vmatmul.bf16.vlgmr.msrb.gmra.mxu2 %v8494_v4  ;;  %v5168_v4 = vperm.slane %v12504_v54, 3 }
 0x299   : > { %5154 = vmatmul.bf16.vlgmr.msrb.gmra.mxu3 %v8495_v27 }
 0x29b   : > { %v4934_v30 = vpop.f32.mrf.mxu2  ;;  %v4910_v36 = vpop.f32.mrf.mxu0 }
 0x29c   : > { %v4935_v34 = vadd.f32 %v4934_v30, %v4922_v42  ;;  %v4947_v45 = vpop.f32.mrf.mxu3  ;;  %v4923_v37 = vpop.f32.mrf.mxu1  ;;  %v5187_v42 = vld [vmem:[#allocation2] sm:$0x1] }
 0x29e   : > { %v4948_v35 = vadd.f32 %v4947_v45, %v4935_v34 }
 0x2a3   : > { %v4936_v38 = vpop.f32.mrf.mxu2 }
 0x2a4   : > { %v4949_v16 = vpop.f32.mrf.mxu3 }
 0x2b3   : > { %v4960_v39 = vpop.f32.mrf.mxu0 }
 0x2b4   : > { %v4961_v21 = vadd.f32 %v4960_v39, %v4948_v35  ;;  %v4973_v40 = vpop.f32.mrf.mxu1 }
 0x2b6   : > { %v4974_v41 = vadd.f32 %v4973_v40, %v4961_v21 }
 0x2bb   : > { %v4986_v43 = vpop.f32.mrf.mxu2  ;;  %v4962_v47 = vpop.f32.mrf.mxu0 }
 0x2bc   : > { %v4987_v26 = vadd.f32 %v4986_v43, %v4974_v41  ;;  %v4999_v44 = vpop.f32.mrf.mxu3  ;;  %v4975_v48 = vpop.f32.mrf.mxu1 }
 0x2be   : > { %v5000_v46 = vadd.f32 %v4999_v44, %v4987_v26 }
 0x2c3   : > { %v4988_v49 = vpop.f32.mrf.mxu2 }
 0x2c4   : > { %v5001_v62 = vpop.f32.mrf.mxu3 }
 0x2d3   : > { %v5012_v52 = vpop.f32.mrf.mxu0 }
 0x2d4   : > { %v5025_v53 = vpop.f32.mrf.mxu1  ;;  %v5013_v1 = vadd.f32 %v5012_v52, %v5000_v46 }
 0x2d6   : > { %v5026_v11 = vadd.f32 %v5025_v53, %v5013_v1 }
 0x2db   : > { %v5038_v9 = vpop.f32.mrf.mxu2  ;;  %v5014_v58 = vpop.f32.mrf.mxu0 }
 0x2dc   : > { %v5051_v56 = vpop.f32.mrf.mxu3  ;;  %v5027_v59 = vpop.f32.mrf.mxu1  ;;  %v5039_v15 = vadd.f32 %v5038_v9, %v5026_v11 }
 0x2de   : > { %v5052_v18 = vadd.f32 %v5051_v56, %v5039_v15 }
 0x2e3   : > { %v5040_v63 = vpop.f32.mrf.mxu2 }
 0x2e4   : > { %v5053_v60 = vpop.f32.mrf.mxu3 }
 0x2f3   : > { %v5064_v61 = vpop.f32.mrf.mxu0 }
 0x2f4   : > { %v5077_v0 = vpop.f32.mrf.mxu1  ;;  %v5065_v33 = vadd.f32 %v5064_v61, %v5052_v18 }
 0x2f6   : > { %v5078_v19 = vadd.f32 %v5077_v0, %v5065_v33 }
 0x2fb   : > { %v5090_v8 = vpop.f32.mrf.mxu2  ;;  %v5066_v10 = vpop.f32.mrf.mxu0 }
 0x2fc   : > { %v5103_v29 = vpop.f32.mrf.mxu3  ;;  %v5079_v23 = vpop.f32.mrf.mxu1  ;;  %v5091_v20 = vadd.f32 %v5090_v8, %v5078_v19 }
 0x2fe   : > { %v5104_v50 = vadd.f32 %v5103_v29, %v5091_v20 }
 0x303   : > { %v5092_v31 = vpop.f32.mrf.mxu2 }
 0x304   : > { %v5105_v32 = vpop.f32.mrf.mxu3 }
 0x313   : > { %v5116_v22 = vpop.f32.mrf.mxu0 }
 0x314   : > { %v5129_v2 = vpop.f32.mrf.mxu1  ;;  %v5117_v24 = vadd.f32 %v5116_v22, %v5104_v50 }
 0x316   : > { %v5130_v51 = vadd.f32 %v5129_v2, %v5117_v24 }
 0x31b   : > { %v5142_v3 = vpop.f32.mrf.mxu2  ;;  %v5118_v57 = vpop.f32.mrf.mxu0 }
 0x31c   : > { %v5143_v12 = vadd.f32 %v5142_v3, %v5130_v51  ;;  %v5155_v13 = vpop.f32.mrf.mxu3  ;;  %v5131_v17 = vpop.f32.mrf.mxu1 }
 0x31e   : > { %v5156_v25 = vadd.f32 %v5155_v13, %v5143_v12 }
 0x320   : > { %v5162_v27 = vmax.f32 %v5156_v25, 0.0 }
 0x322   : > { %v5176_v14 = vmul.f32 %v5168_v4, %v5162_v27 }
 0x323   : > { %v5144_v28 = vpop.f32.mrf.mxu2 }
 0x324   : > { %v5157_v5 = vpop.f32.mrf.mxu3  ;;  %v5183_v6 = vsel %vm5177_vm0, %v5176_v14, 0.0 }
 0x325   : > { %v5184_v7 = vadd.f32 %v5183_v6, %v12557_v55 }
 0x327   : > { %5185 = vadd.xlane.f32.xlu0 %v5184_v7 }
 0x39a   : > { %v5186_v30 = vpop.xlane.xlu0 %5185 }
 0x39b   : > { %v5188_v34 = vadd.f32 %v5187_v42, %v5186_v30 }
 0x39d   : > { %v5189_v45 = vand.u32 2147483647, %v5188_v34  ;;  %vm5193_vm6 = vcmp.ge.f32.partialorder %v5188_v34, 0.0 }
 0x39f   : > { %v5190_v35 = vsub.f32 0.0, %v5189_v45 }
 0x3a1   : > { %v5191_v36 = vmul.f32 1.442695, %v5190_v35 }
 0x3a3   : > { %8477 = vpow2.f32 %v5191_v36 }
 0x3a9   : > { %v8478_v37 = vpop.eup %8477 }
 0x3aa   : > { %v5194_v38 = vadd.f32 1.0, %v8478_v37 }
 0x3ac   : > { %8479 = vrcp.f32 %v5194_v38  ;;  %v5206_v21 = vand.u32 2147483648, %v5194_v38  ;;  %v5204_v41 = vand.u32 2147483647, %v5194_v38  ;;  %vm5200_vm2 = vweird.f32 %v5194_v38 }
 0x3ae   : > { %v5207_v43 = vor.u32 1.1754944e-38, %v5206_v21  ;;  %vm5205_vm4 = vcmp.eq.f32.partialorder %v5204_v41, 8.507059e+37 }
 0x3b2   : > { %v8480_v54 = vpop.eup %8479 }
 0x3b3   : > { %v5196_v16 = vmul.f32 %v8480_v54, %v5194_v38  ;;  %vm5201_vm1 = vweird.f32 %v8480_v54 }
 0x3b4   : > { %vm5202_vm3 = vmor %vm5200_vm2, %vm5201_vm1 }
 0x3b5   : > { %v5197_v39 = vsub.f32 1.0, %v5196_v16 }
 0x3b7   : > { %v5198_v40 = vmul.f32 %v8480_v54, %v5197_v39 }
 0x3b9   : > { %v5199_v55 = vadd.f32 %v8480_v54, %v5198_v40 }
 0x3bb   : > { %v5203_v26 = vsel %vm5202_vm3, %v8480_v54, %v5199_v55 }
 0x3bc   : > { %v5208_v44 = vsel %vm5205_vm4, %v5207_v43, %v5203_v26 }
 0x3bd   : > { %v5210_v46 = vmul.f32 %v8478_v37, %v5208_v44 }
 0x3bf   : > { %v5211_v47 = vsel %vm5193_vm6, %v5208_v44, %v5210_v46 }
 0x3c0   : > { %5213 = vst.msk [vmem:[%s219_s14] sm:$0x1] %vm5212_vm5, %v5211_v47 }
 0x3c1 PF: > { %s17_s20 = sadd.s32 1, %s8503_s20  }
 0x3c2   : > { %p14_p4 = scmp.ge.s32.totalorder %s17_s20, 4  }
 0x3c4   :  { %16 = sbr.rel (!%p14_p4) target bundleno = 3 (0x3), region = 70 }

</bundles_post_ra>
